<compile_context>
chip_gen: v6e
topology: v6e:2x2x1
jax: 0.10.0
libtpu: 0.0.40
codegen_flags: <defaults>
</compile_context>

<pallas_src>
import functools

import numpy as np
import jax
import jax.numpy as jnp
from jax.experimental import pallas as pl
from jax.experimental.pallas import tpu as pltpu

_VMEM_LIMIT = 48 * 1024 * 1024   # > 16/32 MiB scoped defaults, < v7x 64 MiB physical
_BN_EPS = 1e-5


# ----------------------------------------------------------------------------
# Pallas kernel 1: 3x3 "same" conv (9 shifted bf16 matmuls, f32 accum)
#                  + per-channel sum / sum-of-squares for BatchNorm.
# Grid: (N, H_out); each step produces one output row from three halo rows.
# ----------------------------------------------------------------------------
def _conv3x3_rows_kernel(xt_ref, xm_ref, xb_ref, w_ref, b_ref,
                         y_ref, s1_ref, s2_ref):
    # xt/xm/xb: (W+2, Cin_p) bf16 rows h, h+1, h+2 of the zero-padded input.
    # w_ref:    (9, Cin_p, Cout_p) bf16      b_ref: (1, Cout_p) f32
    # y_ref:    (W, Cout_p) bf16 output row
    # s1/s2:    (1, Cout_p) f32 resident accumulators (constant block index).
    @pl.when(jnp.logical_and(pl.program_id(0) == 0, pl.program_id(1) == 0))
    def _init_stats():
        s1_ref[...] = jnp.zeros_like(s1_ref)
        s2_ref[...] = jnp.zeros_like(s2_ref)

    w_out, c_out = y_ref.shape
    acc = jnp.zeros((w_out, c_out), jnp.float32)
    rows = (xt_ref[...], xm_ref[...], xb_ref[...])
    for dy in range(3):
        r = rows[dy]
        for dx in range(3):
            acc += jnp.dot(r[dx:dx + w_out, :], w_ref[3 * dy + dx],
                           preferred_element_type=jnp.float32)
    acc += b_ref[...]                                   # conv bias (broadcast)

    # Single-pass BN statistics (kept in f32, from the f32 accumulator).
    s1_ref[...] += jnp.sum(acc, axis=0, keepdims=True)
    s2_ref[...] += jnp.sum(acc * acc, axis=0, keepdims=True)
    y_ref[...] = acc.astype(y_ref.dtype)


def conv3x3_rows(x_pad, w9, bias):
    """x_pad: (N, H+2, W+2, Cin_p) bf16 (zero-padded spatially + channels)."""
    n, hp, wp, cp = x_pad.shape
    h, w = hp - 2, wp - 2
    cout = w9.shape[2]

    def row_spec(dy):
        return pl.BlockSpec((None, None, wp, cp),
                            lambda i, j, dy=dy: (i, j + dy, 0, 0))

    y, s1, s2 = pl.pallas_call(
        _conv3x3_rows_kernel,
        grid=(n, h),
        in_specs=[row_spec(0), row_spec(1), row_spec(2),
                  pl.BlockSpec((9, cp, cout), lambda i, j: (0, 0, 0)),
                  pl.BlockSpec((1, cout), lambda i, j: (0, 0))],
        out_specs=[pl.BlockSpec((None, None, w, cout), lambda i, j: (i, j, 0, 0)),
                   pl.BlockSpec((1, cout), lambda i, j: (0, 0)),
                   pl.BlockSpec((1, cout), lambda i, j: (0, 0))],
        out_shape=[jax.ShapeDtypeStruct((n, h, w, cout), jnp.bfloat16),
                   jax.ShapeDtypeStruct((1, cout), jnp.float32),
                   jax.ShapeDtypeStruct((1, cout), jnp.float32)],
        compiler_params=pltpu.CompilerParams(
            # Stats accumulate across both axes -> must be "arbitrary".
            dimension_semantics=("arbitrary", "arbitrary"),
            vmem_limit_bytes=_VMEM_LIMIT),
    )(x_pad, x_pad, x_pad, w9, bias)
    return y, s1, s2


# ----------------------------------------------------------------------------
# Pallas kernel 2: BatchNorm (train-mode batch stats) normalize + SiLU,
# row-tiled over R = N*H*W, fully parallel.
# ----------------------------------------------------------------------------
def _bn_silu_kernel(y_ref, s1_ref, s2_ref, g_ref, b_ref, o_ref, *, inv_count):
    y = y_ref[...].astype(jnp.float32)
    mean = s1_ref[...] * inv_count
    var = jnp.maximum(s2_ref[...] * inv_count - mean * mean, 0.0)
    scale = jax.lax.rsqrt(var + _BN_EPS) * g_ref[...]
    z = (y - mean) * scale + b_ref[...]
    o_ref[...] = (z * jax.nn.sigmoid(z)).astype(o_ref.dtype)


def _pick_row_tile(r):
    for t in (1024, 512, 256, 128, 64, 32, 16, 8):
        if r % t == 0:
            return t
    return r


def bn_silu(y_flat, s1, s2, gamma, beta, count):
    r, c = y_flat.shape
    tile = _pick_row_tile(r)
    kernel = functools.partial(_bn_silu_kernel, inv_count=1.0 / float(count))
    return pl.pallas_call(
        kernel,
        grid=(r // tile,),
        in_specs=[pl.BlockSpec((tile, c), lambda i: (i, 0))]
                 + [pl.BlockSpec((1, c), lambda i: (0, 0))] * 4,
        out_specs=pl.BlockSpec((tile, c), lambda i: (i, 0)),
        out_shape=jax.ShapeDtypeStruct((r, c), jnp.bfloat16),
        compiler_params=pltpu.CompilerParams(
            dimension_semantics=("parallel",),
            vmem_limit_bytes=_VMEM_LIMIT),
    )(y_flat, s1, s2, gamma, beta)


# ----------------------------------------------------------------------------
# ConvBlock = conv kernel + BN/SiLU kernel (glue: spatial / channel zero-pad)
# ----------------------------------------------------------------------------
def conv_block(x_nhwc, params):
    n, h, w, c = x_nhwc.shape
    cin_p = params['w'].shape[1]
    cout_p = params['w'].shape[2]
    x_pad = jnp.pad(x_nhwc.astype(jnp.bfloat16),
                    ((0, 0), (1, 1), (1, 1), (0, cin_p - c)))
    y_raw, s1, s2 = conv3x3_rows(x_pad, params['w'], params['bias'])
    y = bn_silu(y_raw.reshape(n * h * w, cout_p), s1, s2,
                params['gamma'], params['beta'], n * h * w)
    return y.reshape(n, h, w, cout_p)


# ----------------------------------------------------------------------------
# Glue: PyTorch-exact bicubic upsample as a 4-tap gather (a=-0.75,
# align_corners=False, border replication via clamped taps).
# ----------------------------------------------------------------------------
def _cubic_weight(x, a=-0.75):
    x = abs(float(x))
    if x <= 1.0:
        return (a + 2.0) * x ** 3 - (a + 3.0) * x ** 2 + 1.0
    if x < 2.0:
        return a * x ** 3 - 5.0 * a * x ** 2 + 8.0 * a * x - 4.0 * a
    return 0.0


def _bicubic_taps(n_in, scale):
    n_out = int(n_in * scale)
    idx = np.zeros((n_out, 4), np.int32)
    wts = np.zeros((n_out, 4), np.float32)
    for i in range(n_out):
        src = (i + 0.5) / scale - 0.5
        i0 = int(np.floor(src))
        t = src - i0
        dists = (1.0 + t, t, 1.0 - t, 2.0 - t)
        for k in range(4):
            idx[i, k] = min(max(i0 - 1 + k, 0), n_in - 1)
            wts[i, k] = _cubic_weight(dists[k])
    return jnp.asarray(idx), jnp.asarray(wts)


def bicubic_upsample_nhwc(x, scale):
    # TODO(synk): fuse this 4-tap separable resample into the conv1 Pallas
    # kernel to drop one full HBM round trip of the upsampled activation.
    hi, hw = _bicubic_taps(x.shape[1], scale)
    wi, ww = _bicubic_taps(x.shape[2], scale)
    xh = jnp.einsum('nokwc,ok->nowc', x[:, hi, :, :], hw)
    return jnp.einsum('nopkc,pk->nopc', xh[:, :, wi, :], ww)


# ----------------------------------------------------------------------------
# Parameters (deterministic, in-script) and forward pass
# ----------------------------------------------------------------------------
def make_conv_block_params(key, cin, cout, cin_p=None, cout_p=None):
    cin_p = cin if cin_p is None else cin_p
    cout_p = cout if cout_p is None else cout_p
    k_w, k_b = jax.random.split(key)
    w = 0.1 * jax.random.normal(k_w, (3, 3, cin, cout), jnp.float32)
    b = 0.01 * jax.random.normal(k_b, (cout,), jnp.float32)
    w_p = jnp.zeros((3, 3, cin_p, cout_p), jnp.float32).at[:, :, :cin, :cout].set(w)
    bias = jnp.zeros((1, cout_p), jnp.float32).at[0, :cout].set(b)
    gamma = jnp.zeros((1, cout_p), jnp.float32).at[0, :cout].set(1.0)  # BN weight
    beta = jnp.zeros((1, cout_p), jnp.float32)                         # BN bias
    return dict(w=w_p.reshape(9, cin_p, cout_p).astype(jnp.bfloat16),
                bias=bias, gamma=gamma, beta=beta)


def upscaler_forward(x_nchw, params, scale_factor):
    x = jnp.transpose(x_nchw, (0, 2, 3, 1))              # NCHW -> NHWC
    x = bicubic_upsample_nhwc(x, scale_factor)
    x = conv_block(x, params['conv1'])                   # (N, H, W, 64)  bf16
    x = conv_block(x, params['conv2'])                   # (N, H, W, 64)  bf16
    x = conv_block(x, params['conv3'])                   # (N, H, W, 128) bf16
    x = x[..., :3].astype(jnp.float32)                   # 3 real channels
    return jnp.transpose(x, (0, 3, 1, 2))                # NHWC -> NCHW


if __name__ == "__main__":
    scale_factor = 2
    key = jax.random.PRNGKey(0)
    k_x, k1, k2, k3 = jax.random.split(key, 4)

    # PyTorch NCHW convention: (batch=2, C=3, 16, 16)
    x = jax.random.normal(k_x, (2, 3, 16, 16), jnp.float32)

    params = {
        'conv1': make_conv_block_params(k1, 3, 64, cin_p=32, cout_p=64),
        'conv2': make_conv_block_params(k2, 64, 64),
        'conv3': make_conv_block_params(k3, 64, 3, cout_p=128),
    }

    fwd = jax.jit(lambda inp: upscaler_forward(inp, params, scale_factor))
    out = jax.block_until_ready(fwd(x))

    assert out.shape == (2, 3, 16 * scale_factor, 16 * scale_factor), out.shape
    assert bool(jnp.all(jnp.isfinite(out)))
    print("KERNEL_OK")
</pallas_src>

<mosaic_0001>
module attributes {stable_mosaic.version = 11 : i64} {
  func.func @_conv3x3_rows_kernel(%arg0: i32, %arg1: i32, %arg2: memref<1x1x34x32xbf16, #tpu.memory_space<vmem>>, %arg3: memref<1x1x34x32xbf16, #tpu.memory_space<vmem>>, %arg4: memref<1x1x34x32xbf16, #tpu.memory_space<vmem>>, %arg5: memref<9x32x64xbf16, #tpu.memory_space<vmem>>, %arg6: memref<1x64xf32, #tpu.memory_space<vmem>>, %arg7: memref<1x1x32x64xbf16, #tpu.memory_space<vmem>>, %arg8: memref<1x64xf32, #tpu.memory_space<vmem>>, %arg9: memref<1x64xf32, #tpu.memory_space<vmem>>) attributes {dimension_semantics = [#tpu.dimension_semantics<arbitrary>, #tpu.dimension_semantics<arbitrary>], iteration_bounds = array<i64: 2, 32>, scalar_prefetch = 0 : i64, scratch_operands = 0 : i64, tpu.core_type = #tpu.core_type<tc>, window_params = [{transform_indices = @transform_0, window_bounds = array<i64: 1, 1, 34, 32>}, {transform_indices = @transform_1, window_bounds = array<i64: 1, 1, 34, 32>}, {transform_indices = @transform_2, window_bounds = array<i64: 1, 1, 34, 32>}, {pipeline_mode = #tpu.pipeline_mode<synchronous>, transform_indices = @transform_3, window_bounds = array<i64: 9, 32, 64>}, {pipeline_mode = #tpu.pipeline_mode<synchronous>, transform_indices = @transform_4, window_bounds = array<i64: 1, 64>}, {transform_indices = @transform_5, window_bounds = array<i64: 1, 1, 32, 64>}, {pipeline_mode = #tpu.pipeline_mode<synchronous>, transform_indices = @transform_6, window_bounds = array<i64: 1, 64>}, {pipeline_mode = #tpu.pipeline_mode<synchronous>, transform_indices = @transform_7, window_bounds = array<i64: 1, 64>}]} {
    %c0_i32 = arith.constant 0 : i32
    %0 = arith.cmpi eq, %arg0, %c0_i32 : i32
    %c0_i32_0 = arith.constant 0 : i32
    %1 = arith.cmpi eq, %arg1, %c0_i32_0 : i32
    %2 = arith.andi %0, %1 : i1
    %3 = arith.extui %2 : i1 to i32
    %c0_i32_1 = arith.constant 0 : i32
    %4 = arith.cmpi ne, %3, %c0_i32_1 : i32
    scf.if %4 {
      %cst_57 = arith.constant 0.000000e+00 : f32
      %75 = vector.broadcast %cst_57 : f32 to vector<1x64xf32>
      %c0_58 = arith.constant 0 : index
      %c0_59 = arith.constant 0 : index
      %76 = vector.load %arg8[%c0_58, %c0_59] : memref<1x64xf32, #tpu.memory_space<vmem>>, vector<1x64xf32>
      tpu.vector_store %arg8[%c0_58, %c0_59], %75 {strides = array<i32>} : memref<1x64xf32, #tpu.memory_space<vmem>>, vector<1x64xf32>,
      %cst_60 = arith.constant 0.000000e+00 : f32
      %77 = vector.broadcast %cst_60 : f32 to vector<1x64xf32>
      %c0_61 = arith.constant 0 : index
      %c0_62 = arith.constant 0 : index
      %78 = vector.load %arg9[%c0_61, %c0_62] : memref<1x64xf32, #tpu.memory_space<vmem>>, vector<1x64xf32>
      tpu.vector_store %arg9[%c0_61, %c0_62], %77 {strides = array<i32>} : memref<1x64xf32, #tpu.memory_space<vmem>>, vector<1x64xf32>,
    } else {
    }
    %cst = arith.constant 0.000000e+00 : f32
    %5 = vector.broadcast %cst : f32 to vector<32x64xf32>
    %c0 = arith.constant 0 : index
    %c0_2 = arith.constant 0 : index
    %c0_3 = arith.constant 0 : index
    %c0_4 = arith.constant 0 : index
    %6 = vector.load %arg2[%c0, %c0_2, %c0_3, %c0_4] : memref<1x1x34x32xbf16, #tpu.memory_space<vmem>>, vector<1x1x34x32xbf16>
    %7 = vector.shape_cast %6 : vector<1x1x34x32xbf16> to vector<34x32xbf16>
    %c0_5 = arith.constant 0 : index
    %c0_6 = arith.constant 0 : index
    %c0_7 = arith.constant 0 : index
    %c0_8 = arith.constant 0 : index
    %8 = vector.load %arg3[%c0_5, %c0_6, %c0_7, %c0_8] : memref<1x1x34x32xbf16, #tpu.memory_space<vmem>>, vector<1x1x34x32xbf16>
    %9 = vector.shape_cast %8 : vector<1x1x34x32xbf16> to vector<34x32xbf16>
    %c0_9 = arith.constant 0 : index
    %c0_10 = arith.constant 0 : index
    %c0_11 = arith.constant 0 : index
    %c0_12 = arith.constant 0 : index
    %10 = vector.load %arg4[%c0_9, %c0_10, %c0_11, %c0_12] : memref<1x1x34x32xbf16, #tpu.memory_space<vmem>>, vector<1x1x34x32xbf16>
    %11 = vector.shape_cast %10 : vector<1x1x34x32xbf16> to vector<34x32xbf16>
    %12 = vector.extract_strided_slice %7 {offsets = [0, 0], sizes = [32, 32], strides = [1, 1]} : vector<34x32xbf16> to vector<32x32xbf16>
    %c0_13 = arith.constant 0 : index
    %c0_14 = arith.constant 0 : index
    %c0_15 = arith.constant 0 : index
    %13 = vector.load %arg5[%c0_13, %c0_14, %c0_15] : memref<9x32x64xbf16, #tpu.memory_space<vmem>>, vector<1x32x64xbf16>
    %14 = vector.shape_cast %13 : vector<1x32x64xbf16> to vector<32x64xbf16>
    %cst_16 = arith.constant dense<0.000000e+00> : vector<32x64xf32>
    %15 = tpu.matmul %12, %14, %cst_16 {dimension_numbers = #tpu.dot_dimension_numbers<[1], [0], [0], [1], [0, 0, 1, 1], [], []>} : vector<32x32xbf16>, vector<32x64xbf16>, vector<32x64xf32> -> vector<32x64xf32>
    %16 = arith.addf %5, %15 : vector<32x64xf32>
    %17 = vector.extract_strided_slice %7 {offsets = [1, 0], sizes = [32, 32], strides = [1, 1]} : vector<34x32xbf16> to vector<32x32xbf16>
    %c1 = arith.constant 1 : index
    %c0_17 = arith.constant 0 : index
    %c0_18 = arith.constant 0 : index
    %18 = vector.load %arg5[%c1, %c0_17, %c0_18] : memref<9x32x64xbf16, #tpu.memory_space<vmem>>, vector<1x32x64xbf16>
    %19 = vector.shape_cast %18 : vector<1x32x64xbf16> to vector<32x64xbf16>
    %cst_19 = arith.constant dense<0.000000e+00> : vector<32x64xf32>
    %20 = tpu.matmul %17, %19, %cst_19 {dimension_numbers = #tpu.dot_dimension_numbers<[1], [0], [0], [1], [0, 0, 1, 1], [], []>} : vector<32x32xbf16>, vector<32x64xbf16>, vector<32x64xf32> -> vector<32x64xf32>
    %21 = arith.addf %16, %20 : vector<32x64xf32>
    %22 = vector.extract_strided_slice %7 {offsets = [2, 0], sizes = [32, 32], strides = [1, 1]} : vector<34x32xbf16> to vector<32x32xbf16>
    %c2 = arith.constant 2 : index
    %c0_20 = arith.constant 0 : index
    %c0_21 = arith.constant 0 : index
    %23 = vector.load %arg5[%c2, %c0_20, %c0_21] : memref<9x32x64xbf16, #tpu.memory_space<vmem>>, vector<1x32x64xbf16>
    %24 = vector.shape_cast %23 : vector<1x32x64xbf16> to vector<32x64xbf16>
    %cst_22 = arith.constant dense<0.000000e+00> : vector<32x64xf32>
    %25 = tpu.matmul %22, %24, %cst_22 {dimension_numbers = #tpu.dot_dimension_numbers<[1], [0], [0], [1], [0, 0, 1, 1], [], []>} : vector<32x32xbf16>, vector<32x64xbf16>, vector<32x64xf32> -> vector<32x64xf32>
    %26 = arith.addf %21, %25 : vector<32x64xf32>
    %27 = vector.extract_strided_slice %9 {offsets = [0, 0], sizes = [32, 32], strides = [1, 1]} : vector<34x32xbf16> to vector<32x32xbf16>
    %c3 = arith.constant 3 : index
    %c0_23 = arith.constant 0 : index
    %c0_24 = arith.constant 0 : index
    %28 = vector.load %arg5[%c3, %c0_23, %c0_24] : memref<9x32x64xbf16, #tpu.memory_space<vmem>>, vector<1x32x64xbf16>
    %29 = vector.shape_cast %28 : vector<1x32x64xbf16> to vector<32x64xbf16>
    %cst_25 = arith.constant dense<0.000000e+00> : vector<32x64xf32>
    %30 = tpu.matmul %27, %29, %cst_25 {dimension_numbers = #tpu.dot_dimension_numbers<[1], [0], [0], [1], [0, 0, 1, 1], [], []>} : vector<32x32xbf16>, vector<32x64xbf16>, vector<32x64xf32> -> vector<32x64xf32>
    %31 = arith.addf %26, %30 : vector<32x64xf32>
    %32 = vector.extract_strided_slice %9 {offsets = [1, 0], sizes = [32, 32], strides = [1, 1]} : vector<34x32xbf16> to vector<32x32xbf16>
    %c4 = arith.constant 4 : index
    %c0_26 = arith.constant 0 : index
    %c0_27 = arith.constant 0 : index
    %33 = vector.load %arg5[%c4, %c0_26, %c0_27] : memref<9x32x64xbf16, #tpu.memory_space<vmem>>, vector<1x32x64xbf16>
    %34 = vector.shape_cast %33 : vector<1x32x64xbf16> to vector<32x64xbf16>
    %cst_28 = arith.constant dense<0.000000e+00> : vector<32x64xf32>
    %35 = tpu.matmul %32, %34, %cst_28 {dimension_numbers = #tpu.dot_dimension_numbers<[1], [0], [0], [1], [0, 0, 1, 1], [], []>} : vector<32x32xbf16>, vector<32x64xbf16>, vector<32x64xf32> -> vector<32x64xf32>
    %36 = arith.addf %31, %35 : vector<32x64xf32>
    %37 = vector.extract_strided_slice %9 {offsets = [2, 0], sizes = [32, 32], strides = [1, 1]} : vector<34x32xbf16> to vector<32x32xbf16>
    %c5 = arith.constant 5 : index
    %c0_29 = arith.constant 0 : index
    %c0_30 = arith.constant 0 : index
    %38 = vector.load %arg5[%c5, %c0_29, %c0_30] : memref<9x32x64xbf16, #tpu.memory_space<vmem>>, vector<1x32x64xbf16>
    %39 = vector.shape_cast %38 : vector<1x32x64xbf16> to vector<32x64xbf16>
    %cst_31 = arith.constant dense<0.000000e+00> : vector<32x64xf32>
    %40 = tpu.matmul %37, %39, %cst_31 {dimension_numbers = #tpu.dot_dimension_numbers<[1], [0], [0], [1], [0, 0, 1, 1], [], []>} : vector<32x32xbf16>, vector<32x64xbf16>, vector<32x64xf32> -> vector<32x64xf32>
    %41 = arith.addf %36, %40 : vector<32x64xf32>
    %42 = vector.extract_strided_slice %11 {offsets = [0, 0], sizes = [32, 32], strides = [1, 1]} : vector<34x32xbf16> to vector<32x32xbf16>
    %c6 = arith.constant 6 : index
    %c0_32 = arith.constant 0 : index
    %c0_33 = arith.constant 0 : index
    %43 = vector.load %arg5[%c6, %c0_32, %c0_33] : memref<9x32x64xbf16, #tpu.memory_space<vmem>>, vector<1x32x64xbf16>
    %44 = vector.shape_cast %43 : vector<1x32x64xbf16> to vector<32x64xbf16>
    %cst_34 = arith.constant dense<0.000000e+00> : vector<32x64xf32>
    %45 = tpu.matmul %42, %44, %cst_34 {dimension_numbers = #tpu.dot_dimension_numbers<[1], [0], [0], [1], [0, 0, 1, 1], [], []>} : vector<32x32xbf16>, vector<32x64xbf16>, vector<32x64xf32> -> vector<32x64xf32>
    %46 = arith.addf %41, %45 : vector<32x64xf32>
    %47 = vector.extract_strided_slice %11 {offsets = [1, 0], sizes = [32, 32], strides = [1, 1]} : vector<34x32xbf16> to vector<32x32xbf16>
    %c7 = arith.constant 7 : index
    %c0_35 = arith.constant 0 : index
    %c0_36 = arith.constant 0 : index
    %48 = vector.load %arg5[%c7, %c0_35, %c0_36] : memref<9x32x64xbf16, #tpu.memory_space<vmem>>, vector<1x32x64xbf16>
    %49 = vector.shape_cast %48 : vector<1x32x64xbf16> to vector<32x64xbf16>
    %cst_37 = arith.constant dense<0.000000e+00> : vector<32x64xf32>
    %50 = tpu.matmul %47, %49, %cst_37 {dimension_numbers = #tpu.dot_dimension_numbers<[1], [0], [0], [1], [0, 0, 1, 1], [], []>} : vector<32x32xbf16>, vector<32x64xbf16>, vector<32x64xf32> -> vector<32x64xf32>
    %51 = arith.addf %46, %50 : vector<32x64xf32>
    %52 = vector.extract_strided_slice %11 {offsets = [2, 0], sizes = [32, 32], strides = [1, 1]} : vector<34x32xbf16> to vector<32x32xbf16>
    %c8 = arith.constant 8 : index
    %c0_38 = arith.constant 0 : index
    %c0_39 = arith.constant 0 : index
    %53 = vector.load %arg5[%c8, %c0_38, %c0_39] : memref<9x32x64xbf16, #tpu.memory_space<vmem>>, vector<1x32x64xbf16>
    %54 = vector.shape_cast %53 : vector<1x32x64xbf16> to vector<32x64xbf16>
    %cst_40 = arith.constant dense<0.000000e+00> : vector<32x64xf32>
    %55 = tpu.matmul %52, %54, %cst_40 {dimension_numbers = #tpu.dot_dimension_numbers<[1], [0], [0], [1], [0, 0, 1, 1], [], []>} : vector<32x32xbf16>, vector<32x64xbf16>, vector<32x64xf32> -> vector<32x64xf32>
    %56 = arith.addf %51, %55 : vector<32x64xf32>
    %c0_41 = arith.constant 0 : index
    %c0_42 = arith.constant 0 : index
    %57 = vector.load %arg6[%c0_41, %c0_42] : memref<1x64xf32, #tpu.memory_space<vmem>>, vector<1x64xf32>
    %58 = vector.broadcast %57 : vector<1x64xf32> to vector<32x64xf32>
    %59 = arith.addf %56, %58 : vector<32x64xf32>
    %c0_43 = arith.constant 0 : index
    %c0_44 = arith.constant 0 : index
    %60 = vector.load %arg8[%c0_43, %c0_44] : memref<1x64xf32, #tpu.memory_space<vmem>>, vector<1x64xf32>
    %cst_45 = arith.constant dense<0.000000e+00> : vector<64xf32>
    %61 = vector.multi_reduction <add>, %59, %cst_45 [0] : vector<32x64xf32> to vector<64xf32>
    %62 = vector.shape_cast %61 : vector<64xf32> to vector<1x64xf32>
    %63 = arith.addf %60, %62 : vector<1x64xf32>
    %c0_46 = arith.constant 0 : index
    %c0_47 = arith.constant 0 : index
    %64 = vector.load %arg8[%c0_46, %c0_47] : memref<1x64xf32, #tpu.memory_space<vmem>>, vector<1x64xf32>
    tpu.vector_store %arg8[%c0_46, %c0_47], %63 {strides = array<i32>} : memref<1x64xf32, #tpu.memory_space<vmem>>, vector<1x64xf32>,
    %c0_48 = arith.constant 0 : index
    %c0_49 = arith.constant 0 : index
    %65 = vector.load %arg9[%c0_48, %c0_49] : memref<1x64xf32, #tpu.memory_space<vmem>>, vector<1x64xf32>
    %66 = arith.mulf %59, %59 : vector<32x64xf32>
    %cst_50 = arith.constant dense<0.000000e+00> : vector<64xf32>
    %67 = vector.multi_reduction <add>, %66, %cst_50 [0] : vector<32x64xf32> to vector<64xf32>
    %68 = vector.shape_cast %67 : vector<64xf32> to vector<1x64xf32>
    %69 = arith.addf %65, %68 : vector<1x64xf32>
    %c0_51 = arith.constant 0 : index
    %c0_52 = arith.constant 0 : index
    %70 = vector.load %arg9[%c0_51, %c0_52] : memref<1x64xf32, #tpu.memory_space<vmem>>, vector<1x64xf32>
    tpu.vector_store %arg9[%c0_51, %c0_52], %69 {strides = array<i32>} : memref<1x64xf32, #tpu.memory_space<vmem>>, vector<1x64xf32>,
    %71 = arith.truncf %59 : vector<32x64xf32> to vector<32x64xbf16>
    %c0_53 = arith.constant 0 : index
    %c0_54 = arith.constant 0 : index
    %c0_55 = arith.constant 0 : index
    %c0_56 = arith.constant 0 : index
    %72 = vector.load %arg7[%c0_53, %c0_54, %c0_55, %c0_56] : memref<1x1x32x64xbf16, #tpu.memory_space<vmem>>, vector<1x1x32x64xbf16>
    %73 = vector.shape_cast %72 : vector<1x1x32x64xbf16> to vector<32x64xbf16>
    %74 = vector.shape_cast %71 : vector<32x64xbf16> to vector<1x1x32x64xbf16>
    tpu.vector_store %arg7[%c0_53, %c0_54, %c0_55, %c0_56], %74 {strides = array<i32>} : memref<1x1x32x64xbf16, #tpu.memory_space<vmem>>, vector<1x1x32x64xbf16>,
    return
  }
  func.func @transform_0(%arg0: i32, %arg1: i32) -> (i32, i32, i32, i32) {
    %c0_i32 = arith.constant 0 : i32
    %0 = arith.addi %arg1, %c0_i32 : i32
    %c0_i32_0 = arith.constant 0 : i32
    %c0_i32_1 = arith.constant 0 : i32
    %c0_i32_2 = arith.constant 0 : i32
    return %arg0, %0, %c0_i32_0, %c0_i32_1 : i32, i32, i32, i32
  }
  func.func @transform_1(%arg0: i32, %arg1: i32) -> (i32, i32, i32, i32) {
    %c1_i32 = arith.constant 1 : i32
    %0 = arith.addi %arg1, %c1_i32 : i32
    %c0_i32 = arith.constant 0 : i32
    %c0_i32_0 = arith.constant 0 : i32
    %c0_i32_1 = arith.constant 0 : i32
    return %arg0, %0, %c0_i32, %c0_i32_0 : i32, i32, i32, i32
  }
  func.func @transform_2(%arg0: i32, %arg1: i32) -> (i32, i32, i32, i32) {
    %c2_i32 = arith.constant 2 : i32
    %0 = arith.addi %arg1, %c2_i32 : i32
    %c0_i32 = arith.constant 0 : i32
    %c0_i32_0 = arith.constant 0 : i32
    %c0_i32_1 = arith.constant 0 : i32
    return %arg0, %0, %c0_i32, %c0_i32_0 : i32, i32, i32, i32
  }
  func.func @transform_3(%arg0: i32, %arg1: i32) -> (i32, i32, i32) {
    %c0_i32 = arith.constant 0 : i32
    %c0_i32_0 = arith.constant 0 : i32
    %c0_i32_1 = arith.constant 0 : i32
    %c0_i32_2 = arith.constant 0 : i32
    return %c0_i32, %c0_i32_0, %c0_i32_1 : i32, i32, i32
  }
  func.func @transform_4(%arg0: i32, %arg1: i32) -> (i32, i32) {
    %c0_i32 = arith.constant 0 : i32
    %c0_i32_0 = arith.constant 0 : i32
    %c0_i32_1 = arith.constant 0 : i32
    return %c0_i32, %c0_i32_0 : i32, i32
  }
  func.func @transform_5(%arg0: i32, %arg1: i32) -> (i32, i32, i32, i32) {
    %c0_i32 = arith.constant 0 : i32
    %c0_i32_0 = arith.constant 0 : i32
    %c0_i32_1 = arith.constant 0 : i32
    return %arg0, %arg1, %c0_i32, %c0_i32_0 : i32, i32, i32, i32
  }
  func.func @transform_6(%arg0: i32, %arg1: i32) -> (i32, i32) {
    %c0_i32 = arith.constant 0 : i32
    %c0_i32_0 = arith.constant 0 : i32
    %c0_i32_1 = arith.constant 0 : i32
    return %c0_i32, %c0_i32_0 : i32, i32
  }
  func.func @transform_7(%arg0: i32, %arg1: i32) -> (i32, i32) {
    %c0_i32 = arith.constant 0 : i32
    %c0_i32_0 = arith.constant 0 : i32
    %c0_i32_1 = arith.constant 0 : i32
    return %c0_i32, %c0_i32_0 : i32, i32
  }
}

module attributes {stable_mosaic.version = 11 : i64} {
  func.func @_bn_silu_kernel(%arg0: i32, %arg1: memref<1024x64xbf16, #tpu.memory_space<vmem>>, %arg2: memref<1x64xf32, #tpu.memory_space<vmem>>, %arg3: memref<1x64xf32, #tpu.memory_space<vmem>>, %arg4: memref<1x64xf32, #tpu.memory_space<vmem>>, %arg5: memref<1x64xf32, #tpu.memory_space<vmem>>, %arg6: memref<1024x64xbf16, #tpu.memory_space<vmem>>) attributes {dimension_semantics = [#tpu.dimension_semantics<parallel>], iteration_bounds = array<i64: 2>, scalar_prefetch = 0 : i64, scratch_operands = 0 : i64, tpu.core_type = #tpu.core_type<tc>, window_params = [{transform_indices = @transform_0, window_bounds = array<i64: 1024, 64>}, {pipeline_mode = #tpu.pipeline_mode<synchronous>, transform_indices = @transform_1, window_bounds = array<i64: 1, 64>}, {pipeline_mode = #tpu.pipeline_mode<synchronous>, transform_indices = @transform_2, window_bounds = array<i64: 1, 64>}, {pipeline_mode = #tpu.pipeline_mode<synchronous>, transform_indices = @transform_3, window_bounds = array<i64: 1, 64>}, {pipeline_mode = #tpu.pipeline_mode<synchronous>, transform_indices = @transform_4, window_bounds = array<i64: 1, 64>}, {transform_indices = @transform_5, window_bounds = array<i64: 1024, 64>}]} {
    %c0 = arith.constant 0 : index
    %c0_0 = arith.constant 0 : index
    %0 = vector.load %arg1[%c0, %c0_0] : memref<1024x64xbf16, #tpu.memory_space<vmem>>, vector<1024x64xbf16>
    %1 = arith.extf %0 : vector<1024x64xbf16> to vector<1024x64xf32>
    %c0_1 = arith.constant 0 : index
    %c0_2 = arith.constant 0 : index
    %2 = vector.load %arg2[%c0_1, %c0_2] : memref<1x64xf32, #tpu.memory_space<vmem>>, vector<1x64xf32>
    %cst = arith.constant 4.8828125E-4 : f32
    %3 = vector.broadcast %cst : f32 to vector<1x64xf32>
    %4 = arith.mulf %2, %3 : vector<1x64xf32>
    %c0_3 = arith.constant 0 : index
    %c0_4 = arith.constant 0 : index
    %5 = vector.load %arg3[%c0_3, %c0_4] : memref<1x64xf32, #tpu.memory_space<vmem>>, vector<1x64xf32>
    %cst_5 = arith.constant 4.8828125E-4 : f32
    %6 = vector.broadcast %cst_5 : f32 to vector<1x64xf32>
    %7 = arith.mulf %5, %6 : vector<1x64xf32>
    %8 = arith.mulf %4, %4 : vector<1x64xf32>
    %9 = arith.subf %7, %8 : vector<1x64xf32>
    %cst_6 = arith.constant 0.000000e+00 : f32
    %10 = vector.broadcast %cst_6 : f32 to vector<1x64xf32>
    %11 = arith.maximumf %9, %10 : vector<1x64xf32>
    %cst_7 = arith.constant 9.99999974E-6 : f32
    %12 = vector.broadcast %cst_7 : f32 to vector<1x64xf32>
    %13 = arith.addf %11, %12 : vector<1x64xf32>
    %14 = math.rsqrt %13 : vector<1x64xf32>
    %c0_8 = arith.constant 0 : index
    %c0_9 = arith.constant 0 : index
    %15 = vector.load %arg4[%c0_8, %c0_9] : memref<1x64xf32, #tpu.memory_space<vmem>>, vector<1x64xf32>
    %16 = arith.mulf %14, %15 : vector<1x64xf32>
    %17 = vector.broadcast %4 : vector<1x64xf32> to vector<1024x64xf32>
    %18 = arith.subf %1, %17 : vector<1024x64xf32>
    %19 = vector.broadcast %16 : vector<1x64xf32> to vector<1024x64xf32>
    %20 = arith.mulf %18, %19 : vector<1024x64xf32>
    %c0_10 = arith.constant 0 : index
    %c0_11 = arith.constant 0 : index
    %21 = vector.load %arg5[%c0_10, %c0_11] : memref<1x64xf32, #tpu.memory_space<vmem>>, vector<1x64xf32>
    %22 = vector.broadcast %21 : vector<1x64xf32> to vector<1024x64xf32>
    %23 = arith.addf %20, %22 : vector<1024x64xf32>
    %24 = arith.negf %23 : vector<1024x64xf32>
    %25 = math.exp %24 : vector<1024x64xf32>
    %cst_12 = arith.constant 1.000000e+00 : f32
    %26 = vector.broadcast %cst_12 : f32 to vector<1024x64xf32>
    %27 = arith.addf %26, %25 : vector<1024x64xf32>
    %28 = arith.divf %26, %27 : vector<1024x64xf32>
    %29 = arith.mulf %23, %28 : vector<1024x64xf32>
    %30 = arith.truncf %29 : vector<1024x64xf32> to vector<1024x64xbf16>
    %c0_13 = arith.constant 0 : index
    %c0_14 = arith.constant 0 : index
    %31 = vector.load %arg6[%c0_13, %c0_14] : memref<1024x64xbf16, #tpu.memory_space<vmem>>, vector<1024x64xbf16>
    tpu.vector_store %arg6[%c0_13, %c0_14], %30 {strides = array<i32>} : memref<1024x64xbf16, #tpu.memory_space<vmem>>, vector<1024x64xbf16>,
    return
  }
  func.func @transform_0(%arg0: i32) -> (i32, i32) {
    %c0_i32 = arith.constant 0 : i32
    %c0_i32_0 = arith.constant 0 : i32
    return %arg0, %c0_i32 : i32, i32
  }
  func.func @transform_1(%arg0: i32) -> (i32, i32) {
    %c0_i32 = arith.constant 0 : i32
    %c0_i32_0 = arith.constant 0 : i32
    %c0_i32_1 = arith.constant 0 : i32
    return %c0_i32, %c0_i32_0 : i32, i32
  }
  func.func @transform_2(%arg0: i32) -> (i32, i32) {
    %c0_i32 = arith.constant 0 : i32
    %c0_i32_0 = arith.constant 0 : i32
    %c0_i32_1 = arith.constant 0 : i32
    return %c0_i32, %c0_i32_0 : i32, i32
  }
  func.func @transform_3(%arg0: i32) -> (i32, i32) {
    %c0_i32 = arith.constant 0 : i32
    %c0_i32_0 = arith.constant 0 : i32
    %c0_i32_1 = arith.constant 0 : i32
    return %c0_i32, %c0_i32_0 : i32, i32
  }
  func.func @transform_4(%arg0: i32) -> (i32, i32) {
    %c0_i32 = arith.constant 0 : i32
    %c0_i32_0 = arith.constant 0 : i32
    %c0_i32_1 = arith.constant 0 : i32
    return %c0_i32, %c0_i32_0 : i32, i32
  }
  func.func @transform_5(%arg0: i32) -> (i32, i32) {
    %c0_i32 = arith.constant 0 : i32
    %c0_i32_0 = arith.constant 0 : i32
    return %arg0, %c0_i32 : i32, i32
  }
}

module attributes {stable_mosaic.version = 11 : i64} {
  func.func @_conv3x3_rows_kernel(%arg0: i32, %arg1: i32, %arg2: memref<1x1x34x64xbf16, #tpu.memory_space<vmem>>, %arg3: memref<1x1x34x64xbf16, #tpu.memory_space<vmem>>, %arg4: memref<1x1x34x64xbf16, #tpu.memory_space<vmem>>, %arg5: memref<9x64x64xbf16, #tpu.memory_space<vmem>>, %arg6: memref<1x64xf32, #tpu.memory_space<vmem>>, %arg7: memref<1x1x32x64xbf16, #tpu.memory_space<vmem>>, %arg8: memref<1x64xf32, #tpu.memory_space<vmem>>, %arg9: memref<1x64xf32, #tpu.memory_space<vmem>>) attributes {dimension_semantics = [#tpu.dimension_semantics<arbitrary>, #tpu.dimension_semantics<arbitrary>], iteration_bounds = array<i64: 2, 32>, scalar_prefetch = 0 : i64, scratch_operands = 0 : i64, tpu.core_type = #tpu.core_type<tc>, window_params = [{transform_indices = @transform_0, window_bounds = array<i64: 1, 1, 34, 64>}, {transform_indices = @transform_1, window_bounds = array<i64: 1, 1, 34, 64>}, {transform_indices = @transform_2, window_bounds = array<i64: 1, 1, 34, 64>}, {pipeline_mode = #tpu.pipeline_mode<synchronous>, transform_indices = @transform_3, window_bounds = array<i64: 9, 64, 64>}, {pipeline_mode = #tpu.pipeline_mode<synchronous>, transform_indices = @transform_4, window_bounds = array<i64: 1, 64>}, {transform_indices = @transform_5, window_bounds = array<i64: 1, 1, 32, 64>}, {pipeline_mode = #tpu.pipeline_mode<synchronous>, transform_indices = @transform_6, window_bounds = array<i64: 1, 64>}, {pipeline_mode = #tpu.pipeline_mode<synchronous>, transform_indices = @transform_7, window_bounds = array<i64: 1, 64>}]} {
    %c0_i32 = arith.constant 0 : i32
    %0 = arith.cmpi eq, %arg0, %c0_i32 : i32
    %c0_i32_0 = arith.constant 0 : i32
    %1 = arith.cmpi eq, %arg1, %c0_i32_0 : i32
    %2 = arith.andi %0, %1 : i1
    %3 = arith.extui %2 : i1 to i32
    %c0_i32_1 = arith.constant 0 : i32
    %4 = arith.cmpi ne, %3, %c0_i32_1 : i32
    scf.if %4 {
      %cst_57 = arith.constant 0.000000e+00 : f32
      %75 = vector.broadcast %cst_57 : f32 to vector<1x64xf32>
      %c0_58 = arith.constant 0 : index
      %c0_59 = arith.constant 0 : index
      %76 = vector.load %arg8[%c0_58, %c0_59] : memref<1x64xf32, #tpu.memory_space<vmem>>, vector<1x64xf32>
      tpu.vector_store %arg8[%c0_58, %c0_59], %75 {strides = array<i32>} : memref<1x64xf32, #tpu.memory_space<vmem>>, vector<1x64xf32>,
      %cst_60 = arith.constant 0.000000e+00 : f32
      %77 = vector.broadcast %cst_60 : f32 to vector<1x64xf32>
      %c0_61 = arith.constant 0 : index
      %c0_62 = arith.constant 0 : index
      %78 = vector.load %arg9[%c0_61, %c0_62] : memref<1x64xf32, #tpu.memory_space<vmem>>, vector<1x64xf32>
      tpu.vector_store %arg9[%c0_61, %c0_62], %77 {strides = array<i32>} : memref<1x64xf32, #tpu.memory_space<vmem>>, vector<1x64xf32>,
    } else {
    }
    %cst = arith.constant 0.000000e+00 : f32
    %5 = vector.broadcast %cst : f32 to vector<32x64xf32>
    %c0 = arith.constant 0 : index
    %c0_2 = arith.constant 0 : index
    %c0_3 = arith.constant 0 : index
    %c0_4 = arith.constant 0 : index
    %6 = vector.load %arg2[%c0, %c0_2, %c0_3, %c0_4] : memref<1x1x34x64xbf16, #tpu.memory_space<vmem>>, vector<1x1x34x64xbf16>
    %7 = vector.shape_cast %6 : vector<1x1x34x64xbf16> to vector<34x64xbf16>
    %c0_5 = arith.constant 0 : index
    %c0_6 = arith.constant 0 : index
    %c0_7 = arith.constant 0 : index
    %c0_8 = arith.constant 0 : index
    %8 = vector.load %arg3[%c0_5, %c0_6, %c0_7, %c0_8] : memref<1x1x34x64xbf16, #tpu.memory_space<vmem>>, vector<1x1x34x64xbf16>
    %9 = vector.shape_cast %8 : vector<1x1x34x64xbf16> to vector<34x64xbf16>
    %c0_9 = arith.constant 0 : index
    %c0_10 = arith.constant 0 : index
    %c0_11 = arith.constant 0 : index
    %c0_12 = arith.constant 0 : index
    %10 = vector.load %arg4[%c0_9, %c0_10, %c0_11, %c0_12] : memref<1x1x34x64xbf16, #tpu.memory_space<vmem>>, vector<1x1x34x64xbf16>
    %11 = vector.shape_cast %10 : vector<1x1x34x64xbf16> to vector<34x64xbf16>
    %12 = vector.extract_strided_slice %7 {offsets = [0, 0], sizes = [32, 64], strides = [1, 1]} : vector<34x64xbf16> to vector<32x64xbf16>
    %c0_13 = arith.constant 0 : index
    %c0_14 = arith.constant 0 : index
    %c0_15 = arith.constant 0 : index
    %13 = vector.load %arg5[%c0_13, %c0_14, %c0_15] : memref<9x64x64xbf16, #tpu.memory_space<vmem>>, vector<1x64x64xbf16>
    %14 = vector.shape_cast %13 : vector<1x64x64xbf16> to vector<64x64xbf16>
    %cst_16 = arith.constant dense<0.000000e+00> : vector<32x64xf32>
    %15 = tpu.matmul %12, %14, %cst_16 {dimension_numbers = #tpu.dot_dimension_numbers<[1], [0], [0], [1], [0, 0, 1, 1], [], []>} : vector<32x64xbf16>, vector<64x64xbf16>, vector<32x64xf32> -> vector<32x64xf32>
    %16 = arith.addf %5, %15 : vector<32x64xf32>
    %17 = vector.extract_strided_slice %7 {offsets = [1, 0], sizes = [32, 64], strides = [1, 1]} : vector<34x64xbf16> to vector<32x64xbf16>
    %c1 = arith.constant 1 : index
    %c0_17 = arith.constant 0 : index
    %c0_18 = arith.constant 0 : index
    %18 = vector.load %arg5[%c1, %c0_17, %c0_18] : memref<9x64x64xbf16, #tpu.memory_space<vmem>>, vector<1x64x64xbf16>
    %19 = vector.shape_cast %18 : vector<1x64x64xbf16> to vector<64x64xbf16>
    %cst_19 = arith.constant dense<0.000000e+00> : vector<32x64xf32>
    %20 = tpu.matmul %17, %19, %cst_19 {dimension_numbers = #tpu.dot_dimension_numbers<[1], [0], [0], [1], [0, 0, 1, 1], [], []>} : vector<32x64xbf16>, vector<64x64xbf16>, vector<32x64xf32> -> vector<32x64xf32>
    %21 = arith.addf %16, %20 : vector<32x64xf32>
    %22 = vector.extract_strided_slice %7 {offsets = [2, 0], sizes = [32, 64], strides = [1, 1]} : vector<34x64xbf16> to vector<32x64xbf16>
    %c2 = arith.constant 2 : index
    %c0_20 = arith.constant 0 : index
    %c0_21 = arith.constant 0 : index
    %23 = vector.load %arg5[%c2, %c0_20, %c0_21] : memref<9x64x64xbf16, #tpu.memory_space<vmem>>, vector<1x64x64xbf16>
    %24 = vector.shape_cast %23 : vector<1x64x64xbf16> to vector<64x64xbf16>
    %cst_22 = arith.constant dense<0.000000e+00> : vector<32x64xf32>
    %25 = tpu.matmul %22, %24, %cst_22 {dimension_numbers = #tpu.dot_dimension_numbers<[1], [0], [0], [1], [0, 0, 1, 1], [], []>} : vector<32x64xbf16>, vector<64x64xbf16>, vector<32x64xf32> -> vector<32x64xf32>
    %26 = arith.addf %21, %25 : vector<32x64xf32>
    %27 = vector.extract_strided_slice %9 {offsets = [0, 0], sizes = [32, 64], strides = [1, 1]} : vector<34x64xbf16> to vector<32x64xbf16>
    %c3 = arith.constant 3 : index
    %c0_23 = arith.constant 0 : index
    %c0_24 = arith.constant 0 : index
    %28 = vector.load %arg5[%c3, %c0_23, %c0_24] : memref<9x64x64xbf16, #tpu.memory_space<vmem>>, vector<1x64x64xbf16>
    %29 = vector.shape_cast %28 : vector<1x64x64xbf16> to vector<64x64xbf16>
    %cst_25 = arith.constant dense<0.000000e+00> : vector<32x64xf32>
    %30 = tpu.matmul %27, %29, %cst_25 {dimension_numbers = #tpu.dot_dimension_numbers<[1], [0], [0], [1], [0, 0, 1, 1], [], []>} : vector<32x64xbf16>, vector<64x64xbf16>, vector<32x64xf32> -> vector<32x64xf32>
    %31 = arith.addf %26, %30 : vector<32x64xf32>
    %32 = vector.extract_strided_slice %9 {offsets = [1, 0], sizes = [32, 64], strides = [1, 1]} : vector<34x64xbf16> to vector<32x64xbf16>
    %c4 = arith.constant 4 : index
    %c0_26 = arith.constant 0 : index
    %c0_27 = arith.constant 0 : index
    %33 = vector.load %arg5[%c4, %c0_26, %c0_27] : memref<9x64x64xbf16, #tpu.memory_space<vmem>>, vector<1x64x64xbf16>
    %34 = vector.shape_cast %33 : vector<1x64x64xbf16> to vector<64x64xbf16>
    %cst_28 = arith.constant dense<0.000000e+00> : vector<32x64xf32>
    %35 = tpu.matmul %32, %34, %cst_28 {dimension_numbers = #tpu.dot_dimension_numbers<[1], [0], [0], [1], [0, 0, 1, 1], [], []>} : vector<32x64xbf16>, vector<64x64xbf16>, vector<32x64xf32> -> vector<32x64xf32>
    %36 = arith.addf %31, %35 : vector<32x64xf32>
    %37 = vector.extract_strided_slice %9 {offsets = [2, 0], sizes = [32, 64], strides = [1, 1]} : vector<34x64xbf16> to vector<32x64xbf16>
    %c5 = arith.constant 5 : index
    %c0_29 = arith.constant 0 : index
    %c0_30 = arith.constant 0 : index
    %38 = vector.load %arg5[%c5, %c0_29, %c0_30] : memref<9x64x64xbf16, #tpu.memory_space<vmem>>, vector<1x64x64xbf16>
    %39 = vector.shape_cast %38 : vector<1x64x64xbf16> to vector<64x64xbf16>
    %cst_31 = arith.constant dense<0.000000e+00> : vector<32x64xf32>
    %40 = tpu.matmul %37, %39, %cst_31 {dimension_numbers = #tpu.dot_dimension_numbers<[1], [0], [0], [1], [0, 0, 1, 1], [], []>} : vector<32x64xbf16>, vector<64x64xbf16>, vector<32x64xf32> -> vector<32x64xf32>
    %41 = arith.addf %36, %40 : vector<32x64xf32>
    %42 = vector.extract_strided_slice %11 {offsets = [0, 0], sizes = [32, 64], strides = [1, 1]} : vector<34x64xbf16> to vector<32x64xbf16>
    %c6 = arith.constant 6 : index
    %c0_32 = arith.constant 0 : index
    %c0_33 = arith.constant 0 : index
    %43 = vector.load %arg5[%c6, %c0_32, %c0_33] : memref<9x64x64xbf16, #tpu.memory_space<vmem>>, vector<1x64x64xbf16>
    %44 = vector.shape_cast %43 : vector<1x64x64xbf16> to vector<64x64xbf16>
    %cst_34 = arith.constant dense<0.000000e+00> : vector<32x64xf32>
    %45 = tpu.matmul %42, %44, %cst_34 {dimension_numbers = #tpu.dot_dimension_numbers<[1], [0], [0], [1], [0, 0, 1, 1], [], []>} : vector<32x64xbf16>, vector<64x64xbf16>, vector<32x64xf32> -> vector<32x64xf32>
    %46 = arith.addf %41, %45 : vector<32x64xf32>
    %47 = vector.extract_strided_slice %11 {offsets = [1, 0], sizes = [32, 64], strides = [1, 1]} : vector<34x64xbf16> to vector<32x64xbf16>
    %c7 = arith.constant 7 : index
    %c0_35 = arith.constant 0 : index
    %c0_36 = arith.constant 0 : index
    %48 = vector.load %arg5[%c7, %c0_35, %c0_36] : memref<9x64x64xbf16, #tpu.memory_space<vmem>>, vector<1x64x64xbf16>
    %49 = vector.shape_cast %48 : vector<1x64x64xbf16> to vector<64x64xbf16>
    %cst_37 = arith.constant dense<0.000000e+00> : vector<32x64xf32>
    %50 = tpu.matmul %47, %49, %cst_37 {dimension_numbers = #tpu.dot_dimension_numbers<[1], [0], [0], [1], [0, 0, 1, 1], [], []>} : vector<32x64xbf16>, vector<64x64xbf16>, vector<32x64xf32> -> vector<32x64xf32>
    %51 = arith.addf %46, %50 : vector<32x64xf32>
    %52 = vector.extract_strided_slice %11 {offsets = [2, 0], sizes = [32, 64], strides = [1, 1]} : vector<34x64xbf16> to vector<32x64xbf16>
    %c8 = arith.constant 8 : index
    %c0_38 = arith.constant 0 : index
    %c0_39 = arith.constant 0 : index
    %53 = vector.load %arg5[%c8, %c0_38, %c0_39] : memref<9x64x64xbf16, #tpu.memory_space<vmem>>, vector<1x64x64xbf16>
    %54 = vector.shape_cast %53 : vector<1x64x64xbf16> to vector<64x64xbf16>
    %cst_40 = arith.constant dense<0.000000e+00> : vector<32x64xf32>
    %55 = tpu.matmul %52, %54, %cst_40 {dimension_numbers = #tpu.dot_dimension_numbers<[1], [0], [0], [1], [0, 0, 1, 1], [], []>} : vector<32x64xbf16>, vector<64x64xbf16>, vector<32x64xf32> -> vector<32x64xf32>
    %56 = arith.addf %51, %55 : vector<32x64xf32>
    %c0_41 = arith.constant 0 : index
    %c0_42 = arith.constant 0 : index
    %57 = vector.load %arg6[%c0_41, %c0_42] : memref<1x64xf32, #tpu.memory_space<vmem>>, vector<1x64xf32>
    %58 = vector.broadcast %57 : vector<1x64xf32> to vector<32x64xf32>
    %59 = arith.addf %56, %58 : vector<32x64xf32>
    %c0_43 = arith.constant 0 : index
    %c0_44 = arith.constant 0 : index
    %60 = vector.load %arg8[%c0_43, %c0_44] : memref<1x64xf32, #tpu.memory_space<vmem>>, vector<1x64xf32>
    %cst_45 = arith.constant dense<0.000000e+00> : vector<64xf32>
    %61 = vector.multi_reduction <add>, %59, %cst_45 [0] : vector<32x64xf32> to vector<64xf32>
    %62 = vector.shape_cast %61 : vector<64xf32> to vector<1x64xf32>
    %63 = arith.addf %60, %62 : vector<1x64xf32>
    %c0_46 = arith.constant 0 : index
    %c0_47 = arith.constant 0 : index
    %64 = vector.load %arg8[%c0_46, %c0_47] : memref<1x64xf32, #tpu.memory_space<vmem>>, vector<1x64xf32>
    tpu.vector_store %arg8[%c0_46, %c0_47], %63 {strides = array<i32>} : memref<1x64xf32, #tpu.memory_space<vmem>>, vector<1x64xf32>,
    %c0_48 = arith.constant 0 : index
    %c0_49 = arith.constant 0 : index
    %65 = vector.load %arg9[%c0_48, %c0_49] : memref<1x64xf32, #tpu.memory_space<vmem>>, vector<1x64xf32>
    %66 = arith.mulf %59, %59 : vector<32x64xf32>
    %cst_50 = arith.constant dense<0.000000e+00> : vector<64xf32>
    %67 = vector.multi_reduction <add>, %66, %cst_50 [0] : vector<32x64xf32> to vector<64xf32>
    %68 = vector.shape_cast %67 : vector<64xf32> to vector<1x64xf32>
    %69 = arith.addf %65, %68 : vector<1x64xf32>
    %c0_51 = arith.constant 0 : index
    %c0_52 = arith.constant 0 : index
    %70 = vector.load %arg9[%c0_51, %c0_52] : memref<1x64xf32, #tpu.memory_space<vmem>>, vector<1x64xf32>
    tpu.vector_store %arg9[%c0_51, %c0_52], %69 {strides = array<i32>} : memref<1x64xf32, #tpu.memory_space<vmem>>, vector<1x64xf32>,
    %71 = arith.truncf %59 : vector<32x64xf32> to vector<32x64xbf16>
    %c0_53 = arith.constant 0 : index
    %c0_54 = arith.constant 0 : index
    %c0_55 = arith.constant 0 : index
    %c0_56 = arith.constant 0 : index
    %72 = vector.load %arg7[%c0_53, %c0_54, %c0_55, %c0_56] : memref<1x1x32x64xbf16, #tpu.memory_space<vmem>>, vector<1x1x32x64xbf16>
    %73 = vector.shape_cast %72 : vector<1x1x32x64xbf16> to vector<32x64xbf16>
    %74 = vector.shape_cast %71 : vector<32x64xbf16> to vector<1x1x32x64xbf16>
    tpu.vector_store %arg7[%c0_53, %c0_54, %c0_55, %c0_56], %74 {strides = array<i32>} : memref<1x1x32x64xbf16, #tpu.memory_space<vmem>>, vector<1x1x32x64xbf16>,
    return
  }
  func.func @transform_0(%arg0: i32, %arg1: i32) -> (i32, i32, i32, i32) {
    %c0_i32 = arith.constant 0 : i32
    %0 = arith.addi %arg1, %c0_i32 : i32
    %c0_i32_0 = arith.constant 0 : i32
    %c0_i32_1 = arith.constant 0 : i32
    %c0_i32_2 = arith.constant 0 : i32
    return %arg0, %0, %c0_i32_0, %c0_i32_1 : i32, i32, i32, i32
  }
  func.func @transform_1(%arg0: i32, %arg1: i32) -> (i32, i32, i32, i32) {
    %c1_i32 = arith.constant 1 : i32
    %0 = arith.addi %arg1, %c1_i32 : i32
    %c0_i32 = arith.constant 0 : i32
    %c0_i32_0 = arith.constant 0 : i32
    %c0_i32_1 = arith.constant 0 : i32
    return %arg0, %0, %c0_i32, %c0_i32_0 : i32, i32, i32, i32
  }
  func.func @transform_2(%arg0: i32, %arg1: i32) -> (i32, i32, i32, i32) {
    %c2_i32 = arith.constant 2 : i32
    %0 = arith.addi %arg1, %c2_i32 : i32
    %c0_i32 = arith.constant 0 : i32
    %c0_i32_0 = arith.constant 0 : i32
    %c0_i32_1 = arith.constant 0 : i32
    return %arg0, %0, %c0_i32, %c0_i32_0 : i32, i32, i32, i32
  }
  func.func @transform_3(%arg0: i32, %arg1: i32) -> (i32, i32, i32) {
    %c0_i32 = arith.constant 0 : i32
    %c0_i32_0 = arith.constant 0 : i32
    %c0_i32_1 = arith.constant 0 : i32
    %c0_i32_2 = arith.constant 0 : i32
    return %c0_i32, %c0_i32_0, %c0_i32_1 : i32, i32, i32
  }
  func.func @transform_4(%arg0: i32, %arg1: i32) -> (i32, i32) {
    %c0_i32 = arith.constant 0 : i32
    %c0_i32_0 = arith.constant 0 : i32
    %c0_i32_1 = arith.constant 0 : i32
    return %c0_i32, %c0_i32_0 : i32, i32
  }
  func.func @transform_5(%arg0: i32, %arg1: i32) -> (i32, i32, i32, i32) {
    %c0_i32 = arith.constant 0 : i32
    %c0_i32_0 = arith.constant 0 : i32
    %c0_i32_1 = arith.constant 0 : i32
    return %arg0, %arg1, %c0_i32, %c0_i32_0 : i32, i32, i32, i32
  }
  func.func @transform_6(%arg0: i32, %arg1: i32) -> (i32, i32) {
    %c0_i32 = arith.constant 0 : i32
    %c0_i32_0 = arith.constant 0 : i32
    %c0_i32_1 = arith.constant 0 : i32
    return %c0_i32, %c0_i32_0 : i32, i32
  }
  func.func @transform_7(%arg0: i32, %arg1: i32) -> (i32, i32) {
    %c0_i32 = arith.constant 0 : i32
    %c0_i32_0 = arith.constant 0 : i32
    %c0_i32_1 = arith.constant 0 : i32
    return %c0_i32, %c0_i32_0 : i32, i32
  }
}

module attributes {stable_mosaic.version = 11 : i64} {
  func.func @_conv3x3_rows_kernel(%arg0: i32, %arg1: i32, %arg2: memref<1x1x34x64xbf16, #tpu.memory_space<vmem>>, %arg3: memref<1x1x34x64xbf16, #tpu.memory_space<vmem>>, %arg4: memref<1x1x34x64xbf16, #tpu.memory_space<vmem>>, %arg5: memref<9x64x128xbf16, #tpu.memory_space<vmem>>, %arg6: memref<1x128xf32, #tpu.memory_space<vmem>>, %arg7: memref<1x1x32x128xbf16, #tpu.memory_space<vmem>>, %arg8: memref<1x128xf32, #tpu.memory_space<vmem>>, %arg9: memref<1x128xf32, #tpu.memory_space<vmem>>) attributes {dimension_semantics = [#tpu.dimension_semantics<arbitrary>, #tpu.dimension_semantics<arbitrary>], iteration_bounds = array<i64: 2, 32>, scalar_prefetch = 0 : i64, scratch_operands = 0 : i64, tpu.core_type = #tpu.core_type<tc>, window_params = [{transform_indices = @transform_0, window_bounds = array<i64: 1, 1, 34, 64>}, {transform_indices = @transform_1, window_bounds = array<i64: 1, 1, 34, 64>}, {transform_indices = @transform_2, window_bounds = array<i64: 1, 1, 34, 64>}, {pipeline_mode = #tpu.pipeline_mode<synchronous>, transform_indices = @transform_3, window_bounds = array<i64: 9, 64, 128>}, {pipeline_mode = #tpu.pipeline_mode<synchronous>, transform_indices = @transform_4, window_bounds = array<i64: 1, 128>}, {transform_indices = @transform_5, window_bounds = array<i64: 1, 1, 32, 128>}, {pipeline_mode = #tpu.pipeline_mode<synchronous>, transform_indices = @transform_6, window_bounds = array<i64: 1, 128>}, {pipeline_mode = #tpu.pipeline_mode<synchronous>, transform_indices = @transform_7, window_bounds = array<i64: 1, 128>}]} {
    %c0_i32 = arith.constant 0 : i32
    %0 = arith.cmpi eq, %arg0, %c0_i32 : i32
    %c0_i32_0 = arith.constant 0 : i32
    %1 = arith.cmpi eq, %arg1, %c0_i32_0 : i32
    %2 = arith.andi %0, %1 : i1
    %3 = arith.extui %2 : i1 to i32
    %c0_i32_1 = arith.constant 0 : i32
    %4 = arith.cmpi ne, %3, %c0_i32_1 : i32
    scf.if %4 {
      %cst_57 = arith.constant 0.000000e+00 : f32
      %75 = vector.broadcast %cst_57 : f32 to vector<1x128xf32>
      %c0_58 = arith.constant 0 : index
      %c0_59 = arith.constant 0 : index
      %76 = vector.load %arg8[%c0_58, %c0_59] : memref<1x128xf32, #tpu.memory_space<vmem>>, vector<1x128xf32>
      tpu.vector_store %arg8[%c0_58, %c0_59], %75 {strides = array<i32>} : memref<1x128xf32, #tpu.memory_space<vmem>>, vector<1x128xf32>,
      %cst_60 = arith.constant 0.000000e+00 : f32
      %77 = vector.broadcast %cst_60 : f32 to vector<1x128xf32>
      %c0_61 = arith.constant 0 : index
      %c0_62 = arith.constant 0 : index
      %78 = vector.load %arg9[%c0_61, %c0_62] : memref<1x128xf32, #tpu.memory_space<vmem>>, vector<1x128xf32>
      tpu.vector_store %arg9[%c0_61, %c0_62], %77 {strides = array<i32>} : memref<1x128xf32, #tpu.memory_space<vmem>>, vector<1x128xf32>,
    } else {
    }
    %cst = arith.constant 0.000000e+00 : f32
    %5 = vector.broadcast %cst : f32 to vector<32x128xf32>
    %c0 = arith.constant 0 : index
    %c0_2 = arith.constant 0 : index
    %c0_3 = arith.constant 0 : index
    %c0_4 = arith.constant 0 : index
    %6 = vector.load %arg2[%c0, %c0_2, %c0_3, %c0_4] : memref<1x1x34x64xbf16, #tpu.memory_space<vmem>>, vector<1x1x34x64xbf16>
    %7 = vector.shape_cast %6 : vector<1x1x34x64xbf16> to vector<34x64xbf16>
    %c0_5 = arith.constant 0 : index
    %c0_6 = arith.constant 0 : index
    %c0_7 = arith.constant 0 : index
    %c0_8 = arith.constant 0 : index
    %8 = vector.load %arg3[%c0_5, %c0_6, %c0_7, %c0_8] : memref<1x1x34x64xbf16, #tpu.memory_space<vmem>>, vector<1x1x34x64xbf16>
    %9 = vector.shape_cast %8 : vector<1x1x34x64xbf16> to vector<34x64xbf16>
    %c0_9 = arith.constant 0 : index
    %c0_10 = arith.constant 0 : index
    %c0_11 = arith.constant 0 : index
    %c0_12 = arith.constant 0 : index
    %10 = vector.load %arg4[%c0_9, %c0_10, %c0_11, %c0_12] : memref<1x1x34x64xbf16, #tpu.memory_space<vmem>>, vector<1x1x34x64xbf16>
    %11 = vector.shape_cast %10 : vector<1x1x34x64xbf16> to vector<34x64xbf16>
    %12 = vector.extract_strided_slice %7 {offsets = [0, 0], sizes = [32, 64], strides = [1, 1]} : vector<34x64xbf16> to vector<32x64xbf16>
    %c0_13 = arith.constant 0 : index
    %c0_14 = arith.constant 0 : index
    %c0_15 = arith.constant 0 : index
    %13 = vector.load %arg5[%c0_13, %c0_14, %c0_15] : memref<9x64x128xbf16, #tpu.memory_space<vmem>>, vector<1x64x128xbf16>
    %14 = vector.shape_cast %13 : vector<1x64x128xbf16> to vector<64x128xbf16>
    %cst_16 = arith.constant dense<0.000000e+00> : vector<32x128xf32>
    %15 = tpu.matmul %12, %14, %cst_16 {dimension_numbers = #tpu.dot_dimension_numbers<[1], [0], [0], [1], [0, 0, 1, 1], [], []>} : vector<32x64xbf16>, vector<64x128xbf16>, vector<32x128xf32> -> vector<32x128xf32>
    %16 = arith.addf %5, %15 : vector<32x128xf32>
    %17 = vector.extract_strided_slice %7 {offsets = [1, 0], sizes = [32, 64], strides = [1, 1]} : vector<34x64xbf16> to vector<32x64xbf16>
    %c1 = arith.constant 1 : index
    %c0_17 = arith.constant 0 : index
    %c0_18 = arith.constant 0 : index
    %18 = vector.load %arg5[%c1, %c0_17, %c0_18] : memref<9x64x128xbf16, #tpu.memory_space<vmem>>, vector<1x64x128xbf16>
    %19 = vector.shape_cast %18 : vector<1x64x128xbf16> to vector<64x128xbf16>
    %cst_19 = arith.constant dense<0.000000e+00> : vector<32x128xf32>
    %20 = tpu.matmul %17, %19, %cst_19 {dimension_numbers = #tpu.dot_dimension_numbers<[1], [0], [0], [1], [0, 0, 1, 1], [], []>} : vector<32x64xbf16>, vector<64x128xbf16>, vector<32x128xf32> -> vector<32x128xf32>
    %21 = arith.addf %16, %20 : vector<32x128xf32>
    %22 = vector.extract_strided_slice %7 {offsets = [2, 0], sizes = [32, 64], strides = [1, 1]} : vector<34x64xbf16> to vector<32x64xbf16>
    %c2 = arith.constant 2 : index
    %c0_20 = arith.constant 0 : index
    %c0_21 = arith.constant 0 : index
    %23 = vector.load %arg5[%c2, %c0_20, %c0_21] : memref<9x64x128xbf16, #tpu.memory_space<vmem>>, vector<1x64x128xbf16>
    %24 = vector.shape_cast %23 : vector<1x64x128xbf16> to vector<64x128xbf16>
    %cst_22 = arith.constant dense<0.000000e+00> : vector<32x128xf32>
    %25 = tpu.matmul %22, %24, %cst_22 {dimension_numbers = #tpu.dot_dimension_numbers<[1], [0], [0], [1], [0, 0, 1, 1], [], []>} : vector<32x64xbf16>, vector<64x128xbf16>, vector<32x128xf32> -> vector<32x128xf32>
    %26 = arith.addf %21, %25 : vector<32x128xf32>
    %27 = vector.extract_strided_slice %9 {offsets = [0, 0], sizes = [32, 64], strides = [1, 1]} : vector<34x64xbf16> to vector<32x64xbf16>
    %c3 = arith.constant 3 : index
    %c0_23 = arith.constant 0 : index
    %c0_24 = arith.constant 0 : index
    %28 = vector.load %arg5[%c3, %c0_23, %c0_24] : memref<9x64x128xbf16, #tpu.memory_space<vmem>>, vector<1x64x128xbf16>
    %29 = vector.shape_cast %28 : vector<1x64x128xbf16> to vector<64x128xbf16>
    %cst_25 = arith.constant dense<0.000000e+00> : vector<32x128xf32>
    %30 = tpu.matmul %27, %29, %cst_25 {dimension_numbers = #tpu.dot_dimension_numbers<[1], [0], [0], [1], [0, 0, 1, 1], [], []>} : vector<32x64xbf16>, vector<64x128xbf16>, vector<32x128xf32> -> vector<32x128xf32>
    %31 = arith.addf %26, %30 : vector<32x128xf32>
    %32 = vector.extract_strided_slice %9 {offsets = [1, 0], sizes = [32, 64], strides = [1, 1]} : vector<34x64xbf16> to vector<32x64xbf16>
    %c4 = arith.constant 4 : index
    %c0_26 = arith.constant 0 : index
    %c0_27 = arith.constant 0 : index
    %33 = vector.load %arg5[%c4, %c0_26, %c0_27] : memref<9x64x128xbf16, #tpu.memory_space<vmem>>, vector<1x64x128xbf16>
    %34 = vector.shape_cast %33 : vector<1x64x128xbf16> to vector<64x128xbf16>
    %cst_28 = arith.constant dense<0.000000e+00> : vector<32x128xf32>
    %35 = tpu.matmul %32, %34, %cst_28 {dimension_numbers = #tpu.dot_dimension_numbers<[1], [0], [0], [1], [0, 0, 1, 1], [], []>} : vector<32x64xbf16>, vector<64x128xbf16>, vector<32x128xf32> -> vector<32x128xf32>
    %36 = arith.addf %31, %35 : vector<32x128xf32>
    %37 = vector.extract_strided_slice %9 {offsets = [2, 0], sizes = [32, 64], strides = [1, 1]} : vector<34x64xbf16> to vector<32x64xbf16>
    %c5 = arith.constant 5 : index
    %c0_29 = arith.constant 0 : index
    %c0_30 = arith.constant 0 : index
    %38 = vector.load %arg5[%c5, %c0_29, %c0_30] : memref<9x64x128xbf16, #tpu.memory_space<vmem>>, vector<1x64x128xbf16>
    %39 = vector.shape_cast %38 : vector<1x64x128xbf16> to vector<64x128xbf16>
    %cst_31 = arith.constant dense<0.000000e+00> : vector<32x128xf32>
    %40 = tpu.matmul %37, %39, %cst_31 {dimension_numbers = #tpu.dot_dimension_numbers<[1], [0], [0], [1], [0, 0, 1, 1], [], []>} : vector<32x64xbf16>, vector<64x128xbf16>, vector<32x128xf32> -> vector<32x128xf32>
    %41 = arith.addf %36, %40 : vector<32x128xf32>
    %42 = vector.extract_strided_slice %11 {offsets = [0, 0], sizes = [32, 64], strides = [1, 1]} : vector<34x64xbf16> to vector<32x64xbf16>
    %c6 = arith.constant 6 : index
    %c0_32 = arith.constant 0 : index
    %c0_33 = arith.constant 0 : index
    %43 = vector.load %arg5[%c6, %c0_32, %c0_33] : memref<9x64x128xbf16, #tpu.memory_space<vmem>>, vector<1x64x128xbf16>
    %44 = vector.shape_cast %43 : vector<1x64x128xbf16> to vector<64x128xbf16>
    %cst_34 = arith.constant dense<0.000000e+00> : vector<32x128xf32>
    %45 = tpu.matmul %42, %44, %cst_34 {dimension_numbers = #tpu.dot_dimension_numbers<[1], [0], [0], [1], [0, 0, 1, 1], [], []>} : vector<32x64xbf16>, vector<64x128xbf16>, vector<32x128xf32> -> vector<32x128xf32>
    %46 = arith.addf %41, %45 : vector<32x128xf32>
    %47 = vector.extract_strided_slice %11 {offsets = [1, 0], sizes = [32, 64], strides = [1, 1]} : vector<34x64xbf16> to vector<32x64xbf16>
    %c7 = arith.constant 7 : index
    %c0_35 = arith.constant 0 : index
    %c0_36 = arith.constant 0 : index
    %48 = vector.load %arg5[%c7, %c0_35, %c0_36] : memref<9x64x128xbf16, #tpu.memory_space<vmem>>, vector<1x64x128xbf16>
    %49 = vector.shape_cast %48 : vector<1x64x128xbf16> to vector<64x128xbf16>
    %cst_37 = arith.constant dense<0.000000e+00> : vector<32x128xf32>
    %50 = tpu.matmul %47, %49, %cst_37 {dimension_numbers = #tpu.dot_dimension_numbers<[1], [0], [0], [1], [0, 0, 1, 1], [], []>} : vector<32x64xbf16>, vector<64x128xbf16>, vector<32x128xf32> -> vector<32x128xf32>
    %51 = arith.addf %46, %50 : vector<32x128xf32>
    %52 = vector.extract_strided_slice %11 {offsets = [2, 0], sizes = [32, 64], strides = [1, 1]} : vector<34x64xbf16> to vector<32x64xbf16>
    %c8 = arith.constant 8 : index
    %c0_38 = arith.constant 0 : index
    %c0_39 = arith.constant 0 : index
    %53 = vector.load %arg5[%c8, %c0_38, %c0_39] : memref<9x64x128xbf16, #tpu.memory_space<vmem>>, vector<1x64x128xbf16>
    %54 = vector.shape_cast %53 : vector<1x64x128xbf16> to vector<64x128xbf16>
    %cst_40 = arith.constant dense<0.000000e+00> : vector<32x128xf32>
    %55 = tpu.matmul %52, %54, %cst_40 {dimension_numbers = #tpu.dot_dimension_numbers<[1], [0], [0], [1], [0, 0, 1, 1], [], []>} : vector<32x64xbf16>, vector<64x128xbf16>, vector<32x128xf32> -> vector<32x128xf32>
    %56 = arith.addf %51, %55 : vector<32x128xf32>
    %c0_41 = arith.constant 0 : index
    %c0_42 = arith.constant 0 : index
    %57 = vector.load %arg6[%c0_41, %c0_42] : memref<1x128xf32, #tpu.memory_space<vmem>>, vector<1x128xf32>
    %58 = vector.broadcast %57 : vector<1x128xf32> to vector<32x128xf32>
    %59 = arith.addf %56, %58 : vector<32x128xf32>
    %c0_43 = arith.constant 0 : index
    %c0_44 = arith.constant 0 : index
    %60 = vector.load %arg8[%c0_43, %c0_44] : memref<1x128xf32, #tpu.memory_space<vmem>>, vector<1x128xf32>
    %cst_45 = arith.constant dense<0.000000e+00> : vector<128xf32>
    %61 = vector.multi_reduction <add>, %59, %cst_45 [0] : vector<32x128xf32> to vector<128xf32>
    %62 = vector.shape_cast %61 : vector<128xf32> to vector<1x128xf32>
    %63 = arith.addf %60, %62 : vector<1x128xf32>
    %c0_46 = arith.constant 0 : index
    %c0_47 = arith.constant 0 : index
    %64 = vector.load %arg8[%c0_46, %c0_47] : memref<1x128xf32, #tpu.memory_space<vmem>>, vector<1x128xf32>
    tpu.vector_store %arg8[%c0_46, %c0_47], %63 {strides = array<i32>} : memref<1x128xf32, #tpu.memory_space<vmem>>, vector<1x128xf32>,
    %c0_48 = arith.constant 0 : index
    %c0_49 = arith.constant 0 : index
    %65 = vector.load %arg9[%c0_48, %c0_49] : memref<1x128xf32, #tpu.memory_space<vmem>>, vector<1x128xf32>
    %66 = arith.mulf %59, %59 : vector<32x128xf32>
    %cst_50 = arith.constant dense<0.000000e+00> : vector<128xf32>
    %67 = vector.multi_reduction <add>, %66, %cst_50 [0] : vector<32x128xf32> to vector<128xf32>
    %68 = vector.shape_cast %67 : vector<128xf32> to vector<1x128xf32>
    %69 = arith.addf %65, %68 : vector<1x128xf32>
    %c0_51 = arith.constant 0 : index
    %c0_52 = arith.constant 0 : index
    %70 = vector.load %arg9[%c0_51, %c0_52] : memref<1x128xf32, #tpu.memory_space<vmem>>, vector<1x128xf32>
    tpu.vector_store %arg9[%c0_51, %c0_52], %69 {strides = array<i32>} : memref<1x128xf32, #tpu.memory_space<vmem>>, vector<1x128xf32>,
    %71 = arith.truncf %59 : vector<32x128xf32> to vector<32x128xbf16>
    %c0_53 = arith.constant 0 : index
    %c0_54 = arith.constant 0 : index
    %c0_55 = arith.constant 0 : index
    %c0_56 = arith.constant 0 : index
    %72 = vector.load %arg7[%c0_53, %c0_54, %c0_55, %c0_56] : memref<1x1x32x128xbf16, #tpu.memory_space<vmem>>, vector<1x1x32x128xbf16>
    %73 = vector.shape_cast %72 : vector<1x1x32x128xbf16> to vector<32x128xbf16>
    %74 = vector.shape_cast %71 : vector<32x128xbf16> to vector<1x1x32x128xbf16>
    tpu.vector_store %arg7[%c0_53, %c0_54, %c0_55, %c0_56], %74 {strides = array<i32>} : memref<1x1x32x128xbf16, #tpu.memory_space<vmem>>, vector<1x1x32x128xbf16>,
    return
  }
  func.func @transform_0(%arg0: i32, %arg1: i32) -> (i32, i32, i32, i32) {
    %c0_i32 = arith.constant 0 : i32
    %0 = arith.addi %arg1, %c0_i32 : i32
    %c0_i32_0 = arith.constant 0 : i32
    %c0_i32_1 = arith.constant 0 : i32
    %c0_i32_2 = arith.constant 0 : i32
    return %arg0, %0, %c0_i32_0, %c0_i32_1 : i32, i32, i32, i32
  }
  func.func @transform_1(%arg0: i32, %arg1: i32) -> (i32, i32, i32, i32) {
    %c1_i32 = arith.constant 1 : i32
    %0 = arith.addi %arg1, %c1_i32 : i32
    %c0_i32 = arith.constant 0 : i32
    %c0_i32_0 = arith.constant 0 : i32
    %c0_i32_1 = arith.constant 0 : i32
    return %arg0, %0, %c0_i32, %c0_i32_0 : i32, i32, i32, i32
  }
  func.func @transform_2(%arg0: i32, %arg1: i32) -> (i32, i32, i32, i32) {
    %c2_i32 = arith.constant 2 : i32
    %0 = arith.addi %arg1, %c2_i32 : i32
    %c0_i32 = arith.constant 0 : i32
    %c0_i32_0 = arith.constant 0 : i32
    %c0_i32_1 = arith.constant 0 : i32
    return %arg0, %0, %c0_i32, %c0_i32_0 : i32, i32, i32, i32
  }
  func.func @transform_3(%arg0: i32, %arg1: i32) -> (i32, i32, i32) {
    %c0_i32 = arith.constant 0 : i32
    %c0_i32_0 = arith.constant 0 : i32
    %c0_i32_1 = arith.constant 0 : i32
    %c0_i32_2 = arith.constant 0 : i32
    return %c0_i32, %c0_i32_0, %c0_i32_1 : i32, i32, i32
  }
  func.func @transform_4(%arg0: i32, %arg1: i32) -> (i32, i32) {
    %c0_i32 = arith.constant 0 : i32
    %c0_i32_0 = arith.constant 0 : i32
    %c0_i32_1 = arith.constant 0 : i32
    return %c0_i32, %c0_i32_0 : i32, i32
  }
  func.func @transform_5(%arg0: i32, %arg1: i32) -> (i32, i32, i32, i32) {
    %c0_i32 = arith.constant 0 : i32
    %c0_i32_0 = arith.constant 0 : i32
    %c0_i32_1 = arith.constant 0 : i32
    return %arg0, %arg1, %c0_i32, %c0_i32_0 : i32, i32, i32, i32
  }
  func.func @transform_6(%arg0: i32, %arg1: i32) -> (i32, i32) {
    %c0_i32 = arith.constant 0 : i32
    %c0_i32_0 = arith.constant 0 : i32
    %c0_i32_1 = arith.constant 0 : i32
    return %c0_i32, %c0_i32_0 : i32, i32
  }
  func.func @transform_7(%arg0: i32, %arg1: i32) -> (i32, i32) {
    %c0_i32 = arith.constant 0 : i32
    %c0_i32_0 = arith.constant 0 : i32
    %c0_i32_1 = arith.constant 0 : i32
    return %c0_i32, %c0_i32_0 : i32, i32
  }
}

module attributes {stable_mosaic.version = 11 : i64} {
  func.func @_bn_silu_kernel(%arg0: i32, %arg1: memref<1024x128xbf16, #tpu.memory_space<vmem>>, %arg2: memref<1x128xf32, #tpu.memory_space<vmem>>, %arg3: memref<1x128xf32, #tpu.memory_space<vmem>>, %arg4: memref<1x128xf32, #tpu.memory_space<vmem>>, %arg5: memref<1x128xf32, #tpu.memory_space<vmem>>, %arg6: memref<1024x128xbf16, #tpu.memory_space<vmem>>) attributes {dimension_semantics = [#tpu.dimension_semantics<parallel>], iteration_bounds = array<i64: 2>, scalar_prefetch = 0 : i64, scratch_operands = 0 : i64, tpu.core_type = #tpu.core_type<tc>, window_params = [{transform_indices = @transform_0, window_bounds = array<i64: 1024, 128>}, {pipeline_mode = #tpu.pipeline_mode<synchronous>, transform_indices = @transform_1, window_bounds = array<i64: 1, 128>}, {pipeline_mode = #tpu.pipeline_mode<synchronous>, transform_indices = @transform_2, window_bounds = array<i64: 1, 128>}, {pipeline_mode = #tpu.pipeline_mode<synchronous>, transform_indices = @transform_3, window_bounds = array<i64: 1, 128>}, {pipeline_mode = #tpu.pipeline_mode<synchronous>, transform_indices = @transform_4, window_bounds = array<i64: 1, 128>}, {transform_indices = @transform_5, window_bounds = array<i64: 1024, 128>}]} {
    %c0 = arith.constant 0 : index
    %c0_0 = arith.constant 0 : index
    %0 = vector.load %arg1[%c0, %c0_0] : memref<1024x128xbf16, #tpu.memory_space<vmem>>, vector<1024x128xbf16>
    %1 = arith.extf %0 : vector<1024x128xbf16> to vector<1024x128xf32>
    %c0_1 = arith.constant 0 : index
    %c0_2 = arith.constant 0 : index
    %2 = vector.load %arg2[%c0_1, %c0_2] : memref<1x128xf32, #tpu.memory_space<vmem>>, vector<1x128xf32>
    %cst = arith.constant 4.8828125E-4 : f32
    %3 = vector.broadcast %cst : f32 to vector<1x128xf32>
    %4 = arith.mulf %2, %3 : vector<1x128xf32>
    %c0_3 = arith.constant 0 : index
    %c0_4 = arith.constant 0 : index
    %5 = vector.load %arg3[%c0_3, %c0_4] : memref<1x128xf32, #tpu.memory_space<vmem>>, vector<1x128xf32>
    %cst_5 = arith.constant 4.8828125E-4 : f32
    %6 = vector.broadcast %cst_5 : f32 to vector<1x128xf32>
    %7 = arith.mulf %5, %6 : vector<1x128xf32>
    %8 = arith.mulf %4, %4 : vector<1x128xf32>
    %9 = arith.subf %7, %8 : vector<1x128xf32>
    %cst_6 = arith.constant 0.000000e+00 : f32
    %10 = vector.broadcast %cst_6 : f32 to vector<1x128xf32>
    %11 = arith.maximumf %9, %10 : vector<1x128xf32>
    %cst_7 = arith.constant 9.99999974E-6 : f32
    %12 = vector.broadcast %cst_7 : f32 to vector<1x128xf32>
    %13 = arith.addf %11, %12 : vector<1x128xf32>
    %14 = math.rsqrt %13 : vector<1x128xf32>
    %c0_8 = arith.constant 0 : index
    %c0_9 = arith.constant 0 : index
    %15 = vector.load %arg4[%c0_8, %c0_9] : memref<1x128xf32, #tpu.memory_space<vmem>>, vector<1x128xf32>
    %16 = arith.mulf %14, %15 : vector<1x128xf32>
    %17 = vector.broadcast %4 : vector<1x128xf32> to vector<1024x128xf32>
    %18 = arith.subf %1, %17 : vector<1024x128xf32>
    %19 = vector.broadcast %16 : vector<1x128xf32> to vector<1024x128xf32>
    %20 = arith.mulf %18, %19 : vector<1024x128xf32>
    %c0_10 = arith.constant 0 : index
    %c0_11 = arith.constant 0 : index
    %21 = vector.load %arg5[%c0_10, %c0_11] : memref<1x128xf32, #tpu.memory_space<vmem>>, vector<1x128xf32>
    %22 = vector.broadcast %21 : vector<1x128xf32> to vector<1024x128xf32>
    %23 = arith.addf %20, %22 : vector<1024x128xf32>
    %24 = arith.negf %23 : vector<1024x128xf32>
    %25 = math.exp %24 : vector<1024x128xf32>
    %cst_12 = arith.constant 1.000000e+00 : f32
    %26 = vector.broadcast %cst_12 : f32 to vector<1024x128xf32>
    %27 = arith.addf %26, %25 : vector<1024x128xf32>
    %28 = arith.divf %26, %27 : vector<1024x128xf32>
    %29 = arith.mulf %23, %28 : vector<1024x128xf32>
    %30 = arith.truncf %29 : vector<1024x128xf32> to vector<1024x128xbf16>
    %c0_13 = arith.constant 0 : index
    %c0_14 = arith.constant 0 : index
    %31 = vector.load %arg6[%c0_13, %c0_14] : memref<1024x128xbf16, #tpu.memory_space<vmem>>, vector<1024x128xbf16>
    tpu.vector_store %arg6[%c0_13, %c0_14], %30 {strides = array<i32>} : memref<1024x128xbf16, #tpu.memory_space<vmem>>, vector<1024x128xbf16>,
    return
  }
  func.func @transform_0(%arg0: i32) -> (i32, i32) {
    %c0_i32 = arith.constant 0 : i32
    %c0_i32_0 = arith.constant 0 : i32
    return %arg0, %c0_i32 : i32, i32
  }
  func.func @transform_1(%arg0: i32) -> (i32, i32) {
    %c0_i32 = arith.constant 0 : i32
    %c0_i32_0 = arith.constant 0 : i32
    %c0_i32_1 = arith.constant 0 : i32
    return %c0_i32, %c0_i32_0 : i32, i32
  }
  func.func @transform_2(%arg0: i32) -> (i32, i32) {
    %c0_i32 = arith.constant 0 : i32
    %c0_i32_0 = arith.constant 0 : i32
    %c0_i32_1 = arith.constant 0 : i32
    return %c0_i32, %c0_i32_0 : i32, i32
  }
  func.func @transform_3(%arg0: i32) -> (i32, i32) {
    %c0_i32 = arith.constant 0 : i32
    %c0_i32_0 = arith.constant 0 : i32
    %c0_i32_1 = arith.constant 0 : i32
    return %c0_i32, %c0_i32_0 : i32, i32
  }
  func.func @transform_4(%arg0: i32) -> (i32, i32) {
    %c0_i32 = arith.constant 0 : i32
    %c0_i32_0 = arith.constant 0 : i32
    %c0_i32_1 = arith.constant 0 : i32
    return %c0_i32, %c0_i32_0 : i32, i32
  }
  func.func @transform_5(%arg0: i32) -> (i32, i32) {
    %c0_i32 = arith.constant 0 : i32
    %c0_i32_0 = arith.constant 0 : i32
    return %arg0, %c0_i32 : i32, i32
  }
}

</mosaic_0001>

<bundles_post_ra>
// kernel: _lambda_.6
= control target key start
LH: loop header
LB: loop body
LE: loop exit
PB: predicated region body
PF: predicated region fallthrough
CT: control target
= control target key end

     0   :  { %s1782_s24 = smov 0   ;;  %s1784_s25 = smov 0   ;;  %s1991_s0 = inlined_call_operand.vmem [shape: bf16[2,34,34,32], index: 0, kind: input, shape index: {}, may-alias: {0,1,2}]   ;;  %s1992_s1 = inlined_call_operand.vmem [shape: bf16[2,34,34,32], index: 1, kind: input, shape index: {}, may-alias: {0,1,2}]   ;;  %s1993_s2 = inlined_call_operand.vmem [shape: bf16[2,34,34,32], index: 2, kind: input, shape index: {}, may-alias: {0,1,2}]   ;;  %s1994_s3 = inlined_call_operand.vmem [shape: bf16[9,32,64], index: 3, kind: input, shape index: {}]   ;;  %s1995_s4 = inlined_call_operand.vmem [shape: f32[1,64], index: 4, kind: input, shape index: {}]   ;;  %s1996_s5 = inlined_call_operand.vmem [shape: bf16[2,32,32,64], index: 5, kind: output, shape index: {0}]   ;;  %s1997_s6 = inlined_call_operand.vmem [shape: f32[1,64], index: 6, kind: output, shape index: {1}]   ;;  %s1998_s7 = inlined_call_operand.vmem [shape: f32[1,64], index: 7, kind: output, shape index: {2}]  }
   0x1   :  { %1999 = sst [smem:[#allocation4_spill]] %s1991_s0  ;;  %s1786_s26 = smov 0  }
   0x2   :  { %s1788_s27 = smov 0   ;;  %s1790_s28 = smov 0  }
   0x3 LB: > { %s27_s29 = sadd.s32 1, %s1731_s26  ;;  %s30_s30 = sadd.s32 1, %s1735_s27  ;;  %s1739_s28 = sphi %s1790_s28, %s18_s28   ;;  %s1735_s27 = sphi %s1788_s27, %s2008_s27   ;;  %s1731_s26 = sphi %s1786_s26, %s2007_s26   ;;  %s1727_s25 = sphi %s1784_s25, %s2006_s25   ;;  %s1723_s24 = sphi %s1782_s24, %s2005_s24  }
   0x4   : > { %p28_p0 = scmp.ge.s32.totalorder %s27_s29, 32  ;;  %p1426_p1 = scmp.ge.s32.totalorder %s1739_s28, 1 }
   0x5   : > { %p292_p2 = scmp.lt.s32.totalorder %s1739_s28, 65 }
   0x6   : > { %s2010_s29 = smov (%p28_p0, %s27_s29), 0  ;;  %s2012_s30 = smov (!%p28_p0, %s30_s30), %s1735_s27 }
   0x7   : > { %2000 = sst [smem:[#allocation2_spill]] %s2010_s29  ;;  %p293_p3 = pnand %p1426_p1, %p292_p2 }
   0x8   : > { %p32_p4 = scmp.ge.s32.totalorder %s2012_s30, 2  ;;  %p352_p5 = scmp.lt.s32.totalorder (!%p293_p3), %s1727_s25, 1 }
   0x9   : > { %296 = sbr.rel (%p293_p3) target bundleno = 306 (0x132), region = 40  ;;  %p354_p6 = scmp.lt.s32.totalorder (!%p293_p3), %s1723_s24, 33 }
   0xa   : > { %s2014_s30 = smov (%p32_p4, %s2012_s30), 0  ;;  %s361_s8 = sadd.s32 (!%p293_p3), 1, %s1723_s24 }
   0xb   : > { %2001 = sst [smem:[#allocation3_spill]] %s2014_s30  ;;  %s372_s9 = sadd.s32 (!%p293_p3), 2, %s1723_s24 }
   0xc   : > { %p364_p7 = scmp.lt.s32.totalorder (!%p293_p3), %s361_s8, 33  ;;  %p375_p8 = scmp.lt.s32.totalorder (!%p293_p3), %s372_s9, 33 }
   0xd   : > { %s2002_s0 = sld [smem:[#allocation4_spill]] (!%p293_p3)  ;;  %p385_p9 = scmp.lt.s32.totalorder (!%p293_p3), %s1723_s24, 31 }
   0xe   : > { %s353_s10 = scalar_select %p352_p5, %s1727_s25, 1 }
   0xf   : > { %s355_s11 = scalar_select %p354_p6, %s1723_s24, 33 }
  0x10   : > { %s1630_s12 = smul.u32 170, %s353_s10  ;;  %s2016_s8 = smov (!%p364_p7, %s361_s8), 33 }
  0x11   : > { %s1629_s13 = smul.u32 5, %s355_s11  ;;  %p393_p10 = scmp.eq.s32.totalorder %s1727_s25, 0 }
  0x12   : > { %s1631_s16 = smul.u32 5, %s2016_s8  ;;  %p394_p11 = scmp.eq.s32.totalorder %s1723_s24, 0 }
  0x13   : > { %s358_s14 = sadd.s32 %s1630_s12, %s1629_s13  ;;  %s1431_s11 = sshll.u32 %s353_s10, 7 }
  0x14   : > { %s1427_s15 = sshll.u32 %s358_s14, 2  ;;  %s368_s20 = sadd.s32 %s1631_s16, %s1630_s12 }
  0x15   : > { %s1825_s19 = scalar_lea.vmem %s2002_s0, %s1427_s15  ;;  %s1428_s21 = sshll.u32 %s368_s20, 2 }
  0x16   : > { %s1833_s30 = scalar_lea.vmem %s1992_s1, %s1428_s21  ;;  %s2018_s9 = smov (!%p375_p8, %s372_s9), 33 }
  0x17   : > { %s2020_s24 = smov (!%p385_p9, %s1723_s24), 31  ;;  %s1632_s13 = smul.u32 5, %s2018_s9 }
  0x18   : > { %p395_p12 = pnand %p394_p11, %p393_p10  ;;  %s1430_s8 = sshll.u32 %s2020_s24, 2 }
  0x19   : > { %s379_s14 = sadd.s32 %s1632_s13, %s1630_s12  ;;  %s389_s17 = sadd.s32 %s1431_s11, %s1430_s8 }
  0x1a   : > { %s1429_s15 = sshll.u32 %s379_s14, 2  ;;  %s1432_s18 = sshll.u32 %s389_s17, 2 }
  0x1b   : > { %s1839_s25 = scalar_lea.vmem %s1993_s2, %s1429_s15  ;;  %s1844_s21 = scalar_lea.vmem %s1996_s5, %s1432_s18 }
  0x1c   : > { %398 = sbr.rel (%p395_p12) target bundleno = 35 (0x23), region = 44 }
  0x21   : > { %vm399_vm0 = vcmask 516096   ;;  %v1741_v0 = vmov 0.0  }
  0x22   : > { %400 = vst.msk [vmem:[%s1997_s6] sm:$0x1] %vm399_vm0, %v1741_v0  ;;  %401 = vst.msk [vmem:[%s1998_s7] sm:$0x1] %vm399_vm0, %v1741_v0 }
  0x23 PF: > { %v1674_v1 = vld [vmem:[%s1994_s3 + $0x18] sm:$0xff]   ;;  %v1675_v2 = vld [vmem:[%s1994_s3 + $0x8] sm:$0xff]   ;;  %v1676_v3 = vld [vmem:[%s1994_s3 + $0x10] sm:$0xff]   ;;  %vm472_vm1 = vcmask 261120   ;;  %vm439_vm2 = vsmask.f32 7424 }
  0x24   : > { %1557 = vmatprep.subr.bf16.mxu0 %v1674_v1  ;;  %1565 = vmatprep.subr.bf16.mxu1 %v1675_v2  ;;  %v1677_v4 = vld [vmem:[%s1994_s3] sm:$0xff]   ;;  %v1679_v6 = vld [vmem:[%s1825_s19 + $0x8] sm:$0xff]   ;;  %v1680_v7 = vld [vmem:[%s1825_s19 + $0x10] ss:$0 sps:$4 sm:$0x11]   ;;  %vm598_vm3 = vcmask 1046528  }
  0x25   : > { %1558 = vmatpush3.bf16.msra.mxu0 %v1674_v1  ;;  %1566 = vmatpush3.bf16.msra.mxu1 %v1675_v2  ;;  %v1678_v5 = vld [vmem:[%s1825_s19] sm:$0xff]   ;;  %v1681_v8 = vld [vmem:[%s1994_s3 + $0x28] sm:$0xff]   ;;  %v448_v11 = vshll.u32 %v1679_v6, 16  ;;  %v452_v12 = vshrl.u32 %v1679_v6, 16  ;;  %v456_v13 = vshll.u32 %v1680_v7, 16  ;;  %v1682_v14 = vld [vmem:[%s1994_s3 + $0x38] sm:$0xff]  }
  0x26   : > { %1559 = vmatprep.subr.bf16.mxu0 %v1676_v3  ;;  %1567 = vmatprep.subr.bf16.mxu1 %v1677_v4  ;;  %v441_v9 = vshrl.u32 %v1678_v5, 16  ;;  %v443_v10 = vshll.u32 %v1678_v5, 16  ;;  %v1684_v20 = vld [vmem:[%s1994_s3 + $0x30] sm:$0xff]   ;;  %v599_v21 = vrot.slane %v1678_v5, 1  ;;  %v600_v22 = vrot.slane %v1679_v6, 1  ;;  %v1685_v23 = vld [vmem:[%s1833_s30] sm:$0xff]  }
  0x27   : > { %1569 = vmatprep.mubr.msk.bf16.mxu1 %vm472_vm1, %v1678_v5  ;;  %v450_v16 = vrot.slane %v448_v11, 1  ;;  %v458_v17 = vrot.slane %v456_v13, 1  ;;  %v1683_v24 = vld [vmem:[%s1994_s3 + $0x20] sm:$0xff]   ;;  %v1687_v28 = vld [vmem:[%s1833_s30 + $0x8] sm:$0xff]   ;;  %v769_v29 = vshrl.u32 %v1685_v23, 16  ;;  %v1688_v30 = vld [vmem:[%s1994_s3 + $0x58] sm:$0xff]  }
  0x28   : > { %v445_v15 = vrot.slane %v443_v10, 1  ;;  %v601_v27 = vsel %vm598_vm3, %v599_v21, %v600_v22  ;;  %v771_v31 = vshll.u32 %v1685_v23, 16  ;;  %v602_v32 = vrot.slane %v1680_v7, 1  ;;  %v1686_v34 = vld [vmem:[%s1994_s3 + $0x48] sm:$0xff]   ;;  %v1690_v35 = vld [vmem:[%s1994_s3 + $0x50] sm:$0xff]   ;;  %v1689_v46 = vld [vmem:[%s1994_s3 + $0x40] sm:$0xff]  }
  0x29   : > { %1560 = vmatpush3.bf16.msra.mxu0 %v1676_v3  ;;  %1568 = vmatpush3.bf16.msra.mxu1 %v1677_v4  ;;  %v454_v19 = vor.u32 %v452_v12, %v450_v16  ;;  %v775_v33 = vshll.u32 %v1687_v28, 16  ;;  %v863_v37 = vrot.slane %v1685_v23, 1  ;;  %v1691_v39 = vld [vmem:[%s1833_s30 + $0x10] ss:$0 sps:$4 sm:$0x11]   ;;  %v779_v41 = vshrl.u32 %v1687_v28, 16 }
  0x2a   : > { %1573 = vmatprep.subr.bf16.mxu0 %v1681_v8  ;;  %1581 = vmatprep.subr.bf16.mxu1 %v1682_v14  ;;  %v446_v18 = vor.u32 %v445_v15, %v441_v9  ;;  %v773_v36 = vrot.slane %v771_v31, 1  ;;  %v864_v42 = vrot.slane %v1687_v28, 1  ;;  %v603_v43 = vsel %vm598_vm3, %v600_v22, %v602_v32  ;;  %v1693_v49 = vld [vmem:[%s1994_s3 + $0x78] sm:$0xff]   ;;  %v1692_v50 = vld [vmem:[%s1994_s3 + $0x68] sm:$0xff]   ;;  %v1695_v51 = vld [vmem:[%s1994_s3 + $0x70] sm:$0xff]  }
  0x2b   : > { %v459_v26 = vsel %vm439_vm2, %v454_v19, %v458_v17  ;;  %v777_v38 = vrot.slane %v775_v33, 1  ;;  %v783_v44 = vshll.u32 %v1691_v39, 16  ;;  %v866_v45 = vrot.slane %v1691_v39, 1  ;;  %v1696_v55 = vld [vmem:[%s1839_s25] sm:$0xff]   ;;  %v1697_v56 = vld [vmem:[%s1839_s25 + $0x8] sm:$0xff]  }
  0x2c   : > { %1570 = vmatmul.mubr.msk.bf16.vlgmr.msra.gmra.mxu1 %vm472_vm1, %v1679_v6  ;;  %v451_v25 = vsel %vm439_vm2, %v446_v18, %v450_v16  ;;  %v774_v40 = vor.u32 %v773_v36, %v769_v29  ;;  %v865_v47 = vsel %vm598_vm3, %v863_v37, %v864_v42  ;;  %v1033_v57 = vshrl.u32 %v1696_v55, 16  ;;  %v1699_v61 = vld [vmem:[%s1839_s25 + $0x10] ss:$0 sps:$4 sm:$0x11]   ;;  %v1694_v0 = vld [vmem:[%s1994_s3 + $0x60] sm:$0xff]   ;;  %v1698_v7 = vld [vmem:[%s1994_s3 + $0x88] sm:$0xff]  }
  0x2d   : > { %1582 = vmatpush3.bf16.msra.mxu1 %v1682_v14  ;;  %1585 = vmatprep.mubr.msk.bf16.mxu1 %vm472_vm1, %v1685_v23  ;;  %v781_v52 = vor.u32 %v779_v41, %v777_v38  ;;  %v785_v53 = vrot.slane %v783_v44, 1  ;;  %v867_v54 = vsel %vm598_vm3, %v864_v42, %v866_v45  ;;  %v1035_v58 = vshll.u32 %v1696_v55, 16  ;;  %v1700_v11 = vld [vmem:[%s1994_s3 + $0x80] sm:$0xff]  }
  0x2e   : > { %1583 = vmatprep.subr.bf16.mxu1 %v1684_v20  ;;  %1561 = vmatprep.mubr.msk.bf16.mxu0 %vm472_vm1, %v451_v25  ;;  %v778_v48 = vsel %vm439_vm2, %v774_v40, %v777_v38  ;;  %v1039_v59 = vshll.u32 %v1697_v56, 16  ;;  %v1043_v60 = vshrl.u32 %v1697_v56, 16  ;;  %v1047_v2 = vshll.u32 %v1699_v61, 16 }
  0x2f   : > { %1562 = vmatmul.mubr.msk.bf16.vlgmr.msra.gmra.mxu0 %vm472_vm1, %v459_v26  ;;  %v786_v62 = vsel %vm439_vm2, %v781_v52, %v785_v53  ;;  %v1037_v63 = vrot.slane %v1035_v58, 1  ;;  %v1127_v9 = vrot.slane %v1696_v55, 1  ;;  %v1128_v10 = vrot.slane %v1697_v56, 1 }
  0x30   : > { %1574 = vmatpush3.bf16.msra.mxu0 %v1681_v8  ;;  %1577 = vmatprep.mubr.msk.bf16.mxu0 %vm472_vm1, %v601_v27  ;;  %v1041_v1 = vrot.slane %v1039_v59, 1  ;;  %v1049_v5 = vrot.slane %v1047_v2, 1  ;;  %v1130_v13 = vrot.slane %v1699_v61, 1  ;;  %vm1268_vm4 = vcmask 519168  }
  0x31   : > { %1584 = vmatpush3.bf16.msra.mxu1 %v1684_v20  ;;  %1575 = vmatprep.subr.bf16.mxu0 %v1683_v24  ;;  %v1038_v3 = vor.u32 %v1037_v63, %v1033_v57  ;;  %v1129_v12 = vsel %vm598_vm3, %v1127_v9, %v1128_v10  ;;  %vm1215_vm5 = vcmask 523264   ;;  %vm1230_vm6 = vcmask 516096  }
  0x32   : > { %1597 = vmatprep.subr.bf16.mxu1 %v1688_v30  ;;  %v1045_v4 = vor.u32 %v1043_v60, %v1041_v1  ;;  %v1131_v14 = vsel %vm598_vm3, %v1128_v10, %v1130_v13 }
  0x33   : > { %v1042_v6 = vsel %vm439_vm2, %v1038_v3, %v1041_v1 }
  0x34   : > { %1586 = vmatmul.mubr.msk.bf16.vlgmr.msra.gmra.mxu1 %vm472_vm1, %v1687_v28  ;;  %1576 = vmatpush3.bf16.msra.mxu0 %v1683_v24  ;;  %v1050_v8 = vsel %vm439_vm2, %v1045_v4, %v1049_v5 }
  0x35   : > { %1598 = vmatpush3.bf16.msra.mxu1 %v1688_v30  ;;  %1589 = vmatprep.subr.bf16.mxu0 %v1686_v34 }
  0x36   : > { %1599 = vmatprep.subr.bf16.mxu1 %v1690_v35  ;;  %1601 = vmatprep.mubr.msk.bf16.mxu1 %vm472_vm1, %v865_v47 }
  0x37   : > { %1578 = vmatmul.mubr.msk.bf16.vlgmr.msra.gmra.mxu0 %vm472_vm1, %v603_v43 }
  0x38   : > { %1590 = vmatpush3.bf16.msra.mxu0 %v1686_v34  ;;  %1593 = vmatprep.mubr.msk.bf16.mxu0 %vm472_vm1, %v778_v48 }
  0x39   : > { %1600 = vmatpush3.bf16.msra.mxu1 %v1690_v35  ;;  %1591 = vmatprep.subr.bf16.mxu0 %v1689_v46 }
  0x3a   : > { %1613 = vmatprep.subr.bf16.mxu1 %v1693_v49 }
  0x3c   : > { %1602 = vmatmul.mubr.msk.bf16.vlgmr.msra.gmra.mxu1 %vm472_vm1, %v867_v54  ;;  %1592 = vmatpush3.bf16.msra.mxu0 %v1689_v46 }
  0x3d   : > { %1614 = vmatpush3.bf16.msra.mxu1 %v1693_v49  ;;  %1605 = vmatprep.subr.bf16.mxu0 %v1692_v50 }
  0x3e   : > { %1615 = vmatprep.subr.bf16.mxu1 %v1695_v51  ;;  %1617 = vmatprep.mubr.msk.bf16.mxu1 %vm472_vm1, %v1042_v6  ;;  %v1510_v6 = vld [vmem:[%s1995_s4] ss:$0 sm:$0xff] }
  0x3f   : > { %1594 = vmatmul.mubr.msk.bf16.vlgmr.msra.gmra.mxu0 %vm472_vm1, %v786_v62 }
  0x40   : > { %1606 = vmatpush3.bf16.msra.mxu0 %v1692_v50  ;;  %1609 = vmatprep.mubr.msk.bf16.mxu0 %vm472_vm1, %v1696_v55 }
  0x41   : > { %1616 = vmatpush3.bf16.msra.mxu1 %v1695_v51  ;;  %1607 = vmatprep.subr.bf16.mxu0 %v1694_v0 }
  0x44   : > { %1618 = vmatmul.mubr.msk.bf16.vlgmr.msra.gmra.mxu1 %vm472_vm1, %v1050_v8  ;;  %1608 = vmatpush3.bf16.msra.mxu0 %v1694_v0 }
  0x45   : > { %1621 = vmatprep.subr.bf16.mxu0 %v1698_v7 }
  0x47   : > { %1610 = vmatmul.mubr.msk.bf16.vlgmr.msra.gmra.mxu0 %vm472_vm1, %v1697_v56 }
  0x48   : > { %1622 = vmatpush3.bf16.msra.mxu0 %v1698_v7  ;;  %1625 = vmatprep.mubr.msk.bf16.mxu0 %vm472_vm1, %v1129_v12 }
  0x49   : > { %1623 = vmatprep.subr.bf16.mxu0 %v1700_v11 }
  0x4c   : > { %1624 = vmatpush3.bf16.msra.mxu0 %v1700_v11 }
  0x4f   : > { %1626 = vmatmul.mubr.msk.bf16.vlgmr.msra.gmra.mxu0 %vm472_vm1, %v1131_v14 }
  0xec   : > { %v1571_v15 = vpop.f32.mrf.mxu1 }
  0xee   : > { %v578_v16 = vpop.f32.mrf.mxu1 }
  0xef   : > { %v1563_v17 = vpop.f32.mrf.mxu0 }
  0xf0   : > { %v1572_v18 = vpop.f32.mrf.mxu1  ;;  %v587_v31 = vadd.f32 %v1571_v15, %v1563_v17 }
  0xf1   : > { %v513_v19 = vpop.f32.mrf.mxu0 }
  0xf2   : > { %v581_v20 = vpop.f32.mrf.mxu1  ;;  %v579_v34 = vadd.f32 %v578_v16, %v513_v19 }
  0xf3   : > { %v1564_v21 = vpop.f32.mrf.mxu0 }
  0xf4   : > { %v1587_v22 = vpop.f32.mrf.mxu1  ;;  %v590_v39 = vadd.f32 %v1572_v18, %v1564_v21 }
  0xf5   : > { %v516_v23 = vpop.f32.mrf.mxu0 }
  0xf6   : > { %v742_v24 = vpop.f32.mrf.mxu1  ;;  %v582_v42 = vadd.f32 %v581_v20, %v516_v23 }
  0xf7   : > { %v1579_v25 = vpop.f32.mrf.mxu0 }
  0xf8   : > { %v1588_v26 = vpop.f32.mrf.mxu1  ;;  %v673_v35 = vadd.f32 %v1579_v25, %v587_v31 }
  0xf9   : > { %v656_v27 = vpop.f32.mrf.mxu0 }
  0xfa   : > { %v745_v28 = vpop.f32.mrf.mxu1  ;;  %v671_v37 = vadd.f32 %v656_v27, %v579_v34  ;;  %v759_v41 = vadd.f32 %v1587_v22, %v673_v35 }
  0xfb   : > { %v1580_v29 = vpop.f32.mrf.mxu0 }
  0xfc   : > { %v1603_v30 = vpop.f32.mrf.mxu1  ;;  %v674_v43 = vadd.f32 %v1580_v29, %v590_v39  ;;  %v757_v45 = vadd.f32 %v742_v24, %v671_v37 }
  0xfd   : > { %v659_v32 = vpop.f32.mrf.mxu0 }
  0xfe   : > { %v920_v33 = vpop.f32.mrf.mxu1  ;;  %v672_v48 = vadd.f32 %v659_v32, %v582_v42  ;;  %v760_v51 = vadd.f32 %v1588_v26, %v674_v43 }
  0xff   : > { %v1595_v36 = vpop.f32.mrf.mxu0 }
 0x100   : > { %v1604_v38 = vpop.f32.mrf.mxu1  ;;  %v856_v46 = vadd.f32 %v1595_v36, %v759_v41  ;;  %v758_v55 = vadd.f32 %v745_v28, %v672_v48 }
 0x101   : > { %v839_v40 = vpop.f32.mrf.mxu0 }
 0x102   : > { %v923_v47 = vpop.f32.mrf.mxu1  ;;  %v854_v50 = vadd.f32 %v839_v40, %v757_v45  ;;  %v937_v53 = vadd.f32 %v1603_v30, %v856_v46 }
 0x103   : > { %v1596_v44 = vpop.f32.mrf.mxu0 }
 0x104   : > { %v1619_v54 = vpop.f32.mrf.mxu1  ;;  %v857_v56 = vadd.f32 %v1596_v44, %v760_v51  ;;  %v935_v58 = vadd.f32 %v920_v33, %v854_v50 }
 0x105   : > { %v842_v49 = vpop.f32.mrf.mxu0 }
 0x106   : > { %v855_v60 = vadd.f32 %v842_v49, %v758_v55  ;;  %v1103_v63 = vpop.f32.mrf.mxu1  ;;  %v938_v0 = vadd.f32 %v1604_v38, %v857_v56  ;;  %v1214_v55 = vld [vmem:[%s1997_s6] sm:$0x1] }
 0x107   : > { %v1611_v52 = vpop.f32.mrf.mxu0 }
 0x108   : > { %v1023_v59 = vadd.f32 %v1611_v52, %v937_v53  ;;  %v936_v3 = vadd.f32 %v923_v47, %v855_v60  ;;  %v1620_v8 = vpop.f32.mrf.mxu1 }
 0x109   : > { %v1006_v57 = vpop.f32.mrf.mxu0 }
 0x10a   : > { %v1021_v62 = vadd.f32 %v1006_v57, %v935_v58  ;;  %v1120_v2 = vadd.f32 %v1619_v54, %v1023_v59  ;;  %v1106_v16 = vpop.f32.mrf.mxu1  ;;  %v1232_v58 = vld [vmem:[%s1998_s7] sm:$0x1] }
 0x10b   : > { %v1612_v61 = vpop.f32.mrf.mxu0 }
 0x10c   : > { %v1024_v4 = vadd.f32 %v1612_v61, %v938_v0  ;;  %v1118_v7 = vadd.f32 %v1103_v63, %v1021_v62 }
 0x10d   : > { %v1009_v1 = vpop.f32.mrf.mxu0 }
 0x10e   : > { %v1022_v10 = vadd.f32 %v1009_v1, %v936_v3  ;;  %v1121_v14 = vadd.f32 %v1620_v8, %v1024_v4 }
 0x10f   : > { %v1627_v5 = vpop.f32.mrf.mxu0 }
 0x110   : > { %v1201_v9 = vadd.f32 %v1627_v5, %v1120_v2  ;;  %v1119_v19 = vadd.f32 %v1106_v16, %v1022_v10 }
 0x111   : > { %v1184_v11 = vpop.f32.mrf.mxu0 }
 0x112   : > { %v1212_v12 = vadd.f32 %v1510_v6, %v1201_v9  ;;  %v1199_v13 = vadd.f32 %v1184_v11, %v1118_v7 }
 0x113   : > { %v1628_v15 = vpop.f32.mrf.mxu0 }
 0x114   : > { %v1519_v17 = vpack.c.bf16 %v1212_v12, %v1212_v12  ;;  %v1210_v18 = vadd.f32 %v1510_v6, %v1199_v13  ;;  %v1202_v20 = vadd.f32 %v1628_v15, %v1121_v14  ;;  %v1235_v28 = vmul.f32 %v1212_v12, %v1212_v12 }
 0x115   : > { %v1187_v21 = vpop.f32.mrf.mxu0  ;;  %v1219_v34 = vsel %vm1215_vm5, %v1212_v12, 0.0 }
 0x116   : > { %1271 = vst.msk [vmem:[%s1844_s21 + $0x8] sm:$0xf] %vm1268_vm4, %v1519_v17  ;;  %v1517_v22 = vpack.c.bf16 %v1210_v18, %v1210_v18  ;;  %v1213_v23 = vadd.f32 %v1510_v6, %v1202_v20  ;;  %v1200_v24 = vadd.f32 %v1187_v21, %v1119_v19  ;;  %v1233_v25 = vmul.f32 %v1210_v18, %v1210_v18 }
 0x117   : > { %v1216_v29 = vsel %vm1215_vm5, %v1210_v18, 0.0  ;;  %v1240_v40 = vsel %vm1215_vm5, %v1235_v28, 0.0 }
 0x118   : > { %1269 = vst.msk [vmem:[%s1844_s21] sm:$0xf] %vm1268_vm4, %v1517_v22  ;;  %v1520_v26 = vpack.c.bf16 %v1213_v23, %v1213_v23  ;;  %v1211_v27 = vadd.f32 %v1510_v6, %v1200_v24  ;;  %v1237_v35 = vsel %vm1215_vm5, %v1233_v25, 0.0  ;;  %v1236_v36 = vmul.f32 %v1213_v23, %v1213_v23 }
 0x119   : > { %v1221_v41 = vsel %vm1215_vm5, %v1213_v23, 0.0 }
 0x11a   : > { %1272 = vst.msk [vmem:[%s1844_s21 + $0xc] sm:$0xf] %vm1268_vm4, %v1520_v26  ;;  %v1217_v30 = vsel %vm1215_vm5, %v1211_v27, 0.0  ;;  %v1234_v31 = vmul.f32 %v1211_v27, %v1211_v27  ;;  %v1518_v32 = vpack.c.bf16 %v1211_v27, %v1211_v27  ;;  %v1242_v44 = vsel %vm1215_vm5, %v1236_v36, 0.0 }
 0x11b   : > { %v1218_v33 = vadd.f32 %v1217_v30, %v1216_v29 }
 0x11c   : > { %v1238_v37 = vsel %vm1215_vm5, %v1234_v31, 0.0  ;;  %1270 = vst.msk [vmem:[%s1844_s21 + $0x4] sm:$0xf] %vm1268_vm4, %v1518_v32 }
 0x11d   : > { %v1220_v38 = vadd.f32 %v1219_v34, %v1218_v33  ;;  %v1239_v39 = vadd.f32 %v1238_v37, %v1237_v35 }
 0x11f   : > { %v1222_v42 = vadd.f32 %v1221_v41, %v1220_v38  ;;  %v1241_v43 = vadd.f32 %v1240_v40, %v1239_v39 }
 0x121   : > { %v1223_v45 = vrot.slane %v1222_v42, 4  ;;  %v1243_v46 = vadd.f32 %v1242_v44, %v1241_v43 }
 0x123   : > { %v1224_v47 = vadd.f32 %v1223_v45, %v1222_v42  ;;  %v1244_v48 = vrot.slane %v1243_v46, 4 }
 0x125   : > { %v1225_v49 = vrot.slane %v1224_v47, 2  ;;  %v1245_v50 = vadd.f32 %v1244_v48, %v1243_v46 }
 0x127   : > { %v1226_v51 = vadd.f32 %v1225_v49, %v1224_v47  ;;  %v1246_v52 = vrot.slane %v1245_v50, 2 }
 0x129   : > { %v1227_v53 = vrot.slane %v1226_v51, 1  ;;  %v1247_v54 = vadd.f32 %v1246_v52, %v1245_v50 }
 0x12b   : > { %v1228_v56 = vadd.f32 %v1227_v53, %v1226_v51  ;;  %v1248_v57 = vrot.slane %v1247_v54, 1 }
 0x12d   : > { %v1229_v59 = vadd.f32 %v1228_v56, %v1214_v55  ;;  %v1249_v60 = vadd.f32 %v1248_v57, %v1247_v54 }
 0x12f   : > { %1231 = vst.msk [vmem:[%s1997_s6] sm:$0x1] %vm1230_vm6, %v1229_v59  ;;  %v1250_v61 = vadd.f32 %v1249_v60, %v1232_v58 }
 0x131   : > { %1251 = vst.msk [vmem:[%s1998_s7] sm:$0x1] %vm1230_vm6, %v1250_v61 }
 0x132 PF: > { %s18_s28 = sadd.s32 1, %s1739_s28   ;;  %s2003_s8 = sld [smem:[#allocation2_spill]] }
 0x133   : > { %p15_p13 = scmp.ge.s32.totalorder %s18_s28, 66   ;;  %s2004_s14 = sld [smem:[#allocation3_spill]] }
 0x134   : > { %s2005_s24 = smov %s1731_s26  ;;  %s2006_s25 = smov %s1735_s27 }
 0x135   :  { %17 = sbr.rel (!%p15_p13) target bundleno = 3 (0x3), region = 104 }
 0x138   : > { %s2007_s26 = smov %s2003_s8 }
 0x139   : > { %s2008_s27 = smov %s2004_s14 }

// kernel: _lambda_.7
= control target key start
LH: loop header
LB: loop body
LE: loop exit
PB: predicated region body
PF: predicated region fallthrough
CT: control target
= control target key end

     0   :  { %s3768_s18 = smov 0   ;;  %s5273_s0 = inlined_call_operand.vmem [shape: bf16[2048,64], index: 0, kind: input, shape index: {}]   ;;  %s5274_s1 = inlined_call_operand.vmem [shape: f32[1,64], index: 1, kind: input, shape index: {}]   ;;  %s5275_s2 = inlined_call_operand.vmem [shape: f32[1,64], index: 2, kind: input, shape index: {}]   ;;  %s5276_s3 = inlined_call_operand.vmem [shape: f32[1,64], index: 3, kind: input, shape index: {}]   ;;  %s5277_s4 = inlined_call_operand.vmem [shape: f32[1,64], index: 4, kind: input, shape index: {}]   ;;  %s5278_s5 = inlined_call_operand.vmem [shape: bf16[2048,64], index: 5, kind: output, shape index: {}]  }
   0x1 LB: > { %s2491_s19 = sadd.s32 4294967295, %s3736_s18   ;;  %p2495_p0 = scmp.ge.s32.totalorder %s3736_s18, 1  ;;  %s3736_s18 = sphi %s3768_s18, %s15_s18  }
   0x2   : > { %p188_p1 = scmp.lt.s32.totalorder %s3736_s18, 3 }
   0x4   : > { %p189_p2 = pnand %p2495_p0, %p188_p1 }
   0x6   : > { %192 = sbr.rel (%p189_p2) target bundleno = 369 (0x171), region = 40 }
   0xb   : > { %s2496_s20 = sshll.u32 %s2491_s19, 7  ;;  %v484_v0 = vld [vmem:[%s5274_s1] sm:$0x1]  ;;  %v496_v2 = vlaneseq  ;;  %vm2306_vm0 = vcmask 519168  }
   0xc   : > { %v486_v1 = vld [vmem:[%s5275_s2] sm:$0x1]  ;;  %p217_p3 = scmp.lt.s32.totalorder %s2496_s20, 255  ;;  %v485_v3 = vmul.f32 0.00048828125, %v484_v0 }
   0xd   : > { %v487_v4 = vmul.f32 0.00048828125, %v486_v1  ;;  %v3782_v5 = vshrl.u32 %v496_v2, 7 }
   0xe   : > { %s5308_s20 = smov (!%p217_p3, %s2496_s20), 255  ;;  %v488_v6 = vmul.f32 %v485_v3, %v485_v3 }
   0xf   : > { %v498_v7 = vsub.s32 0, %v3782_v5  ;;  %s2497_s25 = sshll.u32 %s5308_s20, 2 }
  0x10   : > { %v489_v8 = vsub.f32 %v487_v4, %v488_v6  ;;  %s3793_s28 = scalar_lea.vmem %s5273_s0, %s2497_s25  ;;  %s4194_s10 = scalar_lea.vmem %s5278_s5, %s2497_s25 }
  0x11   : > { %v3797_v9 = vrot.slane %v485_v3, %v498_v7  ;;  %v2888_v10 = vld [vmem:[%s3793_s28] sm:$0xff]   ;;  %v3143_v12 = vld [vmem:[%s3793_s28 + $0x8] sm:$0xff]   ;;  %v3144_v13 = vld [vmem:[%s3793_s28 + $0x10] sm:$0xff]  }
  0x12   : > { %v490_v11 = vmax.f32 %v489_v8, 0.0  ;;  %v2889_v14 = vunpack.c.l.bf16 %v2888_v10  ;;  %v2890_v15 = vunpack.c.h.bf16 %v2888_v10  ;;  %v2893_v16 = vunpack.c.l.bf16 %v3143_v12  ;;  %v3145_v18 = vld [vmem:[%s3793_s28 + $0x18] sm:$0xff]   ;;  %v3146_v23 = vld [vmem:[%s3793_s28 + $0x20] sm:$0xff]   ;;  %v3147_v24 = vld [vmem:[%s3793_s28 + $0x28] sm:$0xff]  }
  0x13   : > { %v2894_v17 = vunpack.c.h.bf16 %v3143_v12  ;;  %v2897_v20 = vunpack.c.l.bf16 %v3144_v13  ;;  %v2898_v21 = vunpack.c.h.bf16 %v3144_v13  ;;  %v2901_v22 = vunpack.c.l.bf16 %v3145_v18  ;;  %v3148_v29 = vld [vmem:[%s3793_s28 + $0x30] sm:$0xff]   ;;  %v3149_v30 = vld [vmem:[%s3793_s28 + $0x38] sm:$0xff]   ;;  %v3150_v42 = vld [vmem:[%s3793_s28 + $0x40] sm:$0xff]  }
  0x14   : > { %v491_v19 = vadd.f32 1e-05, %v490_v11  ;;  %v3806_v25 = vsub.f32 %v2889_v14, %v3797_v9  ;;  %v3809_v26 = vsub.f32 %v2890_v15, %v3797_v9  ;;  %v3812_v27 = vsub.f32 %v2893_v16, %v3797_v9  ;;  %v3151_v43 = vld [vmem:[%s3793_s28 + $0x48] sm:$0xff]   ;;  %v3152_v48 = vld [vmem:[%s3793_s28 + $0x50] sm:$0xff]   ;;  %v3153_v49 = vld [vmem:[%s3793_s28 + $0x58] sm:$0xff]  }
  0x15   : > { %v3815_v28 = vsub.f32 %v2894_v17, %v3797_v9  ;;  %v3820_v31 = vsub.f32 %v2897_v20, %v3797_v9  ;;  %v3823_v32 = vsub.f32 %v2898_v21, %v3797_v9  ;;  %v3826_v33 = vsub.f32 %v2901_v22, %v3797_v9  ;;  %v3154_v62 = vld [vmem:[%s3793_s28 + $0x60] sm:$0xff]   ;;  %v3155_v63 = vld [vmem:[%s3793_s28 + $0x68] sm:$0xff]   ;;  %v3156_v4 = vld [vmem:[%s3793_s28 + $0x70] sm:$0xff]  }
  0x16   : > { %3214 = vrsqrt.f32 %v491_v19  ;;  %v2902_v34 = vunpack.c.h.bf16 %v3145_v18  ;;  %v2905_v35 = vunpack.c.l.bf16 %v3146_v23  ;;  %v2906_v36 = vunpack.c.h.bf16 %v3146_v23  ;;  %v3157_v6 = vld [vmem:[%s3793_s28 + $0x78] sm:$0xff]   ;;  %v3158_v21 = vld [vmem:[%s3793_s28 + $0x80] sm:$0xff]   ;;  %v3159_v22 = vld [vmem:[%s3793_s28 + $0x88] sm:$0xff]  }
  0x17   : > { %v2909_v37 = vunpack.c.l.bf16 %v3147_v24  ;;  %v2910_v38 = vunpack.c.h.bf16 %v3147_v24  ;;  %v2913_v39 = vunpack.c.l.bf16 %v3148_v29  ;;  %v2914_v40 = vunpack.c.h.bf16 %v3148_v29  ;;  %v493_v23 = vld [vmem:[%s5276_s3] sm:$0x1] }
  0x18   : > { %v2917_v41 = vunpack.c.l.bf16 %v3149_v30  ;;  %v3831_v44 = vsub.f32 %v2902_v34, %v3797_v9  ;;  %v3834_v45 = vsub.f32 %v2905_v35, %v3797_v9  ;;  %v3837_v46 = vsub.f32 %v2906_v36, %v3797_v9  ;;  %v3160_v35 = vld [vmem:[%s3793_s28 + $0x90] sm:$0xff]  }
  0x19   : > { %v3840_v47 = vsub.f32 %v2909_v37, %v3797_v9  ;;  %v3845_v50 = vsub.f32 %v2910_v38, %v3797_v9  ;;  %v3848_v51 = vsub.f32 %v2913_v39, %v3797_v9  ;;  %v3851_v52 = vsub.f32 %v2914_v40, %v3797_v9 }
  0x1a   : > { %v3854_v53 = vsub.f32 %v2917_v41, %v3797_v9  ;;  %v2918_v54 = vunpack.c.h.bf16 %v3149_v30  ;;  %v2921_v55 = vunpack.c.l.bf16 %v3150_v42  ;;  %v2922_v56 = vunpack.c.h.bf16 %v3150_v42 }
  0x1b   : > { %v2925_v57 = vunpack.c.l.bf16 %v3151_v43  ;;  %v2926_v58 = vunpack.c.h.bf16 %v3151_v43  ;;  %v2929_v59 = vunpack.c.l.bf16 %v3152_v48  ;;  %v2930_v60 = vunpack.c.h.bf16 %v3152_v48 }
  0x1c   : > { %v2933_v61 = vunpack.c.l.bf16 %v3153_v49  ;;  %v3859_v0 = vsub.f32 %v2918_v54, %v3797_v9  ;;  %v3862_v1 = vsub.f32 %v2921_v55, %v3797_v9  ;;  %v3865_v2 = vsub.f32 %v2922_v56, %v3797_v9 }
  0x1d   : > { %v3868_v3 = vsub.f32 %v2925_v57, %v3797_v9  ;;  %v3873_v8 = vsub.f32 %v2926_v58, %v3797_v9  ;;  %v3876_v10 = vsub.f32 %v2929_v59, %v3797_v9  ;;  %v3879_v11 = vsub.f32 %v2930_v60, %v3797_v9  ;;  %v3915_v57 = vld [vmem:[%s3793_s28 + $0x98] sm:$0xff]   ;;  %v3918_v58 = vld [vmem:[%s3793_s28 + $0xa0] sm:$0xff]  }
  0x1e   : > { %v3882_v12 = vsub.f32 %v2933_v61, %v3797_v9  ;;  %v2934_v13 = vunpack.c.h.bf16 %v3153_v49  ;;  %v2937_v14 = vunpack.c.l.bf16 %v3154_v62  ;;  %v2938_v15 = vunpack.c.h.bf16 %v3154_v62 }
  0x1f   : > { %v2941_v16 = vunpack.c.l.bf16 %v3155_v63  ;;  %v2942_v17 = vunpack.c.h.bf16 %v3155_v63  ;;  %v2945_v18 = vunpack.c.l.bf16 %v3156_v4  ;;  %v2946_v19 = vunpack.c.h.bf16 %v3156_v4 }
  0x20   : > { %v2949_v20 = vunpack.c.l.bf16 %v3157_v6  ;;  %v3890_v24 = vsub.f32 %v2934_v13, %v3797_v9  ;;  %v3893_v29 = vsub.f32 %v2937_v14, %v3797_v9  ;;  %v3896_v30 = vsub.f32 %v2938_v15, %v3797_v9  ;;  %v3948_v14 = vld [vmem:[%s5277_s4] ss:$0 sm:$0xff] }
  0x21   : > { %v3899_v34 = vsub.f32 %v2941_v16, %v3797_v9  ;;  %v3903_v36 = vsub.f32 %v2942_v17, %v3797_v9  ;;  %v3906_v37 = vsub.f32 %v2945_v18, %v3797_v9  ;;  %v3909_v38 = vsub.f32 %v2946_v19, %v3797_v9 }
  0x22   : > { %v3912_v39 = vsub.f32 %v2949_v20, %v3797_v9  ;;  %v2950_v41 = vunpack.c.h.bf16 %v3157_v6  ;;  %v2953_v42 = vunpack.c.l.bf16 %v3158_v21  ;;  %v2954_v43 = vunpack.c.h.bf16 %v3158_v21 }
  0x23   : > { %v3215_v40 = vpop.eup %3214  ;;  %v2957_v48 = vunpack.c.l.bf16 %v3159_v22  ;;  %v2958_v54 = vunpack.c.h.bf16 %v3159_v22  ;;  %v2961_v55 = vunpack.c.l.bf16 %v3160_v35  ;;  %v2962_v56 = vunpack.c.h.bf16 %v3160_v35 }
  0x24   : > { %v494_v49 = vmul.f32 %v3215_v40, %v493_v23  ;;  %v3921_v59 = vsub.f32 %v2950_v41, %v3797_v9  ;;  %v3924_v60 = vsub.f32 %v2953_v42, %v3797_v9  ;;  %v3927_v61 = vsub.f32 %v2954_v43, %v3797_v9 }
  0x25   : > { %v3930_v62 = vsub.f32 %v2957_v48, %v3797_v9  ;;  %v3937_v4 = vsub.f32 %v2958_v54, %v3797_v9  ;;  %v3940_v6 = vsub.f32 %v2961_v55, %v3797_v9  ;;  %v3943_v13 = vsub.f32 %v2962_v56, %v3797_v9 }
  0x26   : > { %v3934_v63 = vrot.slane %v494_v49, %v498_v7 }
  0x28   : > { %v635_v17 = vmul.f32 %v3934_v63, %v3806_v25  ;;  %v636_v18 = vmul.f32 %v3934_v63, %v3809_v26  ;;  %v637_v19 = vmul.f32 %v3934_v63, %v3812_v27  ;;  %v638_v20 = vmul.f32 %v3934_v63, %v3815_v28 }
  0x29   : > { %v639_v21 = vmul.f32 %v3934_v63, %v3820_v31  ;;  %v640_v22 = vmul.f32 %v3934_v63, %v3823_v32  ;;  %v641_v23 = vmul.f32 %v3934_v63, %v3826_v33  ;;  %v642_v25 = vmul.f32 %v3934_v63, %v3831_v44 }
  0x2a   : > { %v3971_v26 = vadd.f32 %v3948_v14, %v635_v17  ;;  %v3974_v27 = vadd.f32 %v3948_v14, %v636_v18  ;;  %v3977_v28 = vadd.f32 %v3948_v14, %v637_v19  ;;  %v3980_v31 = vadd.f32 %v3948_v14, %v638_v20 }
  0x2b   : > { %v3983_v32 = vadd.f32 %v3948_v14, %v639_v21  ;;  %v3986_v33 = vadd.f32 %v3948_v14, %v640_v22  ;;  %v3989_v44 = vadd.f32 %v3948_v14, %v641_v23  ;;  %v3992_v35 = vadd.f32 %v3948_v14, %v642_v25 }
  0x2c   : > { %v2501_v40 = vmul.f32 -1.442695, %v3971_v26  ;;  %v2502_v41 = vmul.f32 -1.442695, %v3974_v27  ;;  %v2503_v42 = vmul.f32 -1.442695, %v3977_v28  ;;  %v643_v43 = vmul.f32 %v3934_v63, %v3834_v45 }
  0x2d   : > { %v2504_v48 = vmul.f32 -1.442695, %v3980_v31  ;;  %v2505_v49 = vmul.f32 -1.442695, %v3983_v32  ;;  %v2506_v54 = vmul.f32 -1.442695, %v3986_v33  ;;  %v644_v55 = vmul.f32 %v3934_v63, %v3837_v46 }
  0x2e   : > { %3216 = vpow2.f32 %v2501_v40  ;;  %v2507_v56 = vmul.f32 -1.442695, %v3989_v44  ;;  %v2508_v17 = vmul.f32 -1.442695, %v3992_v35  ;;  %v4007_v18 = vadd.f32 %v3948_v14, %v643_v43 }
  0x2f   : > { %3218 = vpow2.f32 %v2502_v41  ;;  %v4010_v45 = vadd.f32 %v3948_v14, %v644_v55  ;;  %v645_v19 = vmul.f32 %v3934_v63, %v3840_v47  ;;  %v646_v20 = vmul.f32 %v3934_v63, %v3845_v50 }
  0x30   : > { %3220 = vpow2.f32 %v2503_v42  ;;  %v2509_v46 = vmul.f32 -1.442695, %v4007_v18  ;;  %v647_v21 = vmul.f32 %v3934_v63, %v3848_v51  ;;  %v648_v22 = vmul.f32 %v3934_v63, %v3851_v52 }
  0x31   : > { %3222 = vpow2.f32 %v2504_v48  ;;  %v2510_v23 = vmul.f32 -1.442695, %v4010_v45  ;;  %v4023_v25 = vadd.f32 %v3948_v14, %v645_v19  ;;  %v4026_v47 = vadd.f32 %v3948_v14, %v646_v20 }
  0x32   : > { %3224 = vpow2.f32 %v2505_v49  ;;  %v4029_v50 = vadd.f32 %v3948_v14, %v647_v21  ;;  %v4032_v40 = vadd.f32 %v3948_v14, %v648_v22  ;;  %v649_v51 = vmul.f32 %v3934_v63, %v3854_v53 }
  0x33   : > { %3226 = vpow2.f32 %v2506_v54  ;;  %v2511_v52 = vmul.f32 -1.442695, %v4023_v25  ;;  %v2512_v41 = vmul.f32 -1.442695, %v4026_v47  ;;  %v650_v42 = vmul.f32 %v3934_v63, %v3859_v0 }
  0x34   : > { %3228 = vpow2.f32 %v2507_v56  ;;  %v2513_v43 = vmul.f32 -1.442695, %v4029_v50  ;;  %v2514_v48 = vmul.f32 -1.442695, %v4032_v40  ;;  %v4043_v49 = vadd.f32 %v3948_v14, %v649_v51 }
  0x35   : > { %3230 = vpow2.f32 %v2508_v17  ;;  %v4046_v55 = vadd.f32 %v3948_v14, %v650_v42  ;;  %v651_v53 = vmul.f32 %v3934_v63, %v3862_v1  ;;  %v652_v54 = vmul.f32 %v3934_v63, %v3865_v2 }
  0x36   : > { %3232 = vpow2.f32 %v2509_v46  ;;  %v2515_v0 = vmul.f32 -1.442695, %v4043_v49  ;;  %v653_v56 = vmul.f32 %v3934_v63, %v3868_v3  ;;  %v654_v19 = vmul.f32 %v3934_v63, %v3873_v8 }
  0x37   : > { %3234 = vpow2.f32 %v2510_v23  ;;  %v2516_v17 = vmul.f32 -1.442695, %v4046_v55  ;;  %v4059_v20 = vadd.f32 %v3948_v14, %v651_v53  ;;  %v4062_v1 = vadd.f32 %v3948_v14, %v652_v54 }
  0x38   : > { %3236 = vpow2.f32 %v2511_v52  ;;  %v4065_v2 = vadd.f32 %v3948_v14, %v653_v56  ;;  %v4068_v46 = vadd.f32 %v3948_v14, %v654_v19  ;;  %v655_v3 = vmul.f32 %v3934_v63, %v3876_v10 }
  0x39   : > { %3238 = vpow2.f32 %v2512_v41  ;;  %v4073_v8 = vmul.f32 -1.442695, %v4059_v20  ;;  %v4076_v21 = vmul.f32 -1.442695, %v4062_v1  ;;  %v656_v22 = vmul.f32 %v3934_v63, %v3879_v11 }
  0x3a   : > { %3240 = vpow2.f32 %v2513_v43  ;;  %v4081_v23 = vmul.f32 -1.442695, %v4065_v2  ;;  %v4084_v51 = vmul.f32 -1.442695, %v4068_v46  ;;  %v4087_v52 = vadd.f32 %v3948_v14, %v655_v3 }
  0x3b   : > { %v3217_v10 = vpop.eup %3216  ;;  %3242 = vpow2.f32 %v2514_v48  ;;  %v4090_v41 = vadd.f32 %v3948_v14, %v656_v22  ;;  %v657_v42 = vmul.f32 %v3934_v63, %v3882_v12  ;;  %v658_v11 = vmul.f32 %v3934_v63, %v3890_v24 }
  0x3c   : > { %v3219_v43 = vpop.eup %3218  ;;  %v1282_v53 = vadd.f32 1.0, %v3217_v10  ;;  %3244 = vpow2.f32 %v2515_v0  ;;  %v4097_v54 = vmul.f32 -1.442695, %v4087_v52  ;;  %v659_v56 = vmul.f32 %v3934_v63, %v3893_v29 }
  0x3d   : > { %v3221_v19 = vpop.eup %3220  ;;  %v1283_v48 = vadd.f32 1.0, %v3219_v43  ;;  %3246 = vpow2.f32 %v2516_v17  ;;  %v4102_v3 = vmul.f32 -1.442695, %v4090_v41  ;;  %v4105_v12 = vadd.f32 %v3948_v14, %v657_v42 }
  0x3e   : > { %v3223_v22 = vpop.eup %3222  ;;  %3248 = vrcp.f32 %v1282_v53  ;;  %v1284_v24 = vadd.f32 1.0, %v3221_v19  ;;  %v4108_v0 = vadd.f32 %v3948_v14, %v658_v11  ;;  %v4111_v10 = vadd.f32 %v3948_v14, %v659_v56 }
  0x3f   : > { %v3225_v16 = vpop.eup %3224  ;;  %3250 = vrcp.f32 %v1283_v48  ;;  %v1285_v29 = vadd.f32 1.0, %v3223_v22  ;;  %v4114_v17 = vmul.f32 -1.442695, %v4105_v12  ;;  %v660_v43 = vmul.f32 %v3934_v63, %v3896_v30 }
  0x40   : > { %5287 = vst [vmem:[#allocation2_spill] sm:$0xff] %v4111_v10  ;;  %v3227_v42 = vpop.eup %3226  ;;  %3252 = vrcp.f32 %v1284_v24  ;;  %v1286_v7 = vadd.f32 1.0, %v3225_v16  ;;  %v4119_v53 = vmul.f32 -1.442695, %v4108_v0  ;;  %v4122_v11 = vmul.f32 -1.442695, %v4111_v10 }
  0x41   : > { %v3229_v56 = vpop.eup %3228  ;;  %3254 = vrcp.f32 %v1285_v29  ;;  %v1287_v19 = vadd.f32 1.0, %v3227_v42  ;;  %v4125_v48 = vadd.f32 %v3948_v14, %v660_v43  ;;  %v661_v22 = vmul.f32 %v3934_v63, %v3899_v34 }
  0x42   : > { %v3231_v5 = vpop.eup %3230  ;;  %3256 = vrcp.f32 %v1286_v7  ;;  %v1288_v30 = vadd.f32 1.0, %v3229_v56  ;;  %v662_v16 = vmul.f32 %v3934_v63, %v3903_v36  ;;  %v663_v24 = vmul.f32 %v3934_v63, %v3906_v37 }
  0x43   : > { %5288 = vst [vmem:[#allocation3_spill] sm:$0xff] %v4125_v48  ;;  %v3233_v15 = vpop.eup %3232  ;;  %3258 = vrcp.f32 %v1287_v19  ;;  %v1289_v10 = vadd.f32 1.0, %v3231_v5  ;;  %v4134_v29 = vmul.f32 -1.442695, %v4125_v48  ;;  %v4137_v43 = vadd.f32 %v3948_v14, %v661_v22 }
  0x44   : > { %v3235_v42 = vpop.eup %3234  ;;  %3260 = vrcp.f32 %v1288_v30  ;;  %v1290_v34 = vadd.f32 1.0, %v3233_v15  ;;  %v4140_v7 = vadd.f32 %v3948_v14, %v662_v16  ;;  %v4143_v36 = vadd.f32 %v3948_v14, %v663_v24 }
  0x45   : > { %5289 = vst [vmem:[#allocation4_spill] sm:$0xff] %v4137_v43  ;;  %v3237_v56 = vpop.eup %3236  ;;  %3262 = vrcp.f32 %v1289_v10  ;;  %v1291_v37 = vadd.f32 1.0, %v3235_v42  ;;  %v4146_v5 = vmul.f32 -1.442695, %v4137_v43  ;;  %v664_v19 = vmul.f32 %v3934_v63, %v3909_v38 }
  0x46   : > { %5290 = vst [vmem:[#allocation5_spill] sm:$0xff] %v4140_v7  ;;  %5291 = vst [vmem:[#allocation6_spill] sm:$0xff] %v4143_v36  ;;  %v3239_v22 = vpop.eup %3238  ;;  %3264 = vrcp.f32 %v1290_v34  ;;  %v1292_v30 = vadd.f32 1.0, %v3237_v56  ;;  %v4151_v15 = vmul.f32 -1.442695, %v4140_v7  ;;  %v665_v42 = vmul.f32 %v3934_v63, %v3912_v39 }
  0x47   : > { %v4154_v16 = vmul.f32 -1.442695, %v4143_v36  ;;  %v3241_v24 = vpop.eup %3240  ;;  %3266 = vrcp.f32 %v1291_v37  ;;  %v1293_v48 = vadd.f32 1.0, %v3239_v22  ;;  %v4157_v10 = vadd.f32 %v3948_v14, %v664_v19 }
  0x48   : > { %v3243_v43 = vpop.eup %3242  ;;  %3268 = vrcp.f32 %v1292_v30  ;;  %v1294_v38 = vadd.f32 1.0, %v3241_v24  ;;  %v666_v34 = vmul.f32 %v3934_v63, %v3921_v59  ;;  %v667_v56 = vmul.f32 %v3934_v63, %v3924_v60 }
  0x49   : > { %5292 = vst [vmem:[#allocation7_spill] sm:$0xff] %v4157_v10  ;;  %v3245_v36 = vpop.eup %3244  ;;  %3270 = vrcp.f32 %v1293_v48  ;;  %v1295_v7 = vadd.f32 1.0, %v3243_v43  ;;  %v4166_v37 = vmul.f32 -1.442695, %v4157_v10  ;;  %v4169_v19 = vadd.f32 %v3948_v14, %v665_v42 }
  0x4a   : > { %v3247_v22 = vpop.eup %3246  ;;  %3272 = vrcp.f32 %v1294_v38  ;;  %v1296_v39 = vadd.f32 1.0, %v3245_v36  ;;  %v4172_v30 = vadd.f32 %v3948_v14, %v666_v34  ;;  %v4175_v59 = vadd.f32 %v3948_v14, %v667_v56 }
  0x4b   : > { %v3249_v60 = vpop.eup %3248  ;;  %3274 = vrcp.f32 %v1295_v7  ;;  %v1297_v48 = vadd.f32 1.0, %v3247_v22  ;;  %v4178_v43 = vmul.f32 -1.442695, %v4169_v19  ;;  %v668_v24 = vmul.f32 %v3934_v63, %v3927_v61 }
  0x4c   : > { %5293 = vst [vmem:[#allocation8_spill] sm:$0xff] %v4172_v30  ;;  %5294 = vst [vmem:[#allocation9_spill] sm:$0xff] %v4175_v59  ;;  %v3251_v42 = vpop.eup %3250  ;;  %v1666_v10 = vmul.f32 %v3249_v60, %v3971_v26  ;;  %3276 = vrcp.f32 %v1296_v39  ;;  %v4184_v36 = vmul.f32 -1.442695, %v4172_v30  ;;  %v4187_v38 = vmul.f32 -1.442695, %v4175_v59 }
  0x4d   : > { %v3253_v34 = vpop.eup %3252  ;;  %v1667_v61 = vmul.f32 %v3251_v42, %v3974_v27  ;;  %3278 = vrcp.f32 %v1297_v48  ;;  %v4198_v26 = vadd.f32 %v3948_v14, %v668_v24  ;;  %v669_v7 = vmul.f32 %v3934_v63, %v3930_v62 }
  0x4e   : > { %v3255_v56 = vpop.eup %3254  ;;  %v2759_v22 = vpack.c.bf16 %v1666_v10, %v1666_v10  ;;  %v1668_v39 = vmul.f32 %v3253_v34, %v3977_v28  ;;  %3280 = vpow2.f32 %v4073_v8  ;;  %v670_v60 = vmul.f32 %v3934_v63, %v3937_v4 }
  0x4f   : > { %v3257_v59 = vpop.eup %3256  ;;  %v2760_v30 = vpack.c.bf16 %v1667_v61, %v1667_v61  ;;  %v1669_v27 = vmul.f32 %v3255_v56, %v3980_v31  ;;  %3282 = vpow2.f32 %v4076_v21  ;;  %v4209_v48 = vmul.f32 -1.442695, %v4198_v26 }
  0x50   : > { %v3259_v62 = vpop.eup %3258  ;;  %2307 = vst.msk [vmem:[%s4194_s10] sm:$0xf] %vm2306_vm0, %v2759_v22  ;;  %v2761_v10 = vpack.c.bf16 %v1668_v39, %v1668_v39  ;;  %v1670_v28 = vmul.f32 %v3257_v59, %v3983_v32  ;;  %3284 = vpow2.f32 %v4081_v23  ;;  %v4216_v4 = vadd.f32 %v3948_v14, %v669_v7 }
  0x51   : > { %v3261_v8 = vpop.eup %3260  ;;  %2308 = vst.msk [vmem:[%s4194_s10 + $0x4] sm:$0xf] %vm2306_vm0, %v2760_v30  ;;  %v2762_v31 = vpack.c.bf16 %v1669_v27, %v1669_v27  ;;  %v1671_v21 = vmul.f32 %v3259_v62, %v3986_v33  ;;  %3286 = vpow2.f32 %v4084_v51  ;;  %v4223_v24 = vadd.f32 %v3948_v14, %v670_v60 }
  0x52   : > { %v3263_v42 = vpop.eup %3262  ;;  %2309 = vst.msk [vmem:[%s4194_s10 + $0x8] sm:$0xf] %vm2306_vm0, %v2761_v10  ;;  %v2763_v32 = vpack.c.bf16 %v1670_v28, %v1670_v28  ;;  %v1672_v23 = vmul.f32 %v3261_v8, %v3989_v44  ;;  %3288 = vpow2.f32 %v4097_v54  ;;  %v4230_v30 = vmul.f32 -1.442695, %v4216_v4 }
  0x53   : > { %v3265_v59 = vpop.eup %3264  ;;  %2310 = vst.msk [vmem:[%s4194_s10 + $0xc] sm:$0xf] %vm2306_vm0, %v2762_v31  ;;  %v2764_v33 = vpack.c.bf16 %v1671_v21, %v1671_v21  ;;  %v1673_v51 = vmul.f32 %v3263_v42, %v3992_v35  ;;  %3290 = vpow2.f32 %v4102_v3  ;;  %v4237_v34 = vmul.f32 -1.442695, %v4223_v24 }
  0x54   : > { %v3267_v61 = vpop.eup %3266  ;;  %2311 = vst.msk [vmem:[%s4194_s10 + $0x10] sm:$0xf] %vm2306_vm0, %v2763_v32  ;;  %v2765_v44 = vpack.c.bf16 %v1672_v23, %v1672_v23  ;;  %v1674_v54 = vmul.f32 %v3265_v59, %v4007_v18  ;;  %3292 = vpow2.f32 %v4114_v17  ;;  %v671_v7 = vmul.f32 %v3934_v63, %v3940_v6 }
  0x55   : > { %v3269_v56 = vpop.eup %3268  ;;  %2312 = vst.msk [vmem:[%s4194_s10 + $0x14] sm:$0xf] %vm2306_vm0, %v2764_v33  ;;  %v2766_v35 = vpack.c.bf16 %v1673_v51, %v1673_v51  ;;  %v1675_v3 = vmul.f32 %v3267_v61, %v4010_v45  ;;  %3294 = vpow2.f32 %v4119_v53  ;;  %v672_v22 = vmul.f32 %v3934_v63, %v3943_v13 }
  0x56   : > { %v3271_v39 = vpop.eup %3270  ;;  %2313 = vst.msk [vmem:[%s4194_s10 + $0x18] sm:$0xf] %vm2306_vm0, %v2765_v44  ;;  %v2767_v18 = vpack.c.bf16 %v1674_v54, %v1674_v54  ;;  %v1676_v17 = vmul.f32 %v3269_v56, %v4023_v25  ;;  %3296 = vpow2.f32 %v4122_v11  ;;  %v4256_v6 = vadd.f32 %v3948_v14, %v671_v7 }
  0x57   : > { %v3273_v60 = vpop.eup %3272  ;;  %2314 = vst.msk [vmem:[%s4194_s10 + $0x1c] sm:$0xf] %vm2306_vm0, %v2766_v35  ;;  %v2768_v45 = vpack.c.bf16 %v1675_v3, %v1675_v3  ;;  %v1677_v53 = vmul.f32 %v3271_v39, %v4026_v47  ;;  %3298 = vpow2.f32 %v4134_v29  ;;  %v4263_v13 = vadd.f32 %v3948_v14, %v672_v22  ;;  %v3163_v39 = vld [vmem:[%s3793_s28 + $0xa8] sm:$0xff]  }
  0x58   : > { %v3275_v27 = vpop.eup %3274  ;;  %2315 = vst.msk [vmem:[%s4194_s10 + $0x20] sm:$0xf] %vm2306_vm0, %v2767_v18  ;;  %v2769_v25 = vpack.c.bf16 %v1676_v17, %v1676_v17  ;;  %v1678_v11 = vmul.f32 %v3273_v60, %v4029_v50  ;;  %3300 = vpow2.f32 %v4146_v5  ;;  %v4270_v62 = vmul.f32 -1.442695, %v4256_v6 }
  0x59   : > { %v3277_v10 = vpop.eup %3276  ;;  %2316 = vst.msk [vmem:[%s4194_s10 + $0x24] sm:$0xf] %vm2306_vm0, %v2768_v45  ;;  %v2770_v47 = vpack.c.bf16 %v1677_v53, %v1677_v53  ;;  %v1679_v29 = vmul.f32 %v3275_v27, %v4032_v40  ;;  %3302 = vpow2.f32 %v4151_v15  ;;  %v4277_v28 = vmul.f32 -1.442695, %v4263_v13 }
  0x5a   : > { %v3279_v8 = vpop.eup %3278  ;;  %2317 = vst.msk [vmem:[%s4194_s10 + $0x28] sm:$0xf] %vm2306_vm0, %v2769_v25  ;;  %v2771_v50 = vpack.c.bf16 %v1678_v11, %v1678_v11  ;;  %v1680_v5 = vmul.f32 %v3277_v10, %v4043_v49  ;;  %3304 = vpow2.f32 %v4154_v16  ;;  %v5295_v31 = vunpack.c.l.bf16 %v3915_v57 }
  0x5b   : > { %v3281_v40 = vpop.eup %3280  ;;  %2318 = vst.msk [vmem:[%s4194_s10 + $0x2c] sm:$0xf] %vm2306_vm0, %v2770_v47  ;;  %v2772_v15 = vpack.c.bf16 %v1679_v29, %v1679_v29  ;;  %v1681_v42 = vmul.f32 %v3279_v8, %v4046_v55  ;;  %3306 = vpow2.f32 %v4166_v37  ;;  %v5296_v32 = vunpack.c.h.bf16 %v3915_v57 }
  0x5c   : > { %v539_v21 = vsub.f32 %v5295_v31, %v3797_v9  ;;  %v3283_v23 = vpop.eup %3282  ;;  %2319 = vst.msk [vmem:[%s4194_s10 + $0x30] sm:$0xf] %vm2306_vm0, %v2771_v50  ;;  %v2773_v16 = vpack.c.bf16 %v1680_v5, %v1680_v5  ;;  %v1298_v59 = vadd.f32 1.0, %v3281_v40  ;;  %3308 = vpow2.f32 %v4178_v43 }
  0x5d   : > { %v540_v49 = vsub.f32 %v5296_v32, %v3797_v9  ;;  %v3285_v51 = vpop.eup %3284  ;;  %2320 = vst.msk [vmem:[%s4194_s10 + $0x34] sm:$0xf] %vm2306_vm0, %v2772_v15  ;;  %v2774_v55 = vpack.c.bf16 %v1681_v42, %v1681_v42  ;;  %v1299_v37 = vadd.f32 1.0, %v3283_v23  ;;  %3310 = vpow2.f32 %v4184_v36 }
  0x5e   : > { %v673_v33 = vmul.f32 %v3934_v63, %v539_v21  ;;  %v3287_v61 = vpop.eup %3286  ;;  %2321 = vst.msk [vmem:[%s4194_s10 + $0x38] sm:$0xf] %vm2306_vm0, %v2773_v16  ;;  %3312 = vrcp.f32 %v1298_v59  ;;  %v1300_v44 = vadd.f32 1.0, %v3285_v51  ;;  %v5297_v43 = vunpack.c.l.bf16 %v3918_v58  ;;  %v3164_v21 = vld [vmem:[%s3793_s28 + $0xb0] sm:$0xff]  }
  0x5f   : > { %v674_v57 = vmul.f32 %v3934_v63, %v540_v49  ;;  %v3289_v56 = vpop.eup %3288  ;;  %2322 = vst.msk [vmem:[%s4194_s10 + $0x3c] sm:$0xf] %vm2306_vm0, %v2774_v55  ;;  %3314 = vrcp.f32 %v1299_v37  ;;  %v1301_v35 = vadd.f32 1.0, %v3287_v61  ;;  %v5298_v3 = vunpack.c.h.bf16 %v3918_v58 }
  0x60   : > { %v4304_v54 = vadd.f32 %v3948_v14, %v673_v33  ;;  %v541_v7 = vsub.f32 %v5297_v43, %v3797_v9  ;;  %v3291_v18 = vpop.eup %3290  ;;  %3316 = vrcp.f32 %v1300_v44  ;;  %v1302_v17 = vadd.f32 1.0, %v3289_v56 }
  0x61   : > { %v4312_v36 = vadd.f32 %v3948_v14, %v674_v57  ;;  %v542_v22 = vsub.f32 %v5298_v3, %v3797_v9  ;;  %v3293_v53 = vpop.eup %3292  ;;  %3318 = vrcp.f32 %v1301_v35  ;;  %v1303_v27 = vadd.f32 1.0, %v3291_v18 }
  0x62   : > { %v4319_v60 = vmul.f32 -1.442695, %v4304_v54  ;;  %v675_v45 = vmul.f32 %v3934_v63, %v541_v7  ;;  %v3295_v58 = vpop.eup %3294  ;;  %3320 = vrcp.f32 %v1302_v17  ;;  %v1304_v10 = vadd.f32 1.0, %v3293_v53 }
  0x63   : > { %v4323_v25 = vmul.f32 -1.442695, %v4312_v36  ;;  %v676_v11 = vmul.f32 %v3934_v63, %v542_v22  ;;  %v2973_v29 = vunpack.c.l.bf16 %v3163_v39  ;;  %v3297_v8 = vpop.eup %3296  ;;  %3322 = vrcp.f32 %v1303_v27 }
  0x64   : > { %v4327_v47 = vadd.f32 %v3948_v14, %v675_v45  ;;  %v1305_v50 = vadd.f32 1.0, %v3295_v58  ;;  %v2974_v31 = vunpack.c.h.bf16 %v3163_v39  ;;  %v3299_v40 = vpop.eup %3298  ;;  %3324 = vrcp.f32 %v1304_v10  ;;  %v3165_v45 = vld [vmem:[%s3793_s28 + $0xb8] sm:$0xff]  }
  0x65   : > { %v4330_v5 = vadd.f32 %v3948_v14, %v676_v11  ;;  %v1306_v15 = vadd.f32 1.0, %v3297_v8  ;;  %v543_v32 = vsub.f32 %v2973_v29, %v3797_v9  ;;  %v3301_v49 = vpop.eup %3300  ;;  %v1307_v23 = vadd.f32 1.0, %v3299_v40 }
  0x66   : > { %v4334_v42 = vmul.f32 -1.442695, %v4327_v47  ;;  %3326 = vrcp.f32 %v1305_v50  ;;  %v544_v59 = vsub.f32 %v2974_v31, %v3797_v9  ;;  %v3303_v33 = vpop.eup %3302  ;;  %v1308_v51 = vadd.f32 1.0, %v3301_v49 }
  0x67   : > { %v4338_v16 = vmul.f32 -1.442695, %v4330_v5  ;;  %3328 = vrcp.f32 %v1306_v15  ;;  %v677_v55 = vmul.f32 %v3934_v63, %v543_v32  ;;  %v2977_v37 = vunpack.c.l.bf16 %v3164_v21  ;;  %v3305_v57 = vpop.eup %3304 }
  0x68   : > { %3330 = vrcp.f32 %v1307_v23  ;;  %v1309_v61 = vadd.f32 1.0, %v3303_v33  ;;  %v678_v44 = vmul.f32 %v3934_v63, %v544_v59  ;;  %v2978_v43 = vunpack.c.h.bf16 %v3164_v21  ;;  %v3307_v7 = vpop.eup %3306 }
  0x69   : > { %3332 = vrcp.f32 %v1308_v51  ;;  %v1310_v56 = vadd.f32 1.0, %v3305_v57  ;;  %v4344_v35 = vadd.f32 %v3948_v14, %v677_v55  ;;  %v545_v3 = vsub.f32 %v2977_v37, %v3797_v9  ;;  %v3309_v22 = vpop.eup %3308 }
  0x6a   : > { %3334 = vrcp.f32 %v1309_v61  ;;  %v1311_v39 = vadd.f32 1.0, %v3307_v7  ;;  %v4348_v18 = vadd.f32 %v3948_v14, %v678_v44  ;;  %v546_v17 = vsub.f32 %v2978_v43, %v3797_v9  ;;  %v3311_v53 = vpop.eup %3310 }
  0x6b   : > { %3336 = vrcp.f32 %v1310_v56  ;;  %v1312_v27 = vadd.f32 1.0, %v3309_v22  ;;  %v4353_v11 = vmul.f32 -1.442695, %v4344_v35  ;;  %v679_v58 = vmul.f32 %v3934_v63, %v545_v3  ;;  %v3313_v10 = vpop.eup %3312 }
  0x6c   : > { %3338 = vrcp.f32 %v1311_v39  ;;  %v1313_v29 = vadd.f32 1.0, %v3311_v53  ;;  %v4357_v8 = vmul.f32 -1.442695, %v4348_v18  ;;  %v680_v50 = vmul.f32 %v3934_v63, %v546_v17  ;;  %v3315_v31 = vpop.eup %3314  ;;  %v5299_v53 = vld [vmem:[#allocation2_spill] sm:$0xff] }
  0x6d   : > { %v1682_v21 = vmul.f32 %v3313_v10, %v4059_v20  ;;  %3340 = vrcp.f32 %v1312_v27  ;;  %v4362_v40 = vadd.f32 %v3948_v14, %v679_v58  ;;  %v2981_v15 = vunpack.c.l.bf16 %v3165_v45  ;;  %v3317_v32 = vpop.eup %3316 }
  0x6e   : > { %v1683_v49 = vmul.f32 %v3315_v31, %v4062_v1  ;;  %3342 = vrcp.f32 %v1313_v29  ;;  %v4366_v23 = vadd.f32 %v3948_v14, %v680_v50  ;;  %v2982_v59 = vunpack.c.h.bf16 %v3165_v45  ;;  %v3319_v33 = vpop.eup %3318  ;;  %v3166_v50 = vld [vmem:[%s3793_s28 + $0xc0] sm:$0xff]  }
  0x6f   : > { %v2775_v51 = vpack.c.bf16 %v1682_v21, %v1682_v21  ;;  %v1684_v55 = vmul.f32 %v3317_v32, %v4065_v2  ;;  %3344 = vpow2.f32 %v4187_v38  ;;  %v4371_v20 = vmul.f32 -1.442695, %v4362_v40  ;;  %v3321_v37 = vpop.eup %3320  ;;  %v5301_v21 = vld [vmem:[#allocation4_spill] sm:$0xff] }
  0x70   : > { %v2776_v57 = vpack.c.bf16 %v1683_v49, %v1683_v49  ;;  %v1685_v61 = vmul.f32 %v3319_v33, %v4068_v46  ;;  %3346 = vpow2.f32 %v4209_v48  ;;  %v4376_v1 = vmul.f32 -1.442695, %v4366_v23  ;;  %v3323_v44 = vpop.eup %3322 }
  0x71   : > { %2323 = vst.msk [vmem:[%s4194_s10 + $0x40] sm:$0xf] %vm2306_vm0, %v2775_v51  ;;  %v2777_v43 = vpack.c.bf16 %v1684_v55, %v1684_v55  ;;  %v1686_v2 = vmul.f32 %v3321_v37, %v4087_v52  ;;  %3348 = vpow2.f32 %v4230_v30  ;;  %v547_v38 = vsub.f32 %v2981_v15, %v3797_v9  ;;  %v3325_v7 = vpop.eup %3324 }
  0x72   : > { %2324 = vst.msk [vmem:[%s4194_s10 + $0x44] sm:$0xf] %vm2306_vm0, %v2776_v57  ;;  %v2778_v46 = vpack.c.bf16 %v1685_v61, %v1685_v61  ;;  %v1687_v48 = vmul.f32 %v3323_v44, %v4090_v41  ;;  %3350 = vpow2.f32 %v4237_v34  ;;  %v548_v56 = vsub.f32 %v2982_v59, %v3797_v9  ;;  %v5302_v59 = vld [vmem:[#allocation5_spill] sm:$0xff]  ;;  %v5303_v57 = vld [vmem:[#allocation6_spill] sm:$0xff] }
  0x73   : > { %v3327_v3 = vpop.eup %3326  ;;  %2325 = vst.msk [vmem:[%s4194_s10 + $0x48] sm:$0xf] %vm2306_vm0, %v2777_v43  ;;  %v2779_v52 = vpack.c.bf16 %v1686_v2, %v1686_v2  ;;  %v1688_v22 = vmul.f32 %v3325_v7, %v4105_v12  ;;  %3352 = vpow2.f32 %v4270_v62  ;;  %v681_v30 = vmul.f32 %v3934_v63, %v547_v38  ;;  %v5304_v2 = vld [vmem:[#allocation7_spill] sm:$0xff] }
  0x74   : > { %v3329_v39 = vpop.eup %3328  ;;  %2326 = vst.msk [vmem:[%s4194_s10 + $0x4c] sm:$0xf] %vm2306_vm0, %v2778_v46  ;;  %v2780_v41 = vpack.c.bf16 %v1687_v48, %v1687_v48  ;;  %v1689_v34 = vmul.f32 %v3327_v3, %v4108_v0  ;;  %3354 = vpow2.f32 %v4277_v28  ;;  %v682_v17 = vmul.f32 %v3934_v63, %v548_v56  ;;  %v5300_v28 = vld [vmem:[#allocation3_spill] sm:$0xff] }
  0x75   : > { %v3331_v45 = vpop.eup %3330  ;;  %2327 = vst.msk [vmem:[%s4194_s10 + $0x50] sm:$0xf] %vm2306_vm0, %v2779_v52  ;;  %v2781_v12 = vpack.c.bf16 %v1688_v22, %v1688_v22  ;;  %v1690_v62 = vmul.f32 %v3329_v39, %v5299_v53  ;;  %3356 = vpow2.f32 %v4319_v60  ;;  %v4403_v27 = vadd.f32 %v3948_v14, %v681_v30  ;;  %v5305_v52 = vld [vmem:[#allocation8_spill] sm:$0xff]  ;;  %v3167_v30 = vld [vmem:[%s3793_s28 + $0xc8] sm:$0xff]  }
  0x76   : > { %v3333_v58 = vpop.eup %3332  ;;  %2328 = vst.msk [vmem:[%s4194_s10 + $0x54] sm:$0xf] %vm2306_vm0, %v2780_v41  ;;  %v2782_v0 = vpack.c.bf16 %v1689_v34, %v1689_v34  ;;  %v1691_v10 = vmul.f32 %v3331_v45, %v5300_v28  ;;  %3358 = vpow2.f32 %v4323_v25  ;;  %v4410_v29 = vadd.f32 %v3948_v14, %v682_v17 }
  0x77   : > { %v3335_v31 = vpop.eup %3334  ;;  %2329 = vst.msk [vmem:[%s4194_s10 + $0x58] sm:$0xf] %vm2306_vm0, %v2781_v12  ;;  %v2783_v60 = vpack.c.bf16 %v1690_v62, %v1690_v62  ;;  %v1692_v15 = vmul.f32 %v3333_v58, %v5301_v21  ;;  %3360 = vpow2.f32 %v4334_v42  ;;  %v2547_v32 = vmul.f32 -1.442695, %v4403_v27 }
  0x78   : > { %v3337_v49 = vpop.eup %3336  ;;  %2330 = vst.msk [vmem:[%s4194_s10 + $0x5c] sm:$0xf] %vm2306_vm0, %v2782_v0  ;;  %v2784_v25 = vpack.c.bf16 %v1691_v10, %v1691_v10  ;;  %v1693_v33 = vmul.f32 %v3335_v31, %v5302_v59  ;;  %3362 = vpow2.f32 %v4338_v16  ;;  %v2548_v51 = vmul.f32 -1.442695, %v4410_v29  ;;  %v3168_v31 = vld [vmem:[%s3793_s28 + $0xd0] sm:$0xff]  }
  0x79   : > { %v3339_v55 = vpop.eup %3338  ;;  %2331 = vst.msk [vmem:[%s4194_s10 + $0x60] sm:$0xf] %vm2306_vm0, %v2783_v60  ;;  %v2785_v37 = vpack.c.bf16 %v1692_v15, %v1692_v15  ;;  %v1694_v61 = vmul.f32 %v3337_v49, %v5303_v57  ;;  %3364 = vpow2.f32 %v4353_v11  ;;  %v2985_v42 = vunpack.c.l.bf16 %v3166_v50 }
  0x7a   : > { %v3341_v44 = vpop.eup %3340  ;;  %2332 = vst.msk [vmem:[%s4194_s10 + $0x64] sm:$0xf] %vm2306_vm0, %v2784_v25  ;;  %v2786_v43 = vpack.c.bf16 %v1693_v33, %v1693_v33  ;;  %v1695_v38 = vmul.f32 %v3339_v55, %v5304_v2  ;;  %3366 = vpow2.f32 %v4357_v8  ;;  %v2986_v16 = vunpack.c.h.bf16 %v3166_v50 }
  0x7b   : > { %v3343_v7 = vpop.eup %3342  ;;  %2333 = vst.msk [vmem:[%s4194_s10 + $0x68] sm:$0xf] %vm2306_vm0, %v2785_v37  ;;  %v2787_v46 = vpack.c.bf16 %v1694_v61, %v1694_v61  ;;  %v1696_v48 = vmul.f32 %v3341_v44, %v4169_v19  ;;  %3368 = vpow2.f32 %v4371_v20  ;;  %v549_v11 = vsub.f32 %v2985_v42, %v3797_v9 }
  0x7c   : > { %v3345_v56 = vpop.eup %3344  ;;  %2334 = vst.msk [vmem:[%s4194_s10 + $0x6c] sm:$0xf] %vm2306_vm0, %v2786_v43  ;;  %v2788_v3 = vpack.c.bf16 %v1695_v38, %v1695_v38  ;;  %v1697_v22 = vmul.f32 %v3343_v7, %v5305_v52  ;;  %3370 = vpow2.f32 %v4376_v1  ;;  %v550_v8 = vsub.f32 %v2986_v16, %v3797_v9 }
  0x7d   : > { %v3347_v39 = vpop.eup %3346  ;;  %2335 = vst.msk [vmem:[%s4194_s10 + $0x70] sm:$0xf] %vm2306_vm0, %v2787_v46  ;;  %v2789_v19 = vpack.c.bf16 %v1696_v48, %v1696_v48  ;;  %v1314_v20 = vadd.f32 1.0, %v3345_v56  ;;  %3372 = vpow2.f32 %v2547_v32  ;;  %v683_v41 = vmul.f32 %v3934_v63, %v549_v11 }
  0x7e   : > { %v3349_v34 = vpop.eup %3348  ;;  %2336 = vst.msk [vmem:[%s4194_s10 + $0x74] sm:$0xf] %vm2306_vm0, %v2788_v3  ;;  %v2790_v17 = vpack.c.bf16 %v1697_v22, %v1697_v22  ;;  %v1315_v45 = vadd.f32 1.0, %v3347_v39  ;;  %3374 = vpow2.f32 %v2548_v51  ;;  %v684_v1 = vmul.f32 %v3934_v63, %v550_v8  ;;  %v3169_v3 = vld [vmem:[%s3793_s28 + $0xd8] sm:$0xff]  }
  0x7f   : > { %v3351_v12 = vpop.eup %3350  ;;  %2337 = vst.msk [vmem:[%s4194_s10 + $0x78] sm:$0xf] %vm2306_vm0, %v2789_v19  ;;  %3376 = vrcp.f32 %v1314_v20  ;;  %v1316_v53 = vadd.f32 1.0, %v3349_v34  ;;  %v4451_v62 = vadd.f32 %v3948_v14, %v683_v41  ;;  %v2989_v58 = vunpack.c.l.bf16 %v3167_v30 }
  0x80   : > { %v3353_v0 = vpop.eup %3352  ;;  %2338 = vst.msk [vmem:[%s4194_s10 + $0x7c] sm:$0xf] %vm2306_vm0, %v2790_v17  ;;  %3378 = vrcp.f32 %v1315_v45  ;;  %v1317_v28 = vadd.f32 1.0, %v3351_v12  ;;  %v4456_v10 = vadd.f32 %v3948_v14, %v684_v1  ;;  %v2990_v50 = vunpack.c.h.bf16 %v3167_v30 }
  0x81   : > { %v3355_v60 = vpop.eup %3354  ;;  %3380 = vrcp.f32 %v1316_v53  ;;  %v1318_v21 = vadd.f32 1.0, %v3353_v0  ;;  %v4460_v15 = vmul.f32 -1.442695, %v4451_v62  ;;  %v551_v32 = vsub.f32 %v2989_v58, %v3797_v9  ;;  %v4488_v58 = vld [vmem:[%s5277_s4] ss:$0 sm:$0xff] }
  0x82   : > { %v3357_v49 = vpop.eup %3356  ;;  %3382 = vrcp.f32 %v1317_v28  ;;  %v1319_v25 = vadd.f32 1.0, %v3355_v60  ;;  %v4464_v59 = vmul.f32 -1.442695, %v4456_v10  ;;  %v552_v33 = vsub.f32 %v2990_v50, %v3797_v9  ;;  %v3170_v50 = vld [vmem:[%s3793_s28 + $0xe0] sm:$0xff]  }
  0x83   : > { %v3359_v51 = vpop.eup %3358  ;;  %3384 = vrcp.f32 %v1318_v21  ;;  %v1320_v55 = vadd.f32 1.0, %v3357_v49  ;;  %v685_v37 = vmul.f32 %v3934_v63, %v551_v32  ;;  %v2993_v57 = vunpack.c.l.bf16 %v3168_v31 }
  0x84   : > { %v3361_v61 = vpop.eup %3360  ;;  %3386 = vrcp.f32 %v1319_v25  ;;  %v1321_v42 = vadd.f32 1.0, %v3359_v51  ;;  %v686_v44 = vmul.f32 %v3934_v63, %v552_v33  ;;  %v2994_v43 = vunpack.c.h.bf16 %v3168_v31 }
  0x85   : > { %v3363_v2 = vpop.eup %3362  ;;  %3388 = vrcp.f32 %v1320_v55  ;;  %v1322_v38 = vadd.f32 1.0, %v3361_v61  ;;  %v4470_v16 = vadd.f32 %v3948_v14, %v685_v37  ;;  %v553_v7 = vsub.f32 %v2993_v57, %v3797_v9  ;;  %v5306_v55 = vld [vmem:[#allocation9_spill] sm:$0xff] }
  0x86   : > { %v3365_v46 = vpop.eup %3364  ;;  %3390 = vrcp.f32 %v1321_v42  ;;  %v1323_v48 = vadd.f32 1.0, %v3363_v2  ;;  %v4474_v11 = vadd.f32 %v3948_v14, %v686_v44  ;;  %v554_v56 = vsub.f32 %v2994_v43, %v3797_v9 }
  0x87   : > { %v3367_v52 = vpop.eup %3366  ;;  %3392 = vrcp.f32 %v1322_v38  ;;  %v1324_v22 = vadd.f32 1.0, %v3365_v46  ;;  %v2551_v8 = vmul.f32 -1.442695, %v4470_v16  ;;  %v687_v30 = vmul.f32 %v3934_v63, %v553_v7 }
  0x88   : > { %v3369_v39 = vpop.eup %3368  ;;  %3394 = vrcp.f32 %v1323_v48  ;;  %v1325_v19 = vadd.f32 1.0, %v3367_v52  ;;  %v2552_v20 = vmul.f32 -1.442695, %v4474_v11  ;;  %v688_v41 = vmul.f32 %v3934_v63, %v554_v56 }
  0x89   : > { %v3371_v34 = vpop.eup %3370  ;;  %3396 = vrcp.f32 %v1324_v22  ;;  %v1326_v17 = vadd.f32 1.0, %v3369_v39  ;;  %v4483_v45 = vadd.f32 %v3948_v14, %v687_v30  ;;  %v2997_v1 = vunpack.c.l.bf16 %v3169_v3 }
  0x8a   : > { %v3373_v12 = vpop.eup %3372  ;;  %3398 = vrcp.f32 %v1325_v19  ;;  %v1327_v53 = vadd.f32 1.0, %v3371_v34  ;;  %v4491_v0 = vadd.f32 %v4488_v58, %v688_v41  ;;  %v2998_v28 = vunpack.c.h.bf16 %v3169_v3 }
  0x8b   : > { %v3375_v31 = vpop.eup %3374  ;;  %3400 = vrcp.f32 %v1326_v17  ;;  %v1328_v60 = vadd.f32 1.0, %v3373_v12  ;;  %v2553_v14 = vmul.f32 -1.442695, %v4483_v45  ;;  %v555_v21 = vsub.f32 %v2997_v1, %v3797_v9  ;;  %v3171_v12 = vld [vmem:[%s3793_s28 + $0xe8] sm:$0xff]  }
  0x8c   : > { %v3377_v32 = vpop.eup %3376  ;;  %3402 = vrcp.f32 %v1327_v53  ;;  %v1329_v49 = vadd.f32 1.0, %v3375_v31  ;;  %v2554_v25 = vmul.f32 -1.442695, %v4491_v0  ;;  %v556_v33 = vsub.f32 %v2998_v28, %v3797_v9 }
  0x8d   : > { %v3379_v51 = vpop.eup %3378  ;;  %v1698_v37 = vmul.f32 %v3377_v32, %v5306_v55  ;;  %3404 = vrcp.f32 %v1328_v60  ;;  %v689_v57 = vmul.f32 %v3934_v63, %v555_v21  ;;  %v3001_v61 = vunpack.c.l.bf16 %v3170_v50 }
  0x8e   : > { %v3381_v42 = vpop.eup %3380  ;;  %v1699_v44 = vmul.f32 %v3379_v51, %v4198_v26  ;;  %3406 = vrcp.f32 %v1329_v49  ;;  %v690_v43 = vmul.f32 %v3934_v63, %v556_v33  ;;  %v3002_v2 = vunpack.c.h.bf16 %v3170_v50 }
  0x8f   : > { %v3383_v38 = vpop.eup %3382  ;;  %v2791_v7 = vpack.c.bf16 %v1698_v37, %v1698_v37  ;;  %v1700_v46 = vmul.f32 %v3381_v42, %v4216_v4  ;;  %3408 = vpow2.f32 %v4460_v15  ;;  %v4505_v48 = vadd.f32 %v4488_v58, %v689_v57 }
  0x90   : > { %v3385_v56 = vpop.eup %3384  ;;  %v2792_v3 = vpack.c.bf16 %v1699_v44, %v1699_v44  ;;  %v1701_v52 = vmul.f32 %v3383_v38, %v4223_v24  ;;  %3410 = vpow2.f32 %v4464_v59  ;;  %v4510_v26 = vadd.f32 %v4488_v58, %v690_v43 }
  0x91   : > { %v3387_v22 = vpop.eup %3386  ;;  %2339 = vst.msk [vmem:[%s4194_s10 + $0x80] sm:$0xf] %vm2306_vm0, %v2791_v7  ;;  %v2793_v30 = vpack.c.bf16 %v1700_v46, %v1700_v46  ;;  %v1702_v4 = vmul.f32 %v3385_v56, %v4256_v6  ;;  %3412 = vpow2.f32 %v2551_v8  ;;  %v2555_v15 = vmul.f32 -1.442695, %v4505_v48  ;;  %v3172_v46 = vld [vmem:[%s3793_s28 + $0xf0] sm:$0xff]  }
  0x92   : > { %v3389_v39 = vpop.eup %3388  ;;  %2340 = vst.msk [vmem:[%s4194_s10 + $0x84] sm:$0xf] %vm2306_vm0, %v2792_v3  ;;  %v2794_v24 = vpack.c.bf16 %v1701_v52, %v1701_v52  ;;  %v1703_v59 = vmul.f32 %v3387_v22, %v4263_v13  ;;  %3414 = vpow2.f32 %v2552_v20  ;;  %v2556_v19 = vmul.f32 -1.442695, %v4510_v26 }
  0x93   : > { %v3391_v41 = vpop.eup %3390  ;;  %2341 = vst.msk [vmem:[%s4194_s10 + $0x88] sm:$0xf] %vm2306_vm0, %v2793_v30  ;;  %v2795_v34 = vpack.c.bf16 %v1702_v4, %v1702_v4  ;;  %v1704_v6 = vmul.f32 %v3389_v39, %v4304_v54  ;;  %3416 = vpow2.f32 %v2553_v14  ;;  %v557_v8 = vsub.f32 %v3001_v61, %v3797_v9 }
  0x94   : > { %v3393_v17 = vpop.eup %3392  ;;  %2342 = vst.msk [vmem:[%s4194_s10 + $0x8c] sm:$0xf] %vm2306_vm0, %v2794_v24  ;;  %v2796_v1 = vpack.c.bf16 %v1703_v59, %v1703_v59  ;;  %v1705_v13 = vmul.f32 %v3391_v41, %v4312_v36  ;;  %3418 = vpow2.f32 %v2554_v25  ;;  %v558_v20 = vsub.f32 %v3002_v2, %v3797_v9 }
  0x95   : > { %v3395_v53 = vpop.eup %3394  ;;  %2343 = vst.msk [vmem:[%s4194_s10 + $0x90] sm:$0xf] %vm2306_vm0, %v2795_v34  ;;  %v2797_v28 = vpack.c.bf16 %v1704_v6, %v1704_v6  ;;  %v1706_v54 = vmul.f32 %v3393_v17, %v4327_v47  ;;  %3420 = vpow2.f32 %v2555_v15  ;;  %v691_v50 = vmul.f32 %v3934_v63, %v557_v8  ;;  %v3173_v8 = vld [vmem:[%s3793_s28 + $0xf8] sm:$0xff]  }
  0x96   : > { %v3397_v31 = vpop.eup %3396  ;;  %2344 = vst.msk [vmem:[%s4194_s10 + $0x94] sm:$0xf] %vm2306_vm0, %v2796_v1  ;;  %v2798_v60 = vpack.c.bf16 %v1705_v13, %v1705_v13  ;;  %v1707_v36 = vmul.f32 %v3395_v53, %v4330_v5  ;;  %3422 = vpow2.f32 %v2556_v19  ;;  %v692_v14 = vmul.f32 %v3934_v63, %v558_v20 }
  0x97   : > { %v3399_v21 = vpop.eup %3398  ;;  %2345 = vst.msk [vmem:[%s4194_s10 + $0x98] sm:$0xf] %vm2306_vm0, %v2797_v28  ;;  %v2799_v32 = vpack.c.bf16 %v1706_v54, %v1706_v54  ;;  %v1708_v47 = vmul.f32 %v3397_v31, %v4344_v35  ;;  %v4541_v49 = vadd.f32 %v4488_v58, %v691_v50  ;;  %v3005_v25 = vunpack.c.l.bf16 %v3171_v12 }
  0x98   : > { %v3401_v33 = vpop.eup %3400  ;;  %2346 = vst.msk [vmem:[%s4194_s10 + $0x9c] sm:$0xf] %vm2306_vm0, %v2798_v60  ;;  %v2800_v51 = vpack.c.bf16 %v1707_v36, %v1707_v36  ;;  %v1709_v5 = vmul.f32 %v3399_v21, %v4348_v18  ;;  %v4547_v55 = vadd.f32 %v4488_v58, %v692_v14  ;;  %v3006_v37 = vunpack.c.h.bf16 %v3171_v12 }
  0x99   : > { %v3403_v57 = vpop.eup %3402  ;;  %2347 = vst.msk [vmem:[%s4194_s10 + $0xa0] sm:$0xf] %vm2306_vm0, %v2799_v32  ;;  %v2801_v35 = vpack.c.bf16 %v1708_v47, %v1708_v47  ;;  %v1710_v61 = vmul.f32 %v3401_v33, %v4362_v40  ;;  %v2557_v42 = vmul.f32 -1.442695, %v4541_v49  ;;  %v559_v44 = vsub.f32 %v3005_v25, %v3797_v9  ;;  %v3174_v25 = vld [vmem:[%s3793_s28 + $0x100] sm:$0xff]  }
  0x9a   : > { %v3405_v43 = vpop.eup %3404  ;;  %2348 = vst.msk [vmem:[%s4194_s10 + $0xa4] sm:$0xf] %vm2306_vm0, %v2800_v51  ;;  %v2802_v18 = vpack.c.bf16 %v1709_v5, %v1709_v5  ;;  %v1711_v2 = vmul.f32 %v3403_v57, %v4366_v23  ;;  %v2558_v38 = vmul.f32 -1.442695, %v4547_v55  ;;  %v560_v7 = vsub.f32 %v3006_v37, %v3797_v9 }
  0x9b   : > { %v3407_v56 = vpop.eup %3406  ;;  %2349 = vst.msk [vmem:[%s4194_s10 + $0xa8] sm:$0xf] %vm2306_vm0, %v2801_v35  ;;  %v2803_v40 = vpack.c.bf16 %v1710_v61, %v1710_v61  ;;  %v1712_v3 = vmul.f32 %v3405_v43, %v4403_v27  ;;  %3424 = vpow2.f32 %v2557_v42  ;;  %v693_v52 = vmul.f32 %v3934_v63, %v559_v44  ;;  %v3175_v42 = vld [vmem:[%s3793_s28 + $0x108] sm:$0xff]  }
  0x9c   : > { %v3409_v22 = vpop.eup %3408  ;;  %2350 = vst.msk [vmem:[%s4194_s10 + $0xac] sm:$0xf] %vm2306_vm0, %v2802_v18  ;;  %v2804_v23 = vpack.c.bf16 %v1711_v2, %v1711_v2  ;;  %v1713_v30 = vmul.f32 %v3407_v56, %v4410_v29  ;;  %3426 = vpow2.f32 %v2558_v38  ;;  %v694_v4 = vmul.f32 %v3934_v63, %v560_v7 }
  0x9d   : > { %v3411_v15 = vpop.eup %3410  ;;  %2351 = vst.msk [vmem:[%s4194_s10 + $0xb0] sm:$0xf] %vm2306_vm0, %v2803_v40  ;;  %v2805_v39 = vpack.c.bf16 %v1712_v3, %v1712_v3  ;;  %v1330_v27 = vadd.f32 1.0, %v3409_v22  ;;  %v4571_v24 = vadd.f32 %v4488_v58, %v693_v52  ;;  %v3009_v59 = vunpack.c.l.bf16 %v3172_v46 }
  0x9e   : > { %v3413_v19 = vpop.eup %3412  ;;  %2352 = vst.msk [vmem:[%s4194_s10 + $0xb4] sm:$0xf] %vm2306_vm0, %v2804_v23  ;;  %v2806_v41 = vpack.c.bf16 %v1713_v30, %v1713_v30  ;;  %v1331_v34 = vadd.f32 1.0, %v3411_v15  ;;  %v4576_v29 = vadd.f32 %v4488_v58, %v694_v4  ;;  %v3010_v6 = vunpack.c.h.bf16 %v3172_v46 }
  0x9f   : > { %v3415_v17 = vpop.eup %3414  ;;  %2353 = vst.msk [vmem:[%s4194_s10 + $0xb8] sm:$0xf] %vm2306_vm0, %v2805_v39  ;;  %3428 = vrcp.f32 %v1330_v27  ;;  %v1332_v1 = vadd.f32 1.0, %v3413_v19  ;;  %v2559_v13 = vmul.f32 -1.442695, %v4571_v24  ;;  %v561_v20 = vsub.f32 %v3009_v59, %v3797_v9  ;;  %v3176_v27 = vld [vmem:[%s3793_s28 + $0x110] sm:$0xff]  }
  0xa0   : > { %v3417_v12 = vpop.eup %3416  ;;  %2354 = vst.msk [vmem:[%s4194_s10 + $0xbc] sm:$0xf] %vm2306_vm0, %v2806_v41  ;;  %3430 = vrcp.f32 %v1331_v34  ;;  %v1333_v53 = vadd.f32 1.0, %v3415_v17  ;;  %v2560_v28 = vmul.f32 -1.442695, %v4576_v29  ;;  %v562_v54 = vsub.f32 %v3010_v6, %v3797_v9 }
  0xa1   : > { %v3419_v50 = vpop.eup %3418  ;;  %3432 = vrcp.f32 %v1332_v1  ;;  %v1334_v31 = vadd.f32 1.0, %v3417_v12  ;;  %v695_v60 = vmul.f32 %v3934_v63, %v561_v20  ;;  %v3013_v36 = vunpack.c.l.bf16 %v3173_v8 }
  0xa2   : > { %v3421_v14 = vpop.eup %3420  ;;  %3434 = vrcp.f32 %v1333_v53  ;;  %v1335_v21 = vadd.f32 1.0, %v3419_v50  ;;  %v696_v32 = vmul.f32 %v3934_v63, %v562_v54  ;;  %v3014_v47 = vunpack.c.h.bf16 %v3173_v8 }
  0xa3   : > { %v3423_v33 = vpop.eup %3422  ;;  %3436 = vrcp.f32 %v1334_v31  ;;  %v1336_v51 = vadd.f32 1.0, %v3421_v14  ;;  %v4591_v5 = vadd.f32 %v4488_v58, %v695_v60  ;;  %v563_v37 = vsub.f32 %v3013_v36, %v3797_v9 }
  0xa4   : > { %3438 = vrcp.f32 %v1335_v21  ;;  %v1337_v57 = vadd.f32 1.0, %v3423_v33  ;;  %v4595_v35 = vadd.f32 %v4488_v58, %v696_v32  ;;  %v564_v61 = vsub.f32 %v3014_v47, %v3797_v9 }
  0xa5   : > { %3440 = vrcp.f32 %v1336_v51  ;;  %v2561_v44 = vmul.f32 -1.442695, %v4591_v5  ;;  %v697_v43 = vmul.f32 %v3934_v63, %v563_v37  ;;  %v3017_v18 = vunpack.c.l.bf16 %v3174_v25 }
  0xa6   : > { %3442 = vrcp.f32 %v1337_v57  ;;  %v2562_v2 = vmul.f32 -1.442695, %v4595_v35  ;;  %v698_v38 = vmul.f32 %v3934_v63, %v564_v61  ;;  %v3018_v7 = vunpack.c.h.bf16 %v3174_v25 }
  0xa7   : > { %3444 = vpow2.f32 %v2559_v13  ;;  %v4604_v46 = vadd.f32 %v4488_v58, %v697_v43  ;;  %v565_v56 = vsub.f32 %v3017_v18, %v3797_v9  ;;  %v3021_v40 = vunpack.c.l.bf16 %v3175_v42 }
  0xa8   : > { %v3425_v3 = vpop.eup %3424  ;;  %3446 = vpow2.f32 %v2560_v28  ;;  %v4608_v52 = vadd.f32 %v4488_v58, %v698_v38  ;;  %v566_v22 = vsub.f32 %v3018_v7, %v3797_v9  ;;  %v3022_v23 = vunpack.c.h.bf16 %v3175_v42 }
  0xa9   : > { %v3427_v30 = vpop.eup %3426  ;;  %v1338_v4 = vadd.f32 1.0, %v3425_v3  ;;  %3448 = vpow2.f32 %v2561_v44  ;;  %v2563_v15 = vmul.f32 -1.442695, %v4604_v46  ;;  %v699_v39 = vmul.f32 %v3934_v63, %v565_v56 }
  0xaa   : > { %v1339_v59 = vadd.f32 1.0, %v3427_v30  ;;  %3450 = vpow2.f32 %v2562_v2  ;;  %v2564_v19 = vmul.f32 -1.442695, %v4608_v52  ;;  %v700_v41 = vmul.f32 %v3934_v63, %v566_v22  ;;  %v3177_v2 = vld [vmem:[%s3793_s28 + $0x118] sm:$0xff]  }
  0xab   : > { %3452 = vrcp.f32 %v1338_v4  ;;  %v4617_v34 = vadd.f32 %v4488_v58, %v699_v39  ;;  %v567_v6 = vsub.f32 %v3021_v40, %v3797_v9  ;;  %v568_v8 = vsub.f32 %v3022_v23, %v3797_v9 }
  0xac   : > { %v3429_v17 = vpop.eup %3428  ;;  %3454 = vrcp.f32 %v1339_v59  ;;  %v4622_v1 = vadd.f32 %v4488_v58, %v700_v41  ;;  %v3025_v13 = vunpack.c.l.bf16 %v3176_v27  ;;  %v3026_v20 = vunpack.c.h.bf16 %v3176_v27  ;;  %v3178_v41 = vld [vmem:[%s3793_s28 + $0x120] sm:$0xff]  }
  0xad   : > { %v3431_v12 = vpop.eup %3430  ;;  %v1714_v53 = vmul.f32 %v3429_v17, %v4451_v62  ;;  %3456 = vpow2.f32 %v2563_v15  ;;  %v2565_v28 = vmul.f32 -1.442695, %v4617_v34  ;;  %v701_v54 = vmul.f32 %v3934_v63, %v567_v6 }
  0xae   : > { %v3433_v50 = vpop.eup %3432  ;;  %v1715_v31 = vmul.f32 %v3431_v12, %v4456_v10  ;;  %3458 = vpow2.f32 %v2564_v19  ;;  %v2566_v60 = vmul.f32 -1.442695, %v4622_v1  ;;  %v702_v36 = vmul.f32 %v3934_v63, %v568_v8 }
  0xaf   : > { %v3435_v14 = vpop.eup %3434  ;;  %v2807_v21 = vpack.c.bf16 %v1714_v53, %v1714_v53  ;;  %v1716_v32 = vmul.f32 %v3433_v50, %v4470_v16  ;;  %3460 = vpow2.f32 %v2565_v28  ;;  %v4632_v62 = vadd.f32 %v4488_v58, %v701_v54 }
  0xb0   : > { %v3437_v47 = vpop.eup %3436  ;;  %v2808_v25 = vpack.c.bf16 %v1715_v31, %v1715_v31  ;;  %v1717_v33 = vmul.f32 %v3435_v14, %v4474_v11  ;;  %3462 = vpow2.f32 %v2566_v60  ;;  %v4636_v10 = vadd.f32 %v4488_v58, %v702_v36 }
  0xb1   : > { %v3439_v51 = vpop.eup %3438  ;;  %2355 = vst.msk [vmem:[%s4194_s10 + $0xc0] sm:$0xf] %vm2306_vm0, %v2807_v21  ;;  %v2809_v37 = vpack.c.bf16 %v1716_v32, %v1716_v32  ;;  %v1718_v16 = vmul.f32 %v3437_v47, %v4483_v45  ;;  %v2567_v57 = vmul.f32 -1.442695, %v4632_v62  ;;  %v569_v61 = vsub.f32 %v3025_v13, %v3797_v9 }
  0xb2   : > { %v3441_v42 = vpop.eup %3440  ;;  %2356 = vst.msk [vmem:[%s4194_s10 + $0xc4] sm:$0xf] %vm2306_vm0, %v2808_v25  ;;  %v2810_v11 = vpack.c.bf16 %v1717_v33, %v1717_v33  ;;  %v1719_v44 = vmul.f32 %v3439_v51, %v4491_v0  ;;  %v2568_v43 = vmul.f32 -1.442695, %v4636_v10  ;;  %v570_v18 = vsub.f32 %v3026_v20, %v3797_v9 }
  0xb3   : > { %v3443_v38 = vpop.eup %3442  ;;  %2357 = vst.msk [vmem:[%s4194_s10 + $0xc8] sm:$0xf] %vm2306_vm0, %v2809_v37  ;;  %v2811_v45 = vpack.c.bf16 %v1718_v16, %v1718_v16  ;;  %v1720_v7 = vmul.f32 %v3441_v42, %v4505_v48  ;;  %3464 = vpow2.f32 %v2567_v57  ;;  %v703_v56 = vmul.f32 %v3934_v63, %v569_v61  ;;  %v3179_v57 = vld [vmem:[%s3793_s28 + $0x128] sm:$0xff]  }
  0xb4   : > { %v3445_v40 = vpop.eup %3444  ;;  %2358 = vst.msk [vmem:[%s4194_s10 + $0xcc] sm:$0xf] %vm2306_vm0, %v2810_v11  ;;  %v2812_v0 = vpack.c.bf16 %v1719_v44, %v1719_v44  ;;  %v1721_v3 = vmul.f32 %v3443_v38, %v4510_v26  ;;  %3466 = vpow2.f32 %v2568_v43  ;;  %v704_v22 = vmul.f32 %v3934_v63, %v570_v18  ;;  %v3180_v43 = vld [vmem:[%s3793_s28 + $0x130] sm:$0xff]  }
  0xb5   : > { %v3447_v23 = vpop.eup %3446  ;;  %2359 = vst.msk [vmem:[%s4194_s10 + $0xd0] sm:$0xf] %vm2306_vm0, %v2811_v45  ;;  %v2813_v30 = vpack.c.bf16 %v1720_v7, %v1720_v7  ;;  %v1340_v48 = vadd.f32 1.0, %v3445_v40  ;;  %v4660_v4 = vadd.f32 %v4488_v58, %v703_v56  ;;  %v3029_v15 = vunpack.c.l.bf16 %v3177_v2 }
  0xb6   : > { %v3449_v39 = vpop.eup %3448  ;;  %2360 = vst.msk [vmem:[%s4194_s10 + $0xd4] sm:$0xf] %vm2306_vm0, %v2812_v0  ;;  %v2814_v27 = vpack.c.bf16 %v1721_v3, %v1721_v3  ;;  %v1341_v59 = vadd.f32 1.0, %v3447_v23  ;;  %v4665_v26 = vadd.f32 %v4488_v58, %v704_v22  ;;  %v3030_v19 = vunpack.c.h.bf16 %v3177_v2 }
  0xb7   : > { %v3451_v6 = vpop.eup %3450  ;;  %2361 = vst.msk [vmem:[%s4194_s10 + $0xd8] sm:$0xf] %vm2306_vm0, %v2813_v30  ;;  %3468 = vrcp.f32 %v1340_v48  ;;  %v1342_v8 = vadd.f32 1.0, %v3449_v39  ;;  %v2569_v17 = vmul.f32 -1.442695, %v4660_v4  ;;  %v571_v13 = vsub.f32 %v3029_v15, %v3797_v9 }
  0xb8   : > { %v3453_v20 = vpop.eup %3452  ;;  %2362 = vst.msk [vmem:[%s4194_s10 + $0xdc] sm:$0xf] %vm2306_vm0, %v2814_v27  ;;  %3470 = vrcp.f32 %v1341_v59  ;;  %v1343_v12 = vadd.f32 1.0, %v3451_v6  ;;  %v2570_v53 = vmul.f32 -1.442695, %v4665_v26  ;;  %v572_v28 = vsub.f32 %v3030_v19, %v3797_v9 }
  0xb9   : > { %v3455_v54 = vpop.eup %3454  ;;  %v1722_v50 = vmul.f32 %v3453_v20, %v4541_v49  ;;  %3472 = vrcp.f32 %v1342_v8  ;;  %v705_v31 = vmul.f32 %v3934_v63, %v571_v13  ;;  %v3033_v60 = vunpack.c.l.bf16 %v3178_v41 }
  0xba   : > { %v3457_v36 = vpop.eup %3456  ;;  %v1723_v14 = vmul.f32 %v3455_v54, %v4547_v55  ;;  %3474 = vrcp.f32 %v1343_v12  ;;  %v706_v21 = vmul.f32 %v3934_v63, %v572_v28  ;;  %v3034_v32 = vunpack.c.h.bf16 %v3178_v41 }
  0xbb   : > { %v3459_v47 = vpop.eup %3458  ;;  %v2815_v25 = vpack.c.bf16 %v1722_v50, %v1722_v50  ;;  %v1344_v33 = vadd.f32 1.0, %v3457_v36  ;;  %3476 = vpow2.f32 %v2569_v17  ;;  %v4681_v49 = vadd.f32 %v4488_v58, %v705_v31 }
  0xbc   : > { %v3461_v51 = vpop.eup %3460  ;;  %v2816_v37 = vpack.c.bf16 %v1723_v14, %v1723_v14  ;;  %v1345_v16 = vadd.f32 1.0, %v3459_v47  ;;  %3478 = vpow2.f32 %v2570_v53  ;;  %v4684_v55 = vadd.f32 %v4488_v58, %v706_v21 }
  0xbd   : > { %v3463_v61 = vpop.eup %3462  ;;  %2363 = vst.msk [vmem:[%s4194_s10 + $0xe0] sm:$0xf] %vm2306_vm0, %v2815_v25  ;;  %3480 = vrcp.f32 %v1344_v33  ;;  %v1346_v42 = vadd.f32 1.0, %v3461_v51  ;;  %v2571_v11 = vmul.f32 -1.442695, %v4681_v49  ;;  %v573_v44 = vsub.f32 %v3033_v60, %v3797_v9 }
  0xbe   : > { %2364 = vst.msk [vmem:[%s4194_s10 + $0xe4] sm:$0xf] %vm2306_vm0, %v2816_v37  ;;  %3482 = vrcp.f32 %v1345_v16  ;;  %v1347_v18 = vadd.f32 1.0, %v3463_v61  ;;  %v2572_v2 = vmul.f32 -1.442695, %v4684_v55  ;;  %v574_v38 = vsub.f32 %v3034_v32, %v3797_v9  ;;  %v3181_v16 = vld [vmem:[%s3793_s28 + $0x138] sm:$0xff]  }
  0xbf   : > { %3484 = vrcp.f32 %v1346_v42  ;;  %v707_v45 = vmul.f32 %v3934_v63, %v573_v44  ;;  %v3037_v7 = vunpack.c.l.bf16 %v3179_v57  ;;  %v3038_v56 = vunpack.c.h.bf16 %v3179_v57 }
  0xc0   : > { %v3465_v40 = vpop.eup %3464  ;;  %3486 = vrcp.f32 %v1347_v18  ;;  %v708_v0 = vmul.f32 %v3934_v63, %v574_v38  ;;  %v3041_v3 = vunpack.c.l.bf16 %v3180_v43  ;;  %v3042_v22 = vunpack.c.h.bf16 %v3180_v43 }
  0xc1   : > { %v3467_v23 = vpop.eup %3466  ;;  %v1348_v30 = vadd.f32 1.0, %v3465_v40  ;;  %3488 = vpow2.f32 %v2571_v11  ;;  %v4699_v48 = vadd.f32 %v4488_v58, %v707_v45  ;;  %v575_v15 = vsub.f32 %v3037_v7, %v3797_v9  ;;  %v3182_v11 = vld [vmem:[%s3793_s28 + $0x140] sm:$0xff]  }
  0xc2   : > { %v1349_v39 = vadd.f32 1.0, %v3467_v23  ;;  %3490 = vpow2.f32 %v2572_v2  ;;  %v4703_v27 = vadd.f32 %v4488_v58, %v708_v0  ;;  %v576_v59 = vsub.f32 %v3038_v56, %v3797_v9 }
  0xc3   : > { %3492 = vrcp.f32 %v1348_v30  ;;  %v2573_v19 = vmul.f32 -1.442695, %v4699_v48  ;;  %v709_v41 = vmul.f32 %v3934_v63, %v575_v15  ;;  %v577_v6 = vsub.f32 %v3041_v3, %v3797_v9 }
  0xc4   : > { %v3469_v8 = vpop.eup %3468  ;;  %3494 = vrcp.f32 %v1349_v39  ;;  %v2574_v17 = vmul.f32 -1.442695, %v4703_v27  ;;  %v710_v13 = vmul.f32 %v3934_v63, %v576_v59  ;;  %v578_v20 = vsub.f32 %v3042_v22, %v3797_v9 }
  0xc5   : > { %v3471_v12 = vpop.eup %3470  ;;  %v1724_v53 = vmul.f32 %v3469_v8, %v4571_v24  ;;  %3496 = vpow2.f32 %v2573_v19  ;;  %v4714_v28 = vadd.f32 %v4488_v58, %v709_v41  ;;  %v711_v54 = vmul.f32 %v3934_v63, %v577_v6 }
  0xc6   : > { %v3473_v50 = vpop.eup %3472  ;;  %v1725_v31 = vmul.f32 %v3471_v12, %v4576_v29  ;;  %3498 = vpow2.f32 %v2574_v17  ;;  %v4719_v60 = vadd.f32 %v4488_v58, %v710_v13  ;;  %v712_v36 = vmul.f32 %v3934_v63, %v578_v20 }
  0xc7   : > { %v3475_v14 = vpop.eup %3474  ;;  %v2817_v21 = vpack.c.bf16 %v1724_v53, %v1724_v53  ;;  %v1726_v24 = vmul.f32 %v3473_v50, %v4591_v5  ;;  %v2575_v32 = vmul.f32 -1.442695, %v4714_v28  ;;  %v4725_v47 = vadd.f32 %v4488_v58, %v711_v54 }
  0xc8   : > { %v3477_v25 = vpop.eup %3476  ;;  %v2818_v29 = vpack.c.bf16 %v1725_v31, %v1725_v31  ;;  %v1727_v33 = vmul.f32 %v3475_v14, %v4595_v35  ;;  %v2576_v51 = vmul.f32 -1.442695, %v4719_v60  ;;  %v4730_v37 = vadd.f32 %v4488_v58, %v712_v36 }
  0xc9   : > { %v3479_v57 = vpop.eup %3478  ;;  %2365 = vst.msk [vmem:[%s4194_s10 + $0xe8] sm:$0xf] %vm2306_vm0, %v2817_v21  ;;  %v2819_v5 = vpack.c.bf16 %v1726_v24, %v1726_v24  ;;  %v1350_v61 = vadd.f32 1.0, %v3477_v25  ;;  %3500 = vpow2.f32 %v2575_v32  ;;  %v2577_v42 = vmul.f32 -1.442695, %v4725_v47 }
  0xca   : > { %v3481_v44 = vpop.eup %3480  ;;  %2366 = vst.msk [vmem:[%s4194_s10 + $0xec] sm:$0xf] %vm2306_vm0, %v2818_v29  ;;  %v2820_v35 = vpack.c.bf16 %v1727_v33, %v1727_v33  ;;  %v1351_v43 = vadd.f32 1.0, %v3479_v57  ;;  %3502 = vpow2.f32 %v2576_v51  ;;  %v2578_v18 = vmul.f32 -1.442695, %v4730_v37 }
  0xcb   : > { %v3483_v2 = vpop.eup %3482  ;;  %2367 = vst.msk [vmem:[%s4194_s10 + $0xf0] sm:$0xf] %vm2306_vm0, %v2819_v5  ;;  %v1728_v38 = vmul.f32 %v3481_v44, %v4604_v46  ;;  %3504 = vrcp.f32 %v1350_v61  ;;  %v3045_v45 = vunpack.c.l.bf16 %v3181_v16  ;;  %v3046_v7 = vunpack.c.h.bf16 %v3181_v16  ;;  %v3184_v16 = vld [vmem:[%s3793_s28 + $0x150] sm:$0xff]  }
  0xcc   : > { %v3485_v56 = vpop.eup %3484  ;;  %2368 = vst.msk [vmem:[%s4194_s10 + $0xf4] sm:$0xf] %vm2306_vm0, %v2820_v35  ;;  %v1729_v40 = vmul.f32 %v3483_v2, %v4608_v52  ;;  %3506 = vrcp.f32 %v1351_v43  ;;  %v3049_v0 = vunpack.c.l.bf16 %v3182_v11  ;;  %v3050_v3 = vunpack.c.h.bf16 %v3182_v11 }
  0xcd   : > { %v3487_v22 = vpop.eup %3486  ;;  %v2821_v23 = vpack.c.bf16 %v1728_v38, %v1728_v38  ;;  %v1730_v30 = vmul.f32 %v3485_v56, %v4617_v34  ;;  %3508 = vpow2.f32 %v2577_v42  ;;  %v579_v46 = vsub.f32 %v3045_v45, %v3797_v9 }
  0xce   : > { %v3489_v15 = vpop.eup %3488  ;;  %v2822_v39 = vpack.c.bf16 %v1729_v40, %v1729_v40  ;;  %v1731_v59 = vmul.f32 %v3487_v22, %v4622_v1  ;;  %3510 = vpow2.f32 %v2578_v18  ;;  %v580_v19 = vsub.f32 %v3046_v7, %v3797_v9 }
  0xcf   : > { %v3491_v52 = vpop.eup %3490  ;;  %2369 = vst.msk [vmem:[%s4194_s10 + $0xf8] sm:$0xf] %vm2306_vm0, %v2821_v23  ;;  %v2823_v41 = vpack.c.bf16 %v1730_v30, %v1730_v30  ;;  %v1352_v6 = vadd.f32 1.0, %v3489_v15  ;;  %v713_v8 = vmul.f32 %v3934_v63, %v579_v46  ;;  %v581_v34 = vsub.f32 %v3049_v0, %v3797_v9 }
  0xd0   : > { %v3493_v17 = vpop.eup %3492  ;;  %2370 = vst.msk [vmem:[%s4194_s10 + $0xfc] sm:$0xf] %vm2306_vm0, %v2822_v39  ;;  %v2824_v13 = vpack.c.bf16 %v1731_v59, %v1731_v59  ;;  %v1353_v1 = vadd.f32 1.0, %v3491_v52  ;;  %v714_v20 = vmul.f32 %v3934_v63, %v580_v19  ;;  %v582_v12 = vsub.f32 %v3050_v3, %v3797_v9 }
  0xd1   : > { %v3495_v53 = vpop.eup %3494  ;;  %2371 = vst.msk [vmem:[%s4194_s10 + $0x100] sm:$0xf] %vm2306_vm0, %v2823_v41  ;;  %v1732_v54 = vmul.f32 %v3493_v17, %v4632_v62  ;;  %3512 = vrcp.f32 %v1352_v6  ;;  %v4762_v50 = vadd.f32 %v4488_v58, %v713_v8  ;;  %v715_v31 = vmul.f32 %v3934_v63, %v581_v34  ;;  %v3183_v62 = vld [vmem:[%s3793_s28 + $0x148] sm:$0xff]   ;;  %v3185_v34 = vld [vmem:[%s3793_s28 + $0x158] sm:$0xff]  }
  0xd2   : > { %v3497_v36 = vpop.eup %3496  ;;  %2372 = vst.msk [vmem:[%s4194_s10 + $0x104] sm:$0xf] %vm2306_vm0, %v2824_v13  ;;  %v1733_v14 = vmul.f32 %v3495_v53, %v4636_v10  ;;  %3514 = vrcp.f32 %v1353_v1  ;;  %v4769_v21 = vadd.f32 %v4488_v58, %v714_v20  ;;  %v716_v24 = vmul.f32 %v3934_v63, %v582_v12 }
  0xd3   : > { %v3499_v32 = vpop.eup %3498  ;;  %v2825_v25 = vpack.c.bf16 %v1732_v54, %v1732_v54  ;;  %v1354_v29 = vadd.f32 1.0, %v3497_v36  ;;  %v2579_v33 = vmul.f32 -1.442695, %v4762_v50  ;;  %v4775_v51 = vadd.f32 %v4488_v58, %v715_v31 }
  0xd4   : > { %v2826_v57 = vpack.c.bf16 %v1733_v14, %v1733_v14  ;;  %v1355_v5 = vadd.f32 1.0, %v3499_v32  ;;  %v2580_v10 = vmul.f32 -1.442695, %v4769_v21  ;;  %v4780_v61 = vadd.f32 %v4488_v58, %v716_v24  ;;  %v3186_v14 = vld [vmem:[%s3793_s28 + $0x160] sm:$0xff]  }
  0xd5   : > { %2373 = vst.msk [vmem:[%s4194_s10 + $0x108] sm:$0xf] %vm2306_vm0, %v2825_v25  ;;  %3516 = vrcp.f32 %v1354_v29  ;;  %v2581_v42 = vmul.f32 -1.442695, %v4775_v51  ;;  %v3053_v11 = vunpack.c.l.bf16 %v3183_v62  ;;  %v3054_v44 = vunpack.c.h.bf16 %v3183_v62 }
  0xd6   : > { %v3501_v35 = vpop.eup %3500  ;;  %2374 = vst.msk [vmem:[%s4194_s10 + $0x10c] sm:$0xf] %vm2306_vm0, %v2826_v57  ;;  %3518 = vrcp.f32 %v1355_v5  ;;  %v2582_v43 = vmul.f32 -1.442695, %v4780_v61  ;;  %v3057_v18 = vunpack.c.l.bf16 %v3184_v16  ;;  %v3058_v2 = vunpack.c.h.bf16 %v3184_v16  ;;  %v3187_v57 = vld [vmem:[%s3793_s28 + $0x168] sm:$0xff]  }
  0xd7   : > { %v3503_v38 = vpop.eup %3502  ;;  %v1356_v45 = vadd.f32 1.0, %v3501_v35  ;;  %3520 = vpow2.f32 %v2579_v33  ;;  %v583_v7 = vsub.f32 %v3053_v11, %v3797_v9  ;;  %v584_v56 = vsub.f32 %v3054_v44, %v3797_v9 }
  0xd8   : > { %v3505_v40 = vpop.eup %3504  ;;  %v1357_v0 = vadd.f32 1.0, %v3503_v38  ;;  %3522 = vpow2.f32 %v2580_v10  ;;  %v585_v3 = vsub.f32 %v3057_v18, %v3797_v9  ;;  %v586_v22 = vsub.f32 %v3058_v2, %v3797_v9 }
  0xd9   : > { %v3507_v23 = vpop.eup %3506  ;;  %v1734_v30 = vmul.f32 %v3505_v40, %v4660_v4  ;;  %3524 = vrcp.f32 %v1356_v45  ;;  %v717_v46 = vmul.f32 %v3934_v63, %v583_v7  ;;  %v718_v15 = vmul.f32 %v3934_v63, %v584_v56 }
  0xda   : > { %v3509_v39 = vpop.eup %3508  ;;  %v1735_v59 = vmul.f32 %v3507_v23, %v4665_v26  ;;  %3526 = vrcp.f32 %v1357_v0  ;;  %v719_v19 = vmul.f32 %v3934_v63, %v585_v3  ;;  %v720_v52 = vmul.f32 %v3934_v63, %v586_v22 }
  0xdb   : > { %v3511_v41 = vpop.eup %3510  ;;  %v2827_v6 = vpack.c.bf16 %v1734_v30, %v1734_v30  ;;  %v1358_v8 = vadd.f32 1.0, %v3509_v39  ;;  %3528 = vpow2.f32 %v2581_v42  ;;  %v4799_v4 = vadd.f32 %v4488_v58, %v717_v46 }
  0xdc   : > { %v2828_v17 = vpack.c.bf16 %v1735_v59, %v1735_v59  ;;  %v1359_v13 = vadd.f32 1.0, %v3511_v41  ;;  %3530 = vpow2.f32 %v2582_v43  ;;  %v4803_v26 = vadd.f32 %v4488_v58, %v718_v15 }
  0xdd   : > { %2375 = vst.msk [vmem:[%s4194_s10 + $0x110] sm:$0xf] %vm2306_vm0, %v2827_v6  ;;  %3532 = vrcp.f32 %v1358_v8  ;;  %v2583_v1 = vmul.f32 -1.442695, %v4799_v4  ;;  %v4809_v20 = vadd.f32 %v4488_v58, %v719_v19  ;;  %v4812_v12 = vadd.f32 %v4488_v58, %v720_v52 }
  0xde   : > { %v3513_v53 = vpop.eup %3512  ;;  %2376 = vst.msk [vmem:[%s4194_s10 + $0x114] sm:$0xf] %vm2306_vm0, %v2828_v17  ;;  %3534 = vrcp.f32 %v1359_v13  ;;  %v2584_v54 = vmul.f32 -1.442695, %v4803_v26  ;;  %v3061_v31 = vunpack.c.l.bf16 %v3185_v34  ;;  %v3062_v36 = vunpack.c.h.bf16 %v3185_v34 }
  0xdf   : > { %v3515_v24 = vpop.eup %3514  ;;  %v1736_v62 = vmul.f32 %v3513_v53, %v4681_v49  ;;  %3536 = vpow2.f32 %v2583_v1  ;;  %v2585_v32 = vmul.f32 -1.442695, %v4809_v20  ;;  %v2586_v25 = vmul.f32 -1.442695, %v4812_v12 }
  0xe0   : > { %v1737_v29 = vmul.f32 %v3515_v24, %v4684_v55  ;;  %3538 = vpow2.f32 %v2584_v54  ;;  %v587_v33 = vsub.f32 %v3061_v31, %v3797_v9  ;;  %v588_v16 = vsub.f32 %v3062_v36, %v3797_v9 }
  0xe1   : > { %v2829_v5 = vpack.c.bf16 %v1736_v62, %v1736_v62  ;;  %3540 = vpow2.f32 %v2585_v32  ;;  %v3065_v10 = vunpack.c.l.bf16 %v3186_v14  ;;  %v3066_v42 = vunpack.c.h.bf16 %v3186_v14 }
  0xe2   : > { %v3517_v49 = vpop.eup %3516  ;;  %v2830_v11 = vpack.c.bf16 %v1737_v29, %v1737_v29  ;;  %3542 = vpow2.f32 %v2586_v25  ;;  %v721_v44 = vmul.f32 %v3934_v63, %v587_v33  ;;  %v722_v35 = vmul.f32 %v3934_v63, %v588_v16 }
  0xe3   : > { %v3519_v43 = vpop.eup %3518  ;;  %2377 = vst.msk [vmem:[%s4194_s10 + $0x118] sm:$0xf] %vm2306_vm0, %v2829_v5  ;;  %v1738_v55 = vmul.f32 %v3517_v49, %v4699_v48  ;;  %v589_v18 = vsub.f32 %v3065_v10, %v3797_v9  ;;  %v590_v2 = vsub.f32 %v3066_v42, %v3797_v9  ;;  %v3069_v38 = vunpack.c.l.bf16 %v3187_v57 }
  0xe4   : > { %v3521_v45 = vpop.eup %3520  ;;  %2378 = vst.msk [vmem:[%s4194_s10 + $0x11c] sm:$0xf] %vm2306_vm0, %v2830_v11  ;;  %v1739_v7 = vmul.f32 %v3519_v43, %v4703_v27  ;;  %v4836_v56 = vadd.f32 %v4488_v58, %v721_v44  ;;  %v4839_v40 = vadd.f32 %v4488_v58, %v722_v35  ;;  %v3070_v0 = vunpack.c.h.bf16 %v3187_v57  ;;  %v3189_v43 = vld [vmem:[%s3793_s28 + $0x178] sm:$0xff]  }
  0xe5   : > { %v3523_v3 = vpop.eup %3522  ;;  %v2831_v48 = vpack.c.bf16 %v1738_v55, %v1738_v55  ;;  %v1360_v22 = vadd.f32 1.0, %v3521_v45  ;;  %v723_v23 = vmul.f32 %v3934_v63, %v589_v18  ;;  %v724_v30 = vmul.f32 %v3934_v63, %v590_v2  ;;  %v3190_v45 = vld [vmem:[%s3793_s28 + $0x180] sm:$0xff]  }
  0xe6   : > { %v3525_v46 = vpop.eup %3524  ;;  %v2832_v15 = vpack.c.bf16 %v1739_v7, %v1739_v7  ;;  %v1361_v39 = vadd.f32 1.0, %v3523_v3  ;;  %v2587_v27 = vmul.f32 -1.442695, %v4836_v56  ;;  %v2588_v59 = vmul.f32 -1.442695, %v4839_v40 }
  0xe7   : > { %v3527_v19 = vpop.eup %3526  ;;  %2379 = vst.msk [vmem:[%s4194_s10 + $0x120] sm:$0xf] %vm2306_vm0, %v2831_v48  ;;  %v1740_v52 = vmul.f32 %v3525_v46, %v4714_v28  ;;  %3544 = vrcp.f32 %v1360_v22  ;;  %v4849_v41 = vadd.f32 %v4488_v58, %v723_v23  ;;  %v4852_v6 = vadd.f32 %v4488_v58, %v724_v30  ;;  %v3188_v58 = vld [vmem:[%s3793_s28 + $0x170] sm:$0xff]  }
  0xe8   : > { %v3529_v8 = vpop.eup %3528  ;;  %2380 = vst.msk [vmem:[%s4194_s10 + $0x124] sm:$0xf] %vm2306_vm0, %v2832_v15  ;;  %v1741_v34 = vmul.f32 %v3527_v19, %v4719_v60  ;;  %3546 = vrcp.f32 %v1361_v39  ;;  %v591_v17 = vsub.f32 %v3069_v38, %v3797_v9  ;;  %v592_v13 = vsub.f32 %v3070_v0, %v3797_v9 }
  0xe9   : > { %v3531_v1 = vpop.eup %3530  ;;  %v2833_v28 = vpack.c.bf16 %v1740_v52, %v1740_v52  ;;  %v1362_v53 = vadd.f32 1.0, %v3529_v8  ;;  %3548 = vpow2.f32 %v2587_v27  ;;  %v2589_v54 = vmul.f32 -1.442695, %v4849_v41 }
  0xea   : > { %v3533_v31 = vpop.eup %3532  ;;  %v2834_v36 = vpack.c.bf16 %v1741_v34, %v1741_v34  ;;  %v1363_v14 = vadd.f32 1.0, %v3531_v1  ;;  %3550 = vpow2.f32 %v2588_v59  ;;  %v2590_v60 = vmul.f32 -1.442695, %v4852_v6 }
  0xeb   : > { %v3535_v24 = vpop.eup %3534  ;;  %2381 = vst.msk [vmem:[%s4194_s10 + $0x128] sm:$0xf] %vm2306_vm0, %v2833_v28  ;;  %v1742_v62 = vmul.f32 %v3533_v31, %v4725_v47  ;;  %3552 = vrcp.f32 %v1362_v53  ;;  %v725_v32 = vmul.f32 %v3934_v63, %v591_v17  ;;  %v726_v25 = vmul.f32 %v3934_v63, %v592_v13  ;;  %v4873_v47 = vld [vmem:[%s5277_s4] ss:$0 sm:$0xff] }
  0xec   : > { %v3537_v29 = vpop.eup %3536  ;;  %2382 = vst.msk [vmem:[%s4194_s10 + $0x12c] sm:$0xf] %vm2306_vm0, %v2834_v36  ;;  %v1743_v33 = vmul.f32 %v3535_v24, %v4730_v37  ;;  %3554 = vrcp.f32 %v1363_v14  ;;  %v3073_v16 = vunpack.c.l.bf16 %v3188_v58  ;;  %v3074_v57 = vunpack.c.h.bf16 %v3188_v58 }
  0xed   : > { %v3539_v5 = vpop.eup %3538  ;;  %v2835_v10 = vpack.c.bf16 %v1742_v62, %v1742_v62  ;;  %v1364_v42 = vadd.f32 1.0, %v3537_v29  ;;  %3556 = vpow2.f32 %v2589_v54  ;;  %v4876_v49 = vadd.f32 %v4873_v47, %v725_v32 }
  0xee   : > { %v3541_v11 = vpop.eup %3540  ;;  %v2836_v37 = vpack.c.bf16 %v1743_v33, %v1743_v33  ;;  %v1365_v44 = vadd.f32 1.0, %v3539_v5  ;;  %3558 = vpow2.f32 %v2590_v60  ;;  %v4879_v35 = vadd.f32 %v4873_v47, %v726_v25 }
  0xef   : > { %v3543_v55 = vpop.eup %3542  ;;  %2383 = vst.msk [vmem:[%s4194_s10 + $0x130] sm:$0xf] %vm2306_vm0, %v2835_v10  ;;  %3560 = vrcp.f32 %v1364_v42  ;;  %v1366_v18 = vadd.f32 1.0, %v3541_v11  ;;  %v2591_v2 = vmul.f32 -1.442695, %v4876_v49  ;;  %v593_v38 = vsub.f32 %v3073_v16, %v3797_v9 }
  0xf0   : > { %2384 = vst.msk [vmem:[%s4194_s10 + $0x134] sm:$0xf] %vm2306_vm0, %v2836_v37  ;;  %3562 = vrcp.f32 %v1365_v44  ;;  %v1367_v7 = vadd.f32 1.0, %v3543_v55  ;;  %v2592_v0 = vmul.f32 -1.442695, %v4879_v35  ;;  %v594_v3 = vsub.f32 %v3074_v57, %v3797_v9 }
  0xf1   : > { %3564 = vrcp.f32 %v1366_v18  ;;  %v727_v48 = vmul.f32 %v3934_v63, %v593_v38  ;;  %v3077_v22 = vunpack.c.l.bf16 %v3189_v43  ;;  %v3078_v23 = vunpack.c.h.bf16 %v3189_v43 }
  0xf2   : > { %3566 = vrcp.f32 %v1367_v7  ;;  %v728_v30 = vmul.f32 %v3934_v63, %v594_v3  ;;  %v3081_v46 = vunpack.c.l.bf16 %v3190_v45  ;;  %v3082_v15 = vunpack.c.h.bf16 %v3190_v45 }
  0xf3   : > { %3568 = vpow2.f32 %v2591_v2  ;;  %v4894_v39 = vadd.f32 %v4873_v47, %v727_v48  ;;  %v595_v27 = vsub.f32 %v3077_v22, %v3797_v9  ;;  %v596_v59 = vsub.f32 %v3078_v23, %v3797_v9  ;;  %v3192_v2 = vld [vmem:[%s3793_s28 + $0x190] sm:$0xff]  }
  0xf4   : > { %v3545_v19 = vpop.eup %3544  ;;  %3570 = vpow2.f32 %v2592_v0  ;;  %v4899_v52 = vadd.f32 %v4873_v47, %v728_v30  ;;  %v597_v8 = vsub.f32 %v3081_v46, %v3797_v9  ;;  %v598_v34 = vsub.f32 %v3082_v15, %v3797_v9 }
  0xf5   : > { %v3547_v17 = vpop.eup %3546  ;;  %v1744_v13 = vmul.f32 %v3545_v19, %v4762_v50  ;;  %v2593_v1 = vmul.f32 -1.442695, %v4894_v39  ;;  %v729_v28 = vmul.f32 %v3934_v63, %v595_v27  ;;  %v730_v53 = vmul.f32 %v3934_v63, %v596_v59 }
  0xf6   : > { %v3549_v54 = vpop.eup %3548  ;;  %v1745_v58 = vmul.f32 %v3547_v17, %v4769_v21  ;;  %v2594_v31 = vmul.f32 -1.442695, %v4899_v52  ;;  %v731_v36 = vmul.f32 %v3934_v63, %v597_v8  ;;  %v732_v14 = vmul.f32 %v3934_v63, %v598_v34 }
  0xf7   : > { %v3551_v60 = vpop.eup %3550  ;;  %v2837_v24 = vpack.c.bf16 %v1744_v13, %v1744_v13  ;;  %v1368_v50 = vadd.f32 1.0, %v3549_v54  ;;  %3572 = vpow2.f32 %v2593_v1  ;;  %v4912_v62 = vadd.f32 %v4873_v47, %v729_v28  ;;  %v3193_v13 = vld [vmem:[%s3793_s28 + $0x198] sm:$0xff]  }
  0xf8   : > { %v3553_v32 = vpop.eup %3552  ;;  %v2838_v25 = vpack.c.bf16 %v1745_v58, %v1745_v58  ;;  %v1369_v29 = vadd.f32 1.0, %v3551_v60  ;;  %3574 = vpow2.f32 %v2594_v31  ;;  %v4915_v21 = vadd.f32 %v4873_v47, %v730_v53 }
  0xf9   : > { %v3555_v33 = vpop.eup %3554  ;;  %2385 = vst.msk [vmem:[%s4194_s10 + $0x138] sm:$0xf] %vm2306_vm0, %v2837_v24  ;;  %v1746_v16 = vmul.f32 %v3553_v32, %v4775_v51  ;;  %3576 = vrcp.f32 %v1368_v50  ;;  %v2595_v57 = vmul.f32 -1.442695, %v4912_v62  ;;  %v4922_v5 = vadd.f32 %v4873_v47, %v731_v36  ;;  %v3191_v51 = vld [vmem:[%s3793_s28 + $0x188] sm:$0xff]  }
  0xfa   : > { %v3557_v10 = vpop.eup %3556  ;;  %2386 = vst.msk [vmem:[%s4194_s10 + $0x13c] sm:$0xf] %vm2306_vm0, %v2838_v25  ;;  %v1747_v42 = vmul.f32 %v3555_v33, %v4780_v61  ;;  %3578 = vrcp.f32 %v1369_v29  ;;  %v2596_v11 = vmul.f32 -1.442695, %v4915_v21  ;;  %v4929_v37 = vadd.f32 %v4873_v47, %v732_v14 }
  0xfb   : > { %v3559_v44 = vpop.eup %3558  ;;  %v2839_v43 = vpack.c.bf16 %v1746_v16, %v1746_v16  ;;  %v1370_v55 = vadd.f32 1.0, %v3557_v10  ;;  %3580 = vpow2.f32 %v2595_v57  ;;  %v2597_v18 = vmul.f32 -1.442695, %v4922_v5 }
  0xfc   : > { %v3561_v38 = vpop.eup %3560  ;;  %v2840_v45 = vpack.c.bf16 %v1747_v42, %v1747_v42  ;;  %v1371_v7 = vadd.f32 1.0, %v3559_v44  ;;  %3582 = vpow2.f32 %v2596_v11  ;;  %v2598_v61 = vmul.f32 -1.442695, %v4929_v37 }
  0xfd   : > { %v3563_v0 = vpop.eup %3562  ;;  %2387 = vst.msk [vmem:[%s4194_s10 + $0x140] sm:$0xf] %vm2306_vm0, %v2839_v43  ;;  %v1748_v3 = vmul.f32 %v3561_v38, %v4799_v4  ;;  %3584 = vrcp.f32 %v1370_v55  ;;  %v3085_v48 = vunpack.c.l.bf16 %v3191_v51  ;;  %v3086_v22 = vunpack.c.h.bf16 %v3191_v51 }
  0xfe   : > { %v3565_v23 = vpop.eup %3564  ;;  %2388 = vst.msk [vmem:[%s4194_s10 + $0x144] sm:$0xf] %vm2306_vm0, %v2840_v45  ;;  %v1749_v30 = vmul.f32 %v3563_v0, %v4803_v26  ;;  %3586 = vrcp.f32 %v1371_v7  ;;  %v3089_v46 = vunpack.c.l.bf16 %v3192_v2  ;;  %v3090_v15 = vunpack.c.h.bf16 %v3192_v2 }
  0xff   : > { %v3567_v27 = vpop.eup %3566  ;;  %v2841_v59 = vpack.c.bf16 %v1748_v3, %v1748_v3  ;;  %v1750_v19 = vmul.f32 %v3565_v23, %v4809_v20  ;;  %3588 = vpow2.f32 %v2597_v18  ;;  %v599_v4 = vsub.f32 %v3085_v48, %v3797_v9  ;;  %v3194_v48 = vld [vmem:[%s3793_s28 + $0x1a0] sm:$0xff]  }
 0x100   : > { %v3569_v8 = vpop.eup %3568  ;;  %v2842_v34 = vpack.c.bf16 %v1749_v30, %v1749_v30  ;;  %v1751_v17 = vmul.f32 %v3567_v27, %v4812_v12  ;;  %3590 = vpow2.f32 %v2598_v61  ;;  %v600_v26 = vsub.f32 %v3086_v22, %v3797_v9 }
 0x101   : > { %v3571_v1 = vpop.eup %3570  ;;  %2389 = vst.msk [vmem:[%s4194_s10 + $0x148] sm:$0xf] %vm2306_vm0, %v2841_v59  ;;  %v2843_v28 = vpack.c.bf16 %v1750_v19, %v1750_v19  ;;  %v1372_v53 = vadd.f32 1.0, %v3569_v8  ;;  %v733_v20 = vmul.f32 %v3934_v63, %v599_v4  ;;  %v601_v54 = vsub.f32 %v3089_v46, %v3797_v9 }
 0x102   : > { %2390 = vst.msk [vmem:[%s4194_s10 + $0x14c] sm:$0xf] %vm2306_vm0, %v2842_v34  ;;  %v2844_v58 = vpack.c.bf16 %v1751_v17, %v1751_v17  ;;  %v1373_v31 = vadd.f32 1.0, %v3571_v1  ;;  %v734_v12 = vmul.f32 %v3934_v63, %v600_v26  ;;  %v602_v36 = vsub.f32 %v3090_v15, %v3797_v9  ;;  %v3195_v1 = vld [vmem:[%s3793_s28 + $0x1a8] sm:$0xff]  }
 0x103   : > { %2391 = vst.msk [vmem:[%s4194_s10 + $0x150] sm:$0xf] %vm2306_vm0, %v2843_v28  ;;  %3592 = vrcp.f32 %v1372_v53  ;;  %v4957_v14 = vadd.f32 %v4873_v47, %v733_v20  ;;  %v735_v60 = vmul.f32 %v3934_v63, %v601_v54  ;;  %v3093_v24 = vunpack.c.l.bf16 %v3193_v13  ;;  %v3196_v54 = vld [vmem:[%s3793_s28 + $0x1b0] sm:$0xff]  }
 0x104   : > { %v3573_v50 = vpop.eup %3572  ;;  %2392 = vst.msk [vmem:[%s4194_s10 + $0x154] sm:$0xf] %vm2306_vm0, %v2844_v58  ;;  %3594 = vrcp.f32 %v1373_v31  ;;  %v4963_v32 = vadd.f32 %v4873_v47, %v734_v12  ;;  %v736_v25 = vmul.f32 %v3934_v63, %v602_v36  ;;  %v3094_v29 = vunpack.c.h.bf16 %v3193_v13 }
 0x105   : > { %v3575_v33 = vpop.eup %3574  ;;  %v1374_v16 = vadd.f32 1.0, %v3573_v50  ;;  %v2599_v57 = vmul.f32 -1.442695, %v4957_v14  ;;  %v4968_v10 = vadd.f32 %v4873_v47, %v735_v60  ;;  %v603_v42 = vsub.f32 %v3093_v24, %v3797_v9 }
 0x106   : > { %v3577_v11 = vpop.eup %3576  ;;  %v1375_v51 = vadd.f32 1.0, %v3575_v33  ;;  %v2600_v44 = vmul.f32 -1.442695, %v4963_v32  ;;  %v4973_v43 = vadd.f32 %v4873_v47, %v736_v25  ;;  %v604_v55 = vsub.f32 %v3094_v29, %v3797_v9 }
 0x107   : > { %v3579_v18 = vpop.eup %3578  ;;  %v1752_v2 = vmul.f32 %v3577_v11, %v4836_v56  ;;  %3596 = vrcp.f32 %v1374_v16  ;;  %v2601_v38 = vmul.f32 -1.442695, %v4968_v10  ;;  %v737_v45 = vmul.f32 %v3934_v63, %v603_v42 }
 0x108   : > { %v3581_v7 = vpop.eup %3580  ;;  %v1753_v61 = vmul.f32 %v3579_v18, %v4839_v40  ;;  %3598 = vrcp.f32 %v1375_v51  ;;  %v2602_v0 = vmul.f32 -1.442695, %v4973_v43  ;;  %v738_v3 = vmul.f32 %v3934_v63, %v604_v55 }
 0x109   : > { %v3583_v22 = vpop.eup %3582  ;;  %v2845_v23 = vpack.c.bf16 %v1752_v2, %v1752_v2  ;;  %v1376_v30 = vadd.f32 1.0, %v3581_v7  ;;  %3600 = vpow2.f32 %v2599_v57  ;;  %v4984_v56 = vadd.f32 %v4873_v47, %v737_v45 }
 0x10a   : > { %v3585_v46 = vpop.eup %3584  ;;  %v2846_v15 = vpack.c.bf16 %v1753_v61, %v1753_v61  ;;  %v1377_v27 = vadd.f32 1.0, %v3583_v22  ;;  %3602 = vpow2.f32 %v2600_v44  ;;  %v4987_v40 = vadd.f32 %v4873_v47, %v738_v3 }
 0x10b   : > { %v3587_v59 = vpop.eup %3586  ;;  %2393 = vst.msk [vmem:[%s4194_s10 + $0x158] sm:$0xf] %vm2306_vm0, %v2845_v23  ;;  %v1754_v19 = vmul.f32 %v3585_v46, %v4849_v41  ;;  %3604 = vrcp.f32 %v1376_v30  ;;  %v2603_v4 = vmul.f32 -1.442695, %v4984_v56  ;;  %v3097_v8 = vunpack.c.l.bf16 %v3194_v48 }
 0x10c   : > { %v3589_v34 = vpop.eup %3588  ;;  %2394 = vst.msk [vmem:[%s4194_s10 + $0x15c] sm:$0xf] %vm2306_vm0, %v2846_v15  ;;  %v1755_v17 = vmul.f32 %v3587_v59, %v4852_v6  ;;  %3606 = vrcp.f32 %v1377_v27  ;;  %v2604_v26 = vmul.f32 -1.442695, %v4987_v40  ;;  %v3098_v13 = vunpack.c.h.bf16 %v3194_v48  ;;  %v3197_v27 = vld [vmem:[%s3793_s28 + $0x1b8] sm:$0xff]  }
 0x10d   : > { %v3591_v28 = vpop.eup %3590  ;;  %v2847_v53 = vpack.c.bf16 %v1754_v19, %v1754_v19  ;;  %v1378_v41 = vadd.f32 1.0, %v3589_v34  ;;  %3608 = vpow2.f32 %v2601_v38  ;;  %v605_v20 = vsub.f32 %v3097_v8, %v3797_v9 }
 0x10e   : > { %v2848_v58 = vpack.c.bf16 %v1755_v17, %v1755_v17  ;;  %v1379_v31 = vadd.f32 1.0, %v3591_v28  ;;  %3610 = vpow2.f32 %v2602_v0  ;;  %v606_v12 = vsub.f32 %v3098_v13, %v3797_v9 }
 0x10f   : > { %2395 = vst.msk [vmem:[%s4194_s10 + $0x160] sm:$0xf] %vm2306_vm0, %v2847_v53  ;;  %3612 = vrcp.f32 %v1378_v41  ;;  %v739_v6 = vmul.f32 %v3934_v63, %v605_v20  ;;  %v3101_v36 = vunpack.c.l.bf16 %v3195_v1  ;;  %v3102_v60 = vunpack.c.h.bf16 %v3195_v1 }
 0x110   : > { %v3593_v24 = vpop.eup %3592  ;;  %2396 = vst.msk [vmem:[%s4194_s10 + $0x164] sm:$0xf] %vm2306_vm0, %v2848_v58  ;;  %3614 = vrcp.f32 %v1379_v31  ;;  %v740_v50 = vmul.f32 %v3934_v63, %v606_v12  ;;  %v3105_v25 = vunpack.c.l.bf16 %v3196_v54  ;;  %v3106_v29 = vunpack.c.h.bf16 %v3196_v54  ;;  %v3198_v12 = vld [vmem:[%s3793_s28 + $0x1c0] sm:$0xff]  }
 0x111   : > { %v3595_v33 = vpop.eup %3594  ;;  %v1756_v16 = vmul.f32 %v3593_v24, %v4876_v49  ;;  %3616 = vpow2.f32 %v2603_v4  ;;  %v5009_v57 = vadd.f32 %v4873_v47, %v739_v6  ;;  %v607_v42 = vsub.f32 %v3101_v36, %v3797_v9 }
 0x112   : > { %v1757_v11 = vmul.f32 %v3595_v33, %v4879_v35  ;;  %3618 = vpow2.f32 %v2604_v26  ;;  %v5014_v51 = vadd.f32 %v4873_v47, %v740_v50  ;;  %v608_v44 = vsub.f32 %v3102_v60, %v3797_v9 }
 0x113   : > { %v2849_v55 = vpack.c.bf16 %v1756_v16, %v1756_v16  ;;  %v2605_v18 = vmul.f32 -1.442695, %v5009_v57  ;;  %v741_v49 = vmul.f32 %v3934_v63, %v607_v42  ;;  %v609_v2 = vsub.f32 %v3105_v25, %v3797_v9 }
 0x114   : > { %v3597_v38 = vpop.eup %3596  ;;  %v2850_v45 = vpack.c.bf16 %v1757_v11, %v1757_v11  ;;  %v2606_v7 = vmul.f32 -1.442695, %v5014_v51  ;;  %v742_v35 = vmul.f32 %v3934_v63, %v608_v44  ;;  %v610_v61 = vsub.f32 %v3106_v29, %v3797_v9 }
 0x115   : > { %v3599_v0 = vpop.eup %3598  ;;  %2397 = vst.msk [vmem:[%s4194_s10 + $0x168] sm:$0xf] %vm2306_vm0, %v2849_v55  ;;  %v1758_v3 = vmul.f32 %v3597_v38, %v4894_v39  ;;  %3620 = vpow2.f32 %v2605_v18  ;;  %v5027_v48 = vadd.f32 %v4873_v47, %v741_v49  ;;  %v743_v22 = vmul.f32 %v3934_v63, %v609_v2 }
 0x116   : > { %v3601_v23 = vpop.eup %3600  ;;  %2398 = vst.msk [vmem:[%s4194_s10 + $0x16c] sm:$0xf] %vm2306_vm0, %v2850_v45  ;;  %v1759_v30 = vmul.f32 %v3599_v0, %v4899_v52  ;;  %3622 = vpow2.f32 %v2606_v7  ;;  %v5034_v46 = vadd.f32 %v4873_v47, %v742_v35  ;;  %v744_v15 = vmul.f32 %v3934_v63, %v610_v61  ;;  %v3199_v45 = vld [vmem:[%s3793_s28 + $0x1c8] sm:$0xff]  }
 0x117   : > { %v3603_v39 = vpop.eup %3602  ;;  %v2851_v59 = vpack.c.bf16 %v1758_v3, %v1758_v3  ;;  %v1380_v19 = vadd.f32 1.0, %v3601_v23  ;;  %v2607_v4 = vmul.f32 -1.442695, %v5027_v48  ;;  %v5040_v8 = vadd.f32 %v4873_v47, %v743_v22 }
 0x118   : > { %v3605_v34 = vpop.eup %3604  ;;  %v2852_v17 = vpack.c.bf16 %v1759_v30, %v1759_v30  ;;  %v1381_v52 = vadd.f32 1.0, %v3603_v39  ;;  %v2608_v26 = vmul.f32 -1.442695, %v5034_v46  ;;  %v5044_v13 = vadd.f32 %v4873_v47, %v744_v15 }
 0x119   : > { %v3607_v1 = vpop.eup %3606  ;;  %2399 = vst.msk [vmem:[%s4194_s10 + $0x170] sm:$0xf] %vm2306_vm0, %v2851_v59  ;;  %v1760_v28 = vmul.f32 %v3605_v34, %v4912_v62  ;;  %3624 = vrcp.f32 %v1380_v19  ;;  %v2609_v53 = vmul.f32 -1.442695, %v5040_v8  ;;  %v3109_v41 = vunpack.c.l.bf16 %v3197_v27 }
 0x11a   : > { %v3609_v20 = vpop.eup %3608  ;;  %2400 = vst.msk [vmem:[%s4194_s10 + $0x174] sm:$0xf] %vm2306_vm0, %v2852_v17  ;;  %v1761_v54 = vmul.f32 %v3607_v1, %v4915_v21  ;;  %3626 = vrcp.f32 %v1381_v52  ;;  %v2610_v58 = vmul.f32 -1.442695, %v5044_v13  ;;  %v3110_v31 = vunpack.c.h.bf16 %v3197_v27  ;;  %v3200_v27 = vld [vmem:[%s3793_s28 + $0x1d0] sm:$0xff]  }
 0x11b   : > { %v3611_v6 = vpop.eup %3610  ;;  %v2853_v36 = vpack.c.bf16 %v1760_v28, %v1760_v28  ;;  %v1382_v60 = vadd.f32 1.0, %v3609_v20  ;;  %3628 = vpow2.f32 %v2607_v4  ;;  %v611_v62 = vsub.f32 %v3109_v41, %v3797_v9 }
 0x11c   : > { %v3613_v24 = vpop.eup %3612  ;;  %v2854_v50 = vpack.c.bf16 %v1761_v54, %v1761_v54  ;;  %v1383_v25 = vadd.f32 1.0, %v3611_v6  ;;  %3630 = vpow2.f32 %v2608_v26  ;;  %v612_v29 = vsub.f32 %v3110_v31, %v3797_v9 }
 0x11d   : > { %v3615_v21 = vpop.eup %3614  ;;  %2401 = vst.msk [vmem:[%s4194_s10 + $0x178] sm:$0xf] %vm2306_vm0, %v2853_v36  ;;  %v1762_v33 = vmul.f32 %v3613_v24, %v4922_v5  ;;  %3632 = vrcp.f32 %v1382_v60  ;;  %v745_v16 = vmul.f32 %v3934_v63, %v611_v62  ;;  %v3113_v42 = vunpack.c.l.bf16 %v3198_v12 }
 0x11e   : > { %v3617_v11 = vpop.eup %3616  ;;  %2402 = vst.msk [vmem:[%s4194_s10 + $0x17c] sm:$0xf] %vm2306_vm0, %v2854_v50  ;;  %v1763_v44 = vmul.f32 %v3615_v21, %v4929_v37  ;;  %3634 = vrcp.f32 %v1383_v25  ;;  %v746_v55 = vmul.f32 %v3934_v63, %v612_v29  ;;  %v3114_v18 = vunpack.c.h.bf16 %v3198_v12 }
 0x11f   : > { %v3619_v49 = vpop.eup %3618  ;;  %v2855_v2 = vpack.c.bf16 %v1762_v33, %v1762_v33  ;;  %v1384_v38 = vadd.f32 1.0, %v3617_v11  ;;  %3636 = vpow2.f32 %v2609_v53  ;;  %v5066_v5 = vadd.f32 %v4873_v47, %v745_v16  ;;  %v3201_v16 = vld [vmem:[%s3793_s28 + $0x1d8] sm:$0xff]  }
 0x120   : > { %v2856_v7 = vpack.c.bf16 %v1763_v44, %v1763_v44  ;;  %v1385_v35 = vadd.f32 1.0, %v3619_v49  ;;  %3638 = vpow2.f32 %v2610_v58  ;;  %v5070_v61 = vadd.f32 %v4873_v47, %v746_v55 }
 0x121   : > { %2403 = vst.msk [vmem:[%s4194_s10 + $0x180] sm:$0xf] %vm2306_vm0, %v2855_v2  ;;  %3640 = vrcp.f32 %v1384_v38  ;;  %v2611_v37 = vmul.f32 -1.442695, %v5066_v5  ;;  %v613_v0 = vsub.f32 %v3113_v42, %v3797_v9  ;;  %v614_v3 = vsub.f32 %v3114_v18, %v3797_v9 }
 0x122   : > { %v3621_v22 = vpop.eup %3620  ;;  %2404 = vst.msk [vmem:[%s4194_s10 + $0x184] sm:$0xf] %vm2306_vm0, %v2856_v7  ;;  %3642 = vrcp.f32 %v1385_v35  ;;  %v2612_v23 = vmul.f32 -1.442695, %v5070_v61  ;;  %v3117_v30 = vunpack.c.l.bf16 %v3199_v45  ;;  %v3118_v15 = vunpack.c.h.bf16 %v3199_v45 }
 0x123   : > { %v3623_v39 = vpop.eup %3622  ;;  %v1386_v59 = vadd.f32 1.0, %v3621_v22  ;;  %3644 = vpow2.f32 %v2611_v37  ;;  %v747_v19 = vmul.f32 %v3934_v63, %v613_v0  ;;  %v748_v4 = vmul.f32 %v3934_v63, %v614_v3  ;;  %v3202_v22 = vld [vmem:[%s3793_s28 + $0x1e0] sm:$0xff]  }
 0x124   : > { %v1387_v34 = vadd.f32 1.0, %v3623_v39  ;;  %3646 = vpow2.f32 %v2612_v23  ;;  %v615_v17 = vsub.f32 %v3117_v30, %v3797_v9  ;;  %v616_v52 = vsub.f32 %v3118_v15, %v3797_v9 }
 0x125   : > { %3648 = vrcp.f32 %v1386_v59  ;;  %v5086_v26 = vadd.f32 %v4873_v47, %v747_v19  ;;  %v5089_v1 = vadd.f32 %v4873_v47, %v748_v4  ;;  %v3121_v28 = vunpack.c.l.bf16 %v3200_v27 }
 0x126   : > { %v3625_v53 = vpop.eup %3624  ;;  %3650 = vrcp.f32 %v1387_v34  ;;  %v749_v41 = vmul.f32 %v3934_v63, %v615_v17  ;;  %v750_v20 = vmul.f32 %v3934_v63, %v616_v52  ;;  %v3122_v54 = vunpack.c.h.bf16 %v3200_v27 }
 0x127   : > { %v3627_v58 = vpop.eup %3626  ;;  %v1764_v31 = vmul.f32 %v3625_v53, %v4957_v14  ;;  %v2613_v12 = vmul.f32 -1.442695, %v5086_v26  ;;  %v2614_v6 = vmul.f32 -1.442695, %v5089_v1  ;;  %v617_v36 = vsub.f32 %v3121_v28, %v3797_v9 }
 0x128   : > { %v3629_v60 = vpop.eup %3628  ;;  %v1765_v62 = vmul.f32 %v3627_v58, %v4963_v32  ;;  %v5099_v24 = vadd.f32 %v4873_v47, %v749_v41  ;;  %v5102_v50 = vadd.f32 %v4873_v47, %v750_v20  ;;  %v618_v25 = vsub.f32 %v3122_v54, %v3797_v9 }
 0x129   : > { %v3631_v29 = vpop.eup %3630  ;;  %v2857_v14 = vpack.c.bf16 %v1764_v31, %v1764_v31  ;;  %v1388_v21 = vadd.f32 1.0, %v3629_v60  ;;  %3652 = vpow2.f32 %v2613_v12  ;;  %v751_v33 = vmul.f32 %v3934_v63, %v617_v36  ;;  %v3203_v12 = vld [vmem:[%s3793_s28 + $0x1e8] sm:$0xff]  }
 0x12a   : > { %v3633_v42 = vpop.eup %3632  ;;  %v2858_v11 = vpack.c.bf16 %v1765_v62, %v1765_v62  ;;  %v1389_v32 = vadd.f32 1.0, %v3631_v29  ;;  %3654 = vpow2.f32 %v2614_v6  ;;  %v2615_v44 = vmul.f32 -1.442695, %v5099_v24 }
 0x12b   : > { %v3635_v55 = vpop.eup %3634  ;;  %2405 = vst.msk [vmem:[%s4194_s10 + $0x188] sm:$0xf] %vm2306_vm0, %v2857_v14  ;;  %v1766_v18 = vmul.f32 %v3633_v42, %v4968_v10  ;;  %3656 = vrcp.f32 %v1388_v21  ;;  %v2616_v49 = vmul.f32 -1.442695, %v5102_v50  ;;  %v5113_v2 = vadd.f32 %v4873_v47, %v751_v33 }
 0x12c   : > { %v3637_v38 = vpop.eup %3636  ;;  %2406 = vst.msk [vmem:[%s4194_s10 + $0x18c] sm:$0xf] %vm2306_vm0, %v2858_v11  ;;  %v1767_v45 = vmul.f32 %v3635_v55, %v4973_v43  ;;  %3658 = vrcp.f32 %v1389_v32  ;;  %v752_v7 = vmul.f32 %v3934_v63, %v618_v25  ;;  %v3125_v35 = vunpack.c.l.bf16 %v3201_v16 }
 0x12d   : > { %v3639_v37 = vpop.eup %3638  ;;  %v2859_v0 = vpack.c.bf16 %v1766_v18, %v1766_v18  ;;  %v1390_v3 = vadd.f32 1.0, %v3637_v38  ;;  %3660 = vpow2.f32 %v2615_v44  ;;  %v2617_v10 = vmul.f32 -1.442695, %v5113_v2 }
 0x12e   : > { %v3641_v23 = vpop.eup %3640  ;;  %v2860_v30 = vpack.c.bf16 %v1767_v45, %v1767_v45  ;;  %v1391_v15 = vadd.f32 1.0, %v3639_v37  ;;  %3662 = vpow2.f32 %v2616_v49  ;;  %v5122_v27 = vadd.f32 %v4873_v47, %v752_v7 }
 0x12f   : > { %v3643_v43 = vpop.eup %3642  ;;  %2407 = vst.msk [vmem:[%s4194_s10 + $0x190] sm:$0xf] %vm2306_vm0, %v2859_v0  ;;  %v1768_v39 = vmul.f32 %v3641_v23, %v4984_v56  ;;  %3664 = vrcp.f32 %v1390_v3  ;;  %v619_v59 = vsub.f32 %v3125_v35, %v3797_v9  ;;  %v3126_v19 = vunpack.c.h.bf16 %v3201_v16 }
 0x130   : > { %v3645_v4 = vpop.eup %3644  ;;  %2408 = vst.msk [vmem:[%s4194_s10 + $0x194] sm:$0xf] %vm2306_vm0, %v2860_v30  ;;  %v1769_v34 = vmul.f32 %v3643_v43, %v4987_v40  ;;  %3666 = vrcp.f32 %v1391_v15  ;;  %v2618_v17 = vmul.f32 -1.442695, %v5122_v27  ;;  %v3129_v52 = vunpack.c.l.bf16 %v3202_v22 }
 0x131   : > { %v3647_v28 = vpop.eup %3646  ;;  %v2861_v53 = vpack.c.bf16 %v1768_v39, %v1768_v39  ;;  %v1392_v41 = vadd.f32 1.0, %v3645_v4  ;;  %3668 = vpow2.f32 %v2617_v10  ;;  %v753_v56 = vmul.f32 %v3934_v63, %v619_v59  ;;  %v3204_v4 = vld [vmem:[%s3793_s28 + $0x1f0] sm:$0xff]  }
 0x132   : > { %v3649_v20 = vpop.eup %3648  ;;  %v2862_v54 = vpack.c.bf16 %v1769_v34, %v1769_v34  ;;  %v1393_v58 = vadd.f32 1.0, %v3647_v28  ;;  %3670 = vpow2.f32 %v2618_v17  ;;  %v620_v31 = vsub.f32 %v3126_v19, %v3797_v9 }
 0x133   : > { %v3651_v40 = vpop.eup %3650  ;;  %2409 = vst.msk [vmem:[%s4194_s10 + $0x198] sm:$0xf] %vm2306_vm0, %v2861_v53  ;;  %v1770_v6 = vmul.f32 %v3649_v20, %v5009_v57  ;;  %3672 = vrcp.f32 %v1392_v41  ;;  %v5139_v36 = vadd.f32 %v4873_v47, %v753_v56  ;;  %v621_v60 = vsub.f32 %v3129_v52, %v3797_v9 }
 0x134   : > { %2410 = vst.msk [vmem:[%s4194_s10 + $0x19c] sm:$0xf] %vm2306_vm0, %v2862_v54  ;;  %v1771_v62 = vmul.f32 %v3651_v40, %v5014_v51  ;;  %3674 = vrcp.f32 %v1393_v58  ;;  %v754_v25 = vmul.f32 %v3934_v63, %v620_v31  ;;  %v3130_v29 = vunpack.c.h.bf16 %v3202_v22 }
 0x135   : > { %v2863_v14 = vpack.c.bf16 %v1770_v6, %v1770_v6  ;;  %v2619_v21 = vmul.f32 -1.442695, %v5139_v36  ;;  %v755_v57 = vmul.f32 %v3934_v63, %v621_v60  ;;  %v3133_v33 = vunpack.c.l.bf16 %v3203_v12 }
 0x136   : > { %v3653_v16 = vpop.eup %3652  ;;  %v2864_v42 = vpack.c.bf16 %v1771_v62, %v1771_v62  ;;  %v5149_v11 = vadd.f32 %v4873_v47, %v754_v25  ;;  %v622_v32 = vsub.f32 %v3130_v29, %v3797_v9  ;;  %v3134_v44 = vunpack.c.h.bf16 %v3203_v12  ;;  %v3205_v12 = vld [vmem:[%s3793_s28 + $0x1f8] sm:$0xff]  }
 0x137   : > { %v3655_v51 = vpop.eup %3654  ;;  %2411 = vst.msk [vmem:[%s4194_s10 + $0x1a0] sm:$0xf] %vm2306_vm0, %v2863_v14  ;;  %v1394_v55 = vadd.f32 1.0, %v3653_v16  ;;  %3676 = vpow2.f32 %v2619_v21  ;;  %v5155_v18 = vadd.f32 %v4873_v47, %v755_v57  ;;  %v623_v49 = vsub.f32 %v3133_v33, %v3797_v9 }
 0x138   : > { %v3657_v38 = vpop.eup %3656  ;;  %2412 = vst.msk [vmem:[%s4194_s10 + $0x1a4] sm:$0xf] %vm2306_vm0, %v2864_v42  ;;  %v1395_v45 = vadd.f32 1.0, %v3655_v51  ;;  %v2620_v7 = vmul.f32 -1.442695, %v5149_v11  ;;  %v756_v35 = vmul.f32 %v3934_v63, %v622_v32  ;;  %v624_v37 = vsub.f32 %v3134_v44, %v3797_v9 }
 0x139   : > { %v3659_v0 = vpop.eup %3658  ;;  %v1772_v3 = vmul.f32 %v3657_v38, %v5027_v48  ;;  %3678 = vrcp.f32 %v1394_v55  ;;  %v2621_v10 = vmul.f32 -1.442695, %v5155_v18  ;;  %v757_v22 = vmul.f32 %v3934_v63, %v623_v49 }
 0x13a   : > { %v3661_v23 = vpop.eup %3660  ;;  %v1773_v30 = vmul.f32 %v3659_v0, %v5034_v46  ;;  %3680 = vrcp.f32 %v1395_v45  ;;  %v5168_v15 = vadd.f32 %v4873_v47, %v756_v35  ;;  %v758_v43 = vmul.f32 %v3934_v63, %v624_v37 }
 0x13b   : > { %v3663_v39 = vpop.eup %3662  ;;  %v2865_v59 = vpack.c.bf16 %v1772_v3, %v1772_v3  ;;  %v1396_v19 = vadd.f32 1.0, %v3661_v23  ;;  %3682 = vpow2.f32 %v2620_v7  ;;  %v5172_v48 = vadd.f32 %v4873_v47, %v757_v22 }
 0x13c   : > { %v3665_v34 = vpop.eup %3664  ;;  %v2866_v17 = vpack.c.bf16 %v1773_v30, %v1773_v30  ;;  %v1397_v46 = vadd.f32 1.0, %v3663_v39  ;;  %3684 = vpow2.f32 %v2621_v10  ;;  %v2622_v52 = vmul.f32 -1.442695, %v5168_v15 }
 0x13d   : > { %v3667_v28 = vpop.eup %3666  ;;  %2413 = vst.msk [vmem:[%s4194_s10 + $0x1a8] sm:$0xf] %vm2306_vm0, %v2865_v59  ;;  %v1774_v53 = vmul.f32 %v3665_v34, %v5040_v8  ;;  %3686 = vrcp.f32 %v1396_v19  ;;  %v2623_v41 = vmul.f32 -1.442695, %v5172_v48  ;;  %v5181_v56 = vadd.f32 %v4873_v47, %v758_v43 }
 0x13e   : > { %v3669_v20 = vpop.eup %3668  ;;  %2414 = vst.msk [vmem:[%s4194_s10 + $0x1ac] sm:$0xf] %vm2306_vm0, %v2866_v17  ;;  %v1775_v54 = vmul.f32 %v3667_v28, %v5044_v13  ;;  %3688 = vrcp.f32 %v1397_v46  ;;  %v3137_v58 = vunpack.c.l.bf16 %v3204_v4  ;;  %v3138_v31 = vunpack.c.h.bf16 %v3204_v4 }
 0x13f   : > { %v3671_v40 = vpop.eup %3670  ;;  %v2867_v6 = vpack.c.bf16 %v1774_v53, %v1774_v53  ;;  %v1398_v8 = vadd.f32 1.0, %v3669_v20  ;;  %3690 = vpow2.f32 %v2622_v52  ;;  %v2624_v60 = vmul.f32 -1.442695, %v5181_v56 }
 0x140   : > { %v3673_v62 = vpop.eup %3672  ;;  %v2868_v25 = vpack.c.bf16 %v1775_v54, %v1775_v54  ;;  %v1399_v29 = vadd.f32 1.0, %v3671_v40  ;;  %3692 = vpow2.f32 %v2623_v41  ;;  %v625_v14 = vsub.f32 %v3137_v58, %v3797_v9 }
 0x141   : > { %v3675_v21 = vpop.eup %3674  ;;  %2415 = vst.msk [vmem:[%s4194_s10 + $0x1b0] sm:$0xf] %vm2306_vm0, %v2867_v6  ;;  %v1776_v13 = vmul.f32 %v3673_v62, %v5066_v5  ;;  %3694 = vrcp.f32 %v1398_v8  ;;  %v626_v57 = vsub.f32 %v3138_v31, %v3797_v9  ;;  %v3141_v33 = vunpack.c.l.bf16 %v3205_v12 }
 0x142   : > { %2416 = vst.msk [vmem:[%s4194_s10 + $0x1b4] sm:$0xf] %vm2306_vm0, %v2868_v25  ;;  %v1777_v16 = vmul.f32 %v3675_v21, %v5070_v61  ;;  %3696 = vrcp.f32 %v1399_v29  ;;  %v759_v42 = vmul.f32 %v3934_v63, %v625_v14  ;;  %v3142_v32 = vunpack.c.h.bf16 %v3205_v12 }
 0x143   : > { %v2869_v44 = vpack.c.bf16 %v1776_v13, %v1776_v13  ;;  %3698 = vpow2.f32 %v2624_v60  ;;  %v760_v51 = vmul.f32 %v3934_v63, %v626_v57  ;;  %v627_v5 = vsub.f32 %v3141_v33, %v3797_v9 }
 0x144   : > { %v3677_v55 = vpop.eup %3676  ;;  %v2870_v49 = vpack.c.bf16 %v1777_v16, %v1777_v16  ;;  %v5200_v38 = vadd.f32 %v4873_v47, %v759_v42  ;;  %v628_v45 = vsub.f32 %v3142_v32, %v3797_v9 }
 0x145   : > { %2417 = vst.msk [vmem:[%s4194_s10 + $0x1b8] sm:$0xf] %vm2306_vm0, %v2869_v44  ;;  %v1400_v61 = vadd.f32 1.0, %v3677_v55  ;;  %v5206_v7 = vadd.f32 %v4873_v47, %v760_v51  ;;  %v761_v35 = vmul.f32 %v3934_v63, %v627_v5 }
 0x146   : > { %v3679_v37 = vpop.eup %3678  ;;  %2418 = vst.msk [vmem:[%s4194_s10 + $0x1bc] sm:$0xf] %vm2306_vm0, %v2870_v49  ;;  %v2625_v0 = vmul.f32 -1.442695, %v5200_v38  ;;  %v762_v3 = vmul.f32 %v3934_v63, %v628_v45 }
 0x147   : > { %v3681_v10 = vpop.eup %3680  ;;  %v1778_v22 = vmul.f32 %v3679_v37, %v5086_v26  ;;  %3700 = vrcp.f32 %v1400_v61  ;;  %v2626_v9 = vmul.f32 -1.442695, %v5206_v7  ;;  %v5216_v23 = vadd.f32 %v4873_v47, %v761_v35 }
 0x148   : > { %v3683_v30 = vpop.eup %3682  ;;  %v1779_v43 = vmul.f32 %v3681_v10, %v5089_v1  ;;  %3702 = vpow2.f32 %v2625_v0  ;;  %v5220_v39 = vadd.f32 %v4873_v47, %v762_v3 }
 0x149   : > { %v3685_v59 = vpop.eup %3684  ;;  %v2871_v63 = vpack.c.bf16 %v1778_v22, %v1778_v22  ;;  %v1401_v19 = vadd.f32 1.0, %v3683_v30  ;;  %3704 = vpow2.f32 %v2626_v9  ;;  %v2627_v26 = vmul.f32 -1.442695, %v5216_v23 }
 0x14a   : > { %v3687_v4 = vpop.eup %3686  ;;  %v2872_v34 = vpack.c.bf16 %v1779_v43, %v1779_v43  ;;  %v1402_v17 = vadd.f32 1.0, %v3685_v59  ;;  %v2628_v46 = vmul.f32 -1.442695, %v5220_v39 }
 0x14b   : > { %v3689_v52 = vpop.eup %3688  ;;  %2419 = vst.msk [vmem:[%s4194_s10 + $0x1c0] sm:$0xf] %vm2306_vm0, %v2871_v63  ;;  %v1780_v1 = vmul.f32 %v3687_v4, %v5099_v24  ;;  %3706 = vrcp.f32 %v1401_v19 }
 0x14c   : > { %v3691_v47 = vpop.eup %3690  ;;  %2420 = vst.msk [vmem:[%s4194_s10 + $0x1c4] sm:$0xf] %vm2306_vm0, %v2872_v34  ;;  %v1781_v28 = vmul.f32 %v3689_v52, %v5102_v50  ;;  %3708 = vrcp.f32 %v1402_v17 }
 0x14d   : > { %v3693_v53 = vpop.eup %3692  ;;  %v2873_v41 = vpack.c.bf16 %v1780_v1, %v1780_v1  ;;  %v1403_v20 = vadd.f32 1.0, %v3691_v47  ;;  %3710 = vpow2.f32 %v2627_v26 }
 0x14e   : > { %v3695_v54 = vpop.eup %3694  ;;  %v2874_v58 = vpack.c.bf16 %v1781_v28, %v1781_v28  ;;  %v1404_v31 = vadd.f32 1.0, %v3693_v53  ;;  %3712 = vpow2.f32 %v2628_v46 }
 0x14f   : > { %v3697_v12 = vpop.eup %3696  ;;  %2421 = vst.msk [vmem:[%s4194_s10 + $0x1c8] sm:$0xf] %vm2306_vm0, %v2873_v41  ;;  %v1782_v24 = vmul.f32 %v3695_v54, %v5113_v2  ;;  %3714 = vrcp.f32 %v1403_v20 }
 0x150   : > { %v3699_v40 = vpop.eup %3698  ;;  %2422 = vst.msk [vmem:[%s4194_s10 + $0x1cc] sm:$0xf] %vm2306_vm0, %v2874_v58  ;;  %v1783_v50 = vmul.f32 %v3697_v12, %v5122_v27  ;;  %3716 = vrcp.f32 %v1404_v31 }
 0x151   : > { %v2875_v6 = vpack.c.bf16 %v1782_v24, %v1782_v24  ;;  %v1405_v8 = vadd.f32 1.0, %v3699_v40 }
 0x152   : > { %v2876_v60 = vpack.c.bf16 %v1783_v50, %v1783_v50 }
 0x153   : > { %2423 = vst.msk [vmem:[%s4194_s10 + $0x1d0] sm:$0xf] %vm2306_vm0, %v2875_v6  ;;  %3718 = vrcp.f32 %v1405_v8 }
 0x154   : > { %v3701_v62 = vpop.eup %3700  ;;  %2424 = vst.msk [vmem:[%s4194_s10 + $0x1d4] sm:$0xf] %vm2306_vm0, %v2876_v60 }
 0x155   : > { %v3703_v25 = vpop.eup %3702  ;;  %v1784_v2 = vmul.f32 %v3701_v62, %v5139_v36 }
 0x156   : > { %v3705_v29 = vpop.eup %3704  ;;  %v1406_v14 = vadd.f32 1.0, %v3703_v25 }
 0x157   : > { %v2877_v21 = vpack.c.bf16 %v1784_v2, %v1784_v2  ;;  %v1407_v13 = vadd.f32 1.0, %v3705_v29 }
 0x158   : > { %v3707_v27 = vpop.eup %3706  ;;  %3720 = vrcp.f32 %v1406_v14 }
 0x159   : > { %v3709_v57 = vpop.eup %3708  ;;  %2425 = vst.msk [vmem:[%s4194_s10 + $0x1d8] sm:$0xf] %vm2306_vm0, %v2877_v21  ;;  %v1785_v33 = vmul.f32 %v3707_v27, %v5149_v11  ;;  %3722 = vrcp.f32 %v1407_v13 }
 0x15a   : > { %v3711_v16 = vpop.eup %3710  ;;  %v1786_v42 = vmul.f32 %v3709_v57, %v5155_v18 }
 0x15b   : > { %v3713_v32 = vpop.eup %3712  ;;  %v2878_v36 = vpack.c.bf16 %v1785_v33, %v1785_v33  ;;  %v1408_v44 = vadd.f32 1.0, %v3711_v16 }
 0x15c   : > { %v3715_v51 = vpop.eup %3714  ;;  %v2879_v5 = vpack.c.bf16 %v1786_v42, %v1786_v42  ;;  %v1409_v55 = vadd.f32 1.0, %v3713_v32 }
 0x15d   : > { %v3717_v49 = vpop.eup %3716  ;;  %2426 = vst.msk [vmem:[%s4194_s10 + $0x1dc] sm:$0xf] %vm2306_vm0, %v2878_v36  ;;  %v1787_v45 = vmul.f32 %v3715_v51, %v5168_v15  ;;  %3724 = vrcp.f32 %v1408_v44 }
 0x15e   : > { %2427 = vst.msk [vmem:[%s4194_s10 + $0x1e0] sm:$0xf] %vm2306_vm0, %v2879_v5  ;;  %v1788_v11 = vmul.f32 %v3717_v49, %v5172_v48  ;;  %3726 = vrcp.f32 %v1409_v55 }
 0x15f   : > { %v2880_v18 = vpack.c.bf16 %v1787_v45, %v1787_v45 }
 0x160   : > { %v3719_v61 = vpop.eup %3718  ;;  %v2881_v35 = vpack.c.bf16 %v1788_v11, %v1788_v11 }
 0x161   : > { %2428 = vst.msk [vmem:[%s4194_s10 + $0x1e4] sm:$0xf] %vm2306_vm0, %v2880_v18  ;;  %v1789_v37 = vmul.f32 %v3719_v61, %v5181_v56 }
 0x162   : > { %2429 = vst.msk [vmem:[%s4194_s10 + $0x1e8] sm:$0xf] %vm2306_vm0, %v2881_v35 }
 0x163   : > { %v2882_v0 = vpack.c.bf16 %v1789_v37, %v1789_v37 }
 0x165   : > { %v3721_v15 = vpop.eup %3720  ;;  %2430 = vst.msk [vmem:[%s4194_s10 + $0x1ec] sm:$0xf] %vm2306_vm0, %v2882_v0 }
 0x166   : > { %v3723_v3 = vpop.eup %3722  ;;  %v1790_v48 = vmul.f32 %v3721_v15, %v5200_v38 }
 0x167   : > { %v1791_v10 = vmul.f32 %v3723_v3, %v5206_v7 }
 0x168   : > { %v2883_v22 = vpack.c.bf16 %v1790_v48, %v1790_v48 }
 0x169   : > { %v2884_v9 = vpack.c.bf16 %v1791_v10, %v1791_v10 }
 0x16a   : > { %v3725_v30 = vpop.eup %3724  ;;  %2431 = vst.msk [vmem:[%s4194_s10 + $0x1f0] sm:$0xf] %vm2306_vm0, %v2883_v22 }
 0x16b   : > { %v3727_v43 = vpop.eup %3726  ;;  %2432 = vst.msk [vmem:[%s4194_s10 + $0x1f4] sm:$0xf] %vm2306_vm0, %v2884_v9  ;;  %v1792_v56 = vmul.f32 %v3725_v30, %v5216_v23 }
 0x16c   : > { %v1793_v59 = vmul.f32 %v3727_v43, %v5220_v39 }
 0x16d   : > { %v2885_v63 = vpack.c.bf16 %v1792_v56, %v1792_v56 }
 0x16e   : > { %v2886_v19 = vpack.c.bf16 %v1793_v59, %v1793_v59 }
 0x16f   : > { %2433 = vst.msk [vmem:[%s4194_s10 + $0x1f8] sm:$0xf] %vm2306_vm0, %v2885_v63 }
 0x170   : > { %2434 = vst.msk [vmem:[%s4194_s10 + $0x1fc] sm:$0xf] %vm2306_vm0, %v2886_v19 }
 0x171 PF: > { %s15_s18 = sadd.s32 1, %s3736_s18  }
 0x172   : > { %p12_p4 = scmp.ge.s32.totalorder %s15_s18, 4  }
 0x174   :  { %14 = sbr.rel (!%p12_p4) target bundleno = 1 (0x1), region = 70 }

// kernel: _lambda_.8
= control target key start
LH: loop header
LB: loop body
LE: loop exit
PB: predicated region body
PF: predicated region fallthrough
CT: control target
= control target key end

     0   :  { %s2047_s24 = smov 0   ;;  %s2049_s25 = smov 0   ;;  %s2338_s0 = inlined_call_operand.vmem [shape: bf16[2,34,34,64], index: 0, kind: input, shape index: {}, may-alias: {0,1,2}]   ;;  %s2339_s1 = inlined_call_operand.vmem [shape: bf16[2,34,34,64], index: 1, kind: input, shape index: {}, may-alias: {0,1,2}]   ;;  %s2340_s2 = inlined_call_operand.vmem [shape: bf16[2,34,34,64], index: 2, kind: input, shape index: {}, may-alias: {0,1,2}]   ;;  %s2341_s3 = inlined_call_operand.vmem [shape: bf16[9,64,64], index: 3, kind: input, shape index: {}]   ;;  %s2342_s4 = inlined_call_operand.vmem [shape: f32[1,64], index: 4, kind: input, shape index: {}]   ;;  %s2343_s5 = inlined_call_operand.vmem [shape: bf16[2,32,32,64], index: 5, kind: output, shape index: {0}]   ;;  %s2344_s6 = inlined_call_operand.vmem [shape: f32[1,64], index: 6, kind: output, shape index: {1}]   ;;  %s2345_s7 = inlined_call_operand.vmem [shape: f32[1,64], index: 7, kind: output, shape index: {2}]  }
   0x1   :  { %2346 = sst [smem:[#allocation4_spill]] %s2338_s0  ;;  %s2051_s26 = smov 0  }
   0x2   :  { %s2053_s27 = smov 0   ;;  %s2055_s28 = smov 0  }
   0x3 LB: > { %s27_s29 = sadd.s32 1, %s1996_s26  ;;  %s30_s30 = sadd.s32 1, %s2000_s27  ;;  %s2004_s28 = sphi %s2055_s28, %s18_s28   ;;  %s2000_s27 = sphi %s2053_s27, %s2355_s27   ;;  %s1996_s26 = sphi %s2051_s26, %s2354_s26   ;;  %s1992_s25 = sphi %s2049_s25, %s2353_s25   ;;  %s1988_s24 = sphi %s2047_s24, %s2352_s24  }
   0x4   : > { %p28_p0 = scmp.ge.s32.totalorder %s27_s29, 32  ;;  %p1569_p1 = scmp.ge.s32.totalorder %s2004_s28, 1 }
   0x5   : > { %p292_p2 = scmp.lt.s32.totalorder %s2004_s28, 65 }
   0x6   : > { %s2357_s29 = smov (%p28_p0, %s27_s29), 0  ;;  %s2359_s30 = smov (!%p28_p0, %s30_s30), %s2000_s27 }
   0x7   : > { %2347 = sst [smem:[#allocation2_spill]] %s2357_s29  ;;  %p293_p3 = pnand %p1569_p1, %p292_p2 }
   0x8   : > { %p32_p4 = scmp.ge.s32.totalorder %s2359_s30, 2  ;;  %p352_p5 = scmp.lt.s32.totalorder (!%p293_p3), %s1992_s25, 1 }
   0x9   : > { %296 = sbr.rel (%p293_p3) target bundleno = 343 (0x157), region = 40  ;;  %p354_p6 = scmp.lt.s32.totalorder (!%p293_p3), %s1988_s24, 33 }
   0xa   : > { %s2361_s30 = smov (%p32_p4, %s2359_s30), 0  ;;  %s361_s8 = sadd.s32 (!%p293_p3), 1, %s1988_s24 }
   0xb   : > { %2348 = sst [smem:[#allocation3_spill]] %s2361_s30  ;;  %s372_s9 = sadd.s32 (!%p293_p3), 2, %s1988_s24 }
   0xc   : > { %p364_p7 = scmp.lt.s32.totalorder (!%p293_p3), %s361_s8, 33  ;;  %p375_p8 = scmp.lt.s32.totalorder (!%p293_p3), %s372_s9, 33 }
   0xd   : > { %s2349_s0 = sld [smem:[#allocation4_spill]] (!%p293_p3)  ;;  %p385_p9 = scmp.lt.s32.totalorder (!%p293_p3), %s1988_s24, 31 }
   0xe   : > { %s353_s10 = scalar_select %p352_p5, %s1992_s25, 1 }
   0xf   : > { %s355_s11 = scalar_select %p354_p6, %s1988_s24, 33 }
  0x10   : > { %s1877_s12 = smul.u32 170, %s353_s10  ;;  %s2363_s8 = smov (!%p364_p7, %s361_s8), 33 }
  0x11   : > { %s1876_s13 = smul.u32 5, %s355_s11  ;;  %p393_p10 = scmp.eq.s32.totalorder %s1992_s25, 0 }
  0x12   : > { %s1878_s16 = smul.u32 5, %s2363_s8  ;;  %p394_p11 = scmp.eq.s32.totalorder %s1988_s24, 0 }
  0x13   : > { %s358_s14 = sadd.s32 %s1877_s12, %s1876_s13  ;;  %s1574_s11 = sshll.u32 %s353_s10, 7 }
  0x14   : > { %s1570_s15 = sshll.u32 %s358_s14, 2  ;;  %s368_s20 = sadd.s32 %s1878_s16, %s1877_s12 }
  0x15   : > { %s2090_s19 = scalar_lea.vmem %s2349_s0, %s1570_s15  ;;  %s1571_s21 = sshll.u32 %s368_s20, 2 }
  0x16   : > { %s2098_s30 = scalar_lea.vmem %s2339_s1, %s1571_s21  ;;  %s2365_s9 = smov (!%p375_p8, %s372_s9), 33 }
  0x17   : > { %s2367_s24 = smov (!%p385_p9, %s1988_s24), 31  ;;  %s1879_s13 = smul.u32 5, %s2365_s9 }
  0x18   : > { %p395_p12 = pnand %p394_p11, %p393_p10  ;;  %s1573_s8 = sshll.u32 %s2367_s24, 2 }
  0x19   : > { %s379_s14 = sadd.s32 %s1879_s13, %s1877_s12  ;;  %s389_s17 = sadd.s32 %s1574_s11, %s1573_s8 }
  0x1a   : > { %s1572_s15 = sshll.u32 %s379_s14, 2  ;;  %s1575_s18 = sshll.u32 %s389_s17, 2 }
  0x1b   : > { %s2104_s25 = scalar_lea.vmem %s2340_s2, %s1572_s15  ;;  %s2109_s21 = scalar_lea.vmem %s2343_s5, %s1575_s18 }
  0x1c   : > { %398 = sbr.rel (%p395_p12) target bundleno = 35 (0x23), region = 44 }
  0x21   : > { %vm399_vm0 = vcmask 516096   ;;  %v2006_v0 = vmov 0.0  }
  0x22   : > { %400 = vst.msk [vmem:[%s2344_s6] sm:$0x1] %vm399_vm0, %v2006_v0  ;;  %401 = vst.msk [vmem:[%s2345_s7] sm:$0x1] %vm399_vm0, %v2006_v0 }
  0x23 PF: > { %v1921_v1 = vld [vmem:[%s2341_s3 + $0x38] sm:$0xff]   ;;  %v1923_v3 = vld [vmem:[%s2341_s3 + $0x30] sm:$0xff]   ;;  %v1925_v5 = vld [vmem:[%s2341_s3 + $0x28] sm:$0xff]   ;;  %vm492_vm1 = vcmask 523264   ;;  %vm447_vm2 = vsmask.f32 7424 }
  0x24   : > { %v1922_v2 = vld [vmem:[%s2341_s3 + $0x18] sm:$0xff]   ;;  %1768 = vmatprep.subr.bf16.mxu0 %v1921_v1  ;;  %v1924_v4 = vld [vmem:[%s2341_s3 + $0x10] sm:$0xff]   ;;  %v1926_v6 = vld [vmem:[%s2341_s3 + $0x8] sm:$0xff]   ;;  %vm634_vm3 = vcmask 1046528   ;;  %vm1411_vm4 = vcmask 519168   ;;  %vm1373_vm5 = vcmask 516096  }
  0x25   : > { %1780 = vmatprep.subr.bf16.mxu1 %v1922_v2  ;;  %1769 = vmatpush3.bf16.msra.mxu0 %v1921_v1  ;;  %v1927_v7 = vld [vmem:[%s2341_s3 + $0x20] sm:$0xff]   ;;  %v2143_v10 = vld [vmem:[%s2090_s19 + $0x8] sm:$0xff]   ;;  %v2146_v11 = vld [vmem:[%s2090_s19 + $0x10] ss:$0 sps:$4 sm:$0x11]  }
  0x26   : > { %1781 = vmatpush3.bf16.msra.mxu1 %v1922_v2  ;;  %1770 = vmatprep.subr.bf16.mxu0 %v1923_v3  ;;  %v1928_v8 = vld [vmem:[%s2341_s3] sm:$0xff]   ;;  %v1932_v12 = vld [vmem:[%s2341_s3 + $0x58] sm:$0xff]   ;;  %v456_v15 = vshll.u32 %v2143_v10, 16  ;;  %v460_v16 = vshrl.u32 %v2143_v10, 16  ;;  %v464_v17 = vshll.u32 %v2146_v11, 16  ;;  %v1934_v25 = vld [vmem:[%s2341_s3 + $0x50] sm:$0xff]  }
  0x27   : > { %1782 = vmatprep.subr.bf16.mxu1 %v1924_v4  ;;  %v1929_v9 = vld [vmem:[%s2090_s19] sm:$0xff]   ;;  %v1933_v18 = vld [vmem:[%s2341_s3 + $0x78] sm:$0xff]   ;;  %v636_v26 = vrot.slane %v2143_v10, 1  ;;  %v1935_v29 = vld [vmem:[%s2341_s3 + $0x70] sm:$0xff]   ;;  %v638_v41 = vrot.slane %v2146_v11, 1 }
  0x28   : > { %v449_v13 = vshrl.u32 %v1929_v9, 16  ;;  %v451_v14 = vshll.u32 %v1929_v9, 16  ;;  %1788 = vmatprep.mubr.msk.bf16.mxu1 %vm492_vm1, %v1929_v9  ;;  %v458_v20 = vrot.slane %v456_v15, 1  ;;  %v466_v21 = vrot.slane %v464_v17, 1  ;;  %v1936_v30 = vld [vmem:[%s2341_s3 + $0x48] sm:$0xff]   ;;  %v1941_v33 = vld [vmem:[%s2098_s30] sm:$0xff]  }
  0x29   : > { %1771 = vmatpush3.bf16.msra.mxu0 %v1923_v3  ;;  %v635_v24 = vrot.slane %v1929_v9, 1  ;;  %v1937_v32 = vld [vmem:[%s2341_s3 + $0x68] sm:$0xff]   ;;  %v1938_v34 = vld [vmem:[%s2341_s3 + $0x40] sm:$0xff]   ;;  %v839_v36 = vshll.u32 %v1941_v33, 16  ;;  %v837_v39 = vshrl.u32 %v1941_v33, 16  ;;  %v1940_v42 = vld [vmem:[%s2341_s3 + $0x98] sm:$0xff]   ;;  %v639_v48 = vsel %vm634_vm3, %v636_v26, %v638_v41 }
  0x2a   : > { %1783 = vmatpush3.bf16.msra.mxu1 %v1924_v4  ;;  %1772 = vmatprep.subr.bf16.mxu0 %v1925_v5  ;;  %v453_v19 = vrot.slane %v451_v14, 1  ;;  %v462_v23 = vor.u32 %v460_v16, %v458_v20  ;;  %v2185_v35 = vld [vmem:[%s2098_s30 + $0x8] sm:$0xff]   ;;  %v1939_v37 = vld [vmem:[%s2341_s3 + $0x60] sm:$0xff]   ;;  %v1943_v43 = vld [vmem:[%s2341_s3 + $0xb8] sm:$0xff]   ;;  %v947_v46 = vrot.slane %v1941_v33, 1 }
  0x2b   : > { %1784 = vmatprep.subr.bf16.mxu1 %v1926_v6  ;;  %v637_v31 = vsel %vm634_vm3, %v635_v24, %v636_v26  ;;  %v843_v38 = vshll.u32 %v2185_v35, 16  ;;  %v841_v40 = vrot.slane %v839_v36, 1  ;;  %v948_v47 = vrot.slane %v2185_v35, 1  ;;  %v1944_v49 = vld [vmem:[%s2341_s3 + $0x90] sm:$0xff]   ;;  %v1946_v54 = vld [vmem:[%s2341_s3 + $0x88] sm:$0xff]   ;;  %v2222_v57 = vld [vmem:[%s2104_s25] sm:$0xff]  }
  0x2c   : > { %v454_v22 = vor.u32 %v453_v19, %v449_v13  ;;  %v467_v28 = vsel %vm447_vm2, %v462_v23, %v466_v21  ;;  %v1945_v50 = vld [vmem:[%s2341_s3 + $0xb0] sm:$0xff]   ;;  %v1947_v55 = vld [vmem:[%s2341_s3 + $0xa8] sm:$0xff]   ;;  %v847_v56 = vshrl.u32 %v2185_v35, 16  ;;  %v1948_v60 = vld [vmem:[%s2341_s3 + $0x80] sm:$0xff]   ;;  %v1151_v62 = vshll.u32 %v2222_v57, 16 }
  0x2d   : > { %1773 = vmatpush3.bf16.msra.mxu0 %v1925_v5  ;;  %v845_v44 = vrot.slane %v843_v38, 1  ;;  %v842_v45 = vor.u32 %v841_v40, %v837_v39  ;;  %v1950_v51 = vld [vmem:[%s2098_s30 + $0x10] ss:$0 sps:$4 sm:$0x11]   ;;  %v949_v53 = vsel %vm634_vm3, %v947_v46, %v948_v47  ;;  %v2225_v59 = vld [vmem:[%s2104_s25 + $0x8] sm:$0xff]   ;;  %v1949_v61 = vld [vmem:[%s2341_s3 + $0xa0] sm:$0xff]  }
  0x2e   : > { %1785 = vmatpush3.bf16.msra.mxu1 %v1926_v6  ;;  %1774 = vmatprep.subr.bf16.mxu0 %v1927_v7  ;;  %v459_v27 = vsel %vm447_vm2, %v454_v22, %v458_v20  ;;  %v851_v58 = vshll.u32 %v1950_v51, 16  ;;  %v1951_v63 = vld [vmem:[%s2341_s3 + $0xd8] sm:$0xff]   ;;  %v1149_v0 = vshrl.u32 %v2222_v57, 16  ;;  %v1153_v1 = vrot.slane %v1151_v62, 1  ;;  %v1953_v11 = vld [vmem:[%s2341_s3 + $0xd0] sm:$0xff]   ;;  %v1955_v15 = vld [vmem:[%s2341_s3 + $0xc8] sm:$0xff]  }
  0x2f   : > { %1786 = vmatprep.subr.bf16.mxu1 %v1928_v8  ;;  %1776 = vmatprep.mubr.msk.bf16.mxu0 %vm492_vm1, %v459_v27  ;;  %v846_v52 = vsel %vm447_vm2, %v842_v45, %v845_v44  ;;  %v1155_v2 = vshll.u32 %v2225_v59, 16  ;;  %v849_v3 = vor.u32 %v847_v56, %v845_v44  ;;  %v950_v5 = vrot.slane %v1950_v51, 1  ;;  %v1952_v6 = vld [vmem:[%s2341_s3 + $0xf8] sm:$0xff]   ;;  %v1962_v14 = vld [vmem:[%s2104_s25 + $0x10] ss:$0 sps:$4 sm:$0x11]  }
  0x30   : > { %v853_v4 = vrot.slane %v851_v58, 1  ;;  %v1956_v16 = vld [vmem:[%s2341_s3 + $0xe8] sm:$0xff]   ;;  %v1159_v17 = vshrl.u32 %v2225_v59, 16  ;;  %v1957_v19 = vld [vmem:[%s2341_s3 + $0xc0] sm:$0xff]   ;;  %v1961_v23 = vld [vmem:[%s2341_s3 + $0x118] sm:$0xff]   ;;  %v1259_v24 = vrot.slane %v2222_v57, 1 }
  0x31   : > { %1775 = vmatpush3.bf16.msra.mxu0 %v1927_v7  ;;  %v1154_v7 = vor.u32 %v1153_v1, %v1149_v0  ;;  %v1958_v20 = vld [vmem:[%s2341_s3 + $0xe0] sm:$0xff]   ;;  %v1963_v27 = vld [vmem:[%s2341_s3 + $0x110] sm:$0xff]  }
  0x32   : > { %1787 = vmatpush3.bf16.msra.mxu1 %v1928_v8  ;;  %1792 = vmatprep.subr.bf16.mxu0 %v1932_v12  ;;  %v1157_v8 = vrot.slane %v1155_v2, 1  ;;  %v854_v9 = vsel %vm447_vm2, %v849_v3, %v853_v4 }
  0x33   : > { %1804 = vmatprep.subr.bf16.mxu1 %v1933_v18 }
  0x34   : > { %1777 = vmatmul.mubr.msk.bf16.vlgmr.msra.gmra.mxu0 %vm492_vm1, %v467_v28  ;;  %v1158_v13 = vsel %vm447_vm2, %v1154_v7, %v1157_v8  ;;  %v1161_v21 = vor.u32 %v1159_v17, %v1157_v8 }
  0x35   : > { %1789 = vmatmul.mubr.msk.bf16.vlgmr.msra.gmra.mxu1 %vm492_vm1, %v2143_v10  ;;  %1793 = vmatpush3.bf16.msra.mxu0 %v1932_v12  ;;  %v951_v10 = vsel %vm634_vm3, %v948_v47, %v950_v5  ;;  %v1954_v12 = vld [vmem:[%s2341_s3 + $0xf0] sm:$0xff]  }
  0x36   : > { %1805 = vmatpush3.bf16.msra.mxu1 %v1933_v18  ;;  %1794 = vmatprep.subr.bf16.mxu0 %v1934_v25  ;;  %v1163_v18 = vshll.u32 %v1962_v14, 16 }
  0x37   : > { %1806 = vmatprep.subr.bf16.mxu1 %v1935_v29  ;;  %1800 = vmatprep.mubr.msk.bf16.mxu0 %vm492_vm1, %v637_v31  ;;  %v1262_v31 = vrot.slane %v1962_v14, 1 }
  0x38   : > { %1812 = vmatprep.mubr.msk.bf16.mxu1 %vm492_vm1, %v1941_v33  ;;  %v1165_v22 = vrot.slane %v1163_v18, 1 }
  0x39   : > { %1795 = vmatpush3.bf16.msra.mxu0 %v1934_v25  ;;  %v1260_v25 = vrot.slane %v2225_v59, 1 }
  0x3a   : > { %1807 = vmatpush3.bf16.msra.mxu1 %v1935_v29  ;;  %1796 = vmatprep.subr.bf16.mxu0 %v1936_v30  ;;  %v1166_v26 = vsel %vm447_vm2, %v1161_v21, %v1165_v22  ;;  %v1964_v29 = vld [vmem:[%s2341_s3 + $0x108] sm:$0xff]  }
  0x3b   : > { %1808 = vmatprep.subr.bf16.mxu1 %v1937_v32  ;;  %v1261_v28 = vsel %vm634_vm3, %v1259_v24, %v1260_v25 }
  0x3d   : > { %1797 = vmatpush3.bf16.msra.mxu0 %v1936_v30  ;;  %v1965_v30 = vld [vmem:[%s2341_s3 + $0x100] sm:$0xff]  }
  0x3e   : > { %1809 = vmatpush3.bf16.msra.mxu1 %v1937_v32  ;;  %1798 = vmatprep.subr.bf16.mxu0 %v1938_v34  ;;  %v1263_v32 = vsel %vm634_vm3, %v1260_v25, %v1262_v31  ;;  %v1703_v25 = vld [vmem:[%s2342_s4] ss:$0 sm:$0xff] }
  0x3f   : > { %1810 = vmatprep.subr.bf16.mxu1 %v1939_v37 }
  0x41   : > { %1799 = vmatpush3.bf16.msra.mxu0 %v1938_v34 }
  0x42   : > { %1811 = vmatpush3.bf16.msra.mxu1 %v1939_v37  ;;  %1816 = vmatprep.subr.bf16.mxu0 %v1940_v42 }
  0x43   : > { %1828 = vmatprep.subr.bf16.mxu1 %v1943_v43 }
  0x44   : > { %1801 = vmatmul.mubr.msk.bf16.vlgmr.msra.gmra.mxu0 %vm492_vm1, %v639_v48 }
  0x45   : > { %1813 = vmatmul.mubr.msk.bf16.vlgmr.msra.gmra.mxu1 %vm492_vm1, %v2185_v35  ;;  %1817 = vmatpush3.bf16.msra.mxu0 %v1940_v42 }
  0x46   : > { %1829 = vmatpush3.bf16.msra.mxu1 %v1943_v43  ;;  %1818 = vmatprep.subr.bf16.mxu0 %v1944_v49 }
  0x47   : > { %1830 = vmatprep.subr.bf16.mxu1 %v1945_v50  ;;  %1824 = vmatprep.mubr.msk.bf16.mxu0 %vm492_vm1, %v846_v52 }
  0x48   : > { %1836 = vmatprep.mubr.msk.bf16.mxu1 %vm492_vm1, %v949_v53 }
  0x49   : > { %1819 = vmatpush3.bf16.msra.mxu0 %v1944_v49 }
  0x4a   : > { %1831 = vmatpush3.bf16.msra.mxu1 %v1945_v50  ;;  %1820 = vmatprep.subr.bf16.mxu0 %v1946_v54 }
  0x4b   : > { %1832 = vmatprep.subr.bf16.mxu1 %v1947_v55 }
  0x4d   : > { %1821 = vmatpush3.bf16.msra.mxu0 %v1946_v54 }
  0x4e   : > { %1833 = vmatpush3.bf16.msra.mxu1 %v1947_v55  ;;  %1822 = vmatprep.subr.bf16.mxu0 %v1948_v60 }
  0x4f   : > { %1834 = vmatprep.subr.bf16.mxu1 %v1949_v61 }
  0x51   : > { %1823 = vmatpush3.bf16.msra.mxu0 %v1948_v60 }
  0x52   : > { %1835 = vmatpush3.bf16.msra.mxu1 %v1949_v61  ;;  %1840 = vmatprep.subr.bf16.mxu0 %v1951_v63 }
  0x53   : > { %1852 = vmatprep.subr.bf16.mxu1 %v1952_v6 }
  0x54   : > { %1825 = vmatmul.mubr.msk.bf16.vlgmr.msra.gmra.mxu0 %vm492_vm1, %v854_v9 }
  0x55   : > { %1837 = vmatmul.mubr.msk.bf16.vlgmr.msra.gmra.mxu1 %vm492_vm1, %v951_v10  ;;  %1841 = vmatpush3.bf16.msra.mxu0 %v1951_v63 }
  0x56   : > { %1853 = vmatpush3.bf16.msra.mxu1 %v1952_v6  ;;  %1842 = vmatprep.subr.bf16.mxu0 %v1953_v11 }
  0x57   : > { %1854 = vmatprep.subr.bf16.mxu1 %v1954_v12  ;;  %1848 = vmatprep.mubr.msk.bf16.mxu0 %vm492_vm1, %v2222_v57 }
  0x58   : > { %1860 = vmatprep.mubr.msk.bf16.mxu1 %vm492_vm1, %v1158_v13 }
  0x59   : > { %1843 = vmatpush3.bf16.msra.mxu0 %v1953_v11 }
  0x5a   : > { %1855 = vmatpush3.bf16.msra.mxu1 %v1954_v12  ;;  %1844 = vmatprep.subr.bf16.mxu0 %v1955_v15 }
  0x5b   : > { %1856 = vmatprep.subr.bf16.mxu1 %v1956_v16 }
  0x5d   : > { %1845 = vmatpush3.bf16.msra.mxu0 %v1955_v15 }
  0x5e   : > { %1857 = vmatpush3.bf16.msra.mxu1 %v1956_v16  ;;  %1846 = vmatprep.subr.bf16.mxu0 %v1957_v19 }
  0x5f   : > { %1858 = vmatprep.subr.bf16.mxu1 %v1958_v20 }
  0x61   : > { %1847 = vmatpush3.bf16.msra.mxu0 %v1957_v19 }
  0x62   : > { %1859 = vmatpush3.bf16.msra.mxu1 %v1958_v20  ;;  %1864 = vmatprep.subr.bf16.mxu0 %v1961_v23 }
  0x64   : > { %1849 = vmatmul.mubr.msk.bf16.vlgmr.msra.gmra.mxu0 %vm492_vm1, %v2225_v59 }
  0x65   : > { %1861 = vmatmul.mubr.msk.bf16.vlgmr.msra.gmra.mxu1 %vm492_vm1, %v1166_v26  ;;  %1865 = vmatpush3.bf16.msra.mxu0 %v1961_v23 }
  0x66   : > { %1872 = vmatprep.mubr.msk.bf16.mxu0 %vm492_vm1, %v1261_v28  ;;  %1866 = vmatprep.subr.bf16.mxu0 %v1963_v27 }
  0x69   : > { %1867 = vmatpush3.bf16.msra.mxu0 %v1963_v27 }
  0x6a   : > { %1868 = vmatprep.subr.bf16.mxu0 %v1964_v29 }
  0x6d   : > { %1869 = vmatpush3.bf16.msra.mxu0 %v1964_v29 }
  0x6e   : > { %1870 = vmatprep.subr.bf16.mxu0 %v1965_v30 }
  0x71   : > { %1871 = vmatpush3.bf16.msra.mxu0 %v1965_v30 }
  0x74   : > { %1873 = vmatmul.mubr.msk.bf16.vlgmr.msra.gmra.mxu0 %vm492_vm1, %v1263_v32 }
  0xf4   : > { %v1778_v33 = vpop.f32.mrf.mxu0 }
  0xf5   : > { %v1790_v35 = vpop.f32.mrf.mxu1 }
  0xf6   : > { %v533_v34 = vpop.f32.mrf.mxu0  ;;  %v619_v53 = vadd.f32 %v1790_v35, %v1778_v33 }
  0xf7   : > { %v610_v37 = vpop.f32.mrf.mxu1 }
  0xf8   : > { %v1779_v36 = vpop.f32.mrf.mxu0  ;;  %v611_v55 = vadd.f32 %v610_v37, %v533_v34 }
  0xf9   : > { %v1791_v39 = vpop.f32.mrf.mxu1 }
  0xfa   : > { %v536_v38 = vpop.f32.mrf.mxu0  ;;  %v622_v60 = vadd.f32 %v1791_v39, %v1779_v36 }
  0xfb   : > { %v613_v41 = vpop.f32.mrf.mxu1 }
  0xfc   : > { %v614_v63 = vadd.f32 %v613_v41, %v536_v38 }
 0x104   : > { %v1802_v40 = vpop.f32.mrf.mxu0 }
 0x105   : > { %v1814_v43 = vpop.f32.mrf.mxu1  ;;  %v721_v56 = vadd.f32 %v1802_v40, %v619_v53 }
 0x106   : > { %v704_v42 = vpop.f32.mrf.mxu0 }
 0x107   : > { %v806_v45 = vpop.f32.mrf.mxu1  ;;  %v719_v58 = vadd.f32 %v704_v42, %v611_v55  ;;  %v823_v62 = vadd.f32 %v1814_v43, %v721_v56 }
 0x108   : > { %v1803_v44 = vpop.f32.mrf.mxu0 }
 0x109   : > { %v1815_v47 = vpop.f32.mrf.mxu1  ;;  %v722_v0 = vadd.f32 %v1803_v44, %v622_v60  ;;  %v821_v1 = vadd.f32 %v806_v45, %v719_v58 }
 0x10a   : > { %v707_v46 = vpop.f32.mrf.mxu0 }
 0x10b   : > { %v809_v49 = vpop.f32.mrf.mxu1  ;;  %v720_v4 = vadd.f32 %v707_v46, %v614_v63  ;;  %v824_v8 = vadd.f32 %v1815_v47, %v722_v0 }
 0x10d   : > { %v822_v10 = vadd.f32 %v809_v49, %v720_v4 }
 0x114   : > { %v1826_v48 = vpop.f32.mrf.mxu0 }
 0x115   : > { %v1838_v51 = vpop.f32.mrf.mxu1  ;;  %v936_v2 = vadd.f32 %v1826_v48, %v823_v62 }
 0x116   : > { %v919_v50 = vpop.f32.mrf.mxu0 }
 0x117   : > { %v1016_v54 = vpop.f32.mrf.mxu1  ;;  %v934_v6 = vadd.f32 %v919_v50, %v821_v1  ;;  %v1033_v9 = vadd.f32 %v1838_v51, %v936_v2 }
 0x118   : > { %v1827_v52 = vpop.f32.mrf.mxu0 }
 0x119   : > { %v1839_v59 = vpop.f32.mrf.mxu1  ;;  %v937_v11 = vadd.f32 %v1827_v52, %v824_v8  ;;  %v1031_v13 = vadd.f32 %v1016_v54, %v934_v6 }
 0x11a   : > { %v922_v57 = vpop.f32.mrf.mxu0 }
 0x11b   : > { %v1019_v3 = vpop.f32.mrf.mxu1  ;;  %v935_v16 = vadd.f32 %v922_v57, %v822_v10  ;;  %v1034_v18 = vadd.f32 %v1839_v59, %v937_v11 }
 0x11d   : > { %v1032_v22 = vadd.f32 %v1019_v3, %v935_v16 }
 0x124   : > { %v1850_v61 = vpop.f32.mrf.mxu0 }
 0x125   : > { %v1862_v7 = vpop.f32.mrf.mxu1  ;;  %v1135_v14 = vadd.f32 %v1850_v61, %v1033_v9  ;;  %v1358_v9 = vld [vmem:[%s2344_s6] sm:$0x1] }
 0x126   : > { %v1118_v5 = vpop.f32.mrf.mxu0 }
 0x127   : > { %v1231_v15 = vpop.f32.mrf.mxu1  ;;  %v1133_v17 = vadd.f32 %v1118_v5, %v1031_v13  ;;  %v1248_v20 = vadd.f32 %v1862_v7, %v1135_v14 }
 0x128   : > { %v1851_v12 = vpop.f32.mrf.mxu0 }
 0x129   : > { %v1863_v21 = vpop.f32.mrf.mxu1  ;;  %v1136_v23 = vadd.f32 %v1851_v12, %v1034_v18  ;;  %v1246_v26 = vadd.f32 %v1231_v15, %v1133_v17  ;;  %v1375_v12 = vld [vmem:[%s2345_s7] sm:$0x1] }
 0x12a   : > { %v1121_v19 = vpop.f32.mrf.mxu0 }
 0x12b   : > { %v1134_v28 = vadd.f32 %v1121_v19, %v1032_v22  ;;  %v1234_v30 = vpop.f32.mrf.mxu1  ;;  %v1249_v33 = vadd.f32 %v1863_v21, %v1136_v23 }
 0x12d   : > { %v1247_v37 = vadd.f32 %v1234_v30, %v1134_v28 }
 0x134   : > { %v1874_v24 = vpop.f32.mrf.mxu0 }
 0x135   : > { %v1345_v27 = vadd.f32 %v1874_v24, %v1248_v20 }
 0x136   : > { %v1328_v29 = vpop.f32.mrf.mxu0 }
 0x137   : > { %v1356_v31 = vadd.f32 %v1703_v25, %v1345_v27  ;;  %v1343_v32 = vadd.f32 %v1328_v29, %v1246_v26 }
 0x138   : > { %v1875_v34 = vpop.f32.mrf.mxu0 }
 0x139   : > { %v1712_v35 = vpack.c.bf16 %v1356_v31, %v1356_v31  ;;  %v1354_v36 = vadd.f32 %v1703_v25, %v1343_v32  ;;  %v1346_v38 = vadd.f32 %v1875_v34, %v1249_v33  ;;  %v1378_v46 = vmul.f32 %v1356_v31, %v1356_v31 }
 0x13a   : > { %v1331_v39 = vpop.f32.mrf.mxu0  ;;  %v1362_v52 = vsel %vm492_vm1, %v1356_v31, 0.0 }
 0x13b   : > { %1414 = vst.msk [vmem:[%s2109_s21 + $0x8] sm:$0xf] %vm1411_vm4, %v1712_v35  ;;  %v1710_v40 = vpack.c.bf16 %v1354_v36, %v1354_v36  ;;  %v1357_v41 = vadd.f32 %v1703_v25, %v1346_v38  ;;  %v1344_v42 = vadd.f32 %v1331_v39, %v1247_v37  ;;  %v1376_v43 = vmul.f32 %v1354_v36, %v1354_v36 }
 0x13c   : > { %v1359_v47 = vsel %vm492_vm1, %v1354_v36, 0.0  ;;  %v1383_v58 = vsel %vm492_vm1, %v1378_v46, 0.0 }
 0x13d   : > { %1412 = vst.msk [vmem:[%s2109_s21] sm:$0xf] %vm1411_vm4, %v1710_v40  ;;  %v1713_v44 = vpack.c.bf16 %v1357_v41, %v1357_v41  ;;  %v1355_v45 = vadd.f32 %v1703_v25, %v1344_v42  ;;  %v1380_v53 = vsel %vm492_vm1, %v1376_v43, 0.0  ;;  %v1379_v54 = vmul.f32 %v1357_v41, %v1357_v41 }
 0x13e   : > { %v1364_v59 = vsel %vm492_vm1, %v1357_v41, 0.0 }
 0x13f   : > { %1415 = vst.msk [vmem:[%s2109_s21 + $0xc] sm:$0xf] %vm1411_vm4, %v1713_v44  ;;  %v1360_v48 = vsel %vm492_vm1, %v1355_v45, 0.0  ;;  %v1377_v49 = vmul.f32 %v1355_v45, %v1355_v45  ;;  %v1711_v50 = vpack.c.bf16 %v1355_v45, %v1355_v45  ;;  %v1385_v62 = vsel %vm492_vm1, %v1379_v54, 0.0 }
 0x140   : > { %v1361_v51 = vadd.f32 %v1360_v48, %v1359_v47 }
 0x141   : > { %v1381_v55 = vsel %vm492_vm1, %v1377_v49, 0.0  ;;  %1413 = vst.msk [vmem:[%s2109_s21 + $0x4] sm:$0xf] %vm1411_vm4, %v1711_v50 }
 0x142   : > { %v1363_v56 = vadd.f32 %v1362_v52, %v1361_v51  ;;  %v1382_v57 = vadd.f32 %v1381_v55, %v1380_v53 }
 0x144   : > { %v1365_v60 = vadd.f32 %v1364_v59, %v1363_v56  ;;  %v1384_v61 = vadd.f32 %v1383_v58, %v1382_v57 }
 0x146   : > { %v1366_v63 = vrot.slane %v1365_v60, 4  ;;  %v1386_v0 = vadd.f32 %v1385_v62, %v1384_v61 }
 0x148   : > { %v1367_v1 = vadd.f32 %v1366_v63, %v1365_v60  ;;  %v1387_v2 = vrot.slane %v1386_v0, 4 }
 0x14a   : > { %v1368_v3 = vrot.slane %v1367_v1, 2  ;;  %v1388_v4 = vadd.f32 %v1387_v2, %v1386_v0 }
 0x14c   : > { %v1369_v5 = vadd.f32 %v1368_v3, %v1367_v1  ;;  %v1389_v6 = vrot.slane %v1388_v4, 2 }
 0x14e   : > { %v1370_v7 = vrot.slane %v1369_v5, 1  ;;  %v1390_v8 = vadd.f32 %v1389_v6, %v1388_v4 }
 0x150   : > { %v1371_v10 = vadd.f32 %v1370_v7, %v1369_v5  ;;  %v1391_v11 = vrot.slane %v1390_v8, 1 }
 0x152   : > { %v1372_v13 = vadd.f32 %v1371_v10, %v1358_v9  ;;  %v1392_v14 = vadd.f32 %v1391_v11, %v1390_v8 }
 0x154   : > { %1374 = vst.msk [vmem:[%s2344_s6] sm:$0x1] %vm1373_vm5, %v1372_v13  ;;  %v1393_v15 = vadd.f32 %v1392_v14, %v1375_v12 }
 0x156   : > { %1394 = vst.msk [vmem:[%s2345_s7] sm:$0x1] %vm1373_vm5, %v1393_v15 }
 0x157 PF: > { %s18_s28 = sadd.s32 1, %s2004_s28   ;;  %s2350_s13 = sld [smem:[#allocation2_spill]] }
 0x158   : > { %p15_p13 = scmp.ge.s32.totalorder %s18_s28, 66   ;;  %s2351_s8 = sld [smem:[#allocation3_spill]] }
 0x159   : > { %s2352_s24 = smov %s1996_s26  ;;  %s2353_s25 = smov %s2000_s27 }
 0x15a   :  { %17 = sbr.rel (!%p15_p13) target bundleno = 3 (0x3), region = 104 }
 0x15d   : > { %s2354_s26 = smov %s2350_s13 }
 0x15e   : > { %s2355_s27 = smov %s2351_s8 }

// kernel: _lambda_.10
= control target key start
LH: loop header
LB: loop body
LE: loop exit
PB: predicated region body
PF: predicated region fallthrough
CT: control target
= control target key end

     0   :  { %s2047_s24 = smov 0   ;;  %s2049_s25 = smov 0   ;;  %s2324_s0 = inlined_call_operand.vmem [shape: bf16[2,34,34,64], index: 0, kind: input, shape index: {}, may-alias: {0,1,2}]   ;;  %s2325_s1 = inlined_call_operand.vmem [shape: bf16[2,34,34,64], index: 1, kind: input, shape index: {}, may-alias: {0,1,2}]   ;;  %s2326_s2 = inlined_call_operand.vmem [shape: bf16[2,34,34,64], index: 2, kind: input, shape index: {}, may-alias: {0,1,2}]   ;;  %s2327_s3 = inlined_call_operand.vmem [shape: bf16[9,64,128], index: 3, kind: input, shape index: {}]   ;;  %s2328_s4 = inlined_call_operand.vmem [shape: f32[1,128], index: 4, kind: input, shape index: {}]   ;;  %s2329_s5 = inlined_call_operand.vmem [shape: bf16[2,32,32,128], index: 5, kind: output, shape index: {0}]   ;;  %s2330_s6 = inlined_call_operand.vmem [shape: f32[1,128], index: 6, kind: output, shape index: {1}]   ;;  %s2331_s7 = inlined_call_operand.vmem [shape: f32[1,128], index: 7, kind: output, shape index: {2}]  }
   0x1   :  { %2332 = sst [smem:[#allocation4_spill]] %s2324_s0  ;;  %s2051_s26 = smov 0  }
   0x2   :  { %s2053_s27 = smov 0   ;;  %s2055_s28 = smov 0  }
   0x3 LB: > { %s27_s29 = sadd.s32 1, %s1996_s26  ;;  %s30_s30 = sadd.s32 1, %s2000_s27  ;;  %s2004_s28 = sphi %s2055_s28, %s18_s28   ;;  %s2000_s27 = sphi %s2053_s27, %s2341_s27   ;;  %s1996_s26 = sphi %s2051_s26, %s2340_s26   ;;  %s1992_s25 = sphi %s2049_s25, %s2339_s25   ;;  %s1988_s24 = sphi %s2047_s24, %s2338_s24  }
   0x4   : > { %p28_p0 = scmp.ge.s32.totalorder %s27_s29, 32  ;;  %p1558_p1 = scmp.ge.s32.totalorder %s2004_s28, 1 }
   0x5   : > { %p292_p2 = scmp.lt.s32.totalorder %s2004_s28, 65 }
   0x6   : > { %s2343_s29 = smov (%p28_p0, %s27_s29), 0  ;;  %s2345_s30 = smov (!%p28_p0, %s30_s30), %s2000_s27 }
   0x7   : > { %2333 = sst [smem:[#allocation2_spill]] %s2343_s29  ;;  %p293_p3 = pnand %p1558_p1, %p292_p2 }
   0x8   : > { %p32_p4 = scmp.ge.s32.totalorder %s2345_s30, 2  ;;  %p352_p5 = scmp.lt.s32.totalorder (!%p293_p3), %s1992_s25, 1 }
   0x9   : > { %296 = sbr.rel (%p293_p3) target bundleno = 342 (0x156), region = 40  ;;  %p354_p6 = scmp.lt.s32.totalorder (!%p293_p3), %s1988_s24, 33 }
   0xa   : > { %s2347_s30 = smov (%p32_p4, %s2345_s30), 0  ;;  %s361_s8 = sadd.s32 (!%p293_p3), 1, %s1988_s24 }
   0xb   : > { %2334 = sst [smem:[#allocation3_spill]] %s2347_s30  ;;  %s372_s9 = sadd.s32 (!%p293_p3), 2, %s1988_s24 }
   0xc   : > { %p364_p7 = scmp.lt.s32.totalorder (!%p293_p3), %s361_s8, 33  ;;  %p375_p8 = scmp.lt.s32.totalorder (!%p293_p3), %s372_s9, 33 }
   0xd   : > { %s2335_s0 = sld [smem:[#allocation4_spill]] (!%p293_p3)  ;;  %p385_p9 = scmp.lt.s32.totalorder (!%p293_p3), %s1988_s24, 31 }
   0xe   : > { %s353_s10 = scalar_select %p352_p5, %s1992_s25, 1 }
   0xf   : > { %s355_s11 = scalar_select %p354_p6, %s1988_s24, 33 }
  0x10   : > { %s1877_s12 = smul.u32 170, %s353_s10  ;;  %s2349_s8 = smov (!%p364_p7, %s361_s8), 33 }
  0x11   : > { %s1876_s13 = smul.u32 5, %s355_s11  ;;  %p393_p10 = scmp.eq.s32.totalorder %s1992_s25, 0 }
  0x12   : > { %s1878_s16 = smul.u32 5, %s2349_s8  ;;  %p394_p11 = scmp.eq.s32.totalorder %s1988_s24, 0 }
  0x13   : > { %s358_s14 = sadd.s32 %s1877_s12, %s1876_s13  ;;  %s1563_s11 = sshll.u32 %s353_s10, 7 }
  0x14   : > { %s1559_s15 = sshll.u32 %s358_s14, 2  ;;  %s368_s20 = sadd.s32 %s1878_s16, %s1877_s12 }
  0x15   : > { %s2090_s19 = scalar_lea.vmem %s2335_s0, %s1559_s15  ;;  %s1560_s21 = sshll.u32 %s368_s20, 2 }
  0x16   : > { %s2098_s30 = scalar_lea.vmem %s2325_s1, %s1560_s21  ;;  %s2351_s9 = smov (!%p375_p8, %s372_s9), 33 }
  0x17   : > { %s2353_s24 = smov (!%p385_p9, %s1988_s24), 31  ;;  %s1879_s13 = smul.u32 5, %s2351_s9 }
  0x18   : > { %p395_p12 = pnand %p394_p11, %p393_p10  ;;  %s1562_s8 = sshll.u32 %s2353_s24, 2 }
  0x19   : > { %s379_s14 = sadd.s32 %s1879_s13, %s1877_s12  ;;  %s389_s17 = sadd.s32 %s1563_s11, %s1562_s8 }
  0x1a   : > { %s1561_s15 = sshll.u32 %s379_s14, 2  ;;  %s1564_s18 = sshll.u32 %s389_s17, 2 }
  0x1b   : > { %s2104_s25 = scalar_lea.vmem %s2326_s2, %s1561_s15  ;;  %s2109_s21 = scalar_lea.vmem %s2329_s5, %s1564_s18 }
  0x1c   : > { %398 = sbr.rel (%p395_p12) target bundleno = 35 (0x23), region = 44 }
  0x21   : > { %v2006_v0 = vmov 0.0  }
  0x22   : > { %399 = vst [vmem:[%s2330_s6] sm:$0x1] %v2006_v0  ;;  %400 = vst [vmem:[%s2331_s7] sm:$0x1] %v2006_v0 }
  0x23 PF: > { %v1921_v1 = vld [vmem:[%s2327_s3 + $0x38] sm:$0xff]   ;;  %v1923_v3 = vld [vmem:[%s2327_s3 + $0x30] sm:$0xff]   ;;  %v1925_v5 = vld [vmem:[%s2327_s3 + $0x28] sm:$0xff]   ;;  %vm491_vm0 = vcmask 523264   ;;  %vm446_vm1 = vsmask.f32 7424 }
  0x24   : > { %v1922_v2 = vld [vmem:[%s2327_s3 + $0x18] sm:$0xff]   ;;  %1768 = vmatprep.subr.bf16.mxu0 %v1921_v1  ;;  %v1924_v4 = vld [vmem:[%s2327_s3 + $0x10] sm:$0xff]   ;;  %v1926_v6 = vld [vmem:[%s2327_s3 + $0x8] sm:$0xff]   ;;  %vm633_vm2 = vcmask 1046528  }
  0x25   : > { %1780 = vmatprep.subr.bf16.mxu1 %v1922_v2  ;;  %1769 = vmatpush3.bf16.msra.mxu0 %v1921_v1  ;;  %v1927_v7 = vld [vmem:[%s2327_s3 + $0x20] sm:$0xff]   ;;  %v2143_v10 = vld [vmem:[%s2090_s19 + $0x8] sm:$0xff]   ;;  %v2146_v11 = vld [vmem:[%s2090_s19 + $0x10] ss:$0 sps:$4 sm:$0x11]  }
  0x26   : > { %1781 = vmatpush3.bf16.msra.mxu1 %v1922_v2  ;;  %1770 = vmatprep.subr.bf16.mxu0 %v1923_v3  ;;  %v1928_v8 = vld [vmem:[%s2327_s3] sm:$0xff]   ;;  %v1932_v12 = vld [vmem:[%s2327_s3 + $0x58] sm:$0xff]   ;;  %v455_v15 = vshll.u32 %v2143_v10, 16  ;;  %v459_v16 = vshrl.u32 %v2143_v10, 16  ;;  %v463_v17 = vshll.u32 %v2146_v11, 16  ;;  %v1934_v25 = vld [vmem:[%s2327_s3 + $0x50] sm:$0xff]  }
  0x27   : > { %1782 = vmatprep.subr.bf16.mxu1 %v1924_v4  ;;  %v1929_v9 = vld [vmem:[%s2090_s19] sm:$0xff]   ;;  %v1933_v18 = vld [vmem:[%s2327_s3 + $0x78] sm:$0xff]   ;;  %v635_v26 = vrot.slane %v2143_v10, 1  ;;  %v1935_v29 = vld [vmem:[%s2327_s3 + $0x70] sm:$0xff]   ;;  %v637_v41 = vrot.slane %v2146_v11, 1 }
  0x28   : > { %v448_v13 = vshrl.u32 %v1929_v9, 16  ;;  %v450_v14 = vshll.u32 %v1929_v9, 16  ;;  %1788 = vmatprep.mubr.msk.bf16.mxu1 %vm491_vm0, %v1929_v9  ;;  %v457_v20 = vrot.slane %v455_v15, 1  ;;  %v465_v21 = vrot.slane %v463_v17, 1  ;;  %v1936_v30 = vld [vmem:[%s2327_s3 + $0x48] sm:$0xff]   ;;  %v1941_v33 = vld [vmem:[%s2098_s30] sm:$0xff]  }
  0x29   : > { %1771 = vmatpush3.bf16.msra.mxu0 %v1923_v3  ;;  %v634_v24 = vrot.slane %v1929_v9, 1  ;;  %v1937_v32 = vld [vmem:[%s2327_s3 + $0x68] sm:$0xff]   ;;  %v1938_v34 = vld [vmem:[%s2327_s3 + $0x40] sm:$0xff]   ;;  %v838_v36 = vshll.u32 %v1941_v33, 16  ;;  %v836_v39 = vshrl.u32 %v1941_v33, 16  ;;  %v1940_v42 = vld [vmem:[%s2327_s3 + $0x98] sm:$0xff]   ;;  %v638_v48 = vsel %vm633_vm2, %v635_v26, %v637_v41 }
  0x2a   : > { %1783 = vmatpush3.bf16.msra.mxu1 %v1924_v4  ;;  %1772 = vmatprep.subr.bf16.mxu0 %v1925_v5  ;;  %v452_v19 = vrot.slane %v450_v14, 1  ;;  %v461_v23 = vor.u32 %v459_v16, %v457_v20  ;;  %v2185_v35 = vld [vmem:[%s2098_s30 + $0x8] sm:$0xff]   ;;  %v1939_v37 = vld [vmem:[%s2327_s3 + $0x60] sm:$0xff]   ;;  %v1943_v43 = vld [vmem:[%s2327_s3 + $0xb8] sm:$0xff]   ;;  %v946_v46 = vrot.slane %v1941_v33, 1 }
  0x2b   : > { %1784 = vmatprep.subr.bf16.mxu1 %v1926_v6  ;;  %v636_v31 = vsel %vm633_vm2, %v634_v24, %v635_v26  ;;  %v842_v38 = vshll.u32 %v2185_v35, 16  ;;  %v840_v40 = vrot.slane %v838_v36, 1  ;;  %v947_v47 = vrot.slane %v2185_v35, 1  ;;  %v1944_v49 = vld [vmem:[%s2327_s3 + $0x90] sm:$0xff]   ;;  %v1946_v54 = vld [vmem:[%s2327_s3 + $0x88] sm:$0xff]   ;;  %v2222_v57 = vld [vmem:[%s2104_s25] sm:$0xff]  }
  0x2c   : > { %v453_v22 = vor.u32 %v452_v19, %v448_v13  ;;  %v466_v28 = vsel %vm446_vm1, %v461_v23, %v465_v21  ;;  %v1945_v50 = vld [vmem:[%s2327_s3 + $0xb0] sm:$0xff]   ;;  %v1947_v55 = vld [vmem:[%s2327_s3 + $0xa8] sm:$0xff]   ;;  %v846_v56 = vshrl.u32 %v2185_v35, 16  ;;  %v1948_v60 = vld [vmem:[%s2327_s3 + $0x80] sm:$0xff]   ;;  %v1150_v62 = vshll.u32 %v2222_v57, 16 }
  0x2d   : > { %1773 = vmatpush3.bf16.msra.mxu0 %v1925_v5  ;;  %v844_v44 = vrot.slane %v842_v38, 1  ;;  %v841_v45 = vor.u32 %v840_v40, %v836_v39  ;;  %v1950_v51 = vld [vmem:[%s2098_s30 + $0x10] ss:$0 sps:$4 sm:$0x11]   ;;  %v948_v53 = vsel %vm633_vm2, %v946_v46, %v947_v47  ;;  %v2225_v59 = vld [vmem:[%s2104_s25 + $0x8] sm:$0xff]   ;;  %v1949_v61 = vld [vmem:[%s2327_s3 + $0xa0] sm:$0xff]  }
  0x2e   : > { %1785 = vmatpush3.bf16.msra.mxu1 %v1926_v6  ;;  %1774 = vmatprep.subr.bf16.mxu0 %v1927_v7  ;;  %v458_v27 = vsel %vm446_vm1, %v453_v22, %v457_v20  ;;  %v850_v58 = vshll.u32 %v1950_v51, 16  ;;  %v1951_v63 = vld [vmem:[%s2327_s3 + $0xd8] sm:$0xff]   ;;  %v1148_v0 = vshrl.u32 %v2222_v57, 16  ;;  %v1152_v1 = vrot.slane %v1150_v62, 1  ;;  %v1953_v11 = vld [vmem:[%s2327_s3 + $0xd0] sm:$0xff]   ;;  %v1955_v15 = vld [vmem:[%s2327_s3 + $0xc8] sm:$0xff]  }
  0x2f   : > { %1786 = vmatprep.subr.bf16.mxu1 %v1928_v8  ;;  %1776 = vmatprep.mubr.msk.bf16.mxu0 %vm491_vm0, %v458_v27  ;;  %v845_v52 = vsel %vm446_vm1, %v841_v45, %v844_v44  ;;  %v1154_v2 = vshll.u32 %v2225_v59, 16  ;;  %v848_v3 = vor.u32 %v846_v56, %v844_v44  ;;  %v949_v5 = vrot.slane %v1950_v51, 1  ;;  %v1952_v6 = vld [vmem:[%s2327_s3 + $0xf8] sm:$0xff]   ;;  %v1962_v14 = vld [vmem:[%s2104_s25 + $0x10] ss:$0 sps:$4 sm:$0x11]  }
  0x30   : > { %v852_v4 = vrot.slane %v850_v58, 1  ;;  %v1956_v16 = vld [vmem:[%s2327_s3 + $0xe8] sm:$0xff]   ;;  %v1158_v17 = vshrl.u32 %v2225_v59, 16  ;;  %v1957_v19 = vld [vmem:[%s2327_s3 + $0xc0] sm:$0xff]   ;;  %v1961_v23 = vld [vmem:[%s2327_s3 + $0x118] sm:$0xff]   ;;  %v1258_v24 = vrot.slane %v2222_v57, 1 }
  0x31   : > { %1775 = vmatpush3.bf16.msra.mxu0 %v1927_v7  ;;  %v1153_v7 = vor.u32 %v1152_v1, %v1148_v0  ;;  %v1958_v20 = vld [vmem:[%s2327_s3 + $0xe0] sm:$0xff]   ;;  %v1963_v27 = vld [vmem:[%s2327_s3 + $0x110] sm:$0xff]  }
  0x32   : > { %1787 = vmatpush3.bf16.msra.mxu1 %v1928_v8  ;;  %1792 = vmatprep.subr.bf16.mxu0 %v1932_v12  ;;  %v1156_v8 = vrot.slane %v1154_v2, 1  ;;  %v853_v9 = vsel %vm446_vm1, %v848_v3, %v852_v4 }
  0x33   : > { %1804 = vmatprep.subr.bf16.mxu1 %v1933_v18 }
  0x34   : > { %1777 = vmatmul.mubr.msk.bf16.vlgmr.msra.gmra.mxu0 %vm491_vm0, %v466_v28  ;;  %v1157_v13 = vsel %vm446_vm1, %v1153_v7, %v1156_v8  ;;  %v1160_v21 = vor.u32 %v1158_v17, %v1156_v8 }
  0x35   : > { %1789 = vmatmul.mubr.msk.bf16.vlgmr.msra.gmra.mxu1 %vm491_vm0, %v2143_v10  ;;  %1793 = vmatpush3.bf16.msra.mxu0 %v1932_v12  ;;  %v950_v10 = vsel %vm633_vm2, %v947_v47, %v949_v5  ;;  %v1954_v12 = vld [vmem:[%s2327_s3 + $0xf0] sm:$0xff]  }
  0x36   : > { %1805 = vmatpush3.bf16.msra.mxu1 %v1933_v18  ;;  %1794 = vmatprep.subr.bf16.mxu0 %v1934_v25  ;;  %v1162_v18 = vshll.u32 %v1962_v14, 16 }
  0x37   : > { %1806 = vmatprep.subr.bf16.mxu1 %v1935_v29  ;;  %1800 = vmatprep.mubr.msk.bf16.mxu0 %vm491_vm0, %v636_v31  ;;  %v1261_v31 = vrot.slane %v1962_v14, 1 }
  0x38   : > { %1812 = vmatprep.mubr.msk.bf16.mxu1 %vm491_vm0, %v1941_v33  ;;  %v1164_v22 = vrot.slane %v1162_v18, 1 }
  0x39   : > { %1795 = vmatpush3.bf16.msra.mxu0 %v1934_v25  ;;  %v1259_v25 = vrot.slane %v2225_v59, 1 }
  0x3a   : > { %1807 = vmatpush3.bf16.msra.mxu1 %v1935_v29  ;;  %1796 = vmatprep.subr.bf16.mxu0 %v1936_v30  ;;  %v1165_v26 = vsel %vm446_vm1, %v1160_v21, %v1164_v22  ;;  %v1964_v29 = vld [vmem:[%s2327_s3 + $0x108] sm:$0xff]  }
  0x3b   : > { %1808 = vmatprep.subr.bf16.mxu1 %v1937_v32  ;;  %v1260_v28 = vsel %vm633_vm2, %v1258_v24, %v1259_v25 }
  0x3d   : > { %1797 = vmatpush3.bf16.msra.mxu0 %v1936_v30  ;;  %v1965_v30 = vld [vmem:[%s2327_s3 + $0x100] sm:$0xff]  }
  0x3e   : > { %1809 = vmatpush3.bf16.msra.mxu1 %v1937_v32  ;;  %1798 = vmatprep.subr.bf16.mxu0 %v1938_v34  ;;  %v1262_v32 = vsel %vm633_vm2, %v1259_v25, %v1261_v31 }
  0x3f   : > { %1810 = vmatprep.subr.bf16.mxu1 %v1939_v37 }
  0x41   : > { %1799 = vmatpush3.bf16.msra.mxu0 %v1938_v34 }
  0x42   : > { %1811 = vmatpush3.bf16.msra.mxu1 %v1939_v37  ;;  %1816 = vmatprep.subr.bf16.mxu0 %v1940_v42 }
  0x43   : > { %1828 = vmatprep.subr.bf16.mxu1 %v1943_v43 }
  0x44   : > { %1801 = vmatmul.mubr.msk.bf16.vlgmr.msra.gmra.mxu0 %vm491_vm0, %v638_v48 }
  0x45   : > { %1813 = vmatmul.mubr.msk.bf16.vlgmr.msra.gmra.mxu1 %vm491_vm0, %v2185_v35  ;;  %1817 = vmatpush3.bf16.msra.mxu0 %v1940_v42 }
  0x46   : > { %1829 = vmatpush3.bf16.msra.mxu1 %v1943_v43  ;;  %1818 = vmatprep.subr.bf16.mxu0 %v1944_v49 }
  0x47   : > { %1830 = vmatprep.subr.bf16.mxu1 %v1945_v50  ;;  %1824 = vmatprep.mubr.msk.bf16.mxu0 %vm491_vm0, %v845_v52 }
  0x48   : > { %1836 = vmatprep.mubr.msk.bf16.mxu1 %vm491_vm0, %v948_v53 }
  0x49   : > { %1819 = vmatpush3.bf16.msra.mxu0 %v1944_v49 }
  0x4a   : > { %1831 = vmatpush3.bf16.msra.mxu1 %v1945_v50  ;;  %1820 = vmatprep.subr.bf16.mxu0 %v1946_v54 }
  0x4b   : > { %1832 = vmatprep.subr.bf16.mxu1 %v1947_v55 }
  0x4d   : > { %1821 = vmatpush3.bf16.msra.mxu0 %v1946_v54 }
  0x4e   : > { %1833 = vmatpush3.bf16.msra.mxu1 %v1947_v55  ;;  %1822 = vmatprep.subr.bf16.mxu0 %v1948_v60 }
  0x4f   : > { %1834 = vmatprep.subr.bf16.mxu1 %v1949_v61 }
  0x51   : > { %1823 = vmatpush3.bf16.msra.mxu0 %v1948_v60 }
  0x52   : > { %1835 = vmatpush3.bf16.msra.mxu1 %v1949_v61  ;;  %1840 = vmatprep.subr.bf16.mxu0 %v1951_v63 }
  0x53   : > { %1852 = vmatprep.subr.bf16.mxu1 %v1952_v6 }
  0x54   : > { %1825 = vmatmul.mubr.msk.bf16.vlgmr.msra.gmra.mxu0 %vm491_vm0, %v853_v9 }
  0x55   : > { %1837 = vmatmul.mubr.msk.bf16.vlgmr.msra.gmra.mxu1 %vm491_vm0, %v950_v10  ;;  %1841 = vmatpush3.bf16.msra.mxu0 %v1951_v63 }
  0x56   : > { %1853 = vmatpush3.bf16.msra.mxu1 %v1952_v6  ;;  %1842 = vmatprep.subr.bf16.mxu0 %v1953_v11 }
  0x57   : > { %1854 = vmatprep.subr.bf16.mxu1 %v1954_v12  ;;  %1848 = vmatprep.mubr.msk.bf16.mxu0 %vm491_vm0, %v2222_v57 }
  0x58   : > { %1860 = vmatprep.mubr.msk.bf16.mxu1 %vm491_vm0, %v1157_v13 }
  0x59   : > { %1843 = vmatpush3.bf16.msra.mxu0 %v1953_v11 }
  0x5a   : > { %1855 = vmatpush3.bf16.msra.mxu1 %v1954_v12  ;;  %1844 = vmatprep.subr.bf16.mxu0 %v1955_v15 }
  0x5b   : > { %1856 = vmatprep.subr.bf16.mxu1 %v1956_v16 }
  0x5d   : > { %1845 = vmatpush3.bf16.msra.mxu0 %v1955_v15 }
  0x5e   : > { %1857 = vmatpush3.bf16.msra.mxu1 %v1956_v16  ;;  %1846 = vmatprep.subr.bf16.mxu0 %v1957_v19 }
  0x5f   : > { %1858 = vmatprep.subr.bf16.mxu1 %v1958_v20 }
  0x61   : > { %1847 = vmatpush3.bf16.msra.mxu0 %v1957_v19 }
  0x62   : > { %1859 = vmatpush3.bf16.msra.mxu1 %v1958_v20  ;;  %1864 = vmatprep.subr.bf16.mxu0 %v1961_v23 }
  0x64   : > { %1849 = vmatmul.mubr.msk.bf16.vlgmr.msra.gmra.mxu0 %vm491_vm0, %v2225_v59 }
  0x65   : > { %1861 = vmatmul.mubr.msk.bf16.vlgmr.msra.gmra.mxu1 %vm491_vm0, %v1165_v26  ;;  %1865 = vmatpush3.bf16.msra.mxu0 %v1961_v23 }
  0x66   : > { %1872 = vmatprep.mubr.msk.bf16.mxu0 %vm491_vm0, %v1260_v28  ;;  %1866 = vmatprep.subr.bf16.mxu0 %v1963_v27 }
  0x69   : > { %1867 = vmatpush3.bf16.msra.mxu0 %v1963_v27 }
  0x6a   : > { %1868 = vmatprep.subr.bf16.mxu0 %v1964_v29 }
  0x6d   : > { %1869 = vmatpush3.bf16.msra.mxu0 %v1964_v29 }
  0x6e   : > { %1870 = vmatprep.subr.bf16.mxu0 %v1965_v30 }
  0x71   : > { %1871 = vmatpush3.bf16.msra.mxu0 %v1965_v30 }
  0x74   : > { %1873 = vmatmul.mubr.msk.bf16.vlgmr.msra.gmra.mxu0 %vm491_vm0, %v1262_v32  ;;  %v1692_v32 = vld [vmem:[%s2328_s4] ss:$0 sm:$0xff] }
  0xf4   : > { %v1778_v33 = vpop.f32.mrf.mxu0 }
  0xf5   : > { %v1790_v34 = vpop.f32.mrf.mxu1 }
  0xf6   : > { %v532_v35 = vpop.f32.mrf.mxu0  ;;  %v618_v54 = vadd.f32 %v1790_v34, %v1778_v33 }
  0xf7   : > { %v609_v36 = vpop.f32.mrf.mxu1 }
  0xf8   : > { %v1779_v37 = vpop.f32.mrf.mxu0  ;;  %v610_v55 = vadd.f32 %v609_v36, %v532_v35 }
  0xf9   : > { %v1791_v38 = vpop.f32.mrf.mxu1 }
  0xfa   : > { %v535_v39 = vpop.f32.mrf.mxu0  ;;  %v621_v58 = vadd.f32 %v1791_v38, %v1779_v37 }
  0xfb   : > { %v612_v41 = vpop.f32.mrf.mxu1 }
  0xfc   : > { %v613_v62 = vadd.f32 %v612_v41, %v535_v39 }
 0x104   : > { %v1802_v40 = vpop.f32.mrf.mxu0 }
 0x105   : > { %v1814_v43 = vpop.f32.mrf.mxu1  ;;  %v720_v59 = vadd.f32 %v1802_v40, %v618_v54 }
 0x106   : > { %v703_v42 = vpop.f32.mrf.mxu0 }
 0x107   : > { %v805_v45 = vpop.f32.mrf.mxu1  ;;  %v718_v60 = vadd.f32 %v703_v42, %v610_v55  ;;  %v822_v1 = vadd.f32 %v1814_v43, %v720_v59 }
 0x108   : > { %v1803_v44 = vpop.f32.mrf.mxu0 }
 0x109   : > { %v1815_v47 = vpop.f32.mrf.mxu1  ;;  %v721_v63 = vadd.f32 %v1803_v44, %v621_v58  ;;  %v820_v2 = vadd.f32 %v805_v45, %v718_v60 }
 0x10a   : > { %v706_v46 = vpop.f32.mrf.mxu0 }
 0x10b   : > { %v808_v49 = vpop.f32.mrf.mxu1  ;;  %v719_v3 = vadd.f32 %v706_v46, %v613_v62  ;;  %v823_v6 = vadd.f32 %v1815_v47, %v721_v63  ;;  %v1357_v63 = vld [vmem:[%s2330_s6] sm:$0x1] }
 0x10d   : > { %v821_v9 = vadd.f32 %v808_v49, %v719_v3 }
 0x114   : > { %v1826_v48 = vpop.f32.mrf.mxu0 }
 0x115   : > { %v1838_v51 = vpop.f32.mrf.mxu1  ;;  %v935_v7 = vadd.f32 %v1826_v48, %v822_v1 }
 0x116   : > { %v918_v50 = vpop.f32.mrf.mxu0 }
 0x117   : > { %v1015_v53 = vpop.f32.mrf.mxu1  ;;  %v933_v8 = vadd.f32 %v918_v50, %v820_v2  ;;  %v1032_v13 = vadd.f32 %v1838_v51, %v935_v7  ;;  %v1369_v2 = vld [vmem:[%s2331_s7] sm:$0x1] }
 0x118   : > { %v1827_v52 = vpop.f32.mrf.mxu0 }
 0x119   : > { %v1839_v57 = vpop.f32.mrf.mxu1  ;;  %v936_v10 = vadd.f32 %v1827_v52, %v823_v6  ;;  %v1030_v14 = vadd.f32 %v1015_v53, %v933_v8 }
 0x11a   : > { %v921_v56 = vpop.f32.mrf.mxu0 }
 0x11b   : > { %v1018_v0 = vpop.f32.mrf.mxu1  ;;  %v934_v15 = vadd.f32 %v921_v56, %v821_v9  ;;  %v1033_v16 = vadd.f32 %v1839_v57, %v936_v10 }
 0x11d   : > { %v1031_v21 = vadd.f32 %v1018_v0, %v934_v15 }
 0x124   : > { %v1850_v61 = vpop.f32.mrf.mxu0 }
 0x125   : > { %v1862_v5 = vpop.f32.mrf.mxu1  ;;  %v1134_v17 = vadd.f32 %v1850_v61, %v1032_v13 }
 0x126   : > { %v1117_v4 = vpop.f32.mrf.mxu0 }
 0x127   : > { %v1230_v12 = vpop.f32.mrf.mxu1  ;;  %v1132_v18 = vadd.f32 %v1117_v4, %v1030_v14  ;;  %v1247_v24 = vadd.f32 %v1862_v5, %v1134_v17 }
 0x128   : > { %v1851_v11 = vpop.f32.mrf.mxu0 }
 0x129   : > { %v1863_v20 = vpop.f32.mrf.mxu1  ;;  %v1135_v22 = vadd.f32 %v1851_v11, %v1033_v16  ;;  %v1245_v25 = vadd.f32 %v1230_v12, %v1132_v18 }
 0x12a   : > { %v1120_v19 = vpop.f32.mrf.mxu0 }
 0x12b   : > { %v1133_v26 = vadd.f32 %v1120_v19, %v1031_v21  ;;  %v1233_v27 = vpop.f32.mrf.mxu1  ;;  %v1248_v29 = vadd.f32 %v1863_v20, %v1135_v22 }
 0x12d   : > { %v1246_v34 = vadd.f32 %v1233_v27, %v1133_v26 }
 0x134   : > { %v1874_v23 = vpop.f32.mrf.mxu0 }
 0x135   : > { %v1344_v30 = vadd.f32 %v1874_v23, %v1247_v24 }
 0x136   : > { %v1327_v28 = vpop.f32.mrf.mxu0 }
 0x137   : > { %v1342_v31 = vadd.f32 %v1327_v28, %v1245_v25  ;;  %v1355_v37 = vadd.f32 %v1692_v32, %v1344_v30 }
 0x138   : > { %v1875_v33 = vpop.f32.mrf.mxu0 }
 0x139   : > { %v1345_v35 = vadd.f32 %v1875_v33, %v1248_v29  ;;  %v1353_v38 = vadd.f32 %v1692_v32, %v1342_v31  ;;  %v1372_v47 = vmul.f32 %v1355_v37, %v1355_v37 }
 0x13a   : > { %v1330_v36 = vpop.f32.mrf.mxu0 }
 0x13b   : > { %v1356_v39 = vadd.f32 %v1692_v32, %v1345_v35  ;;  %v1343_v40 = vadd.f32 %v1330_v36, %v1246_v34  ;;  %v1370_v43 = vmul.f32 %v1353_v38, %v1353_v38 }
 0x13d   : > { %v1711_v41 = vpack.c.bf16 %v1356_v39, %v1355_v37  ;;  %v1354_v42 = vadd.f32 %v1692_v32, %v1343_v40  ;;  %v1373_v50 = vmul.f32 %v1356_v39, %v1356_v39 }
 0x13f   : > { %1713 = vst [vmem:[%s2109_s21 + $0x8] sm:$0xff] %v1711_v41   ;;  %v1358_v44 = vadd.f32 %v1354_v42, %v1353_v38  ;;  %v1371_v45 = vmul.f32 %v1354_v42, %v1354_v42  ;;  %v1706_v46 = vpack.c.bf16 %v1354_v42, %v1353_v38 }
 0x141   : > { %v1359_v48 = vadd.f32 %v1358_v44, %v1355_v37  ;;  %v1374_v49 = vadd.f32 %v1371_v45, %v1370_v43  ;;  %1707 = vst [vmem:[%s2109_s21] sm:$0xff] %v1706_v46  }
 0x143   : > { %v1360_v51 = vadd.f32 %v1359_v48, %v1356_v39  ;;  %v1375_v52 = vadd.f32 %v1374_v49, %v1372_v47 }
 0x145   : > { %v1361_v53 = vrot.slane %v1360_v51, 4  ;;  %v1376_v54 = vadd.f32 %v1375_v52, %v1373_v50 }
 0x147   : > { %v1362_v55 = vadd.f32 %v1361_v53, %v1360_v51  ;;  %v1377_v56 = vrot.slane %v1376_v54, 4 }
 0x149   : > { %v1363_v57 = vrot.slane %v1362_v55, 2  ;;  %v1378_v58 = vadd.f32 %v1377_v56, %v1376_v54 }
 0x14b   : > { %v1364_v59 = vadd.f32 %v1363_v57, %v1362_v55  ;;  %v1379_v60 = vrot.slane %v1378_v58, 2 }
 0x14d   : > { %v1365_v61 = vrot.slane %v1364_v59, 1  ;;  %v1380_v62 = vadd.f32 %v1379_v60, %v1378_v58 }
 0x14f   : > { %v1366_v0 = vadd.f32 %v1365_v61, %v1364_v59  ;;  %v1381_v1 = vrot.slane %v1380_v62, 1 }
 0x151   : > { %v1367_v3 = vadd.f32 %v1366_v0, %v1357_v63  ;;  %v1382_v4 = vadd.f32 %v1381_v1, %v1380_v62 }
 0x153   : > { %1368 = vst [vmem:[%s2330_s6] sm:$0x1] %v1367_v3  ;;  %v1383_v5 = vadd.f32 %v1382_v4, %v1369_v2 }
 0x155   : > { %1384 = vst [vmem:[%s2331_s7] sm:$0x1] %v1383_v5 }
 0x156 PF: > { %s18_s28 = sadd.s32 1, %s2004_s28   ;;  %s2336_s13 = sld [smem:[#allocation2_spill]] }
 0x157   : > { %p15_p13 = scmp.ge.s32.totalorder %s18_s28, 66   ;;  %s2337_s8 = sld [smem:[#allocation3_spill]] }
 0x158   : > { %s2338_s24 = smov %s1996_s26  ;;  %s2339_s25 = smov %s2000_s27 }
 0x159   :  { %17 = sbr.rel (!%p15_p13) target bundleno = 3 (0x3), region = 104 }
 0x15c   : > { %s2340_s26 = smov %s2336_s13 }
 0x15d   : > { %s2341_s27 = smov %s2337_s8 }

// kernel: _lambda_.11
= control target key start
LH: loop header
LB: loop body
LE: loop exit
PB: predicated region body
PF: predicated region fallthrough
CT: control target
= control target key end

     0   :  { %s4150_s18 = smov 0   ;;  %s5490_s0 = inlined_call_operand.vmem [shape: bf16[2048,128], index: 0, kind: input, shape index: {}]   ;;  %s5491_s1 = inlined_call_operand.vmem [shape: f32[1,128], index: 1, kind: input, shape index: {}]   ;;  %s5492_s2 = inlined_call_operand.vmem [shape: f32[1,128], index: 2, kind: input, shape index: {}]   ;;  %s5493_s3 = inlined_call_operand.vmem [shape: f32[1,128], index: 3, kind: input, shape index: {}]   ;;  %s5494_s4 = inlined_call_operand.vmem [shape: f32[1,128], index: 4, kind: input, shape index: {}]   ;;  %s5495_s5 = inlined_call_operand.vmem [shape: bf16[2048,128], index: 5, kind: output, shape index: {}]  }
   0x1 LB: > { %s2490_s19 = sadd.s32 4294967295, %s4118_s18   ;;  %p2494_p0 = scmp.ge.s32.totalorder %s4118_s18, 1  ;;  %s4118_s18 = sphi %s4150_s18, %s15_s18  }
   0x2   : > { %p188_p1 = scmp.lt.s32.totalorder %s4118_s18, 3 }
   0x4   : > { %p189_p2 = pnand %p2494_p0, %p188_p1 }
   0x6   : > { %192 = sbr.rel (%p189_p2) target bundleno = 354 (0x162), region = 40 }
   0xb   : > { %s2495_s20 = sshll.u32 %s2490_s19, 7  ;;  %v484_v0 = vld [vmem:[%s5491_s1] sm:$0x1]  ;;  %v496_v2 = vlaneseq }
   0xc   : > { %v486_v1 = vld [vmem:[%s5492_s2] sm:$0x1]  ;;  %p217_p3 = scmp.lt.s32.totalorder %s2495_s20, 255  ;;  %v485_v3 = vmul.f32 0.00048828125, %v484_v0 }
   0xd   : > { %v487_v4 = vmul.f32 0.00048828125, %v486_v1  ;;  %v4164_v5 = vshrl.u32 %v496_v2, 7 }
   0xe   : > { %s5519_s20 = smov (!%p217_p3, %s2495_s20), 255  ;;  %v488_v6 = vmul.f32 %v485_v3, %v485_v3 }
   0xf   : > { %v498_v7 = vsub.s32 0, %v4164_v5  ;;  %s2496_s25 = sshll.u32 %s5519_s20, 2 }
  0x10   : > { %v489_v8 = vsub.f32 %v487_v4, %v488_v6  ;;  %s4175_s28 = scalar_lea.vmem %s5490_s0, %s2496_s25  ;;  %s4582_s10 = scalar_lea.vmem %s5495_s5, %s2496_s25 }
  0x11   : > { %v4179_v9 = vrot.slane %v485_v3, %v498_v7  ;;  %v2887_v10 = vld [vmem:[%s4175_s28] sm:$0xff]   ;;  %v3462_v12 = vld [vmem:[%s4175_s28 + $0x8] sm:$0xff]   ;;  %v3463_v13 = vld [vmem:[%s4175_s28 + $0x10] sm:$0xff]  }
  0x12   : > { %v490_v11 = vmax.f32 %v489_v8, 0.0  ;;  %v2888_v14 = vunpack.c.l.bf16 %v2887_v10  ;;  %v2889_v15 = vunpack.c.h.bf16 %v2887_v10  ;;  %v2892_v16 = vunpack.c.l.bf16 %v3462_v12  ;;  %v3464_v18 = vld [vmem:[%s4175_s28 + $0x18] sm:$0xff]   ;;  %v3465_v23 = vld [vmem:[%s4175_s28 + $0x20] sm:$0xff]   ;;  %v3466_v24 = vld [vmem:[%s4175_s28 + $0x28] sm:$0xff]  }
  0x13   : > { %v2893_v17 = vunpack.c.h.bf16 %v3462_v12  ;;  %v2896_v20 = vunpack.c.l.bf16 %v3463_v13  ;;  %v2897_v21 = vunpack.c.h.bf16 %v3463_v13  ;;  %v2900_v22 = vunpack.c.l.bf16 %v3464_v18  ;;  %v3467_v29 = vld [vmem:[%s4175_s28 + $0x30] sm:$0xff]   ;;  %v3468_v33 = vld [vmem:[%s4175_s28 + $0x38] sm:$0xff]   ;;  %v3469_v42 = vld [vmem:[%s4175_s28 + $0x40] sm:$0xff]  }
  0x14   : > { %v491_v19 = vadd.f32 1e-05, %v490_v11  ;;  %v4188_v25 = vsub.f32 %v2888_v14, %v4179_v9  ;;  %v4191_v26 = vsub.f32 %v2889_v15, %v4179_v9  ;;  %v4194_v27 = vsub.f32 %v2892_v16, %v4179_v9  ;;  %v3470_v43 = vld [vmem:[%s4175_s28 + $0x48] sm:$0xff]   ;;  %v3471_v48 = vld [vmem:[%s4175_s28 + $0x50] sm:$0xff]   ;;  %v3472_v53 = vld [vmem:[%s4175_s28 + $0x58] sm:$0xff]  }
  0x15   : > { %v4197_v28 = vsub.f32 %v2893_v17, %v4179_v9  ;;  %v4201_v30 = vsub.f32 %v2896_v20, %v4179_v9  ;;  %v4204_v31 = vsub.f32 %v2897_v21, %v4179_v9  ;;  %v2901_v32 = vunpack.c.h.bf16 %v3464_v18  ;;  %v3473_v62 = vld [vmem:[%s4175_s28 + $0x60] sm:$0xff]   ;;  %v3474_v63 = vld [vmem:[%s4175_s28 + $0x68] sm:$0xff]   ;;  %v3475_v4 = vld [vmem:[%s4175_s28 + $0x70] sm:$0xff]  }
  0x16   : > { %3596 = vrsqrt.f32 %v491_v19  ;;  %v4208_v34 = vsub.f32 %v2900_v22, %v4179_v9  ;;  %v2904_v35 = vunpack.c.l.bf16 %v3465_v23  ;;  %v2905_v36 = vunpack.c.h.bf16 %v3465_v23  ;;  %v3476_v12 = vld [vmem:[%s4175_s28 + $0x78] sm:$0xff]   ;;  %v3477_v21 = vld [vmem:[%s4175_s28 + $0x80] sm:$0xff]   ;;  %v3478_v22 = vld [vmem:[%s4175_s28 + $0x88] sm:$0xff]  }
  0x17   : > { %v2908_v37 = vunpack.c.l.bf16 %v3466_v24  ;;  %v4211_v38 = vsub.f32 %v2901_v32, %v4179_v9  ;;  %v2909_v39 = vunpack.c.h.bf16 %v3466_v24  ;;  %v2912_v40 = vunpack.c.l.bf16 %v3467_v29  ;;  %v493_v23 = vld [vmem:[%s5493_s3] sm:$0x1] }
  0x18   : > { %v2913_v41 = vunpack.c.h.bf16 %v3467_v29  ;;  %v4216_v44 = vsub.f32 %v2904_v35, %v4179_v9  ;;  %v4219_v45 = vsub.f32 %v2905_v36, %v4179_v9  ;;  %v2916_v47 = vunpack.c.l.bf16 %v3468_v33  ;;  %v3479_v35 = vld [vmem:[%s4175_s28 + $0x90] sm:$0xff]  }
  0x19   : > { %v4222_v46 = vsub.f32 %v2908_v37, %v4179_v9  ;;  %v4226_v49 = vsub.f32 %v2909_v39, %v4179_v9  ;;  %v4229_v50 = vsub.f32 %v2912_v40, %v4179_v9  ;;  %v2917_v52 = vunpack.c.h.bf16 %v3468_v33 }
  0x1a   : > { %v4232_v51 = vsub.f32 %v2913_v41, %v4179_v9  ;;  %v4236_v54 = vsub.f32 %v2916_v47, %v4179_v9  ;;  %v2920_v55 = vunpack.c.l.bf16 %v3469_v42  ;;  %v2921_v56 = vunpack.c.h.bf16 %v3469_v42 }
  0x1b   : > { %v2924_v57 = vunpack.c.l.bf16 %v3470_v43  ;;  %v4239_v58 = vsub.f32 %v2917_v52, %v4179_v9  ;;  %v2925_v59 = vunpack.c.h.bf16 %v3470_v43  ;;  %v2928_v60 = vunpack.c.l.bf16 %v3471_v48  ;;  %v4297_v52 = vld [vmem:[%s4175_s28 + $0x98] sm:$0xff]  }
  0x1c   : > { %v2929_v61 = vunpack.c.h.bf16 %v3471_v48  ;;  %v4244_v0 = vsub.f32 %v2920_v55, %v4179_v9  ;;  %v4247_v1 = vsub.f32 %v2921_v56, %v4179_v9  ;;  %v2932_v3 = vunpack.c.l.bf16 %v3472_v53 }
  0x1d   : > { %v4250_v2 = vsub.f32 %v2924_v57, %v4179_v9  ;;  %v4254_v6 = vsub.f32 %v2925_v59, %v4179_v9  ;;  %v4257_v8 = vsub.f32 %v2928_v60, %v4179_v9  ;;  %v2933_v11 = vunpack.c.h.bf16 %v3472_v53  ;;  %v4303_v59 = vld [vmem:[%s4175_s28 + $0xa0] sm:$0xff]  }
  0x1e   : > { %v4260_v10 = vsub.f32 %v2929_v61, %v4179_v9  ;;  %v4264_v13 = vsub.f32 %v2932_v3, %v4179_v9  ;;  %v2936_v14 = vunpack.c.l.bf16 %v3473_v62  ;;  %v2937_v15 = vunpack.c.h.bf16 %v3473_v62 }
  0x1f   : > { %v2940_v16 = vunpack.c.l.bf16 %v3474_v63  ;;  %v4267_v17 = vsub.f32 %v2933_v11, %v4179_v9  ;;  %v2941_v18 = vunpack.c.h.bf16 %v3474_v63  ;;  %v2944_v19 = vunpack.c.l.bf16 %v3475_v4 }
  0x20   : > { %v2945_v20 = vunpack.c.h.bf16 %v3475_v4  ;;  %v4275_v24 = vsub.f32 %v2936_v14, %v4179_v9  ;;  %v4278_v29 = vsub.f32 %v2937_v15, %v4179_v9  ;;  %v2948_v33 = vunpack.c.l.bf16 %v3476_v12  ;;  %v4328_v14 = vld [vmem:[%s5494_s4] ss:$0 sm:$0xff] }
  0x21   : > { %v4281_v32 = vsub.f32 %v2940_v16, %v4179_v9  ;;  %v4285_v36 = vsub.f32 %v2941_v18, %v4179_v9  ;;  %v4288_v37 = vsub.f32 %v2944_v19, %v4179_v9  ;;  %v2949_v40 = vunpack.c.h.bf16 %v3476_v12 }
  0x22   : > { %v4291_v39 = vsub.f32 %v2945_v20, %v4179_v9  ;;  %v4294_v42 = vsub.f32 %v2948_v33, %v4179_v9  ;;  %v2952_v43 = vunpack.c.l.bf16 %v3477_v21  ;;  %v2953_v47 = vunpack.c.h.bf16 %v3477_v21 }
  0x23   : > { %v3597_v41 = vpop.eup %3596  ;;  %v2956_v48 = vunpack.c.l.bf16 %v3478_v22  ;;  %v4300_v55 = vsub.f32 %v2949_v40, %v4179_v9  ;;  %v2957_v56 = vunpack.c.h.bf16 %v3478_v22  ;;  %v2960_v57 = vunpack.c.l.bf16 %v3479_v35 }
  0x24   : > { %v494_v53 = vmul.f32 %v3597_v41, %v493_v23  ;;  %v4306_v60 = vsub.f32 %v2952_v43, %v4179_v9  ;;  %v4309_v61 = vsub.f32 %v2953_v47, %v4179_v9  ;;  %v2961_v63 = vunpack.c.h.bf16 %v3479_v35 }
  0x25   : > { %v4312_v62 = vsub.f32 %v2956_v48, %v4179_v9  ;;  %v4319_v4 = vsub.f32 %v2957_v56, %v4179_v9  ;;  %v4322_v11 = vsub.f32 %v2960_v57, %v4179_v9 }
  0x26   : > { %v4316_v3 = vrot.slane %v494_v53, %v498_v7  ;;  %v4331_v15 = vsub.f32 %v2961_v63, %v4179_v9 }
  0x28   : > { %v635_v18 = vmul.f32 %v4316_v3, %v4188_v25  ;;  %v636_v19 = vmul.f32 %v4316_v3, %v4191_v26  ;;  %v637_v20 = vmul.f32 %v4316_v3, %v4194_v27  ;;  %v638_v21 = vmul.f32 %v4316_v3, %v4197_v28 }
  0x29   : > { %v639_v22 = vmul.f32 %v4316_v3, %v4201_v30  ;;  %v640_v23 = vmul.f32 %v4316_v3, %v4204_v31  ;;  %v641_v33 = vmul.f32 %v4316_v3, %v4208_v34  ;;  %v642_v25 = vmul.f32 %v4316_v3, %v4211_v38 }
  0x2a   : > { %v4353_v26 = vadd.f32 %v4328_v14, %v635_v18  ;;  %v4356_v27 = vadd.f32 %v4328_v14, %v636_v19  ;;  %v4359_v28 = vadd.f32 %v4328_v14, %v637_v20  ;;  %v4362_v30 = vadd.f32 %v4328_v14, %v638_v21 }
  0x2b   : > { %v4365_v31 = vadd.f32 %v4328_v14, %v639_v22  ;;  %v4368_v34 = vadd.f32 %v4328_v14, %v640_v23  ;;  %v4371_v38 = vadd.f32 %v4328_v14, %v641_v33  ;;  %v4374_v35 = vadd.f32 %v4328_v14, %v642_v25 }
  0x2c   : > { %v2500_v40 = vmul.f32 -1.442695, %v4353_v26  ;;  %v2501_v41 = vmul.f32 -1.442695, %v4356_v27  ;;  %v2502_v43 = vmul.f32 -1.442695, %v4359_v28  ;;  %v643_v47 = vmul.f32 %v4316_v3, %v4216_v44 }
  0x2d   : > { %v2503_v48 = vmul.f32 -1.442695, %v4362_v30  ;;  %v2504_v53 = vmul.f32 -1.442695, %v4365_v31  ;;  %v2505_v56 = vmul.f32 -1.442695, %v4368_v34  ;;  %v644_v57 = vmul.f32 %v4316_v3, %v4219_v45 }
  0x2e   : > { %3598 = vpow2.f32 %v2500_v40  ;;  %v2506_v63 = vmul.f32 -1.442695, %v4371_v38  ;;  %v2507_v18 = vmul.f32 -1.442695, %v4374_v35  ;;  %v4389_v19 = vadd.f32 %v4328_v14, %v643_v47 }
  0x2f   : > { %3600 = vpow2.f32 %v2501_v41  ;;  %v4392_v44 = vadd.f32 %v4328_v14, %v644_v57  ;;  %v645_v20 = vmul.f32 %v4316_v3, %v4222_v46  ;;  %v646_v21 = vmul.f32 %v4316_v3, %v4226_v49 }
  0x30   : > { %3602 = vpow2.f32 %v2502_v43  ;;  %v2508_v45 = vmul.f32 -1.442695, %v4389_v19  ;;  %v647_v22 = vmul.f32 %v4316_v3, %v4229_v50  ;;  %v648_v23 = vmul.f32 %v4316_v3, %v4232_v51 }
  0x31   : > { %3604 = vpow2.f32 %v2503_v48  ;;  %v2509_v33 = vmul.f32 -1.442695, %v4392_v44  ;;  %v4405_v25 = vadd.f32 %v4328_v14, %v645_v20  ;;  %v4408_v46 = vadd.f32 %v4328_v14, %v646_v21 }
  0x32   : > { %3606 = vpow2.f32 %v2504_v53  ;;  %v4411_v49 = vadd.f32 %v4328_v14, %v647_v22  ;;  %v4414_v40 = vadd.f32 %v4328_v14, %v648_v23  ;;  %v649_v50 = vmul.f32 %v4316_v3, %v4236_v54 }
  0x33   : > { %3608 = vpow2.f32 %v2505_v56  ;;  %v2510_v51 = vmul.f32 -1.442695, %v4405_v25  ;;  %v2511_v41 = vmul.f32 -1.442695, %v4408_v46  ;;  %v650_v43 = vmul.f32 %v4316_v3, %v4239_v58 }
  0x34   : > { %3610 = vpow2.f32 %v2506_v63  ;;  %v2512_v47 = vmul.f32 -1.442695, %v4411_v49  ;;  %v2513_v48 = vmul.f32 -1.442695, %v4414_v40  ;;  %v4425_v53 = vadd.f32 %v4328_v14, %v649_v50 }
  0x35   : > { %3612 = vpow2.f32 %v2507_v18  ;;  %v4428_v57 = vadd.f32 %v4328_v14, %v650_v43  ;;  %v651_v54 = vmul.f32 %v4316_v3, %v4244_v0  ;;  %v652_v56 = vmul.f32 %v4316_v3, %v4247_v1 }
  0x36   : > { %3614 = vpow2.f32 %v2508_v45  ;;  %v2514_v58 = vmul.f32 -1.442695, %v4425_v53  ;;  %v653_v63 = vmul.f32 %v4316_v3, %v4250_v2  ;;  %v654_v20 = vmul.f32 %v4316_v3, %v4254_v6 }
  0x37   : > { %3616 = vpow2.f32 %v2509_v33  ;;  %v2515_v18 = vmul.f32 -1.442695, %v4428_v57  ;;  %v4441_v21 = vadd.f32 %v4328_v14, %v651_v54  ;;  %v4444_v0 = vadd.f32 %v4328_v14, %v652_v56 }
  0x38   : > { %3618 = vpow2.f32 %v2510_v51  ;;  %v4447_v1 = vadd.f32 %v4328_v14, %v653_v63  ;;  %v4450_v45 = vadd.f32 %v4328_v14, %v654_v20  ;;  %v655_v2 = vmul.f32 %v4316_v3, %v4257_v8 }
  0x39   : > { %3620 = vpow2.f32 %v2511_v41  ;;  %v4455_v6 = vmul.f32 -1.442695, %v4441_v21  ;;  %v4458_v22 = vmul.f32 -1.442695, %v4444_v0  ;;  %v656_v23 = vmul.f32 %v4316_v3, %v4260_v10 }
  0x3a   : > { %3622 = vpow2.f32 %v2512_v47  ;;  %v4463_v33 = vmul.f32 -1.442695, %v4447_v1  ;;  %v4466_v50 = vmul.f32 -1.442695, %v4450_v45  ;;  %v4469_v51 = vadd.f32 %v4328_v14, %v655_v2 }
  0x3b   : > { %v3599_v8 = vpop.eup %3598  ;;  %3624 = vpow2.f32 %v2513_v48  ;;  %v4472_v41 = vadd.f32 %v4328_v14, %v656_v23  ;;  %v657_v43 = vmul.f32 %v4316_v3, %v4264_v13  ;;  %v658_v10 = vmul.f32 %v4316_v3, %v4267_v17 }
  0x3c   : > { %v3601_v47 = vpop.eup %3600  ;;  %v1282_v54 = vadd.f32 1.0, %v3599_v8  ;;  %3626 = vpow2.f32 %v2514_v58  ;;  %v4479_v56 = vmul.f32 -1.442695, %v4469_v51  ;;  %v659_v63 = vmul.f32 %v4316_v3, %v4275_v24 }
  0x3d   : > { %v3603_v20 = vpop.eup %3602  ;;  %v1283_v48 = vadd.f32 1.0, %v3601_v47  ;;  %3628 = vpow2.f32 %v2515_v18  ;;  %v4484_v2 = vmul.f32 -1.442695, %v4472_v41  ;;  %v4487_v13 = vadd.f32 %v4328_v14, %v657_v43 }
  0x3e   : > { %v3605_v23 = vpop.eup %3604  ;;  %3630 = vrcp.f32 %v1282_v54  ;;  %v1284_v17 = vadd.f32 1.0, %v3603_v20  ;;  %v4490_v58 = vadd.f32 %v4328_v14, %v658_v10  ;;  %v660_v8 = vmul.f32 %v4316_v3, %v4278_v29 }
  0x3f   : > { %v3607_v16 = vpop.eup %3606  ;;  %3632 = vrcp.f32 %v1283_v48  ;;  %v1285_v24 = vadd.f32 1.0, %v3605_v23  ;;  %v4495_v18 = vmul.f32 -1.442695, %v4487_v13  ;;  %v4498_v47 = vadd.f32 %v4328_v14, %v659_v63 }
  0x40   : > { %v3609_v43 = vpop.eup %3608  ;;  %3634 = vrcp.f32 %v1284_v17  ;;  %v1286_v7 = vadd.f32 1.0, %v3607_v16  ;;  %v4501_v54 = vmul.f32 -1.442695, %v4490_v58  ;;  %v4504_v10 = vadd.f32 %v4328_v14, %v660_v8 }
  0x41   : > { %5502 = vst [vmem:[#allocation2_spill] sm:$0xff] %v4498_v47  ;;  %v3611_v20 = vpop.eup %3610  ;;  %3636 = vrcp.f32 %v1285_v24  ;;  %v1287_v29 = vadd.f32 1.0, %v3609_v43  ;;  %v4507_v48 = vmul.f32 -1.442695, %v4498_v47  ;;  %v661_v23 = vmul.f32 %v4316_v3, %v4281_v32 }
  0x42   : > { %5503 = vst [vmem:[#allocation3_spill] sm:$0xff] %v4504_v10  ;;  %v3613_v63 = vpop.eup %3612  ;;  %3638 = vrcp.f32 %v1286_v7  ;;  %v1288_v5 = vadd.f32 1.0, %v3611_v20  ;;  %v4512_v16 = vmul.f32 -1.442695, %v4504_v10  ;;  %v662_v17 = vmul.f32 %v4316_v3, %v4285_v36 }
  0x43   : > { %v3615_v8 = vpop.eup %3614  ;;  %3640 = vrcp.f32 %v1287_v29  ;;  %v1289_v12 = vadd.f32 1.0, %v3613_v63  ;;  %v4517_v24 = vadd.f32 %v4328_v14, %v661_v23  ;;  %v663_v43 = vmul.f32 %v4316_v3, %v4288_v37 }
  0x44   : > { %v3617_v47 = vpop.eup %3616  ;;  %3642 = vrcp.f32 %v1288_v5  ;;  %v1290_v32 = vadd.f32 1.0, %v3615_v8  ;;  %v4522_v7 = vadd.f32 %v4328_v14, %v662_v17  ;;  %v664_v20 = vmul.f32 %v4316_v3, %v4291_v39 }
  0x45   : > { %5504 = vst [vmem:[#allocation4_spill] sm:$0xff] %v4517_v24  ;;  %v3619_v10 = vpop.eup %3618  ;;  %3644 = vrcp.f32 %v1289_v12  ;;  %v1291_v36 = vadd.f32 1.0, %v3617_v47  ;;  %v4527_v29 = vmul.f32 -1.442695, %v4517_v24  ;;  %v4530_v23 = vadd.f32 %v4328_v14, %v663_v43 }
  0x46   : > { %5505 = vst [vmem:[#allocation5_spill] sm:$0xff] %v4522_v7  ;;  %v3621_v63 = vpop.eup %3620  ;;  %3646 = vrcp.f32 %v1290_v32  ;;  %v1292_v37 = vadd.f32 1.0, %v3619_v10  ;;  %v4533_v5 = vmul.f32 -1.442695, %v4522_v7  ;;  %v4536_v17 = vadd.f32 %v4328_v14, %v664_v20 }
  0x47   : > { %5506 = vst [vmem:[#allocation6_spill] sm:$0xff] %v4530_v23  ;;  %v3623_v8 = vpop.eup %3622  ;;  %3648 = vrcp.f32 %v1291_v36  ;;  %v1293_v39 = vadd.f32 1.0, %v3621_v63  ;;  %v4539_v12 = vmul.f32 -1.442695, %v4530_v23  ;;  %v665_v47 = vmul.f32 %v4316_v3, %v4294_v42 }
  0x48   : > { %5507 = vst [vmem:[#allocation7_spill] sm:$0xff] %v4536_v17  ;;  %v3625_v43 = vpop.eup %3624  ;;  %3650 = vrcp.f32 %v1292_v37  ;;  %v1294_v24 = vadd.f32 1.0, %v3623_v8  ;;  %v4544_v10 = vmul.f32 -1.442695, %v4536_v17  ;;  %v666_v32 = vmul.f32 %v4316_v3, %v4300_v55 }
  0x49   : > { %v3627_v20 = vpop.eup %3626  ;;  %3652 = vrcp.f32 %v1293_v39  ;;  %v1295_v7 = vadd.f32 1.0, %v3625_v43  ;;  %v4549_v36 = vadd.f32 %v4328_v14, %v665_v47  ;;  %v667_v63 = vmul.f32 %v4316_v3, %v4306_v60 }
  0x4a   : > { %v3629_v23 = vpop.eup %3628  ;;  %3654 = vrcp.f32 %v1294_v24  ;;  %v1296_v42 = vadd.f32 1.0, %v3627_v20  ;;  %v4554_v37 = vadd.f32 %v4328_v14, %v666_v32  ;;  %v668_v8 = vmul.f32 %v4316_v3, %v4309_v61 }
  0x4b   : > { %v3631_v17 = vpop.eup %3630  ;;  %3656 = vrcp.f32 %v1295_v7  ;;  %v1297_v55 = vadd.f32 1.0, %v3629_v23  ;;  %v4559_v39 = vmul.f32 -1.442695, %v4549_v36  ;;  %v4562_v47 = vadd.f32 %v4328_v14, %v667_v63 }
  0x4c   : > { %v3633_v60 = vpop.eup %3632  ;;  %v1666_v24 = vmul.f32 %v3631_v17, %v4353_v26  ;;  %3658 = vrcp.f32 %v1296_v42  ;;  %v4566_v43 = vmul.f32 -1.442695, %v4554_v37  ;;  %v4569_v32 = vadd.f32 %v4328_v14, %v668_v8 }
  0x4d   : > { %v3635_v61 = vpop.eup %3634  ;;  %v1667_v7 = vmul.f32 %v3633_v60, %v4356_v27  ;;  %3660 = vrcp.f32 %v1297_v55  ;;  %v4573_v23 = vmul.f32 -1.442695, %v4562_v47  ;;  %v669_v20 = vmul.f32 %v4316_v3, %v4312_v62 }
  0x4e   : > { %v3637_v63 = vpop.eup %3636  ;;  %v1668_v26 = vmul.f32 %v3635_v61, %v4359_v28  ;;  %3662 = vpow2.f32 %v4455_v6  ;;  %v4587_v27 = vmul.f32 -1.442695, %v4569_v32  ;;  %v670_v17 = vmul.f32 %v4316_v3, %v4319_v4 }
  0x4f   : > { %v3639_v42 = vpop.eup %3638  ;;  %v3145_v62 = vpack.c.bf16 %v1667_v7, %v1666_v24  ;;  %v1669_v8 = vmul.f32 %v3637_v63, %v4362_v30  ;;  %3664 = vpow2.f32 %v4458_v22  ;;  %v4594_v55 = vadd.f32 %v4328_v14, %v669_v20 }
  0x50   : > { %v3641_v60 = vpop.eup %3640  ;;  %v1670_v28 = vmul.f32 %v3639_v42, %v4365_v31  ;;  %3666 = vpow2.f32 %v4463_v33  ;;  %v4599_v6 = vadd.f32 %v4328_v14, %v670_v17  ;;  %v671_v4 = vmul.f32 %v4316_v3, %v4322_v11 }
  0x51   : > { %v3643_v24 = vpop.eup %3642  ;;  %3146 = vst [vmem:[%s4582_s10] sm:$0xff] %v3145_v62   ;;  %v3150_v30 = vpack.c.bf16 %v1669_v8, %v1668_v26  ;;  %v1671_v22 = vmul.f32 %v3641_v60, %v4368_v34  ;;  %3668 = vpow2.f32 %v4466_v50  ;;  %v4607_v61 = vmul.f32 -1.442695, %v4594_v55 }
  0x52   : > { %v3645_v31 = vpop.eup %3644  ;;  %v1672_v7 = vmul.f32 %v3643_v24, %v4371_v38  ;;  %3670 = vpow2.f32 %v4479_v56  ;;  %v4612_v33 = vmul.f32 -1.442695, %v4599_v6  ;;  %v672_v11 = vmul.f32 %v4316_v3, %v4331_v15 }
  0x53   : > { %v3647_v20 = vpop.eup %3646  ;;  %3525 = vst [vmem:[%s4582_s10 + $0x8] sm:$0xff] %v3150_v30   ;;  %v3155_v34 = vpack.c.bf16 %v1671_v22, %v1670_v28  ;;  %v1673_v50 = vmul.f32 %v3645_v31, %v4374_v35  ;;  %3672 = vpow2.f32 %v4484_v2  ;;  %v4620_v63 = vadd.f32 %v4328_v14, %v671_v4 }
  0x54   : > { %v3649_v38 = vpop.eup %3648  ;;  %v1674_v26 = vmul.f32 %v3647_v20, %v4389_v19  ;;  %3674 = vpow2.f32 %v4495_v18  ;;  %v4625_v56 = vadd.f32 %v4328_v14, %v672_v11  ;;  %v5508_v15 = vunpack.c.l.bf16 %v4297_v52 }
  0x55   : > { %v3651_v42 = vpop.eup %3650  ;;  %3526 = vst [vmem:[%s4582_s10 + $0x10] sm:$0xff] %v3155_v34   ;;  %v3160_v35 = vpack.c.bf16 %v1673_v50, %v1672_v7  ;;  %v1675_v2 = vmul.f32 %v3649_v38, %v4392_v44  ;;  %3676 = vpow2.f32 %v4501_v54  ;;  %v4634_v62 = vmul.f32 -1.442695, %v4620_v63 }
  0x56   : > { %v539_v17 = vsub.f32 %v5508_v15, %v4179_v9  ;;  %v3653_v19 = vpop.eup %3652  ;;  %v1676_v18 = vmul.f32 %v3651_v42, %v4405_v25  ;;  %3678 = vpow2.f32 %v4507_v48  ;;  %v4639_v8 = vmul.f32 -1.442695, %v4625_v56 }
  0x57   : > { %v5509_v60 = vunpack.c.h.bf16 %v4297_v52  ;;  %v3655_v4 = vpop.eup %3654  ;;  %3527 = vst [vmem:[%s4582_s10 + $0x18] sm:$0xff] %v3160_v35   ;;  %v3165_v44 = vpack.c.bf16 %v1675_v2, %v1674_v26  ;;  %v1677_v54 = vmul.f32 %v3653_v19, %v4408_v46  ;;  %3680 = vpow2.f32 %v4512_v16 }
  0x58   : > { %v673_v24 = vmul.f32 %v4316_v3, %v539_v17  ;;  %v3657_v25 = vpop.eup %3656  ;;  %v1678_v30 = vmul.f32 %v3655_v4, %v4411_v49  ;;  %3682 = vpow2.f32 %v4527_v29  ;;  %v5510_v52 = vunpack.c.l.bf16 %v4303_v59 }
  0x59   : > { %v540_v28 = vsub.f32 %v5509_v60, %v4179_v9  ;;  %v3659_v31 = vpop.eup %3658  ;;  %3528 = vst [vmem:[%s4582_s10 + $0x20] sm:$0xff] %v3165_v44   ;;  %v3170_v46 = vpack.c.bf16 %v1677_v54, %v1676_v18  ;;  %v1679_v16 = vmul.f32 %v3657_v25, %v4414_v40  ;;  %3684 = vpow2.f32 %v4533_v5  ;;  %v3483_v44 = vld [vmem:[%s4175_s28 + $0xb0] sm:$0xff]  }
  0x5a   : > { %v541_v22 = vsub.f32 %v5510_v52, %v4179_v9  ;;  %v4658_v7 = vadd.f32 %v4328_v14, %v673_v24  ;;  %v3661_v49 = vpop.eup %3660  ;;  %v1680_v29 = vmul.f32 %v3659_v31, %v4425_v53  ;;  %3686 = vpow2.f32 %v4539_v12  ;;  %v3482_v53 = vld [vmem:[%s4175_s28 + $0xa8] sm:$0xff]  }
  0x5b   : > { %v674_v48 = vmul.f32 %v4316_v3, %v540_v28  ;;  %v5511_v20 = vunpack.c.h.bf16 %v4303_v59  ;;  %v3663_v50 = vpop.eup %3662  ;;  %3529 = vst [vmem:[%s4582_s10 + $0x28] sm:$0xff] %v3170_v46   ;;  %v3175_v40 = vpack.c.bf16 %v1679_v16, %v1678_v30  ;;  %v1681_v5 = vmul.f32 %v3661_v49, %v4428_v57 }
  0x5c   : > { %3688 = vpow2.f32 %v4544_v10  ;;  %v4672_v38 = vmul.f32 -1.442695, %v4658_v7  ;;  %v3665_v12 = vpop.eup %3664  ;;  %v1298_v26 = vadd.f32 1.0, %v3663_v50  ;;  %v675_v59 = vmul.f32 %v4316_v3, %v541_v22 }
  0x5d   : > { %v4663_v11 = vadd.f32 %v4328_v14, %v674_v48  ;;  %v542_v34 = vsub.f32 %v5511_v20, %v4179_v9  ;;  %3690 = vpow2.f32 %v4559_v39  ;;  %v3667_v17 = vpop.eup %3666  ;;  %3530 = vst [vmem:[%s4582_s10 + $0x30] sm:$0xff] %v3175_v40   ;;  %v3180_v57 = vpack.c.bf16 %v1681_v5, %v1680_v29 }
  0x5e   : > { %v1299_v42 = vadd.f32 1.0, %v3665_v12  ;;  %3692 = vpow2.f32 %v4566_v43  ;;  %v3669_v35 = vpop.eup %3668  ;;  %v1300_v2 = vadd.f32 1.0, %v3667_v17  ;;  %v4684_v19 = vadd.f32 %v4328_v14, %v675_v59 }
  0x5f   : > { %v4677_v15 = vmul.f32 -1.442695, %v4663_v11  ;;  %v676_v10 = vmul.f32 %v4316_v3, %v542_v34  ;;  %3694 = vrcp.f32 %v1298_v26  ;;  %v2972_v39 = vunpack.c.l.bf16 %v3482_v53  ;;  %v3671_v18 = vpop.eup %3670  ;;  %3531 = vst [vmem:[%s4582_s10 + $0x38] sm:$0xff] %v3180_v57  }
  0x60   : > { %3696 = vrcp.f32 %v1299_v42  ;;  %v1301_v60 = vadd.f32 1.0, %v3669_v35  ;;  %v2973_v4 = vunpack.c.h.bf16 %v3482_v53  ;;  %v3673_v54 = vpop.eup %3672  ;;  %v1302_v43 = vadd.f32 1.0, %v3671_v18  ;;  %v3484_v42 = vld [vmem:[%s4175_s28 + $0xb8] sm:$0xff]  }
  0x61   : > { %v4688_v28 = vadd.f32 %v4328_v14, %v676_v10  ;;  %3698 = vrcp.f32 %v1300_v2  ;;  %v4692_v24 = vmul.f32 -1.442695, %v4684_v19  ;;  %v543_v25 = vsub.f32 %v2972_v39, %v4179_v9  ;;  %v3675_v30 = vpop.eup %3674 }
  0x62   : > { %3700 = vrcp.f32 %v1301_v60  ;;  %v1303_v48 = vadd.f32 1.0, %v3673_v54  ;;  %v544_v22 = vsub.f32 %v2973_v4, %v4179_v9  ;;  %v3677_v31 = vpop.eup %3676  ;;  %v1304_v46 = vadd.f32 1.0, %v3675_v30 }
  0x63   : > { %v4696_v52 = vmul.f32 -1.442695, %v4688_v28  ;;  %3702 = vrcp.f32 %v1302_v43  ;;  %v677_v16 = vmul.f32 %v4316_v3, %v543_v25  ;;  %v2976_v49 = vunpack.c.l.bf16 %v3483_v44  ;;  %v3679_v29 = vpop.eup %3678 }
  0x64   : > { %3704 = vrcp.f32 %v1303_v48  ;;  %v1305_v20 = vadd.f32 1.0, %v3677_v31  ;;  %v678_v34 = vmul.f32 %v4316_v3, %v544_v22  ;;  %v2977_v50 = vunpack.c.h.bf16 %v3483_v44  ;;  %v3681_v40 = vpop.eup %3680 }
  0x65   : > { %3706 = vrcp.f32 %v1304_v46  ;;  %v1306_v5 = vadd.f32 1.0, %v3679_v29  ;;  %v4702_v53 = vadd.f32 %v4328_v14, %v677_v16  ;;  %v545_v12 = vsub.f32 %v2976_v49, %v4179_v9  ;;  %v3683_v26 = vpop.eup %3682  ;;  %v3485_v16 = vld [vmem:[%s4175_s28 + $0xc0] sm:$0xff]  }
  0x66   : > { %3708 = vrcp.f32 %v1305_v20  ;;  %v1307_v59 = vadd.f32 1.0, %v3681_v40  ;;  %v4706_v17 = vadd.f32 %v4328_v14, %v678_v34  ;;  %v546_v57 = vsub.f32 %v2977_v50, %v4179_v9  ;;  %v3685_v10 = vpop.eup %3684 }
  0x67   : > { %3710 = vrcp.f32 %v1306_v5  ;;  %v1308_v35 = vadd.f32 1.0, %v3683_v26  ;;  %v4711_v2 = vmul.f32 -1.442695, %v4702_v53  ;;  %v679_v39 = vmul.f32 %v4316_v3, %v545_v12  ;;  %v3687_v18 = vpop.eup %3686 }
  0x68   : > { %3712 = vrcp.f32 %v1307_v59  ;;  %v1309_v60 = vadd.f32 1.0, %v3685_v10  ;;  %v4715_v4 = vmul.f32 -1.442695, %v4706_v17  ;;  %v680_v44 = vmul.f32 %v4316_v3, %v546_v57 }
  0x69   : > { %v3689_v54 = vpop.eup %3688  ;;  %3714 = vrcp.f32 %v1308_v35  ;;  %v1310_v43 = vadd.f32 1.0, %v3687_v18  ;;  %v4719_v25 = vadd.f32 %v4328_v14, %v679_v39  ;;  %v2980_v30 = vunpack.c.l.bf16 %v3484_v42 }
  0x6a   : > { %v3691_v48 = vpop.eup %3690  ;;  %3716 = vrcp.f32 %v1309_v60  ;;  %v1311_v22 = vadd.f32 1.0, %v3689_v54  ;;  %v4722_v31 = vadd.f32 %v4328_v14, %v680_v44  ;;  %v2981_v46 = vunpack.c.h.bf16 %v3484_v42 }
  0x6b   : > { %v3693_v49 = vpop.eup %3692  ;;  %3718 = vrcp.f32 %v1310_v43  ;;  %v1312_v29 = vadd.f32 1.0, %v3691_v48  ;;  %v4726_v20 = vmul.f32 -1.442695, %v4719_v25  ;;  %v547_v34 = vsub.f32 %v2980_v30, %v4179_v9 }
  0x6c   : > { %v3695_v50 = vpop.eup %3694  ;;  %3720 = vrcp.f32 %v1311_v22  ;;  %v1313_v40 = vadd.f32 1.0, %v3693_v49  ;;  %v4730_v5 = vmul.f32 -1.442695, %v4722_v31  ;;  %v548_v12 = vsub.f32 %v2981_v46, %v4179_v9 }
  0x6d   : > { %v3697_v26 = vpop.eup %3696  ;;  %v1682_v59 = vmul.f32 %v3695_v50, %v4441_v21  ;;  %3722 = vrcp.f32 %v1312_v29  ;;  %v681_v57 = vmul.f32 %v4316_v3, %v547_v34  ;;  %v2984_v42 = vunpack.c.l.bf16 %v3485_v16 }
  0x6e   : > { %v3699_v10 = vpop.eup %3698  ;;  %v1683_v35 = vmul.f32 %v3697_v26, %v4444_v0  ;;  %3724 = vrcp.f32 %v1313_v40  ;;  %v682_v39 = vmul.f32 %v4316_v3, %v548_v12  ;;  %v2985_v18 = vunpack.c.h.bf16 %v3485_v16  ;;  %v3486_v16 = vld [vmem:[%s4175_s28 + $0xc8] sm:$0xff]  }
  0x6f   : > { %v3701_v60 = vpop.eup %3700  ;;  %v1684_v44 = vmul.f32 %v3699_v10, %v4447_v1  ;;  %3726 = vpow2.f32 %v4573_v23  ;;  %v4740_v21 = vadd.f32 %v4328_v14, %v681_v57  ;;  %v549_v54 = vsub.f32 %v2984_v42, %v4179_v9 }
  0x70   : > { %v3703_v43 = vpop.eup %3702  ;;  %v3185_v30 = vpack.c.bf16 %v1683_v35, %v1682_v59  ;;  %v1685_v0 = vmul.f32 %v3701_v60, %v4450_v45  ;;  %3728 = vpow2.f32 %v4587_v27  ;;  %v4746_v48 = vadd.f32 %v4328_v14, %v682_v39  ;;  %v5512_v59 = vld [vmem:[#allocation2_spill] sm:$0xff]  ;;  %v5513_v35 = vld [vmem:[#allocation3_spill] sm:$0xff]  ;;  %v3487_v39 = vld [vmem:[%s4175_s28 + $0xd0] sm:$0xff]  }
  0x71   : > { %v3705_v22 = vpop.eup %3704  ;;  %v1686_v1 = vmul.f32 %v3703_v43, %v4469_v51  ;;  %3730 = vpow2.f32 %v4607_v61  ;;  %v4751_v23 = vmul.f32 -1.442695, %v4740_v21  ;;  %v550_v46 = vsub.f32 %v2985_v18, %v4179_v9  ;;  %v5514_v60 = vld [vmem:[#allocation4_spill] sm:$0xff] }
  0x72   : > { %v3707_v49 = vpop.eup %3706  ;;  %3532 = vst [vmem:[%s4582_s10 + $0x40] sm:$0xff] %v3185_v30   ;;  %v3190_v45 = vpack.c.bf16 %v1685_v0, %v1684_v44  ;;  %v1687_v27 = vmul.f32 %v3705_v22, %v4472_v41  ;;  %3732 = vpow2.f32 %v4612_v33  ;;  %v4759_v29 = vmul.f32 -1.442695, %v4746_v48  ;;  %v5515_v0 = vld [vmem:[#allocation5_spill] sm:$0xff] }
  0x73   : > { %v3709_v51 = vpop.eup %3708  ;;  %v1688_v61 = vmul.f32 %v3707_v49, %v4487_v13  ;;  %3734 = vpow2.f32 %v4634_v62  ;;  %v683_v34 = vmul.f32 %v4316_v3, %v549_v54  ;;  %v684_v50 = vmul.f32 %v4316_v3, %v550_v46  ;;  %v5516_v46 = vld [vmem:[#allocation6_spill] sm:$0xff] }
  0x74   : > { %v3711_v40 = vpop.eup %3710  ;;  %3533 = vst [vmem:[%s4582_s10 + $0x48] sm:$0xff] %v3190_v45   ;;  %v3195_v12 = vpack.c.bf16 %v1687_v27, %v1686_v1  ;;  %v1689_v41 = vmul.f32 %v3709_v51, %v4490_v58  ;;  %3736 = vpow2.f32 %v4639_v8  ;;  %v2988_v33 = vunpack.c.l.bf16 %v3486_v16  ;;  %v5517_v51 = vld [vmem:[#allocation7_spill] sm:$0xff] }
  0x75   : > { %v3713_v26 = vpop.eup %3712  ;;  %v1690_v57 = vmul.f32 %v3711_v40, %v5512_v59  ;;  %3738 = vpow2.f32 %v4672_v38  ;;  %v4771_v13 = vadd.f32 %v4328_v14, %v683_v34  ;;  %v4774_v62 = vadd.f32 %v4328_v14, %v684_v50 }
  0x76   : > { %v3715_v42 = vpop.eup %3714  ;;  %3534 = vst [vmem:[%s4582_s10 + $0x50] sm:$0xff] %v3195_v12   ;;  %v3200_v10 = vpack.c.bf16 %v1689_v41, %v1688_v61  ;;  %v1691_v58 = vmul.f32 %v3713_v26, %v5513_v35  ;;  %3740 = vpow2.f32 %v4677_v15  ;;  %v2989_v8 = vunpack.c.h.bf16 %v3486_v16 }
  0x77   : > { %v3717_v18 = vpop.eup %3716  ;;  %v1692_v44 = vmul.f32 %v3715_v42, %v5514_v60  ;;  %3742 = vpow2.f32 %v4692_v24  ;;  %v4783_v38 = vmul.f32 -1.442695, %v4771_v13  ;;  %v4786_v54 = vmul.f32 -1.442695, %v4774_v62 }
  0x78   : > { %v3719_v43 = vpop.eup %3718  ;;  %3535 = vst [vmem:[%s4582_s10 + $0x58] sm:$0xff] %v3200_v10   ;;  %v3205_v30 = vpack.c.bf16 %v1691_v58, %v1690_v57  ;;  %v1693_v22 = vmul.f32 %v3717_v18, %v5515_v0  ;;  %3744 = vpow2.f32 %v4696_v52  ;;  %v551_v15 = vsub.f32 %v2988_v33, %v4179_v9  ;;  %v3488_v57 = vld [vmem:[%s4175_s28 + $0xd8] sm:$0xff]  }
  0x79   : > { %v3721_v1 = vpop.eup %3720  ;;  %v1694_v16 = vmul.f32 %v3719_v43, %v5516_v46  ;;  %3746 = vpow2.f32 %v4711_v2  ;;  %v552_v24 = vsub.f32 %v2989_v8, %v4179_v9  ;;  %v2992_v49 = vunpack.c.l.bf16 %v3487_v39 }
  0x7a   : > { %v3723_v45 = vpop.eup %3722  ;;  %3536 = vst [vmem:[%s4582_s10 + $0x60] sm:$0xff] %v3205_v30   ;;  %v3210_v27 = vpack.c.bf16 %v1693_v22, %v1692_v44  ;;  %v1695_v61 = vmul.f32 %v3721_v1, %v5517_v51  ;;  %3748 = vpow2.f32 %v4715_v4  ;;  %v685_v52 = vmul.f32 %v4316_v3, %v551_v15 }
  0x7b   : > { %v3725_v34 = vpop.eup %3724  ;;  %v1696_v50 = vmul.f32 %v3723_v45, %v4549_v36  ;;  %3750 = vpow2.f32 %v4726_v20  ;;  %v686_v2 = vmul.f32 %v4316_v3, %v552_v24  ;;  %v2993_v40 = vunpack.c.h.bf16 %v3487_v39 }
  0x7c   : > { %v3727_v12 = vpop.eup %3726  ;;  %3537 = vst [vmem:[%s4582_s10 + $0x68] sm:$0xff] %v3210_v27   ;;  %v3215_v41 = vpack.c.bf16 %v1695_v61, %v1694_v16  ;;  %v1697_v33 = vmul.f32 %v3725_v34, %v4554_v37  ;;  %3752 = vpow2.f32 %v4730_v5  ;;  %v4806_v4 = vadd.f32 %v4328_v14, %v685_v52  ;;  %v3489_v27 = vld [vmem:[%s4175_s28 + $0xe0] sm:$0xff]  }
  0x7d   : > { %v3729_v26 = vpop.eup %3728  ;;  %v1314_v59 = vadd.f32 1.0, %v3727_v12  ;;  %3754 = vpow2.f32 %v4751_v23  ;;  %v4810_v36 = vadd.f32 %v4328_v14, %v686_v2  ;;  %v553_v20 = vsub.f32 %v2992_v49, %v4179_v9 }
  0x7e   : > { %v3731_v42 = vpop.eup %3730  ;;  %3538 = vst [vmem:[%s4582_s10 + $0x70] sm:$0xff] %v3215_v41   ;;  %v3220_v10 = vpack.c.bf16 %v1697_v33, %v1696_v50  ;;  %v1315_v37 = vadd.f32 1.0, %v3729_v26  ;;  %3756 = vpow2.f32 %v4759_v29  ;;  %v4817_v5 = vmul.f32 -1.442695, %v4806_v4 }
  0x7f   : > { %v3733_v35 = vpop.eup %3732  ;;  %3758 = vrcp.f32 %v1314_v59  ;;  %v1316_v58 = vadd.f32 1.0, %v3731_v42  ;;  %v4820_v23 = vmul.f32 -1.442695, %v4810_v36  ;;  %v554_v8 = vsub.f32 %v2993_v40, %v4179_v9 }
  0x80   : > { %v3735_v39 = vpop.eup %3734  ;;  %3539 = vst [vmem:[%s4582_s10 + $0x78] sm:$0xff] %v3220_v10   ;;  %3760 = vrcp.f32 %v1315_v37  ;;  %v1317_v18 = vadd.f32 1.0, %v3733_v35  ;;  %v687_v60 = vmul.f32 %v4316_v3, %v553_v20  ;;  %v2996_v44 = vunpack.c.l.bf16 %v3488_v57  ;;  %v3490_v37 = vld [vmem:[%s4175_s28 + $0xe8] sm:$0xff]  }
  0x81   : > { %v3737_v29 = vpop.eup %3736  ;;  %3762 = vrcp.f32 %v1316_v58  ;;  %v1318_v43 = vadd.f32 1.0, %v3735_v39  ;;  %v688_v30 = vmul.f32 %v4316_v3, %v554_v8  ;;  %v2997_v0 = vunpack.c.h.bf16 %v3488_v57 }
  0x82   : > { %v3739_v22 = vpop.eup %3738  ;;  %3764 = vrcp.f32 %v1317_v18  ;;  %v1319_v15 = vadd.f32 1.0, %v3737_v29  ;;  %v4827_v1 = vadd.f32 %v4328_v14, %v687_v60  ;;  %v555_v46 = vsub.f32 %v2996_v44, %v4179_v9 }
  0x83   : > { %v3741_v16 = vpop.eup %3740  ;;  %3766 = vrcp.f32 %v1318_v43  ;;  %v1320_v24 = vadd.f32 1.0, %v3739_v22  ;;  %v4831_v49 = vadd.f32 %v4328_v14, %v688_v30  ;;  %v556_v45 = vsub.f32 %v2997_v0, %v4179_v9 }
  0x84   : > { %v3743_v51 = vpop.eup %3742  ;;  %3768 = vrcp.f32 %v1319_v15  ;;  %v1321_v61 = vadd.f32 1.0, %v3741_v16  ;;  %v4836_v52 = vmul.f32 -1.442695, %v4827_v1  ;;  %v689_v34 = vmul.f32 %v4316_v3, %v555_v46 }
  0x85   : > { %v3745_v50 = vpop.eup %3744  ;;  %3770 = vrcp.f32 %v1320_v24  ;;  %v1322_v2 = vadd.f32 1.0, %v3743_v51  ;;  %v4840_v40 = vmul.f32 -1.442695, %v4831_v49  ;;  %v690_v12 = vmul.f32 %v4316_v3, %v556_v45 }
  0x86   : > { %v3747_v41 = vpop.eup %3746  ;;  %3772 = vrcp.f32 %v1321_v61  ;;  %v1323_v33 = vadd.f32 1.0, %v3745_v50  ;;  %v4844_v26 = vadd.f32 %v4328_v14, %v689_v34  ;;  %v3000_v59 = vunpack.c.l.bf16 %v3489_v27 }
  0x87   : > { %v3749_v20 = vpop.eup %3748  ;;  %3774 = vrcp.f32 %v1322_v2  ;;  %v1324_v57 = vadd.f32 1.0, %v3747_v41  ;;  %v4847_v42 = vadd.f32 %v4328_v14, %v690_v12  ;;  %v3001_v10 = vunpack.c.h.bf16 %v3489_v27  ;;  %v4868_v2 = vld [vmem:[%s5494_s4] ss:$0 sm:$0xff] }
  0x88   : > { %v3751_v35 = vpop.eup %3750  ;;  %3776 = vrcp.f32 %v1323_v33  ;;  %v1325_v58 = vadd.f32 1.0, %v3749_v20  ;;  %v4851_v8 = vmul.f32 -1.442695, %v4844_v26  ;;  %v557_v39 = vsub.f32 %v3000_v59, %v4179_v9 }
  0x89   : > { %v3753_v18 = vpop.eup %3752  ;;  %3778 = vrcp.f32 %v1324_v57  ;;  %v1326_v60 = vadd.f32 1.0, %v3751_v35  ;;  %v4855_v44 = vmul.f32 -1.442695, %v4847_v42  ;;  %v558_v29 = vsub.f32 %v3001_v10, %v4179_v9 }
  0x8a   : > { %v3755_v43 = vpop.eup %3754  ;;  %3780 = vrcp.f32 %v1325_v58  ;;  %v1327_v30 = vadd.f32 1.0, %v3753_v18  ;;  %v691_v0 = vmul.f32 %v4316_v3, %v557_v39  ;;  %v3004_v22 = vunpack.c.l.bf16 %v3490_v37 }
  0x8b   : > { %v3757_v15 = vpop.eup %3756  ;;  %3782 = vrcp.f32 %v1326_v60  ;;  %v1328_v46 = vadd.f32 1.0, %v3755_v43  ;;  %v692_v16 = vmul.f32 %v4316_v3, %v558_v29  ;;  %v3005_v24 = vunpack.c.h.bf16 %v3490_v37 }
  0x8c   : > { %v3759_v45 = vpop.eup %3758  ;;  %3784 = vrcp.f32 %v1327_v30  ;;  %v1329_v27 = vadd.f32 1.0, %v3757_v15  ;;  %v4861_v51 = vadd.f32 %v4328_v14, %v691_v0  ;;  %v559_v61 = vsub.f32 %v3004_v22, %v4179_v9  ;;  %v3492_v0 = vld [vmem:[%s4175_s28 + $0xf8] sm:$0xff]  }
  0x8d   : > { %v3761_v34 = vpop.eup %3760  ;;  %v1698_v50 = vmul.f32 %v3759_v45, %v4562_v47  ;;  %3786 = vrcp.f32 %v1328_v46  ;;  %v4871_v12 = vadd.f32 %v4868_v2, %v692_v16  ;;  %v560_v41 = vsub.f32 %v3005_v24, %v4179_v9  ;;  %v3491_v47 = vld [vmem:[%s4175_s28 + $0xf0] sm:$0xff]  }
  0x8e   : > { %v3763_v33 = vpop.eup %3762  ;;  %v1699_v14 = vmul.f32 %v3761_v34, %v4569_v32  ;;  %3788 = vrcp.f32 %v1329_v27  ;;  %v2556_v59 = vmul.f32 -1.442695, %v4861_v51  ;;  %v693_v20 = vmul.f32 %v4316_v3, %v559_v61 }
  0x8f   : > { %v3765_v57 = vpop.eup %3764  ;;  %v1700_v10 = vmul.f32 %v3763_v33, %v4594_v55  ;;  %3790 = vpow2.f32 %v4783_v38  ;;  %v2557_v37 = vmul.f32 -1.442695, %v4871_v12  ;;  %v694_v35 = vmul.f32 %v4316_v3, %v560_v41 }
  0x90   : > { %v3767_v58 = vpop.eup %3766  ;;  %v3225_v39 = vpack.c.bf16 %v1699_v14, %v1698_v50  ;;  %v1701_v32 = vmul.f32 %v3765_v57, %v4599_v6  ;;  %3792 = vpow2.f32 %v4786_v54  ;;  %v4885_v18 = vadd.f32 %v4868_v2, %v693_v20 }
  0x91   : > { %v3769_v60 = vpop.eup %3768  ;;  %v1702_v29 = vmul.f32 %v3767_v58, %v4620_v63  ;;  %3794 = vpow2.f32 %v4817_v5  ;;  %v4890_v55 = vadd.f32 %v4868_v2, %v694_v35  ;;  %v3008_v38 = vunpack.c.l.bf16 %v3491_v47 }
  0x92   : > { %v3771_v43 = vpop.eup %3770  ;;  %3540 = vst [vmem:[%s4582_s10 + $0x80] sm:$0xff] %v3225_v39   ;;  %v3230_v30 = vpack.c.bf16 %v1701_v32, %v1700_v10  ;;  %v1703_v6 = vmul.f32 %v3769_v60, %v4625_v56  ;;  %3796 = vpow2.f32 %v4820_v23  ;;  %v2558_v54 = vmul.f32 -1.442695, %v4885_v18 }
  0x93   : > { %v3773_v22 = vpop.eup %3772  ;;  %v1704_v63 = vmul.f32 %v3771_v43, %v4658_v7  ;;  %3798 = vpow2.f32 %v4836_v52  ;;  %v2559_v5 = vmul.f32 -1.442695, %v4890_v55  ;;  %v3009_v15 = vunpack.c.h.bf16 %v3491_v47  ;;  %v3493_v47 = vld [vmem:[%s4175_s28 + $0x100] sm:$0xff]  }
  0x94   : > { %v3775_v46 = vpop.eup %3774  ;;  %3541 = vst [vmem:[%s4582_s10 + $0x88] sm:$0xff] %v3230_v30   ;;  %v3235_v16 = vpack.c.bf16 %v1703_v6, %v1702_v29  ;;  %v1705_v24 = vmul.f32 %v3773_v22, %v4663_v11  ;;  %3800 = vpow2.f32 %v4840_v40  ;;  %v561_v56 = vsub.f32 %v3008_v38, %v4179_v9 }
  0x95   : > { %v3777_v23 = vpop.eup %3776  ;;  %v1706_v45 = vmul.f32 %v3775_v46, %v4684_v19  ;;  %3802 = vpow2.f32 %v4851_v8  ;;  %v562_v7 = vsub.f32 %v3009_v15, %v4179_v9  ;;  %v3012_v52 = vunpack.c.l.bf16 %v3492_v0  ;;  %v3494_v15 = vld [vmem:[%s4175_s28 + $0x108] sm:$0xff]  }
  0x96   : > { %v3779_v27 = vpop.eup %3778  ;;  %3542 = vst [vmem:[%s4582_s10 + $0x90] sm:$0xff] %v3235_v16   ;;  %v3240_v61 = vpack.c.bf16 %v1705_v24, %v1704_v63  ;;  %v1707_v34 = vmul.f32 %v3777_v23, %v4688_v28  ;;  %3804 = vpow2.f32 %v4855_v44  ;;  %v695_v11 = vmul.f32 %v4316_v3, %v561_v56 }
  0x97   : > { %v3781_v40 = vpop.eup %3780  ;;  %v1708_v50 = vmul.f32 %v3779_v27, %v4702_v53  ;;  %3806 = vpow2.f32 %v2556_v59  ;;  %v696_v19 = vmul.f32 %v4316_v3, %v562_v7  ;;  %v3013_v8 = vunpack.c.h.bf16 %v3492_v0 }
  0x98   : > { %v3783_v41 = vpop.eup %3782  ;;  %3543 = vst [vmem:[%s4582_s10 + $0x98] sm:$0xff] %v3240_v61   ;;  %v3245_v33 = vpack.c.bf16 %v1707_v34, %v1706_v45  ;;  %v1709_v14 = vmul.f32 %v3781_v40, %v4706_v17  ;;  %3808 = vpow2.f32 %v2557_v37  ;;  %v4916_v28 = vadd.f32 %v4868_v2, %v695_v11 }
  0x99   : > { %v3785_v44 = vpop.eup %3784  ;;  %v1710_v20 = vmul.f32 %v3783_v41, %v4719_v25  ;;  %3810 = vpow2.f32 %v2558_v54  ;;  %v4920_v53 = vadd.f32 %v4868_v2, %v696_v19  ;;  %v563_v59 = vsub.f32 %v3012_v52, %v4179_v9 }
  0x9a   : > { %v3787_v57 = vpop.eup %3786  ;;  %3544 = vst [vmem:[%s4582_s10 + $0xa0] sm:$0xff] %v3245_v33   ;;  %v3250_v10 = vpack.c.bf16 %v1709_v14, %v1708_v50  ;;  %v1711_v17 = vmul.f32 %v3785_v44, %v4722_v31  ;;  %3812 = vpow2.f32 %v2559_v5  ;;  %v2560_v37 = vmul.f32 -1.442695, %v4916_v28  ;;  %v3495_v44 = vld [vmem:[%s4175_s28 + $0x110] sm:$0xff]  }
  0x9b   : > { %v3789_v35 = vpop.eup %3788  ;;  %v1712_v58 = vmul.f32 %v3787_v57, %v4740_v21  ;;  %v2561_v25 = vmul.f32 -1.442695, %v4920_v53  ;;  %v564_v39 = vsub.f32 %v3013_v8, %v4179_v9  ;;  %v697_v32 = vmul.f32 %v4316_v3, %v563_v59 }
  0x9c   : > { %v3791_v60 = vpop.eup %3790  ;;  %3545 = vst [vmem:[%s4582_s10 + $0xa8] sm:$0xff] %v3250_v10   ;;  %v3255_v29 = vpack.c.bf16 %v1711_v17, %v1710_v20  ;;  %v1713_v38 = vmul.f32 %v3789_v35, %v4746_v48  ;;  %3814 = vpow2.f32 %v2560_v37  ;;  %v3016_v31 = vunpack.c.l.bf16 %v3493_v47 }
  0x9d   : > { %v3793_v43 = vpop.eup %3792  ;;  %v1330_v30 = vadd.f32 1.0, %v3791_v60  ;;  %3816 = vpow2.f32 %v2561_v25  ;;  %v698_v21 = vmul.f32 %v4316_v3, %v564_v39  ;;  %v4935_v6 = vadd.f32 %v4868_v2, %v697_v32  ;;  %v3496_v60 = vld [vmem:[%s4175_s28 + $0x118] sm:$0xff]  }
  0x9e   : > { %v3795_v54 = vpop.eup %3794  ;;  %3546 = vst [vmem:[%s4582_s10 + $0xb0] sm:$0xff] %v3255_v29   ;;  %v3260_v0 = vpack.c.bf16 %v1713_v38, %v1712_v58  ;;  %v1331_v22 = vadd.f32 1.0, %v3793_v43  ;;  %v3017_v63 = vunpack.c.h.bf16 %v3493_v47  ;;  %v565_v5 = vsub.f32 %v3016_v31, %v4179_v9 }
  0x9f   : > { %v3797_v48 = vpop.eup %3796  ;;  %3818 = vrcp.f32 %v1330_v30  ;;  %v1332_v46 = vadd.f32 1.0, %v3795_v54  ;;  %v4941_v16 = vadd.f32 %v4868_v2, %v698_v21  ;;  %v2562_v24 = vmul.f32 -1.442695, %v4935_v6 }
  0xa0   : > { %v3799_v56 = vpop.eup %3798  ;;  %3547 = vst [vmem:[%s4582_s10 + $0xb8] sm:$0xff] %v3260_v0   ;;  %3820 = vrcp.f32 %v1331_v22  ;;  %v1333_v23 = vadd.f32 1.0, %v3797_v48  ;;  %v566_v45 = vsub.f32 %v3017_v63, %v4179_v9  ;;  %v699_v7 = vmul.f32 %v4316_v3, %v565_v5 }
  0xa1   : > { %v3801_v52 = vpop.eup %3800  ;;  %3822 = vrcp.f32 %v1332_v46  ;;  %v1334_v27 = vadd.f32 1.0, %v3799_v56  ;;  %v4948_v61 = vmul.f32 -1.442695, %v4941_v16  ;;  %v3020_v34 = vunpack.c.l.bf16 %v3494_v15 }
  0xa2   : > { %v3803_v11 = vpop.eup %3802  ;;  %3824 = vrcp.f32 %v1333_v23  ;;  %v1335_v40 = vadd.f32 1.0, %v3801_v52  ;;  %v700_v50 = vmul.f32 %v4316_v3, %v566_v45  ;;  %v4952_v19 = vadd.f32 %v4868_v2, %v699_v7  ;;  %v3497_v23 = vld [vmem:[%s4175_s28 + $0x120] sm:$0xff]  }
  0xa3   : > { %v3805_v8 = vpop.eup %3804  ;;  %3826 = vrcp.f32 %v1334_v27  ;;  %v1336_v41 = vadd.f32 1.0, %v3803_v11  ;;  %v3021_v33 = vunpack.c.h.bf16 %v3494_v15  ;;  %v567_v14 = vsub.f32 %v3020_v34, %v4179_v9 }
  0xa4   : > { %v3807_v20 = vpop.eup %3806  ;;  %3828 = vrcp.f32 %v1335_v40  ;;  %v1337_v59 = vadd.f32 1.0, %v3805_v8  ;;  %v4957_v47 = vadd.f32 %v4868_v2, %v700_v50  ;;  %v2564_v57 = vmul.f32 -1.442695, %v4952_v19 }
  0xa5   : > { %v3809_v10 = vpop.eup %3808  ;;  %3830 = vrcp.f32 %v1336_v41  ;;  %v1338_v17 = vadd.f32 1.0, %v3807_v20  ;;  %v568_v37 = vsub.f32 %v3021_v33, %v4179_v9  ;;  %v701_v35 = vmul.f32 %v4316_v3, %v567_v14 }
  0xa6   : > { %v3811_v58 = vpop.eup %3810  ;;  %3832 = vrcp.f32 %v1337_v59  ;;  %v1339_v25 = vadd.f32 1.0, %v3809_v10  ;;  %v2565_v39 = vmul.f32 -1.442695, %v4957_v47  ;;  %v3024_v32 = vunpack.c.l.bf16 %v3495_v44 }
  0xa7   : > { %v3813_v29 = vpop.eup %3812  ;;  %3834 = vrcp.f32 %v1338_v17  ;;  %v1340_v38 = vadd.f32 1.0, %v3811_v58  ;;  %v702_v31 = vmul.f32 %v4316_v3, %v568_v37  ;;  %v4966_v43 = vadd.f32 %v4868_v2, %v701_v35 }
  0xa8   : > { %3836 = vrcp.f32 %v1339_v25  ;;  %v1341_v30 = vadd.f32 1.0, %v3813_v29  ;;  %v3025_v21 = vunpack.c.h.bf16 %v3495_v44  ;;  %v569_v54 = vsub.f32 %v3024_v32, %v4179_v9 }
  0xa9   : > { %v3815_v0 = vpop.eup %3814  ;;  %3838 = vrcp.f32 %v1340_v38  ;;  %v4970_v22 = vadd.f32 %v4868_v2, %v702_v31  ;;  %v2566_v63 = vmul.f32 -1.442695, %v4966_v43  ;;  %v3028_v5 = vunpack.c.l.bf16 %v3496_v60 }
  0xaa   : > { %v3817_v15 = vpop.eup %3816  ;;  %3840 = vrcp.f32 %v1341_v30  ;;  %v1342_v48 = vadd.f32 1.0, %v3815_v0  ;;  %v570_v46 = vsub.f32 %v3025_v21, %v4179_v9  ;;  %v703_v56 = vmul.f32 %v4316_v3, %v569_v54 }
  0xab   : > { %v1343_v45 = vadd.f32 1.0, %v3817_v15  ;;  %3842 = vpow2.f32 %v2562_v24  ;;  %v2567_v7 = vmul.f32 -1.442695, %v4970_v22  ;;  %v3029_v52 = vunpack.c.h.bf16 %v3496_v60 }
  0xac   : > { %v3819_v27 = vpop.eup %3818  ;;  %3844 = vrcp.f32 %v1342_v48  ;;  %v704_v34 = vmul.f32 %v4316_v3, %v570_v46  ;;  %v4979_v11 = vadd.f32 %v4868_v2, %v703_v56  ;;  %v571_v40 = vsub.f32 %v3028_v5, %v4179_v9  ;;  %v3499_v48 = vld [vmem:[%s4175_s28 + $0x130] sm:$0xff]  }
  0xad   : > { %v3821_v50 = vpop.eup %3820  ;;  %v1714_v8 = vmul.f32 %v3819_v27, %v4771_v13  ;;  %3846 = vrcp.f32 %v1343_v45  ;;  %v572_v41 = vsub.f32 %v3029_v52, %v4179_v9  ;;  %v3032_v33 = vunpack.c.l.bf16 %v3497_v23 }
  0xae   : > { %v3823_v24 = vpop.eup %3822  ;;  %v1715_v14 = vmul.f32 %v3821_v50, %v4774_v62  ;;  %3848 = vpow2.f32 %v4948_v61  ;;  %v4987_v44 = vadd.f32 %v4868_v2, %v704_v34  ;;  %v2568_v20 = vmul.f32 -1.442695, %v4979_v11 }
  0xaf   : > { %v3825_v59 = vpop.eup %3824  ;;  %v1716_v10 = vmul.f32 %v3823_v24, %v4806_v4  ;;  %3850 = vpow2.f32 %v2564_v57  ;;  %v705_v13 = vmul.f32 %v4316_v3, %v571_v40  ;;  %v706_v17 = vmul.f32 %v4316_v3, %v572_v41 }
  0xb0   : > { %v3827_v37 = vpop.eup %3826  ;;  %v3265_v35 = vpack.c.bf16 %v1715_v14, %v1714_v8  ;;  %v1717_v62 = vmul.f32 %v3825_v59, %v4810_v36  ;;  %3852 = vpow2.f32 %v2565_v39  ;;  %v2569_v61 = vmul.f32 -1.442695, %v4987_v44  ;;  %v3498_v39 = vld [vmem:[%s4175_s28 + $0x128] sm:$0xff]  }
  0xb1   : > { %v3829_v58 = vpop.eup %3828  ;;  %v1718_v25 = vmul.f32 %v3827_v37, %v4827_v1  ;;  %3854 = vpow2.f32 %v2566_v63  ;;  %v4997_v4 = vadd.f32 %v4868_v2, %v705_v13  ;;  %v5000_v57 = vadd.f32 %v4868_v2, %v706_v17 }
  0xb2   : > { %v3831_v32 = vpop.eup %3830  ;;  %3548 = vst [vmem:[%s4582_s10 + $0xc0] sm:$0xff] %v3265_v35   ;;  %v3270_v60 = vpack.c.bf16 %v1717_v62, %v1716_v10  ;;  %v1719_v29 = vmul.f32 %v3829_v58, %v4831_v49  ;;  %3856 = vpow2.f32 %v2567_v7  ;;  %v3033_v36 = vunpack.c.h.bf16 %v3497_v23 }
  0xb3   : > { %v3833_v38 = vpop.eup %3832  ;;  %v1720_v1 = vmul.f32 %v3831_v32, %v4844_v26  ;;  %3858 = vpow2.f32 %v2568_v20  ;;  %v2570_v31 = vmul.f32 -1.442695, %v4997_v4  ;;  %v2571_v30 = vmul.f32 -1.442695, %v5000_v57 }
  0xb4   : > { %v3835_v21 = vpop.eup %3834  ;;  %3549 = vst [vmem:[%s4582_s10 + $0xc8] sm:$0xff] %v3270_v60   ;;  %v3275_v54 = vpack.c.bf16 %v1719_v29, %v1718_v25  ;;  %v1721_v0 = vmul.f32 %v3833_v38, %v4847_v42  ;;  %3860 = vpow2.f32 %v2569_v61  ;;  %v573_v49 = vsub.f32 %v3032_v33, %v4179_v9 }
  0xb5   : > { %v3837_v63 = vpop.eup %3836  ;;  %v1722_v5 = vmul.f32 %v3835_v21, %v4861_v51  ;;  %3862 = vpow2.f32 %v2570_v31  ;;  %v574_v26 = vsub.f32 %v3033_v36, %v4179_v9  ;;  %v3036_v15 = vunpack.c.l.bf16 %v3498_v39  ;;  %v3500_v36 = vld [vmem:[%s4175_s28 + $0x138] sm:$0xff]  }
  0xb6   : > { %v3839_v46 = vpop.eup %3838  ;;  %3550 = vst [vmem:[%s4582_s10 + $0xd0] sm:$0xff] %v3275_v54   ;;  %v3280_v56 = vpack.c.bf16 %v1721_v0, %v1720_v1  ;;  %v1723_v23 = vmul.f32 %v3837_v63, %v4871_v12  ;;  %3864 = vpow2.f32 %v2571_v30  ;;  %v707_v42 = vmul.f32 %v4316_v3, %v573_v49 }
  0xb7   : > { %v3841_v45 = vpop.eup %3840  ;;  %v1724_v7 = vmul.f32 %v3839_v46, %v4885_v18  ;;  %v708_v51 = vmul.f32 %v4316_v3, %v574_v26  ;;  %v3037_v52 = vunpack.c.h.bf16 %v3498_v39  ;;  %v575_v27 = vsub.f32 %v3036_v15, %v4179_v9 }
  0xb8   : > { %v3843_v34 = vpop.eup %3842  ;;  %3551 = vst [vmem:[%s4582_s10 + $0xd8] sm:$0xff] %v3280_v56   ;;  %v3285_v40 = vpack.c.bf16 %v1723_v23, %v1722_v5  ;;  %v1725_v50 = vmul.f32 %v3841_v45, %v4890_v55  ;;  %v5023_v8 = vadd.f32 %v4868_v2, %v707_v42  ;;  %v3040_v12 = vunpack.c.l.bf16 %v3499_v48 }
  0xb9   : > { %v3845_v41 = vpop.eup %3844  ;;  %v1344_v33 = vadd.f32 1.0, %v3843_v34  ;;  %v5026_v18 = vadd.f32 %v4868_v2, %v708_v51  ;;  %v576_v24 = vsub.f32 %v3037_v52, %v4179_v9  ;;  %v709_v14 = vmul.f32 %v4316_v3, %v575_v27  ;;  %v3501_v51 = vld [vmem:[%s4175_s28 + $0x140] sm:$0xff]  }
  0xba   : > { %v3847_v20 = vpop.eup %3846  ;;  %3552 = vst [vmem:[%s4582_s10 + $0xe0] sm:$0xff] %v3285_v40   ;;  %v3290_v59 = vpack.c.bf16 %v1725_v50, %v1724_v7  ;;  %v1726_v10 = vmul.f32 %v3845_v41, %v4916_v28  ;;  %v2572_v55 = vmul.f32 -1.442695, %v5023_v8  ;;  %v3041_v13 = vunpack.c.h.bf16 %v3499_v48  ;;  %v3502_v50 = vld [vmem:[%s4175_s28 + $0x148] sm:$0xff]  }
  0xbb   : > { %v3849_v17 = vpop.eup %3848  ;;  %v1727_v37 = vmul.f32 %v3847_v20, %v4920_v53  ;;  %3866 = vrcp.f32 %v1344_v33  ;;  %v2573_v35 = vmul.f32 -1.442695, %v5026_v18  ;;  %v710_v62 = vmul.f32 %v4316_v3, %v576_v24 }
  0xbc   : > { %v3851_v61 = vpop.eup %3850  ;;  %3553 = vst [vmem:[%s4582_s10 + $0xe8] sm:$0xff] %v3290_v59   ;;  %v1345_v58 = vadd.f32 1.0, %v3849_v17  ;;  %3868 = vpow2.f32 %v2572_v55  ;;  %v5038_v25 = vadd.f32 %v4868_v2, %v709_v14  ;;  %v577_v28 = vsub.f32 %v3040_v12, %v4179_v9 }
  0xbd   : > { %v3853_v32 = vpop.eup %3852  ;;  %v3295_v60 = vpack.c.bf16 %v1727_v37, %v1726_v10  ;;  %v1346_v29 = vadd.f32 1.0, %v3851_v61  ;;  %3870 = vpow2.f32 %v2573_v35  ;;  %v5042_v53 = vadd.f32 %v4868_v2, %v710_v62 }
  0xbe   : > { %v3855_v39 = vpop.eup %3854  ;;  %3872 = vrcp.f32 %v1345_v58  ;;  %v1347_v38 = vadd.f32 1.0, %v3853_v32  ;;  %v2574_v1 = vmul.f32 -1.442695, %v5038_v25  ;;  %v578_v31 = vsub.f32 %v3041_v13, %v4179_v9 }
  0xbf   : > { %v3857_v30 = vpop.eup %3856  ;;  %3554 = vst [vmem:[%s4582_s10 + $0xf0] sm:$0xff] %v3295_v60   ;;  %3874 = vrcp.f32 %v1346_v29  ;;  %v1348_v21 = vadd.f32 1.0, %v3855_v39  ;;  %v2575_v54 = vmul.f32 -1.442695, %v5042_v53  ;;  %v711_v0 = vmul.f32 %v4316_v3, %v577_v28 }
  0xc0   : > { %v3859_v49 = vpop.eup %3858  ;;  %3876 = vrcp.f32 %v1347_v38  ;;  %v1349_v63 = vadd.f32 1.0, %v3857_v30  ;;  %v712_v5 = vmul.f32 %v4316_v3, %v578_v31  ;;  %v3044_v26 = vunpack.c.l.bf16 %v3500_v36 }
  0xc1   : > { %v3861_v15 = vpop.eup %3860  ;;  %3878 = vrcp.f32 %v1348_v21  ;;  %v1350_v48 = vadd.f32 1.0, %v3859_v49  ;;  %v5052_v46 = vadd.f32 %v4868_v2, %v711_v0  ;;  %v3045_v56 = vunpack.c.h.bf16 %v3500_v36 }
  0xc2   : > { %v3863_v23 = vpop.eup %3862  ;;  %3880 = vrcp.f32 %v1349_v63  ;;  %v1351_v42 = vadd.f32 1.0, %v3861_v15  ;;  %v5055_v45 = vadd.f32 %v4868_v2, %v712_v5  ;;  %v579_v7 = vsub.f32 %v3044_v26, %v4179_v9 }
  0xc3   : > { %v3865_v52 = vpop.eup %3864  ;;  %3882 = vrcp.f32 %v1350_v48  ;;  %v1352_v27 = vadd.f32 1.0, %v3863_v23  ;;  %v2576_v34 = vmul.f32 -1.442695, %v5052_v46  ;;  %v580_v40 = vsub.f32 %v3045_v56, %v4179_v9  ;;  %v3503_v56 = vld [vmem:[%s4175_s28 + $0x150] sm:$0xff]  }
  0xc4   : > { %3884 = vrcp.f32 %v1351_v42  ;;  %v1353_v12 = vadd.f32 1.0, %v3865_v52  ;;  %v2577_v41 = vmul.f32 -1.442695, %v5055_v45  ;;  %v713_v33 = vmul.f32 %v4316_v3, %v579_v7 }
  0xc5   : > { %3886 = vrcp.f32 %v1352_v27  ;;  %v714_v24 = vmul.f32 %v4316_v3, %v580_v40  ;;  %v3048_v14 = vunpack.c.l.bf16 %v3501_v51  ;;  %v3049_v20 = vunpack.c.h.bf16 %v3501_v51  ;;  %v3504_v51 = vld [vmem:[%s4175_s28 + $0x158] sm:$0xff]  }
  0xc6   : > { %3888 = vrcp.f32 %v1353_v12  ;;  %v5066_v59 = vadd.f32 %v4868_v2, %v713_v33  ;;  %v3052_v10 = vunpack.c.l.bf16 %v3502_v50  ;;  %v3053_v55 = vunpack.c.h.bf16 %v3502_v50 }
  0xc7   : > { %3890 = vpow2.f32 %v2574_v1  ;;  %v5069_v13 = vadd.f32 %v4868_v2, %v714_v24  ;;  %v581_v17 = vsub.f32 %v3048_v14, %v4179_v9  ;;  %v582_v37 = vsub.f32 %v3049_v20, %v4179_v9  ;;  %v3505_v14 = vld [vmem:[%s4175_s28 + $0x160] sm:$0xff]  }
  0xc8   : > { %v3867_v35 = vpop.eup %3866  ;;  %3892 = vpow2.f32 %v2575_v54  ;;  %v2578_v62 = vmul.f32 -1.442695, %v5066_v59  ;;  %v583_v61 = vsub.f32 %v3052_v10, %v4179_v9  ;;  %v584_v58 = vsub.f32 %v3053_v55, %v4179_v9 }
  0xc9   : > { %v3869_v28 = vpop.eup %3868  ;;  %v1728_v32 = vmul.f32 %v3867_v35, %v4935_v6  ;;  %3894 = vpow2.f32 %v2576_v34  ;;  %v2579_v60 = vmul.f32 -1.442695, %v5069_v13  ;;  %v715_v29 = vmul.f32 %v4316_v3, %v581_v17 }
  0xca   : > { %v3871_v36 = vpop.eup %3870  ;;  %v1354_v39 = vadd.f32 1.0, %v3869_v28  ;;  %3896 = vpow2.f32 %v2577_v41  ;;  %v716_v38 = vmul.f32 %v4316_v3, %v582_v37  ;;  %v717_v1 = vmul.f32 %v4316_v3, %v583_v61 }
  0xcb   : > { %v3873_v31 = vpop.eup %3872  ;;  %v1355_v30 = vadd.f32 1.0, %v3871_v36  ;;  %3898 = vpow2.f32 %v2578_v62  ;;  %v5082_v21 = vadd.f32 %v4868_v2, %v715_v29  ;;  %v718_v6 = vmul.f32 %v4316_v3, %v584_v58 }
  0xcc   : > { %v3875_v54 = vpop.eup %3874  ;;  %v1729_v0 = vmul.f32 %v3873_v31, %v4941_v16  ;;  %3900 = vrcp.f32 %v1354_v39  ;;  %v5087_v49 = vadd.f32 %v4868_v2, %v716_v38  ;;  %v5090_v63 = vadd.f32 %v4868_v2, %v717_v1 }
  0xcd   : > { %v3877_v5 = vpop.eup %3876  ;;  %v1730_v26 = vmul.f32 %v3875_v54, %v4952_v19  ;;  %3902 = vrcp.f32 %v1355_v30  ;;  %v2580_v15 = vmul.f32 -1.442695, %v5082_v21  ;;  %v5095_v48 = vadd.f32 %v4868_v2, %v718_v6 }
  0xce   : > { %v3879_v23 = vpop.eup %3878  ;;  %v3300_v16 = vpack.c.bf16 %v1729_v0, %v1728_v32  ;;  %v1731_v42 = vmul.f32 %v3877_v5, %v4957_v47  ;;  %3904 = vpow2.f32 %v2579_v60  ;;  %v2581_v7 = vmul.f32 -1.442695, %v5087_v49 }
  0xcf   : > { %v3881_v52 = vpop.eup %3880  ;;  %v1732_v19 = vmul.f32 %v3879_v23, %v4966_v43  ;;  %3906 = vpow2.f32 %v2580_v15  ;;  %v2582_v27 = vmul.f32 -1.442695, %v5090_v63  ;;  %v2583_v34 = vmul.f32 -1.442695, %v5095_v48 }
  0xd0   : > { %v3883_v40 = vpop.eup %3882  ;;  %3555 = vst [vmem:[%s4582_s10 + $0xf8] sm:$0xff] %v3300_v16   ;;  %v3305_v50 = vpack.c.bf16 %v1731_v42, %v1730_v26  ;;  %v1733_v12 = vmul.f32 %v3881_v52, %v4970_v22  ;;  %3908 = vpow2.f32 %v2581_v7  ;;  %v3056_v47 = vunpack.c.l.bf16 %v3503_v56  ;;  %v3506_v52 = vld [vmem:[%s4175_s28 + $0x168] sm:$0xff]  }
  0xd1   : > { %v3885_v41 = vpop.eup %3884  ;;  %v1734_v33 = vmul.f32 %v3883_v40, %v4979_v11  ;;  %3910 = vpow2.f32 %v2582_v27  ;;  %v3057_v24 = vunpack.c.h.bf16 %v3503_v56  ;;  %v3060_v43 = vunpack.c.l.bf16 %v3504_v51 }
  0xd2   : > { %v3887_v20 = vpop.eup %3886  ;;  %3556 = vst [vmem:[%s4582_s10 + $0x100] sm:$0xff] %v3305_v50   ;;  %v3310_v10 = vpack.c.bf16 %v1733_v12, %v1732_v19  ;;  %v1735_v55 = vmul.f32 %v3885_v41, %v4987_v44  ;;  %3912 = vpow2.f32 %v2583_v34  ;;  %v585_v17 = vsub.f32 %v3056_v47, %v4179_v9 }
  0xd3   : > { %v3889_v37 = vpop.eup %3888  ;;  %v1736_v22 = vmul.f32 %v3887_v20, %v4997_v4  ;;  %v586_v35 = vsub.f32 %v3057_v24, %v4179_v9  ;;  %v3061_v11 = vunpack.c.h.bf16 %v3504_v51  ;;  %v587_v62 = vsub.f32 %v3060_v43, %v4179_v9 }
  0xd4   : > { %v3891_v61 = vpop.eup %3890  ;;  %3557 = vst [vmem:[%s4582_s10 + $0x108] sm:$0xff] %v3310_v10   ;;  %v3315_v58 = vpack.c.bf16 %v1735_v55, %v1734_v33  ;;  %v1737_v28 = vmul.f32 %v3889_v37, %v5000_v57  ;;  %v719_v32 = vmul.f32 %v4316_v3, %v585_v17  ;;  %v3064_v44 = vunpack.c.l.bf16 %v3505_v14 }
  0xd5   : > { %v3893_v60 = vpop.eup %3892  ;;  %v1356_v29 = vadd.f32 1.0, %v3891_v61  ;;  %v720_v36 = vmul.f32 %v4316_v3, %v586_v35  ;;  %v588_v4 = vsub.f32 %v3061_v11, %v4179_v9  ;;  %v721_v39 = vmul.f32 %v4316_v3, %v587_v62  ;;  %v3507_v35 = vld [vmem:[%s4175_s28 + $0x170] sm:$0xff]  }
  0xd6   : > { %v3895_v38 = vpop.eup %3894  ;;  %3558 = vst [vmem:[%s4582_s10 + $0x110] sm:$0xff] %v3315_v58   ;;  %v3320_v1 = vpack.c.bf16 %v1737_v28, %v1736_v22  ;;  %v1357_v31 = vadd.f32 1.0, %v3893_v60  ;;  %v5122_v30 = vadd.f32 %v4868_v2, %v719_v32  ;;  %v3065_v57 = vunpack.c.h.bf16 %v3505_v14  ;;  %v3508_v28 = vld [vmem:[%s4175_s28 + $0x178] sm:$0xff]  }
  0xd7   : > { %v3897_v6 = vpop.eup %3896  ;;  %3914 = vrcp.f32 %v1356_v29  ;;  %v1358_v54 = vadd.f32 1.0, %v3895_v38  ;;  %v5125_v0 = vadd.f32 %v4868_v2, %v720_v36  ;;  %v722_v5 = vmul.f32 %v4316_v3, %v588_v4 }
  0xd8   : > { %v3899_v26 = vpop.eup %3898  ;;  %3559 = vst [vmem:[%s4582_s10 + $0x118] sm:$0xff] %v3320_v1   ;;  %3916 = vrcp.f32 %v1357_v31  ;;  %v1359_v15 = vadd.f32 1.0, %v3897_v6  ;;  %v2584_v56 = vmul.f32 -1.442695, %v5122_v30  ;;  %v5131_v23 = vadd.f32 %v4868_v2, %v721_v39 }
  0xd9   : > { %v3901_v16 = vpop.eup %3900  ;;  %3918 = vrcp.f32 %v1358_v54  ;;  %v1360_v42 = vadd.f32 1.0, %v3899_v26  ;;  %v2585_v7 = vmul.f32 -1.442695, %v5125_v0  ;;  %v5135_v51 = vadd.f32 %v4868_v2, %v722_v5 }
  0xda   : > { %v3903_v19 = vpop.eup %3902  ;;  %v1738_v27 = vmul.f32 %v3901_v16, %v5023_v8  ;;  %3920 = vrcp.f32 %v1359_v15  ;;  %v2586_v34 = vmul.f32 -1.442695, %v5131_v23  ;;  %v589_v40 = vsub.f32 %v3064_v44, %v4179_v9 }
  0xdb   : > { %v3905_v50 = vpop.eup %3904  ;;  %v1739_v12 = vmul.f32 %v3903_v19, %v5026_v18  ;;  %3922 = vrcp.f32 %v1360_v42  ;;  %v2587_v47 = vmul.f32 -1.442695, %v5135_v51  ;;  %v590_v41 = vsub.f32 %v3065_v57, %v4179_v9 }
  0xdc   : > { %v3907_v33 = vpop.eup %3906  ;;  %v1361_v24 = vadd.f32 1.0, %v3905_v50  ;;  %3924 = vpow2.f32 %v2584_v56  ;;  %v723_v8 = vmul.f32 %v4316_v3, %v589_v40  ;;  %v3068_v43 = vunpack.c.l.bf16 %v3506_v52 }
  0xdd   : > { %v3909_v14 = vpop.eup %3908  ;;  %v3325_v20 = vpack.c.bf16 %v1739_v12, %v1738_v27  ;;  %v1362_v10 = vadd.f32 1.0, %v3907_v33  ;;  %3926 = vpow2.f32 %v2585_v7  ;;  %v724_v18 = vmul.f32 %v4316_v3, %v590_v41 }
  0xde   : > { %v3911_v55 = vpop.eup %3910  ;;  %3928 = vrcp.f32 %v1361_v24  ;;  %v1363_v17 = vadd.f32 1.0, %v3909_v14  ;;  %v5147_v37 = vadd.f32 %v4868_v2, %v723_v8  ;;  %v3069_v22 = vunpack.c.h.bf16 %v3506_v52 }
  0xdf   : > { %v3913_v11 = vpop.eup %3912  ;;  %3560 = vst [vmem:[%s4582_s10 + $0x120] sm:$0xff] %v3325_v20   ;;  %3930 = vrcp.f32 %v1362_v10  ;;  %v1364_v62 = vadd.f32 1.0, %v3911_v55  ;;  %v5152_v61 = vadd.f32 %v4868_v2, %v724_v18  ;;  %v591_v58 = vsub.f32 %v3068_v43, %v4179_v9 }
  0xe0   : > { %3932 = vrcp.f32 %v1363_v17  ;;  %v1365_v32 = vadd.f32 1.0, %v3913_v11  ;;  %v2588_v44 = vmul.f32 -1.442695, %v5147_v37  ;;  %v592_v60 = vsub.f32 %v3069_v22, %v4179_v9 }
  0xe1   : > { %3934 = vrcp.f32 %v1364_v62  ;;  %v2589_v29 = vmul.f32 -1.442695, %v5152_v61  ;;  %v725_v36 = vmul.f32 %v4316_v3, %v591_v58  ;;  %v3072_v4 = vunpack.c.l.bf16 %v3507_v35 }
  0xe2   : > { %3936 = vrcp.f32 %v1365_v32  ;;  %v726_v39 = vmul.f32 %v4316_v3, %v592_v60  ;;  %v3073_v38 = vunpack.c.h.bf16 %v3507_v35  ;;  %v3076_v1 = vunpack.c.l.bf16 %v3508_v28 }
  0xe3   : > { %3938 = vpow2.f32 %v2586_v34  ;;  %v5162_v31 = vadd.f32 %v4868_v2, %v725_v36  ;;  %v593_v57 = vsub.f32 %v3072_v4, %v4179_v9  ;;  %v3077_v6 = vunpack.c.h.bf16 %v3508_v28 }
  0xe4   : > { %v3915_v54 = vpop.eup %3914  ;;  %3940 = vpow2.f32 %v2587_v47  ;;  %v5166_v5 = vadd.f32 %v4868_v2, %v726_v39  ;;  %v594_v26 = vsub.f32 %v3073_v38, %v4179_v9  ;;  %v595_v15 = vsub.f32 %v3076_v1, %v4179_v9  ;;  %v3509_v47 = vld [vmem:[%s4175_s28 + $0x180] sm:$0xff]  }
  0xe5   : > { %v3917_v56 = vpop.eup %3916  ;;  %v1740_v16 = vmul.f32 %v3915_v54, %v5038_v25  ;;  %3942 = vpow2.f32 %v2588_v44  ;;  %v2590_v42 = vmul.f32 -1.442695, %v5162_v31  ;;  %v727_v7 = vmul.f32 %v4316_v3, %v593_v57  ;;  %v3510_v44 = vld [vmem:[%s4175_s28 + $0x188] sm:$0xff]   ;;  %v3511_v54 = vld [vmem:[%s4175_s28 + $0x190] sm:$0xff]  }
  0xe6   : > { %v3919_v52 = vpop.eup %3918  ;;  %v1741_v19 = vmul.f32 %v3917_v56, %v5042_v53  ;;  %3944 = vpow2.f32 %v2589_v29  ;;  %v2591_v27 = vmul.f32 -1.442695, %v5166_v5  ;;  %v728_v34 = vmul.f32 %v4316_v3, %v594_v26 }
  0xe7   : > { %v3921_v40 = vpop.eup %3920  ;;  %v1742_v50 = vmul.f32 %v3919_v52, %v5052_v46  ;;  %3946 = vpow2.f32 %v2590_v42  ;;  %v5178_v25 = vadd.f32 %v4868_v2, %v727_v7  ;;  %v596_v12 = vsub.f32 %v3077_v6, %v4179_v9 }
  0xe8   : > { %v3923_v41 = vpop.eup %3922  ;;  %v3330_v33 = vpack.c.bf16 %v1741_v19, %v1740_v16  ;;  %v1743_v53 = vmul.f32 %v3921_v40, %v5055_v45  ;;  %3948 = vpow2.f32 %v2591_v27  ;;  %v5184_v24 = vadd.f32 %v4868_v2, %v728_v34 }
  0xe9   : > { %v3925_v8 = vpop.eup %3924  ;;  %v1744_v43 = vmul.f32 %v3923_v41, %v5066_v59  ;;  %v2592_v46 = vmul.f32 -1.442695, %v5178_v25  ;;  %v729_v14 = vmul.f32 %v4316_v3, %v595_v15  ;;  %v730_v20 = vmul.f32 %v4316_v3, %v596_v12 }
  0xea   : > { %v3927_v10 = vpop.eup %3926  ;;  %3561 = vst [vmem:[%s4582_s10 + $0x128] sm:$0xff] %v3330_v33   ;;  %v3335_v18 = vpack.c.bf16 %v1743_v53, %v1742_v50  ;;  %v1366_v55 = vadd.f32 1.0, %v3925_v8  ;;  %v2593_v45 = vmul.f32 -1.442695, %v5184_v24  ;;  %v3080_v17 = vunpack.c.l.bf16 %v3509_v47 }
  0xeb   : > { %v3929_v22 = vpop.eup %3928  ;;  %v1367_v35 = vadd.f32 1.0, %v3927_v10  ;;  %3950 = vpow2.f32 %v2592_v46  ;;  %v5193_v59 = vadd.f32 %v4868_v2, %v729_v14  ;;  %v5196_v11 = vadd.f32 %v4868_v2, %v730_v20  ;;  %v3512_v14 = vld [vmem:[%s4175_s28 + $0x198] sm:$0xff]  }
  0xec   : > { %v3931_v62 = vpop.eup %3930  ;;  %3562 = vst [vmem:[%s4582_s10 + $0x130] sm:$0xff] %v3335_v18   ;;  %v1745_v58 = vmul.f32 %v3929_v22, %v5069_v13  ;;  %3952 = vrcp.f32 %v1366_v55  ;;  %v3081_v28 = vunpack.c.h.bf16 %v3509_v47  ;;  %v597_v32 = vsub.f32 %v3080_v17, %v4179_v9 }
  0xed   : > { %v3933_v60 = vpop.eup %3932  ;;  %v1746_v29 = vmul.f32 %v3931_v62, %v5082_v21  ;;  %3954 = vrcp.f32 %v1367_v35  ;;  %v2594_v36 = vmul.f32 -1.442695, %v5193_v59  ;;  %v2595_v2 = vmul.f32 -1.442695, %v5196_v11 }
  0xee   : > { %v3935_v4 = vpop.eup %3934  ;;  %v3340_v39 = vpack.c.bf16 %v1745_v58, %v1744_v43  ;;  %v1747_v38 = vmul.f32 %v3933_v60, %v5087_v49  ;;  %3956 = vpow2.f32 %v2593_v45  ;;  %v598_v13 = vsub.f32 %v3081_v28, %v4179_v9 }
  0xef   : > { %v3937_v1 = vpop.eup %3936  ;;  %v1748_v57 = vmul.f32 %v3935_v4, %v5090_v63  ;;  %3958 = vpow2.f32 %v2594_v36  ;;  %v731_v6 = vmul.f32 %v4316_v3, %v597_v32  ;;  %v3084_v21 = vunpack.c.l.bf16 %v3510_v44  ;;  %v5216_v63 = vld [vmem:[%s5494_s4] ss:$0 sm:$0xff] }
  0xf0   : > { %v3939_v26 = vpop.eup %3938  ;;  %3563 = vst [vmem:[%s4582_s10 + $0x138] sm:$0xff] %v3340_v39   ;;  %v3345_v15 = vpack.c.bf16 %v1747_v38, %v1746_v29  ;;  %v1749_v56 = vmul.f32 %v3937_v1, %v5095_v48  ;;  %3960 = vpow2.f32 %v2595_v2  ;;  %v732_v49 = vmul.f32 %v4316_v3, %v598_v13 }
  0xf1   : > { %v3941_v16 = vpop.eup %3940  ;;  %v1368_v42 = vadd.f32 1.0, %v3939_v26  ;;  %v5219_v7 = vadd.f32 %v5216_v63, %v731_v6  ;;  %v3085_v52 = vunpack.c.h.bf16 %v3510_v44  ;;  %v599_v19 = vsub.f32 %v3084_v21, %v4179_v9 }
  0xf2   : > { %v3943_v27 = vpop.eup %3942  ;;  %3564 = vst [vmem:[%s4582_s10 + $0x140] sm:$0xff] %v3345_v15   ;;  %v3350_v48 = vpack.c.bf16 %v1749_v56, %v1748_v57  ;;  %v1369_v34 = vadd.f32 1.0, %v3941_v16  ;;  %v5224_v40 = vadd.f32 %v5216_v63, %v732_v49  ;;  %v3088_v50 = vunpack.c.l.bf16 %v3511_v54  ;;  %v3513_v49 = vld [vmem:[%s4175_s28 + $0x1a0] sm:$0xff]   ;;  %v3514_v16 = vld [vmem:[%s4175_s28 + $0x1a8] sm:$0xff]  }
  0xf3   : > { %v3945_v12 = vpop.eup %3944  ;;  %3962 = vrcp.f32 %v1368_v42  ;;  %v1370_v47 = vadd.f32 1.0, %v3943_v27  ;;  %v2596_v41 = vmul.f32 -1.442695, %v5219_v7  ;;  %v600_v33 = vsub.f32 %v3085_v52, %v4179_v9 }
  0xf4   : > { %v3947_v53 = vpop.eup %3946  ;;  %3565 = vst [vmem:[%s4582_s10 + $0x148] sm:$0xff] %v3350_v48   ;;  %3964 = vrcp.f32 %v1369_v34  ;;  %v1371_v8 = vadd.f32 1.0, %v3945_v12  ;;  %v2597_v43 = vmul.f32 -1.442695, %v5224_v40  ;;  %v733_v46 = vmul.f32 %v4316_v3, %v599_v19 }
  0xf5   : > { %v3949_v20 = vpop.eup %3948  ;;  %3966 = vrcp.f32 %v1370_v47  ;;  %v1372_v10 = vadd.f32 1.0, %v3947_v53  ;;  %v734_v18 = vmul.f32 %v4316_v3, %v600_v33  ;;  %v3089_v55 = vunpack.c.h.bf16 %v3511_v54 }
  0xf6   : > { %3968 = vrcp.f32 %v1371_v8  ;;  %v1373_v45 = vadd.f32 1.0, %v3949_v20  ;;  %v5234_v17 = vadd.f32 %v5216_v63, %v733_v46  ;;  %v601_v22 = vsub.f32 %v3088_v50, %v4179_v9 }
  0xf7   : > { %3970 = vrcp.f32 %v1372_v10  ;;  %v5238_v35 = vadd.f32 %v5216_v63, %v734_v18  ;;  %v602_v62 = vsub.f32 %v3089_v55, %v4179_v9  ;;  %v3092_v58 = vunpack.c.l.bf16 %v3512_v14 }
  0xf8   : > { %v3951_v28 = vpop.eup %3950  ;;  %3972 = vrcp.f32 %v1373_v45  ;;  %v2598_v32 = vmul.f32 -1.442695, %v5234_v17  ;;  %v735_v44 = vmul.f32 %v4316_v3, %v601_v22  ;;  %v3093_v60 = vunpack.c.h.bf16 %v3512_v14 }
  0xf9   : > { %v3953_v29 = vpop.eup %3952  ;;  %v1374_v36 = vadd.f32 1.0, %v3951_v28  ;;  %3974 = vpow2.f32 %v2596_v41  ;;  %v2599_v2 = vmul.f32 -1.442695, %v5238_v35  ;;  %v736_v4 = vmul.f32 %v4316_v3, %v602_v62  ;;  %v3515_v28 = vld [vmem:[%s4175_s28 + $0x1b0] sm:$0xff]  }
  0xfa   : > { %v3955_v39 = vpop.eup %3954  ;;  %v1750_v38 = vmul.f32 %v3953_v29, %v5122_v30  ;;  %3976 = vpow2.f32 %v2597_v43  ;;  %v5247_v13 = vadd.f32 %v5216_v63, %v735_v44  ;;  %v603_v1 = vsub.f32 %v3092_v58, %v4179_v9 }
  0xfb   : > { %v3957_v57 = vpop.eup %3956  ;;  %v1751_v6 = vmul.f32 %v3955_v39, %v5125_v0  ;;  %3978 = vrcp.f32 %v1374_v36  ;;  %v5252_v21 = vadd.f32 %v5216_v63, %v736_v4  ;;  %v604_v54 = vsub.f32 %v3093_v60, %v4179_v9 }
  0xfc   : > { %v3959_v26 = vpop.eup %3958  ;;  %v1375_v15 = vadd.f32 1.0, %v3957_v57  ;;  %3980 = vpow2.f32 %v2598_v32  ;;  %v2600_v30 = vmul.f32 -1.442695, %v5247_v13  ;;  %v737_v56 = vmul.f32 %v4316_v3, %v603_v1 }
  0xfd   : > { %v3961_v42 = vpop.eup %3960  ;;  %v3355_v52 = vpack.c.bf16 %v1751_v6, %v1750_v38  ;;  %v1376_v19 = vadd.f32 1.0, %v3959_v26  ;;  %3982 = vpow2.f32 %v2599_v2  ;;  %v2601_v0 = vmul.f32 -1.442695, %v5252_v21 }
  0xfe   : > { %3984 = vrcp.f32 %v1375_v15  ;;  %v1377_v27 = vadd.f32 1.0, %v3961_v42  ;;  %v738_v48 = vmul.f32 %v4316_v3, %v604_v54  ;;  %v5262_v34 = vadd.f32 %v5216_v63, %v737_v56  ;;  %v3516_v42 = vld [vmem:[%s4175_s28 + $0x1b8] sm:$0xff]  }
  0xff   : > { %3566 = vst [vmem:[%s4582_s10 + $0x150] sm:$0xff] %v3355_v52   ;;  %3986 = vrcp.f32 %v1376_v19  ;;  %v3096_v50 = vunpack.c.l.bf16 %v3513_v49  ;;  %v3097_v12 = vunpack.c.h.bf16 %v3513_v49  ;;  %v3100_v47 = vunpack.c.l.bf16 %v3514_v16 }
 0x100   : > { %v3963_v41 = vpop.eup %3962  ;;  %3988 = vrcp.f32 %v1377_v27  ;;  %v5266_v33 = vadd.f32 %v5216_v63, %v738_v48  ;;  %v2602_v53 = vmul.f32 -1.442695, %v5262_v34  ;;  %v3101_v8 = vunpack.c.h.bf16 %v3514_v16 }
 0x101   : > { %v3965_v43 = vpop.eup %3964  ;;  %v1752_v46 = vmul.f32 %v3963_v41, %v5131_v23  ;;  %3990 = vpow2.f32 %v2600_v30  ;;  %v605_v14 = vsub.f32 %v3096_v50, %v4179_v9  ;;  %v606_v20 = vsub.f32 %v3097_v12, %v4179_v9 }
 0x102   : > { %v3967_v10 = vpop.eup %3966  ;;  %v1753_v18 = vmul.f32 %v3965_v43, %v5135_v51  ;;  %3992 = vpow2.f32 %v2601_v0  ;;  %v2603_v55 = vmul.f32 -1.442695, %v5266_v33  ;;  %v607_v45 = vsub.f32 %v3100_v47, %v4179_v9 }
 0x103   : > { %v3969_v22 = vpop.eup %3968  ;;  %v1754_v62 = vmul.f32 %v3967_v10, %v5147_v37  ;;  %3994 = vpow2.f32 %v2602_v53  ;;  %v739_v23 = vmul.f32 %v4316_v3, %v605_v14  ;;  %v740_v58 = vmul.f32 %v4316_v3, %v606_v20 }
 0x104   : > { %v3971_v32 = vpop.eup %3970  ;;  %v3360_v44 = vpack.c.bf16 %v1753_v18, %v1752_v46  ;;  %v1755_v60 = vmul.f32 %v3969_v22, %v5152_v61  ;;  %3996 = vpow2.f32 %v2603_v55  ;;  %v608_v51 = vsub.f32 %v3101_v8, %v4179_v9 }
 0x105   : > { %v3973_v29 = vpop.eup %3972  ;;  %v1756_v36 = vmul.f32 %v3971_v32, %v5162_v31  ;;  %v5283_v37 = vadd.f32 %v5216_v63, %v739_v23  ;;  %v5286_v2 = vadd.f32 %v5216_v63, %v740_v58  ;;  %v741_v4 = vmul.f32 %v4316_v3, %v607_v45 }
 0x106   : > { %v3975_v39 = vpop.eup %3974  ;;  %3567 = vst [vmem:[%s4582_s10 + $0x158] sm:$0xff] %v3360_v44   ;;  %v3365_v38 = vpack.c.bf16 %v1755_v60, %v1754_v62  ;;  %v1757_v61 = vmul.f32 %v3973_v29, %v5166_v5  ;;  %v742_v1 = vmul.f32 %v4316_v3, %v608_v51  ;;  %v3104_v57 = vunpack.c.l.bf16 %v3515_v28  ;;  %v3517_v44 = vld [vmem:[%s4175_s28 + $0x1c0] sm:$0xff]  }
 0x107   : > { %v3977_v6 = vpop.eup %3976  ;;  %v1378_v31 = vadd.f32 1.0, %v3975_v39  ;;  %v2604_v54 = vmul.f32 -1.442695, %v5283_v37  ;;  %v2605_v26 = vmul.f32 -1.442695, %v5286_v2  ;;  %v5295_v15 = vadd.f32 %v5216_v63, %v741_v4 }
 0x108   : > { %v3979_v30 = vpop.eup %3978  ;;  %3568 = vst [vmem:[%s4582_s10 + $0x160] sm:$0xff] %v3365_v38   ;;  %v3370_v56 = vpack.c.bf16 %v1757_v61, %v1756_v36  ;;  %v1379_v49 = vadd.f32 1.0, %v3977_v6  ;;  %v5299_v16 = vadd.f32 %v5216_v63, %v742_v1  ;;  %v3105_v5 = vunpack.c.h.bf16 %v3515_v28  ;;  %v3518_v36 = vld [vmem:[%s4175_s28 + $0x1c8] sm:$0xff]  }
 0x109   : > { %v3981_v52 = vpop.eup %3980  ;;  %v1758_v19 = vmul.f32 %v3979_v30, %v5178_v25  ;;  %3998 = vrcp.f32 %v1378_v31  ;;  %v2606_v0 = vmul.f32 -1.442695, %v5295_v15  ;;  %v609_v27 = vsub.f32 %v3104_v57, %v4179_v9 }
 0x10a   : > { %v3983_v48 = vpop.eup %3982  ;;  %3569 = vst [vmem:[%s4582_s10 + $0x168] sm:$0xff] %v3370_v56   ;;  %4000 = vrcp.f32 %v1379_v49  ;;  %v1380_v50 = vadd.f32 1.0, %v3981_v52  ;;  %v2607_v12 = vmul.f32 -1.442695, %v5299_v16  ;;  %v610_v47 = vsub.f32 %v3105_v5, %v4179_v9  ;;  %v3519_v5 = vld [vmem:[%s4175_s28 + $0x1d0] sm:$0xff]  }
 0x10b   : > { %v3985_v41 = vpop.eup %3984  ;;  %v1381_v53 = vadd.f32 1.0, %v3983_v48  ;;  %4002 = vpow2.f32 %v2604_v54  ;;  %v743_v8 = vmul.f32 %v4316_v3, %v609_v27  ;;  %v3108_v43 = vunpack.c.l.bf16 %v3516_v42 }
 0x10c   : > { %v3987_v25 = vpop.eup %3986  ;;  %v1759_v46 = vmul.f32 %v3985_v41, %v5184_v24  ;;  %4004 = vrcp.f32 %v1380_v50  ;;  %v744_v14 = vmul.f32 %v4316_v3, %v610_v47  ;;  %v3109_v20 = vunpack.c.h.bf16 %v3516_v42 }
 0x10d   : > { %v3989_v10 = vpop.eup %3988  ;;  %v1760_v18 = vmul.f32 %v3987_v25, %v5193_v59  ;;  %4006 = vrcp.f32 %v1381_v53  ;;  %v5313_v55 = vadd.f32 %v5216_v63, %v743_v8  ;;  %v611_v45 = vsub.f32 %v3108_v43, %v4179_v9 }
 0x10e   : > { %v3991_v22 = vpop.eup %3990  ;;  %v3375_v62 = vpack.c.bf16 %v1759_v46, %v1758_v19  ;;  %v1761_v24 = vmul.f32 %v3989_v10, %v5196_v11  ;;  %4008 = vpow2.f32 %v2605_v26  ;;  %v5318_v23 = vadd.f32 %v5216_v63, %v744_v14 }
 0x10f   : > { %v3993_v58 = vpop.eup %3992  ;;  %v1382_v28 = vadd.f32 1.0, %v3991_v22  ;;  %4010 = vpow2.f32 %v2606_v0  ;;  %v2608_v59 = vmul.f32 -1.442695, %v5313_v55  ;;  %v612_v32 = vsub.f32 %v3109_v20, %v4179_v9 }
 0x110   : > { %v3995_v60 = vpop.eup %3994  ;;  %3570 = vst [vmem:[%s4582_s10 + $0x170] sm:$0xff] %v3375_v62   ;;  %v3380_v51 = vpack.c.bf16 %v1761_v24, %v1760_v18  ;;  %v1383_v29 = vadd.f32 1.0, %v3993_v58  ;;  %4012 = vpow2.f32 %v2607_v12  ;;  %v2609_v11 = vmul.f32 -1.442695, %v5318_v23 }
 0x111   : > { %v3997_v4 = vpop.eup %3996  ;;  %4014 = vrcp.f32 %v1382_v28  ;;  %v1384_v39 = vadd.f32 1.0, %v3995_v60  ;;  %v745_v38 = vmul.f32 %v4316_v3, %v611_v45  ;;  %v746_v61 = vmul.f32 %v4316_v3, %v612_v32 }
 0x112   : > { %3571 = vst [vmem:[%s4582_s10 + $0x178] sm:$0xff] %v3380_v51   ;;  %4016 = vrcp.f32 %v1383_v29  ;;  %v1385_v1 = vadd.f32 1.0, %v3997_v4  ;;  %v3112_v57 = vunpack.c.l.bf16 %v3517_v44  ;;  %v3113_v6 = vunpack.c.h.bf16 %v3517_v44  ;;  %v3520_v29 = vld [vmem:[%s4175_s28 + $0x1d8] sm:$0xff]  }
 0x113   : > { %4018 = vrcp.f32 %v1384_v39  ;;  %v5330_v31 = vadd.f32 %v5216_v63, %v745_v38  ;;  %v5333_v54 = vadd.f32 %v5216_v63, %v746_v61  ;;  %v3116_v26 = vunpack.c.l.bf16 %v3518_v36 }
 0x114   : > { %4020 = vrcp.f32 %v1385_v1  ;;  %v613_v30 = vsub.f32 %v3112_v57, %v4179_v9  ;;  %v614_v56 = vsub.f32 %v3113_v6, %v4179_v9  ;;  %v3117_v49 = vunpack.c.h.bf16 %v3518_v36 }
 0x115   : > { %4022 = vpow2.f32 %v2608_v59  ;;  %v2610_v42 = vmul.f32 -1.442695, %v5330_v31  ;;  %v2611_v52 = vmul.f32 -1.442695, %v5333_v54  ;;  %v615_v19 = vsub.f32 %v3116_v26, %v4179_v9 }
 0x116   : > { %v3999_v0 = vpop.eup %3998  ;;  %4024 = vpow2.f32 %v2609_v11  ;;  %v747_v27 = vmul.f32 %v4316_v3, %v613_v30  ;;  %v748_v48 = vmul.f32 %v4316_v3, %v614_v56  ;;  %v616_v50 = vsub.f32 %v3117_v49, %v4179_v9 }
 0x117   : > { %v4001_v12 = vpop.eup %4000  ;;  %v1762_v47 = vmul.f32 %v3999_v0, %v5219_v7  ;;  %4026 = vpow2.f32 %v2610_v42  ;;  %v749_v41 = vmul.f32 %v4316_v3, %v615_v19  ;;  %v3120_v53 = vunpack.c.l.bf16 %v3519_v5 }
 0x118   : > { %v4003_v8 = vpop.eup %4002  ;;  %v1763_v43 = vmul.f32 %v4001_v12, %v5224_v40  ;;  %4028 = vpow2.f32 %v2611_v52  ;;  %v5348_v25 = vadd.f32 %v5216_v63, %v747_v27  ;;  %v5351_v46 = vadd.f32 %v5216_v63, %v748_v48  ;;  %v3521_v27 = vld [vmem:[%s4175_s28 + $0x1e0] sm:$0xff]  }
 0x119   : > { %v4005_v14 = vpop.eup %4004  ;;  %v1386_v20 = vadd.f32 1.0, %v4003_v8  ;;  %v750_v10 = vmul.f32 %v4316_v3, %v616_v50  ;;  %v5355_v7 = vadd.f32 %v5216_v63, %v749_v41  ;;  %v3121_v18 = vunpack.c.h.bf16 %v3519_v5 }
 0x11a   : > { %v4007_v45 = vpop.eup %4006  ;;  %v3385_v22 = vpack.c.bf16 %v1763_v43, %v1762_v47  ;;  %v1764_v40 = vmul.f32 %v4005_v14, %v5234_v17  ;;  %v2612_v62 = vmul.f32 -1.442695, %v5348_v25  ;;  %v2613_v24 = vmul.f32 -1.442695, %v5351_v46 }
 0x11b   : > { %v4009_v58 = vpop.eup %4008  ;;  %v1765_v28 = vmul.f32 %v4007_v45, %v5238_v35  ;;  %4030 = vrcp.f32 %v1386_v20  ;;  %v5362_v59 = vadd.f32 %v5216_v63, %v750_v10  ;;  %v2614_v32 = vmul.f32 -1.442695, %v5355_v7 }
 0x11c   : > { %v4011_v44 = vpop.eup %4010  ;;  %3572 = vst [vmem:[%s4582_s10 + $0x180] sm:$0xff] %v3385_v22   ;;  %v1387_v60 = vadd.f32 1.0, %v4009_v58  ;;  %4032 = vpow2.f32 %v2612_v62  ;;  %v617_v17 = vsub.f32 %v3120_v53, %v4179_v9  ;;  %v618_v51 = vsub.f32 %v3121_v18, %v4179_v9 }
 0x11d   : > { %v4013_v11 = vpop.eup %4012  ;;  %v3390_v36 = vpack.c.bf16 %v1765_v28, %v1764_v40  ;;  %v1388_v4 = vadd.f32 1.0, %v4011_v44  ;;  %4034 = vpow2.f32 %v2613_v24  ;;  %v2615_v35 = vmul.f32 -1.442695, %v5362_v59  ;;  %v3523_v28 = vld [vmem:[%s4175_s28 + $0x1f0] sm:$0xff]  }
 0x11e   : > { %v4015_v39 = vpop.eup %4014  ;;  %4036 = vrcp.f32 %v1387_v60  ;;  %v1389_v38 = vadd.f32 1.0, %v4013_v11  ;;  %v751_v61 = vmul.f32 %v4316_v3, %v617_v17  ;;  %v752_v1 = vmul.f32 %v4316_v3, %v618_v51 }
 0x11f   : > { %v4017_v57 = vpop.eup %4016  ;;  %3573 = vst [vmem:[%s4582_s10 + $0x188] sm:$0xff] %v3390_v36   ;;  %v1766_v6 = vmul.f32 %v4015_v39, %v5247_v13  ;;  %4038 = vrcp.f32 %v1388_v4  ;;  %v3124_v26 = vunpack.c.l.bf16 %v3520_v29  ;;  %v3125_v30 = vunpack.c.h.bf16 %v3520_v29 }
 0x120   : > { %v4019_v56 = vpop.eup %4018  ;;  %v1767_v49 = vmul.f32 %v4017_v57, %v5252_v21  ;;  %4040 = vrcp.f32 %v1389_v38  ;;  %v5376_v5 = vadd.f32 %v5216_v63, %v751_v61  ;;  %v5379_v42 = vadd.f32 %v5216_v63, %v752_v1 }
 0x121   : > { %v4021_v52 = vpop.eup %4020  ;;  %v1768_v19 = vmul.f32 %v4019_v56, %v5262_v34  ;;  %4042 = vpow2.f32 %v2614_v32  ;;  %v619_v13 = vsub.f32 %v3124_v26, %v4179_v9  ;;  %v620_v0 = vsub.f32 %v3125_v30, %v4179_v9 }
 0x122   : > { %v4023_v48 = vpop.eup %4022  ;;  %v3395_v21 = vpack.c.bf16 %v1767_v49, %v1766_v6  ;;  %v1769_v50 = vmul.f32 %v4021_v52, %v5266_v33  ;;  %4044 = vpow2.f32 %v2615_v35  ;;  %v2616_v12 = vmul.f32 -1.442695, %v5376_v5  ;;  %v3522_v33 = vld [vmem:[%s4175_s28 + $0x1e8] sm:$0xff]  }
 0x123   : > { %v4025_v47 = vpop.eup %4024  ;;  %v1390_v41 = vadd.f32 1.0, %v4023_v48  ;;  %v2617_v34 = vmul.f32 -1.442695, %v5379_v42  ;;  %v753_v53 = vmul.f32 %v4316_v3, %v619_v13  ;;  %v754_v8 = vmul.f32 %v4316_v3, %v620_v0 }
 0x124   : > { %v4027_v43 = vpop.eup %4026  ;;  %3574 = vst [vmem:[%s4582_s10 + $0x190] sm:$0xff] %v3395_v21   ;;  %v3400_v14 = vpack.c.bf16 %v1769_v50, %v1768_v19  ;;  %v1391_v20 = vadd.f32 1.0, %v4025_v47  ;;  %4046 = vpow2.f32 %v2616_v12  ;;  %v3128_v10 = vunpack.c.l.bf16 %v3521_v27  ;;  %v3524_v47 = vld [vmem:[%s4175_s28 + $0x1f8] sm:$0xff]  }
 0x125   : > { %v4029_v18 = vpop.eup %4028  ;;  %4048 = vrcp.f32 %v1390_v41  ;;  %v1392_v45 = vadd.f32 1.0, %v4027_v43  ;;  %v5393_v22 = vadd.f32 %v5216_v63, %v753_v53  ;;  %v5396_v40 = vadd.f32 %v5216_v63, %v754_v8 }
 0x126   : > { %3575 = vst [vmem:[%s4582_s10 + $0x198] sm:$0xff] %v3400_v14   ;;  %4050 = vrcp.f32 %v1391_v20  ;;  %v1393_v62 = vadd.f32 1.0, %v4029_v18  ;;  %v3129_v24 = vunpack.c.h.bf16 %v3521_v27  ;;  %v621_v58 = vsub.f32 %v3128_v10, %v4179_v9 }
 0x127   : > { %4052 = vrcp.f32 %v1392_v45  ;;  %v2618_v32 = vmul.f32 -1.442695, %v5393_v22  ;;  %v2619_v44 = vmul.f32 -1.442695, %v5396_v40  ;;  %v3132_v60 = vunpack.c.l.bf16 %v3522_v33 }
 0x128   : > { %v4031_v17 = vpop.eup %4030  ;;  %4054 = vrcp.f32 %v1393_v62  ;;  %v622_v51 = vsub.f32 %v3129_v24, %v4179_v9  ;;  %v755_v29 = vmul.f32 %v4316_v3, %v621_v58  ;;  %v3133_v11 = vunpack.c.h.bf16 %v3522_v33 }
 0x129   : > { %v4033_v36 = vpop.eup %4032  ;;  %v1770_v4 = vmul.f32 %v4031_v17, %v5283_v37  ;;  %4056 = vpow2.f32 %v2617_v34  ;;  %v623_v35 = vsub.f32 %v3132_v60, %v4179_v9  ;;  %v3136_v39 = vunpack.c.l.bf16 %v3523_v28 }
 0x12a   : > { %v4035_v38 = vpop.eup %4034  ;;  %v1394_v61 = vadd.f32 1.0, %v4033_v36  ;;  %4058 = vpow2.f32 %v2618_v32  ;;  %v756_v1 = vmul.f32 %v4316_v3, %v622_v51  ;;  %v5409_v57 = vadd.f32 %v5216_v63, %v755_v29 }
 0x12b   : > { %v4037_v6 = vpop.eup %4036  ;;  %v1395_v26 = vadd.f32 1.0, %v4035_v38  ;;  %4060 = vpow2.f32 %v2619_v44  ;;  %v624_v30 = vsub.f32 %v3133_v11, %v4179_v9  ;;  %v757_v56 = vmul.f32 %v4316_v3, %v623_v35 }
 0x12c   : > { %v4039_v37 = vpop.eup %4038  ;;  %v1771_v49 = vmul.f32 %v4037_v6, %v5286_v2  ;;  %4062 = vrcp.f32 %v1394_v61  ;;  %v5415_v52 = vadd.f32 %v5216_v63, %v756_v1  ;;  %v2620_v19 = vmul.f32 -1.442695, %v5409_v57 }
 0x12d   : > { %v4041_v13 = vpop.eup %4040  ;;  %v1772_v0 = vmul.f32 %v4039_v37, %v5295_v15  ;;  %4064 = vrcp.f32 %v1395_v26  ;;  %v758_v27 = vmul.f32 %v4316_v3, %v624_v30  ;;  %v5421_v48 = vadd.f32 %v5216_v63, %v757_v56 }
 0x12e   : > { %v4043_v21 = vpop.eup %4042  ;;  %v3405_v50 = vpack.c.bf16 %v1771_v49, %v1770_v4  ;;  %v1773_v2 = vmul.f32 %v4041_v13, %v5299_v16  ;;  %4066 = vpow2.f32 %v2620_v19  ;;  %v2621_v12 = vmul.f32 -1.442695, %v5415_v52 }
 0x12f   : > { %v4045_v41 = vpop.eup %4044  ;;  %v1396_v34 = vadd.f32 1.0, %v4043_v21  ;;  %v5427_v53 = vadd.f32 %v5216_v63, %v758_v27  ;;  %v2622_v15 = vmul.f32 -1.442695, %v5421_v48  ;;  %v3137_v8 = vunpack.c.h.bf16 %v3523_v28 }
 0x130   : > { %3576 = vst [vmem:[%s4582_s10 + $0x1a0] sm:$0xff] %v3405_v50   ;;  %v3410_v43 = vpack.c.bf16 %v1773_v2, %v1772_v0  ;;  %v1397_v14 = vadd.f32 1.0, %v4045_v41  ;;  %4068 = vpow2.f32 %v2621_v12  ;;  %v625_v20 = vsub.f32 %v3136_v39, %v4179_v9 }
 0x131   : > { %v4047_v16 = vpop.eup %4046  ;;  %4070 = vrcp.f32 %v1396_v34  ;;  %v2623_v10 = vmul.f32 -1.442695, %v5427_v53  ;;  %v626_v33 = vsub.f32 %v3137_v8, %v4179_v9  ;;  %v3140_v18 = vunpack.c.l.bf16 %v3524_v47 }
 0x132   : > { %v4049_v45 = vpop.eup %4048  ;;  %3577 = vst [vmem:[%s4582_s10 + $0x1a8] sm:$0xff] %v3410_v43   ;;  %4072 = vrcp.f32 %v1397_v14  ;;  %v1398_v62 = vadd.f32 1.0, %v4047_v16  ;;  %v759_v24 = vmul.f32 %v4316_v3, %v625_v20  ;;  %v3141_v58 = vunpack.c.h.bf16 %v3524_v47 }
 0x133   : > { %v4051_v28 = vpop.eup %4050  ;;  %v1774_v32 = vmul.f32 %v4049_v45, %v5313_v55  ;;  %4074 = vpow2.f32 %v2622_v15  ;;  %v760_v44 = vmul.f32 %v4316_v3, %v626_v33  ;;  %v627_v60 = vsub.f32 %v3140_v18, %v4179_v9 }
 0x134   : > { %v4053_v17 = vpop.eup %4052  ;;  %v1775_v51 = vmul.f32 %v4051_v28, %v5318_v23  ;;  %4076 = vrcp.f32 %v1398_v62  ;;  %v5441_v29 = vadd.f32 %v5216_v63, %v759_v24  ;;  %v628_v11 = vsub.f32 %v3141_v58, %v4179_v9 }
 0x135   : > { %v4055_v36 = vpop.eup %4054  ;;  %v1776_v4 = vmul.f32 %v4053_v17, %v5330_v31  ;;  %4078 = vpow2.f32 %v2623_v10  ;;  %v5446_v55 = vadd.f32 %v5216_v63, %v760_v44  ;;  %v761_v35 = vmul.f32 %v4316_v3, %v627_v60 }
 0x136   : > { %v4057_v39 = vpop.eup %4056  ;;  %v3415_v38 = vpack.c.bf16 %v1775_v51, %v1774_v32  ;;  %v1777_v23 = vmul.f32 %v4055_v36, %v5333_v54  ;;  %v2624_v61 = vmul.f32 -1.442695, %v5441_v29  ;;  %v762_v1 = vmul.f32 %v4316_v3, %v628_v11 }
 0x137   : > { %v4059_v9 = vpop.eup %4058  ;;  %v1399_v6 = vadd.f32 1.0, %v4057_v39  ;;  %v2625_v26 = vmul.f32 -1.442695, %v5446_v55  ;;  %v5454_v31 = vadd.f32 %v5216_v63, %v761_v35 }
 0x138   : > { %v4061_v30 = vpop.eup %4060  ;;  %3578 = vst [vmem:[%s4582_s10 + $0x1b0] sm:$0xff] %v3415_v38   ;;  %v3420_v56 = vpack.c.bf16 %v1777_v23, %v1776_v4  ;;  %v1400_v37 = vadd.f32 1.0, %v4059_v9  ;;  %4080 = vpow2.f32 %v2624_v61  ;;  %v5458_v49 = vadd.f32 %v5216_v63, %v762_v1 }
 0x139   : > { %v4063_v54 = vpop.eup %4062  ;;  %4082 = vrcp.f32 %v1399_v6  ;;  %v1401_v19 = vadd.f32 1.0, %v4061_v30  ;;  %v2626_v3 = vmul.f32 -1.442695, %v5454_v31 }
 0x13a   : > { %v4065_v13 = vpop.eup %4064  ;;  %3579 = vst [vmem:[%s4582_s10 + $0x1b8] sm:$0xff] %v3420_v56   ;;  %v1778_v0 = vmul.f32 %v4063_v54, %v5348_v25  ;;  %4084 = vrcp.f32 %v1400_v37  ;;  %v2627_v50 = vmul.f32 -1.442695, %v5458_v49 }
 0x13b   : > { %v4067_v27 = vpop.eup %4066  ;;  %v1779_v21 = vmul.f32 %v4065_v13, %v5351_v46  ;;  %4086 = vrcp.f32 %v1401_v19 }
 0x13c   : > { %v1402_v2 = vadd.f32 1.0, %v4067_v27  ;;  %4088 = vpow2.f32 %v2625_v26 }
 0x13d   : > { %v4069_v63 = vpop.eup %4068  ;;  %v3425_v12 = vpack.c.bf16 %v1779_v21, %v1778_v0  ;;  %4090 = vpow2.f32 %v2626_v3 }
 0x13e   : > { %v4071_v47 = vpop.eup %4070  ;;  %v1403_v41 = vadd.f32 1.0, %v4069_v63  ;;  %4092 = vrcp.f32 %v1402_v2 }
 0x13f   : > { %v4073_v34 = vpop.eup %4072  ;;  %3580 = vst [vmem:[%s4582_s10 + $0x1c0] sm:$0xff] %v3425_v12   ;;  %v1780_v25 = vmul.f32 %v4071_v47, %v5355_v7  ;;  %4094 = vpow2.f32 %v2627_v50 }
 0x140   : > { %v4075_v15 = vpop.eup %4074  ;;  %v1781_v46 = vmul.f32 %v4073_v34, %v5362_v59  ;;  %4096 = vrcp.f32 %v1403_v41 }
 0x141   : > { %v4077_v8 = vpop.eup %4076  ;;  %v1404_v43 = vadd.f32 1.0, %v4075_v15 }
 0x142   : > { %v4079_v14 = vpop.eup %4078  ;;  %v3430_v20 = vpack.c.bf16 %v1781_v46, %v1780_v25  ;;  %v1782_v33 = vmul.f32 %v4077_v8, %v5376_v5 }
 0x143   : > { %v1405_v16 = vadd.f32 1.0, %v4079_v14  ;;  %4098 = vrcp.f32 %v1404_v43 }
 0x144   : > { %3581 = vst [vmem:[%s4582_s10 + $0x1c8] sm:$0xff] %v3430_v20  }
 0x145   : > { %v4081_v10 = vpop.eup %4080  ;;  %4100 = vrcp.f32 %v1405_v16 }
 0x146   : > { %v4083_v18 = vpop.eup %4082  ;;  %v1406_v45 = vadd.f32 1.0, %v4081_v10 }
 0x147   : > { %v4085_v7 = vpop.eup %4084  ;;  %v1783_v62 = vmul.f32 %v4083_v18, %v5379_v42 }
 0x148   : > { %v4087_v24 = vpop.eup %4086  ;;  %v1784_v59 = vmul.f32 %v4085_v7, %v5393_v22  ;;  %4102 = vrcp.f32 %v1406_v45 }
 0x149   : > { %v4089_v58 = vpop.eup %4088  ;;  %v3435_v28 = vpack.c.bf16 %v1783_v62, %v1782_v33  ;;  %v1785_v32 = vmul.f32 %v4087_v24, %v5396_v40 }
 0x14a   : > { %v4091_v44 = vpop.eup %4090  ;;  %v1407_v60 = vadd.f32 1.0, %v4089_v58 }
 0x14b   : > { %v4093_v17 = vpop.eup %4092  ;;  %3582 = vst [vmem:[%s4582_s10 + $0x1d0] sm:$0xff] %v3435_v28   ;;  %v3440_v5 = vpack.c.bf16 %v1785_v32, %v1784_v59  ;;  %v1408_v51 = vadd.f32 1.0, %v4091_v44 }
 0x14c   : > { %v4095_v11 = vpop.eup %4094  ;;  %v1786_v36 = vmul.f32 %v4093_v17, %v5409_v57  ;;  %4104 = vrcp.f32 %v1407_v60 }
 0x14d   : > { %v4097_v42 = vpop.eup %4096  ;;  %3583 = vst [vmem:[%s4582_s10 + $0x1d8] sm:$0xff] %v3440_v5   ;;  %v1409_v22 = vadd.f32 1.0, %v4095_v11  ;;  %4106 = vrcp.f32 %v1408_v51 }
 0x14e   : > { %v1787_v4 = vmul.f32 %v4097_v42, %v5415_v52 }
 0x14f   : > { %4108 = vrcp.f32 %v1409_v22 }
 0x150   : > { %v4099_v40 = vpop.eup %4098  ;;  %v3445_v35 = vpack.c.bf16 %v1787_v4, %v1786_v36 }
 0x151   : > { %v1788_v39 = vmul.f32 %v4099_v40, %v5421_v48 }
 0x152   : > { %v4101_v38 = vpop.eup %4100  ;;  %3584 = vst [vmem:[%s4582_s10 + $0x1e0] sm:$0xff] %v3445_v35  }
 0x153   : > { %v1789_v23 = vmul.f32 %v4101_v38, %v5427_v53 }
 0x155   : > { %v4103_v57 = vpop.eup %4102  ;;  %v3450_v61 = vpack.c.bf16 %v1789_v23, %v1788_v39 }
 0x156   : > { %v1790_v1 = vmul.f32 %v4103_v57, %v5441_v29 }
 0x157   : > { %3585 = vst [vmem:[%s4582_s10 + $0x1e8] sm:$0xff] %v3450_v61  }
 0x159   : > { %v4105_v9 = vpop.eup %4104 }
 0x15a   : > { %v4107_v6 = vpop.eup %4106  ;;  %v1791_v52 = vmul.f32 %v4105_v9, %v5446_v55 }
 0x15b   : > { %v1792_v26 = vmul.f32 %v4107_v6, %v5454_v31 }
 0x15c   : > { %v4109_v30 = vpop.eup %4108  ;;  %v3455_v56 = vpack.c.bf16 %v1791_v52, %v1790_v1 }
 0x15d   : > { %v1793_v48 = vmul.f32 %v4109_v30, %v5458_v49 }
 0x15e   : > { %3586 = vst [vmem:[%s4582_s10 + $0x1f0] sm:$0xff] %v3455_v56  }
 0x15f   : > { %v3460_v37 = vpack.c.bf16 %v1793_v48, %v1792_v26 }
 0x161   : > { %3587 = vst [vmem:[%s4582_s10 + $0x1f8] sm:$0xff] %v3460_v37  }
 0x162 PF: > { %s15_s18 = sadd.s32 1, %s4118_s18  }
 0x163   : > { %p12_p4 = scmp.ge.s32.totalorder %s15_s18, 4  }
 0x165   :  { %14 = sbr.rel (!%p12_p4) target bundleno = 1 (0x1), region = 70 }

</bundles_post_ra>
